<compile_context>
chip_gen: v6e
topology: v6e:2x2x1
jax: 0.10.0
libtpu: 0.0.40
codegen_flags: <defaults>
</compile_context>

<pallas_src>
import functools

import jax
import jax.numpy as jnp
from jax.experimental import pallas as pl
from jax.experimental.pallas import tpu as pltpu


# ----------------------------------------------------------------------------
# Fused kernel: Q/K projections + folded V-through-head projection +
#               multi-head cross-attention (one vectorized softmax) +
#               pooled-logit accumulation + 2-way softmax.
# Runs once (no grid); every operand lives whole in VMEM.
# ----------------------------------------------------------------------------
def _fused_kernel(xq_ref, xk_ref, wq_ref, wk_ref, bq_ref, bk_ref,
                  wvf_ref, bfold_ref, out_ref,
                  *, batch, lq, lk, nhead, head_dim):
    f32 = jnp.float32

    # Q/K projections: bf16 x bf16 MXU matmuls, f32 accumulation.
    q = jnp.dot(xq_ref[...], wq_ref[...], preferred_element_type=f32) + bq_ref[...]
    k = jnp.dot(xk_ref[...], wk_ref[...], preferred_element_type=f32) + bk_ref[...]

    # V projection folded through (wo @ w_out): (B*Lk, 2*nhead).  Replaces the
    # (D, D) V weight and the (D, D) out-projection of the original module.
    v2 = jnp.dot(xk_ref[...], wvf_ref[...], preferred_element_type=f32)

    # Attention scores for every (batch, head) pair, stacked into a single
    # (B*nhead*Lq, Lk) block so max/exp/sum/div run as one vector pass instead
    # of B*nhead serial tiny softmax chains.
    scale = 1.0 / (head_dim ** 0.5)
    s_tiles = []
    for b in range(batch):
        q_b = q[b * lq:(b + 1) * lq, :]                       # (Lq, D)
        k_b = k[b * lk:(b + 1) * lk, :]                       # (Lk, D)
        for h in range(nhead):
            lo = h * head_dim
            s_tiles.append(jax.lax.dot_general(
                q_b[:, lo:lo + head_dim], k_b[:, lo:lo + head_dim],
                (((1,), (1,)), ((), ())), preferred_element_type=f32))
    s = jnp.concatenate(s_tiles, axis=0) * scale              # (B*nhead*Lq, Lk)
    s = s - jnp.max(s, axis=-1, keepdims=True)
    p = jnp.exp(s)
    p = p / jnp.sum(p, axis=-1, keepdims=True)

    # Mean-pool over Lq (== AdaptiveAvgPool2d((1, 1024)) when D == 1024)
    # commutes with the folded, 2-wide PV matmul: accumulate pooled logits
    # directly; the per-position attention output is never materialized.
    inv_lq = 1.0 / lq
    for b in range(batch):
        v2_b = v2[b * lk:(b + 1) * lk, :]                     # (Lk, 2*nhead)
        acc = jnp.zeros((lq, 2), dtype=f32)
        for h in range(nhead):
            r0 = (b * nhead + h) * lq
            p_bh = p[r0:r0 + lq, :]                           # (Lq, Lk)
            acc = acc + jnp.dot(p_bh, v2_b[:, 2 * h:2 * h + 2],
                                preferred_element_type=f32)   # (Lq, 2)
        logits = jnp.sum(acc, axis=0, keepdims=True) * inv_lq + bfold_ref[...]
        logits = logits - jnp.max(logits, axis=1, keepdims=True)
        e = jnp.exp(logits)
        out_ref[b:b + 1, :] = e / jnp.sum(e, axis=1, keepdims=True)


# ----------------------------------------------------------------------------
# One-time parameter preprocessing (weight-load time, not per forward call).
# ----------------------------------------------------------------------------
def prepare_params(params, *, nhead):
    d = params["wq"].shape[0]
    assert d % nhead == 0
    hd = d // nhead
    w_fold = params["wo"] @ params["w_out"]                              # (D, 2)
    # Per-head fold of the V projection through the output head.
    wvf = jnp.concatenate(
        [params["wv"][:, h * hd:(h + 1) * hd] @ w_fold[h * hd:(h + 1) * hd, :]
         for h in range(nhead)], axis=1)                                 # (D, 2*nhead)
    b_fold = (params["bv"] @ params["wo"] + params["bo"]) @ params["w_out"] \
        + params["b_out"]                                                # (1, 2)
    return {
        "wq": params["wq"].astype(jnp.bfloat16),    # (D, D)   bf16
        "wk": params["wk"].astype(jnp.bfloat16),    # (D, D)   bf16
        "bq": params["bq"],                         # (1, D)   f32
        "bk": params["bk"],                         # (1, D)   f32
        "wvf": wvf.astype(jnp.bfloat16),            # (D, 2*nhead) bf16
        "b_fold": b_fold,                           # (1, 2)   f32
    }


# ----------------------------------------------------------------------------
# Wrapper
# ----------------------------------------------------------------------------
def cross_attention_weight_predictor(emb_txt, emb_img, folded, *, nhead):
    B, Lq, D = emb_txt.shape
    Bk, Lk, Dk = emb_img.shape
    assert Bk == B and Dk == D
    # AdaptiveAvgPool2d((1, 1024)) == mean over Lq only when D == 1024.
    assert D == 1024, "module semantics require D == 1024"
    assert D % nhead == 0
    head_dim = D // nhead
    # Alignment assumptions of the in-kernel static slices.
    assert head_dim % 128 == 0 and Lq % 8 == 0 and Lk % 8 == 0, \
        "kernel assumes (8,128)-aligned per-(batch,head) tiles"

    # Flatten batch into rows and stream activations in bf16.
    xq = emb_txt.reshape(B * Lq, D).astype(jnp.bfloat16)
    xk = emb_img.reshape(B * Lk, D).astype(jnp.bfloat16)

    kernel = functools.partial(_fused_kernel, batch=B, lq=Lq, lk=Lk,
                               nhead=nhead, head_dim=head_dim)

    flops = (2 * B * Lq * D * D                     # Q projection
             + 2 * B * Lk * D * D                   # K projection
             + 2 * B * Lk * D * (2 * nhead)         # folded V-through-head
             + 2 * B * nhead * Lq * Lk * head_dim   # QK^T scores
             + 2 * B * nhead * Lq * Lk * 2)         # folded PV
    bytes_accessed = (xq.size * 2 + xk.size * 2
                      + folded["wq"].size * 2 + folded["wk"].size * 2
                      + folded["wvf"].size * 2
                      + folded["bq"].size * 4 + folded["bk"].size * 4
                      + folded["b_fold"].size * 4 + B * 2 * 4)
    cost = pl.CostEstimate(flops=flops,
                           transcendentals=B * nhead * Lq * Lk + B * 2,
                           bytes_accessed=bytes_accessed)

    vmem_spec = pl.BlockSpec(memory_space=pltpu.MemorySpace.VMEM)
    weights = pl.pallas_call(
        kernel,
        out_shape=jax.ShapeDtypeStruct((B, 2), jnp.float32),
        in_specs=[vmem_spec] * 8,
        out_specs=vmem_spec,
        compiler_params=pltpu.CompilerParams(vmem_limit_bytes=16 << 20),
        cost_estimate=cost,
    )(xq, xk, folded["wq"], folded["wk"], folded["bq"], folded["bk"],
      folded["wvf"], folded["b_fold"])

    # weights[:, 0].unsqueeze(1).unsqueeze(2), weights[:, 1].unsqueeze(1).unsqueeze(2)
    w0 = weights[:, 0][:, None, None]
    w1 = weights[:, 1][:, None, None]
    return w0, w1


# ----------------------------------------------------------------------------
# Pure-JAX f32 reference of the original module (unfolded, full precision).
# ----------------------------------------------------------------------------
def _reference(emb_txt, emb_img, params, nhead):
    B, Lq, D = emb_txt.shape
    _, Lk, _ = emb_img.shape
    hd = D // nhead
    q = emb_txt @ params["wq"] + params["bq"][0]
    k = emb_img @ params["wk"] + params["bk"][0]
    v = emb_img @ params["wv"] + params["bv"][0]
    qh = q.reshape(B, Lq, nhead, hd).transpose(0, 2, 1, 3)
    kh = k.reshape(B, Lk, nhead, hd).transpose(0, 2, 1, 3)
    vh = v.reshape(B, Lk, nhead, hd).transpose(0, 2, 1, 3)
    s = jnp.einsum("bhqd,bhkd->bhqk", qh, kh) / jnp.sqrt(jnp.float32(hd))
    p = jax.nn.softmax(s, axis=-1)
    o = jnp.einsum("bhqk,bhkd->bhqd", p, vh).transpose(0, 2, 1, 3).reshape(B, Lq, D)
    attn = o @ params["wo"] + params["bo"][0]
    pooled = attn.mean(axis=1)
    logits = pooled @ params["w_out"] + params["b_out"][0]
    w = jax.nn.softmax(logits, axis=1)
    return w[:, 0][:, None, None], w[:, 1][:, None, None]


if __name__ == "__main__":
    # dim must be 1024 for the module's Linear(dim, 2) after AdaptiveAvgPool2d((1, 1024)).
    dim, nhead = 1024, 8
    B, Lq, Lk = 2, 8, 8

    key = jax.random.PRNGKey(0)
    ks = jax.random.split(key, 12)
    sc = 0.02
    params = {
        "wq": sc * jax.random.normal(ks[0], (dim, dim), jnp.float32),
        "wk": sc * jax.random.normal(ks[1], (dim, dim), jnp.float32),
        "wv": sc * jax.random.normal(ks[2], (dim, dim), jnp.float32),
        "wo": sc * jax.random.normal(ks[3], (dim, dim), jnp.float32),
        "bq": sc * jax.random.normal(ks[4], (1, dim), jnp.float32),
        "bk": sc * jax.random.normal(ks[5], (1, dim), jnp.float32),
        "bv": sc * jax.random.normal(ks[6], (1, dim), jnp.float32),
        "bo": sc * jax.random.normal(ks[7], (1, dim), jnp.float32),
        "w_out": sc * jax.random.normal(ks[8], (dim, 2), jnp.float32),
        "b_out": sc * jax.random.normal(ks[9], (1, 2), jnp.float32),
    }
    emb_txt = jax.random.normal(ks[10], (B, Lq, dim), jnp.float32)
    emb_img = jax.random.normal(ks[11], (B, Lk, dim), jnp.float32)

    folded = prepare_params(params, nhead=nhead)   # one-time weight prep (fold + bf16)
    w0, w1 = cross_attention_weight_predictor(emb_txt, emb_img, folded, nhead=nhead)
    w0, w1 = jax.block_until_ready((w0, w1))

    r0, r1 = _reference(emb_txt, emb_img, params, nhead)
    assert w0.shape == (B, 1, 1) and w1.shape == (B, 1, 1)
    # bf16 streamed weights/activations (f32 accumulation) vs. the f32 module
    # reference -> relaxed tolerance; the softmax pair must still sum to 1.
    assert jnp.allclose(w0, r0, atol=5e-3, rtol=1e-2)
    assert jnp.allclose(w1, r1, atol=5e-3, rtol=1e-2)
    assert jnp.allclose(w0 + w1, jnp.ones_like(w0), atol=1e-5)

    print("KERNEL_OK")
</pallas_src>

<mosaic_0001>
module attributes {stable_mosaic.version = 11 : i64} {
  func.func @_fused_kernel(%arg0: memref<16x1024xbf16, #tpu.memory_space<vmem>>, %arg1: memref<16x1024xbf16, #tpu.memory_space<vmem>>, %arg2: memref<1024x1024xbf16, #tpu.memory_space<vmem>>, %arg3: memref<1024x1024xbf16, #tpu.memory_space<vmem>>, %arg4: memref<1x1024xf32, #tpu.memory_space<vmem>>, %arg5: memref<1x1024xf32, #tpu.memory_space<vmem>>, %arg6: memref<1024x16xbf16, #tpu.memory_space<vmem>>, %arg7: memref<1x2xf32, #tpu.memory_space<vmem>>, %arg8: memref<2x2xf32, #tpu.memory_space<vmem>>) attributes {dimension_semantics = [], scalar_prefetch = 0 : i64, scratch_operands = 0 : i64, tpu.core_type = #tpu.core_type<tc>} {
    %c0 = arith.constant 0 : index
    %c0_0 = arith.constant 0 : index
    %0 = vector.load %arg0[%c0, %c0_0] : memref<16x1024xbf16, #tpu.memory_space<vmem>>, vector<16x1024xbf16>
    %c0_1 = arith.constant 0 : index
    %c0_2 = arith.constant 0 : index
    %1 = vector.load %arg2[%c0_1, %c0_2] : memref<1024x1024xbf16, #tpu.memory_space<vmem>>, vector<1024x1024xbf16>
    %cst = arith.constant dense<0.000000e+00> : vector<16x1024xf32>
    %2 = tpu.matmul %0, %1, %cst {dimension_numbers = #tpu.dot_dimension_numbers<[1], [0], [0], [1], [0, 0, 1, 1], [], []>} : vector<16x1024xbf16>, vector<1024x1024xbf16>, vector<16x1024xf32> -> vector<16x1024xf32>
    %c0_3 = arith.constant 0 : index
    %c0_4 = arith.constant 0 : index
    %3 = vector.load %arg4[%c0_3, %c0_4] : memref<1x1024xf32, #tpu.memory_space<vmem>>, vector<1x1024xf32>
    %4 = vector.broadcast %3 : vector<1x1024xf32> to vector<16x1024xf32>
    %5 = arith.addf %2, %4 : vector<16x1024xf32>
    %c0_5 = arith.constant 0 : index
    %c0_6 = arith.constant 0 : index
    %6 = vector.load %arg1[%c0_5, %c0_6] : memref<16x1024xbf16, #tpu.memory_space<vmem>>, vector<16x1024xbf16>
    %c0_7 = arith.constant 0 : index
    %c0_8 = arith.constant 0 : index
    %7 = vector.load %arg3[%c0_7, %c0_8] : memref<1024x1024xbf16, #tpu.memory_space<vmem>>, vector<1024x1024xbf16>
    %cst_9 = arith.constant dense<0.000000e+00> : vector<16x1024xf32>
    %8 = tpu.matmul %6, %7, %cst_9 {dimension_numbers = #tpu.dot_dimension_numbers<[1], [0], [0], [1], [0, 0, 1, 1], [], []>} : vector<16x1024xbf16>, vector<1024x1024xbf16>, vector<16x1024xf32> -> vector<16x1024xf32>
    %c0_10 = arith.constant 0 : index
    %c0_11 = arith.constant 0 : index
    %9 = vector.load %arg5[%c0_10, %c0_11] : memref<1x1024xf32, #tpu.memory_space<vmem>>, vector<1x1024xf32>
    %10 = vector.broadcast %9 : vector<1x1024xf32> to vector<16x1024xf32>
    %11 = arith.addf %8, %10 : vector<16x1024xf32>
    %c0_12 = arith.constant 0 : index
    %c0_13 = arith.constant 0 : index
    %12 = vector.load %arg1[%c0_12, %c0_13] : memref<16x1024xbf16, #tpu.memory_space<vmem>>, vector<16x1024xbf16>
    %c0_14 = arith.constant 0 : index
    %c0_15 = arith.constant 0 : index
    %13 = vector.load %arg6[%c0_14, %c0_15] : memref<1024x16xbf16, #tpu.memory_space<vmem>>, vector<1024x16xbf16>
    %cst_16 = arith.constant dense<0.000000e+00> : vector<16x16xf32>
    %14 = tpu.matmul %12, %13, %cst_16 {dimension_numbers = #tpu.dot_dimension_numbers<[1], [0], [0], [1], [0, 0, 1, 1], [], []>} : vector<16x1024xbf16>, vector<1024x16xbf16>, vector<16x16xf32> -> vector<16x16xf32>
    %15 = vector.extract_strided_slice %5 {offsets = [0, 0], sizes = [8, 1024], strides = [1, 1]} : vector<16x1024xf32> to vector<8x1024xf32>
    %16 = vector.extract_strided_slice %11 {offsets = [0, 0], sizes = [8, 1024], strides = [1, 1]} : vector<16x1024xf32> to vector<8x1024xf32>
    %17 = vector.extract_strided_slice %15 {offsets = [0, 0], sizes = [8, 128], strides = [1, 1]} : vector<8x1024xf32> to vector<8x128xf32>
    %18 = vector.extract_strided_slice %16 {offsets = [0, 0], sizes = [8, 128], strides = [1, 1]} : vector<8x1024xf32> to vector<8x128xf32>
    %cst_17 = arith.constant dense<0.000000e+00> : vector<8x8xf32>
    %19 = tpu.matmul %17, %18, %cst_17 {dimension_numbers = #tpu.dot_dimension_numbers<[1], [1], [0], [0], [0, 0, 1, 0], [], []>} : vector<8x128xf32>, vector<8x128xf32>, vector<8x8xf32> -> vector<8x8xf32>
    %20 = vector.extract_strided_slice %15 {offsets = [0, 128], sizes = [8, 128], strides = [1, 1]} : vector<8x1024xf32> to vector<8x128xf32>
    %21 = vector.extract_strided_slice %16 {offsets = [0, 128], sizes = [8, 128], strides = [1, 1]} : vector<8x1024xf32> to vector<8x128xf32>
    %cst_18 = arith.constant dense<0.000000e+00> : vector<8x8xf32>
    %22 = tpu.matmul %20, %21, %cst_18 {dimension_numbers = #tpu.dot_dimension_numbers<[1], [1], [0], [0], [0, 0, 1, 0], [], []>} : vector<8x128xf32>, vector<8x128xf32>, vector<8x8xf32> -> vector<8x8xf32>
    %23 = vector.extract_strided_slice %15 {offsets = [0, 256], sizes = [8, 128], strides = [1, 1]} : vector<8x1024xf32> to vector<8x128xf32>
    %24 = vector.extract_strided_slice %16 {offsets = [0, 256], sizes = [8, 128], strides = [1, 1]} : vector<8x1024xf32> to vector<8x128xf32>
    %cst_19 = arith.constant dense<0.000000e+00> : vector<8x8xf32>
    %25 = tpu.matmul %23, %24, %cst_19 {dimension_numbers = #tpu.dot_dimension_numbers<[1], [1], [0], [0], [0, 0, 1, 0], [], []>} : vector<8x128xf32>, vector<8x128xf32>, vector<8x8xf32> -> vector<8x8xf32>
    %26 = vector.extract_strided_slice %15 {offsets = [0, 384], sizes = [8, 128], strides = [1, 1]} : vector<8x1024xf32> to vector<8x128xf32>
    %27 = vector.extract_strided_slice %16 {offsets = [0, 384], sizes = [8, 128], strides = [1, 1]} : vector<8x1024xf32> to vector<8x128xf32>
    %cst_20 = arith.constant dense<0.000000e+00> : vector<8x8xf32>
    %28 = tpu.matmul %26, %27, %cst_20 {dimension_numbers = #tpu.dot_dimension_numbers<[1], [1], [0], [0], [0, 0, 1, 0], [], []>} : vector<8x128xf32>, vector<8x128xf32>, vector<8x8xf32> -> vector<8x8xf32>
    %29 = vector.extract_strided_slice %15 {offsets = [0, 512], sizes = [8, 128], strides = [1, 1]} : vector<8x1024xf32> to vector<8x128xf32>
    %30 = vector.extract_strided_slice %16 {offsets = [0, 512], sizes = [8, 128], strides = [1, 1]} : vector<8x1024xf32> to vector<8x128xf32>
    %cst_21 = arith.constant dense<0.000000e+00> : vector<8x8xf32>
    %31 = tpu.matmul %29, %30, %cst_21 {dimension_numbers = #tpu.dot_dimension_numbers<[1], [1], [0], [0], [0, 0, 1, 0], [], []>} : vector<8x128xf32>, vector<8x128xf32>, vector<8x8xf32> -> vector<8x8xf32>
    %32 = vector.extract_strided_slice %15 {offsets = [0, 640], sizes = [8, 128], strides = [1, 1]} : vector<8x1024xf32> to vector<8x128xf32>
    %33 = vector.extract_strided_slice %16 {offsets = [0, 640], sizes = [8, 128], strides = [1, 1]} : vector<8x1024xf32> to vector<8x128xf32>
    %cst_22 = arith.constant dense<0.000000e+00> : vector<8x8xf32>
    %34 = tpu.matmul %32, %33, %cst_22 {dimension_numbers = #tpu.dot_dimension_numbers<[1], [1], [0], [0], [0, 0, 1, 0], [], []>} : vector<8x128xf32>, vector<8x128xf32>, vector<8x8xf32> -> vector<8x8xf32>
    %35 = vector.extract_strided_slice %15 {offsets = [0, 768], sizes = [8, 128], strides = [1, 1]} : vector<8x1024xf32> to vector<8x128xf32>
    %36 = vector.extract_strided_slice %16 {offsets = [0, 768], sizes = [8, 128], strides = [1, 1]} : vector<8x1024xf32> to vector<8x128xf32>
    %cst_23 = arith.constant dense<0.000000e+00> : vector<8x8xf32>
    %37 = tpu.matmul %35, %36, %cst_23 {dimension_numbers = #tpu.dot_dimension_numbers<[1], [1], [0], [0], [0, 0, 1, 0], [], []>} : vector<8x128xf32>, vector<8x128xf32>, vector<8x8xf32> -> vector<8x8xf32>
    %38 = vector.extract_strided_slice %15 {offsets = [0, 896], sizes = [8, 128], strides = [1, 1]} : vector<8x1024xf32> to vector<8x128xf32>
    %39 = vector.extract_strided_slice %16 {offsets = [0, 896], sizes = [8, 128], strides = [1, 1]} : vector<8x1024xf32> to vector<8x128xf32>
    %cst_24 = arith.constant dense<0.000000e+00> : vector<8x8xf32>
    %40 = tpu.matmul %38, %39, %cst_24 {dimension_numbers = #tpu.dot_dimension_numbers<[1], [1], [0], [0], [0, 0, 1, 0], [], []>} : vector<8x128xf32>, vector<8x128xf32>, vector<8x8xf32> -> vector<8x8xf32>
    %41 = vector.extract_strided_slice %5 {offsets = [8, 0], sizes = [8, 1024], strides = [1, 1]} : vector<16x1024xf32> to vector<8x1024xf32>
    %42 = vector.extract_strided_slice %11 {offsets = [8, 0], sizes = [8, 1024], strides = [1, 1]} : vector<16x1024xf32> to vector<8x1024xf32>
    %43 = vector.extract_strided_slice %41 {offsets = [0, 0], sizes = [8, 128], strides = [1, 1]} : vector<8x1024xf32> to vector<8x128xf32>
    %44 = vector.extract_strided_slice %42 {offsets = [0, 0], sizes = [8, 128], strides = [1, 1]} : vector<8x1024xf32> to vector<8x128xf32>
    %cst_25 = arith.constant dense<0.000000e+00> : vector<8x8xf32>
    %45 = tpu.matmul %43, %44, %cst_25 {dimension_numbers = #tpu.dot_dimension_numbers<[1], [1], [0], [0], [0, 0, 1, 0], [], []>} : vector<8x128xf32>, vector<8x128xf32>, vector<8x8xf32> -> vector<8x8xf32>
    %46 = vector.extract_strided_slice %41 {offsets = [0, 128], sizes = [8, 128], strides = [1, 1]} : vector<8x1024xf32> to vector<8x128xf32>
    %47 = vector.extract_strided_slice %42 {offsets = [0, 128], sizes = [8, 128], strides = [1, 1]} : vector<8x1024xf32> to vector<8x128xf32>
    %cst_26 = arith.constant dense<0.000000e+00> : vector<8x8xf32>
    %48 = tpu.matmul %46, %47, %cst_26 {dimension_numbers = #tpu.dot_dimension_numbers<[1], [1], [0], [0], [0, 0, 1, 0], [], []>} : vector<8x128xf32>, vector<8x128xf32>, vector<8x8xf32> -> vector<8x8xf32>
    %49 = vector.extract_strided_slice %41 {offsets = [0, 256], sizes = [8, 128], strides = [1, 1]} : vector<8x1024xf32> to vector<8x128xf32>
    %50 = vector.extract_strided_slice %42 {offsets = [0, 256], sizes = [8, 128], strides = [1, 1]} : vector<8x1024xf32> to vector<8x128xf32>
    %cst_27 = arith.constant dense<0.000000e+00> : vector<8x8xf32>
    %51 = tpu.matmul %49, %50, %cst_27 {dimension_numbers = #tpu.dot_dimension_numbers<[1], [1], [0], [0], [0, 0, 1, 0], [], []>} : vector<8x128xf32>, vector<8x128xf32>, vector<8x8xf32> -> vector<8x8xf32>
    %52 = vector.extract_strided_slice %41 {offsets = [0, 384], sizes = [8, 128], strides = [1, 1]} : vector<8x1024xf32> to vector<8x128xf32>
    %53 = vector.extract_strided_slice %42 {offsets = [0, 384], sizes = [8, 128], strides = [1, 1]} : vector<8x1024xf32> to vector<8x128xf32>
    %cst_28 = arith.constant dense<0.000000e+00> : vector<8x8xf32>
    %54 = tpu.matmul %52, %53, %cst_28 {dimension_numbers = #tpu.dot_dimension_numbers<[1], [1], [0], [0], [0, 0, 1, 0], [], []>} : vector<8x128xf32>, vector<8x128xf32>, vector<8x8xf32> -> vector<8x8xf32>
    %55 = vector.extract_strided_slice %41 {offsets = [0, 512], sizes = [8, 128], strides = [1, 1]} : vector<8x1024xf32> to vector<8x128xf32>
    %56 = vector.extract_strided_slice %42 {offsets = [0, 512], sizes = [8, 128], strides = [1, 1]} : vector<8x1024xf32> to vector<8x128xf32>
    %cst_29 = arith.constant dense<0.000000e+00> : vector<8x8xf32>
    %57 = tpu.matmul %55, %56, %cst_29 {dimension_numbers = #tpu.dot_dimension_numbers<[1], [1], [0], [0], [0, 0, 1, 0], [], []>} : vector<8x128xf32>, vector<8x128xf32>, vector<8x8xf32> -> vector<8x8xf32>
    %58 = vector.extract_strided_slice %41 {offsets = [0, 640], sizes = [8, 128], strides = [1, 1]} : vector<8x1024xf32> to vector<8x128xf32>
    %59 = vector.extract_strided_slice %42 {offsets = [0, 640], sizes = [8, 128], strides = [1, 1]} : vector<8x1024xf32> to vector<8x128xf32>
    %cst_30 = arith.constant dense<0.000000e+00> : vector<8x8xf32>
    %60 = tpu.matmul %58, %59, %cst_30 {dimension_numbers = #tpu.dot_dimension_numbers<[1], [1], [0], [0], [0, 0, 1, 0], [], []>} : vector<8x128xf32>, vector<8x128xf32>, vector<8x8xf32> -> vector<8x8xf32>
    %61 = vector.extract_strided_slice %41 {offsets = [0, 768], sizes = [8, 128], strides = [1, 1]} : vector<8x1024xf32> to vector<8x128xf32>
    %62 = vector.extract_strided_slice %42 {offsets = [0, 768], sizes = [8, 128], strides = [1, 1]} : vector<8x1024xf32> to vector<8x128xf32>
    %cst_31 = arith.constant dense<0.000000e+00> : vector<8x8xf32>
    %63 = tpu.matmul %61, %62, %cst_31 {dimension_numbers = #tpu.dot_dimension_numbers<[1], [1], [0], [0], [0, 0, 1, 0], [], []>} : vector<8x128xf32>, vector<8x128xf32>, vector<8x8xf32> -> vector<8x8xf32>
    %64 = vector.extract_strided_slice %41 {offsets = [0, 896], sizes = [8, 128], strides = [1, 1]} : vector<8x1024xf32> to vector<8x128xf32>
    %65 = vector.extract_strided_slice %42 {offsets = [0, 896], sizes = [8, 128], strides = [1, 1]} : vector<8x1024xf32> to vector<8x128xf32>
    %cst_32 = arith.constant dense<0.000000e+00> : vector<8x8xf32>
    %66 = tpu.matmul %64, %65, %cst_32 {dimension_numbers = #tpu.dot_dimension_numbers<[1], [1], [0], [0], [0, 0, 1, 0], [], []>} : vector<8x128xf32>, vector<8x128xf32>, vector<8x8xf32> -> vector<8x8xf32>
    %67 = tpu.concatenate %19, %22, %25, %28, %31, %34, %37, %40, %45, %48, %51, %54, %57, %60, %63, %66 in 0 : vector<8x8xf32>, vector<8x8xf32>, vector<8x8xf32>, vector<8x8xf32>, vector<8x8xf32>, vector<8x8xf32>, vector<8x8xf32>, vector<8x8xf32>, vector<8x8xf32>, vector<8x8xf32>, vector<8x8xf32>, vector<8x8xf32>, vector<8x8xf32>, vector<8x8xf32>, vector<8x8xf32>, vector<8x8xf32> -> vector<128x8xf32>
    %cst_33 = arith.constant 0.0883883461 : f32
    %68 = vector.broadcast %cst_33 : f32 to vector<128x8xf32>
    %69 = arith.mulf %67, %68 : vector<128x8xf32>
    %cst_34 = arith.constant dense<0xFF800000> : vector<128xf32>
    %70 = vector.multi_reduction <maximumf>, %69, %cst_34 [1] : vector<128x8xf32> to vector<128xf32>
    %71 = vector.shape_cast %70 : vector<128xf32> to vector<128x1xf32>
    %72 = vector.broadcast %71 : vector<128x1xf32> to vector<128x8xf32>
    %73 = arith.subf %69, %72 : vector<128x8xf32>
    %74 = math.exp %73 : vector<128x8xf32>
    %cst_35 = arith.constant dense<0.000000e+00> : vector<128xf32>
    %75 = vector.multi_reduction <add>, %74, %cst_35 [1] : vector<128x8xf32> to vector<128xf32>
    %76 = vector.shape_cast %75 : vector<128xf32> to vector<128x1xf32>
    %77 = vector.broadcast %76 : vector<128x1xf32> to vector<128x8xf32>
    %78 = arith.divf %74, %77 : vector<128x8xf32>
    %79 = vector.extract_strided_slice %14 {offsets = [0, 0], sizes = [8, 16], strides = [1, 1]} : vector<16x16xf32> to vector<8x16xf32>
    %cst_36 = arith.constant 0.000000e+00 : f32
    %80 = vector.broadcast %cst_36 : f32 to vector<8x2xf32>
    %81 = vector.extract_strided_slice %78 {offsets = [0, 0], sizes = [8, 8], strides = [1, 1]} : vector<128x8xf32> to vector<8x8xf32>
    %82 = vector.extract_strided_slice %79 {offsets = [0, 0], sizes = [8, 2], strides = [1, 1]} : vector<8x16xf32> to vector<8x2xf32>
    %cst_37 = arith.constant dense<0.000000e+00> : vector<8x2xf32>
    %83 = tpu.matmul %81, %82, %cst_37 {dimension_numbers = #tpu.dot_dimension_numbers<[1], [0], [0], [1], [0, 0, 1, 1], [], []>} : vector<8x8xf32>, vector<8x2xf32>, vector<8x2xf32> -> vector<8x2xf32>
    %84 = arith.addf %80, %83 : vector<8x2xf32>
    %85 = vector.extract_strided_slice %78 {offsets = [8, 0], sizes = [8, 8], strides = [1, 1]} : vector<128x8xf32> to vector<8x8xf32>
    %86 = vector.extract_strided_slice %79 {offsets = [0, 2], sizes = [8, 2], strides = [1, 1]} : vector<8x16xf32> to vector<8x2xf32>
    %cst_38 = arith.constant dense<0.000000e+00> : vector<8x2xf32>
    %87 = tpu.matmul %85, %86, %cst_38 {dimension_numbers = #tpu.dot_dimension_numbers<[1], [0], [0], [1], [0, 0, 1, 1], [], []>} : vector<8x8xf32>, vector<8x2xf32>, vector<8x2xf32> -> vector<8x2xf32>
    %88 = arith.addf %84, %87 : vector<8x2xf32>
    %89 = vector.extract_strided_slice %78 {offsets = [16, 0], sizes = [8, 8], strides = [1, 1]} : vector<128x8xf32> to vector<8x8xf32>
    %90 = vector.extract_strided_slice %79 {offsets = [0, 4], sizes = [8, 2], strides = [1, 1]} : vector<8x16xf32> to vector<8x2xf32>
    %cst_39 = arith.constant dense<0.000000e+00> : vector<8x2xf32>
    %91 = tpu.matmul %89, %90, %cst_39 {dimension_numbers = #tpu.dot_dimension_numbers<[1], [0], [0], [1], [0, 0, 1, 1], [], []>} : vector<8x8xf32>, vector<8x2xf32>, vector<8x2xf32> -> vector<8x2xf32>
    %92 = arith.addf %88, %91 : vector<8x2xf32>
    %93 = vector.extract_strided_slice %78 {offsets = [24, 0], sizes = [8, 8], strides = [1, 1]} : vector<128x8xf32> to vector<8x8xf32>
    %94 = vector.extract_strided_slice %79 {offsets = [0, 6], sizes = [8, 2], strides = [1, 1]} : vector<8x16xf32> to vector<8x2xf32>
    %cst_40 = arith.constant dense<0.000000e+00> : vector<8x2xf32>
    %95 = tpu.matmul %93, %94, %cst_40 {dimension_numbers = #tpu.dot_dimension_numbers<[1], [0], [0], [1], [0, 0, 1, 1], [], []>} : vector<8x8xf32>, vector<8x2xf32>, vector<8x2xf32> -> vector<8x2xf32>
    %96 = arith.addf %92, %95 : vector<8x2xf32>
    %97 = vector.extract_strided_slice %78 {offsets = [32, 0], sizes = [8, 8], strides = [1, 1]} : vector<128x8xf32> to vector<8x8xf32>
    %98 = vector.extract_strided_slice %79 {offsets = [0, 8], sizes = [8, 2], strides = [1, 1]} : vector<8x16xf32> to vector<8x2xf32>
    %cst_41 = arith.constant dense<0.000000e+00> : vector<8x2xf32>
    %99 = tpu.matmul %97, %98, %cst_41 {dimension_numbers = #tpu.dot_dimension_numbers<[1], [0], [0], [1], [0, 0, 1, 1], [], []>} : vector<8x8xf32>, vector<8x2xf32>, vector<8x2xf32> -> vector<8x2xf32>
    %100 = arith.addf %96, %99 : vector<8x2xf32>
    %101 = vector.extract_strided_slice %78 {offsets = [40, 0], sizes = [8, 8], strides = [1, 1]} : vector<128x8xf32> to vector<8x8xf32>
    %102 = vector.extract_strided_slice %79 {offsets = [0, 10], sizes = [8, 2], strides = [1, 1]} : vector<8x16xf32> to vector<8x2xf32>
    %cst_42 = arith.constant dense<0.000000e+00> : vector<8x2xf32>
    %103 = tpu.matmul %101, %102, %cst_42 {dimension_numbers = #tpu.dot_dimension_numbers<[1], [0], [0], [1], [0, 0, 1, 1], [], []>} : vector<8x8xf32>, vector<8x2xf32>, vector<8x2xf32> -> vector<8x2xf32>
    %104 = arith.addf %100, %103 : vector<8x2xf32>
    %105 = vector.extract_strided_slice %78 {offsets = [48, 0], sizes = [8, 8], strides = [1, 1]} : vector<128x8xf32> to vector<8x8xf32>
    %106 = vector.extract_strided_slice %79 {offsets = [0, 12], sizes = [8, 2], strides = [1, 1]} : vector<8x16xf32> to vector<8x2xf32>
    %cst_43 = arith.constant dense<0.000000e+00> : vector<8x2xf32>
    %107 = tpu.matmul %105, %106, %cst_43 {dimension_numbers = #tpu.dot_dimension_numbers<[1], [0], [0], [1], [0, 0, 1, 1], [], []>} : vector<8x8xf32>, vector<8x2xf32>, vector<8x2xf32> -> vector<8x2xf32>
    %108 = arith.addf %104, %107 : vector<8x2xf32>
    %109 = vector.extract_strided_slice %78 {offsets = [56, 0], sizes = [8, 8], strides = [1, 1]} : vector<128x8xf32> to vector<8x8xf32>
    %110 = vector.extract_strided_slice %79 {offsets = [0, 14], sizes = [8, 2], strides = [1, 1]} : vector<8x16xf32> to vector<8x2xf32>
    %cst_44 = arith.constant dense<0.000000e+00> : vector<8x2xf32>
    %111 = tpu.matmul %109, %110, %cst_44 {dimension_numbers = #tpu.dot_dimension_numbers<[1], [0], [0], [1], [0, 0, 1, 1], [], []>} : vector<8x8xf32>, vector<8x2xf32>, vector<8x2xf32> -> vector<8x2xf32>
    %112 = arith.addf %108, %111 : vector<8x2xf32>
    %cst_45 = arith.constant dense<0.000000e+00> : vector<2xf32>
    %113 = vector.multi_reduction <add>, %112, %cst_45 [0] : vector<8x2xf32> to vector<2xf32>
    %114 = vector.shape_cast %113 : vector<2xf32> to vector<1x2xf32>
    %cst_46 = arith.constant 1.250000e-01 : f32
    %115 = vector.broadcast %cst_46 : f32 to vector<1x2xf32>
    %116 = arith.mulf %114, %115 : vector<1x2xf32>
    %c0_47 = arith.constant 0 : index
    %c0_48 = arith.constant 0 : index
    %117 = vector.load %arg7[%c0_47, %c0_48] : memref<1x2xf32, #tpu.memory_space<vmem>>, vector<1x2xf32>
    %118 = arith.addf %116, %117 : vector<1x2xf32>
    %cst_49 = arith.constant dense<0xFF800000> : vector<1xf32>
    %119 = vector.multi_reduction <maximumf>, %118, %cst_49 [1] : vector<1x2xf32> to vector<1xf32>
    %120 = vector.shape_cast %119 : vector<1xf32> to vector<1x1xf32>
    %121 = vector.broadcast %120 : vector<1x1xf32> to vector<1x2xf32>
    %122 = arith.subf %118, %121 : vector<1x2xf32>
    %123 = math.exp %122 : vector<1x2xf32>
    %cst_50 = arith.constant dense<0.000000e+00> : vector<1xf32>
    %124 = vector.multi_reduction <add>, %123, %cst_50 [1] : vector<1x2xf32> to vector<1xf32>
    %125 = vector.shape_cast %124 : vector<1xf32> to vector<1x1xf32>
    %126 = vector.broadcast %125 : vector<1x1xf32> to vector<1x2xf32>
    %127 = arith.divf %123, %126 : vector<1x2xf32>
    %c0_51 = arith.constant 0 : index
    %c0_52 = arith.constant 0 : index
    %128 = vector.load %arg8[%c0_51, %c0_52] : memref<2x2xf32, #tpu.memory_space<vmem>>, vector<1x2xf32>
    tpu.vector_store %arg8[%c0_51, %c0_52], %127 {strides = array<i32>} : memref<2x2xf32, #tpu.memory_space<vmem>>, vector<1x2xf32>,
    %129 = vector.extract_strided_slice %14 {offsets = [8, 0], sizes = [8, 16], strides = [1, 1]} : vector<16x16xf32> to vector<8x16xf32>
    %cst_53 = arith.constant 0.000000e+00 : f32
    %130 = vector.broadcast %cst_53 : f32 to vector<8x2xf32>
    %131 = vector.extract_strided_slice %78 {offsets = [64, 0], sizes = [8, 8], strides = [1, 1]} : vector<128x8xf32> to vector<8x8xf32>
    %132 = vector.extract_strided_slice %129 {offsets = [0, 0], sizes = [8, 2], strides = [1, 1]} : vector<8x16xf32> to vector<8x2xf32>
    %cst_54 = arith.constant dense<0.000000e+00> : vector<8x2xf32>
    %133 = tpu.matmul %131, %132, %cst_54 {dimension_numbers = #tpu.dot_dimension_numbers<[1], [0], [0], [1], [0, 0, 1, 1], [], []>} : vector<8x8xf32>, vector<8x2xf32>, vector<8x2xf32> -> vector<8x2xf32>
    %134 = arith.addf %130, %133 : vector<8x2xf32>
    %135 = vector.extract_strided_slice %78 {offsets = [72, 0], sizes = [8, 8], strides = [1, 1]} : vector<128x8xf32> to vector<8x8xf32>
    %136 = vector.extract_strided_slice %129 {offsets = [0, 2], sizes = [8, 2], strides = [1, 1]} : vector<8x16xf32> to vector<8x2xf32>
    %cst_55 = arith.constant dense<0.000000e+00> : vector<8x2xf32>
    %137 = tpu.matmul %135, %136, %cst_55 {dimension_numbers = #tpu.dot_dimension_numbers<[1], [0], [0], [1], [0, 0, 1, 1], [], []>} : vector<8x8xf32>, vector<8x2xf32>, vector<8x2xf32> -> vector<8x2xf32>
    %138 = arith.addf %134, %137 : vector<8x2xf32>
    %139 = vector.extract_strided_slice %78 {offsets = [80, 0], sizes = [8, 8], strides = [1, 1]} : vector<128x8xf32> to vector<8x8xf32>
    %140 = vector.extract_strided_slice %129 {offsets = [0, 4], sizes = [8, 2], strides = [1, 1]} : vector<8x16xf32> to vector<8x2xf32>
    %cst_56 = arith.constant dense<0.000000e+00> : vector<8x2xf32>
    %141 = tpu.matmul %139, %140, %cst_56 {dimension_numbers = #tpu.dot_dimension_numbers<[1], [0], [0], [1], [0, 0, 1, 1], [], []>} : vector<8x8xf32>, vector<8x2xf32>, vector<8x2xf32> -> vector<8x2xf32>
    %142 = arith.addf %138, %141 : vector<8x2xf32>
    %143 = vector.extract_strided_slice %78 {offsets = [88, 0], sizes = [8, 8], strides = [1, 1]} : vector<128x8xf32> to vector<8x8xf32>
    %144 = vector.extract_strided_slice %129 {offsets = [0, 6], sizes = [8, 2], strides = [1, 1]} : vector<8x16xf32> to vector<8x2xf32>
    %cst_57 = arith.constant dense<0.000000e+00> : vector<8x2xf32>
    %145 = tpu.matmul %143, %144, %cst_57 {dimension_numbers = #tpu.dot_dimension_numbers<[1], [0], [0], [1], [0, 0, 1, 1], [], []>} : vector<8x8xf32>, vector<8x2xf32>, vector<8x2xf32> -> vector<8x2xf32>
    %146 = arith.addf %142, %145 : vector<8x2xf32>
    %147 = vector.extract_strided_slice %78 {offsets = [96, 0], sizes = [8, 8], strides = [1, 1]} : vector<128x8xf32> to vector<8x8xf32>
    %148 = vector.extract_strided_slice %129 {offsets = [0, 8], sizes = [8, 2], strides = [1, 1]} : vector<8x16xf32> to vector<8x2xf32>
    %cst_58 = arith.constant dense<0.000000e+00> : vector<8x2xf32>
    %149 = tpu.matmul %147, %148, %cst_58 {dimension_numbers = #tpu.dot_dimension_numbers<[1], [0], [0], [1], [0, 0, 1, 1], [], []>} : vector<8x8xf32>, vector<8x2xf32>, vector<8x2xf32> -> vector<8x2xf32>
    %150 = arith.addf %146, %149 : vector<8x2xf32>
    %151 = vector.extract_strided_slice %78 {offsets = [104, 0], sizes = [8, 8], strides = [1, 1]} : vector<128x8xf32> to vector<8x8xf32>
    %152 = vector.extract_strided_slice %129 {offsets = [0, 10], sizes = [8, 2], strides = [1, 1]} : vector<8x16xf32> to vector<8x2xf32>
    %cst_59 = arith.constant dense<0.000000e+00> : vector<8x2xf32>
    %153 = tpu.matmul %151, %152, %cst_59 {dimension_numbers = #tpu.dot_dimension_numbers<[1], [0], [0], [1], [0, 0, 1, 1], [], []>} : vector<8x8xf32>, vector<8x2xf32>, vector<8x2xf32> -> vector<8x2xf32>
    %154 = arith.addf %150, %153 : vector<8x2xf32>
    %155 = vector.extract_strided_slice %78 {offsets = [112, 0], sizes = [8, 8], strides = [1, 1]} : vector<128x8xf32> to vector<8x8xf32>
    %156 = vector.extract_strided_slice %129 {offsets = [0, 12], sizes = [8, 2], strides = [1, 1]} : vector<8x16xf32> to vector<8x2xf32>
    %cst_60 = arith.constant dense<0.000000e+00> : vector<8x2xf32>
    %157 = tpu.matmul %155, %156, %cst_60 {dimension_numbers = #tpu.dot_dimension_numbers<[1], [0], [0], [1], [0, 0, 1, 1], [], []>} : vector<8x8xf32>, vector<8x2xf32>, vector<8x2xf32> -> vector<8x2xf32>
    %158 = arith.addf %154, %157 : vector<8x2xf32>
    %159 = vector.extract_strided_slice %78 {offsets = [120, 0], sizes = [8, 8], strides = [1, 1]} : vector<128x8xf32> to vector<8x8xf32>
    %160 = vector.extract_strided_slice %129 {offsets = [0, 14], sizes = [8, 2], strides = [1, 1]} : vector<8x16xf32> to vector<8x2xf32>
    %cst_61 = arith.constant dense<0.000000e+00> : vector<8x2xf32>
    %161 = tpu.matmul %159, %160, %cst_61 {dimension_numbers = #tpu.dot_dimension_numbers<[1], [0], [0], [1], [0, 0, 1, 1], [], []>} : vector<8x8xf32>, vector<8x2xf32>, vector<8x2xf32> -> vector<8x2xf32>
    %162 = arith.addf %158, %161 : vector<8x2xf32>
    %cst_62 = arith.constant dense<0.000000e+00> : vector<2xf32>
    %163 = vector.multi_reduction <add>, %162, %cst_62 [0] : vector<8x2xf32> to vector<2xf32>
    %164 = vector.shape_cast %163 : vector<2xf32> to vector<1x2xf32>
    %cst_63 = arith.constant 1.250000e-01 : f32
    %165 = vector.broadcast %cst_63 : f32 to vector<1x2xf32>
    %166 = arith.mulf %164, %165 : vector<1x2xf32>
    %c0_64 = arith.constant 0 : index
    %c0_65 = arith.constant 0 : index
    %167 = vector.load %arg7[%c0_64, %c0_65] : memref<1x2xf32, #tpu.memory_space<vmem>>, vector<1x2xf32>
    %168 = arith.addf %166, %167 : vector<1x2xf32>
    %cst_66 = arith.constant dense<0xFF800000> : vector<1xf32>
    %169 = vector.multi_reduction <maximumf>, %168, %cst_66 [1] : vector<1x2xf32> to vector<1xf32>
    %170 = vector.shape_cast %169 : vector<1xf32> to vector<1x1xf32>
    %171 = vector.broadcast %170 : vector<1x1xf32> to vector<1x2xf32>
    %172 = arith.subf %168, %171 : vector<1x2xf32>
    %173 = math.exp %172 : vector<1x2xf32>
    %cst_67 = arith.constant dense<0.000000e+00> : vector<1xf32>
    %174 = vector.multi_reduction <add>, %173, %cst_67 [1] : vector<1x2xf32> to vector<1xf32>
    %175 = vector.shape_cast %174 : vector<1xf32> to vector<1x1xf32>
    %176 = vector.broadcast %175 : vector<1x1xf32> to vector<1x2xf32>
    %177 = arith.divf %173, %176 : vector<1x2xf32>
    %c1 = arith.constant 1 : index
    %c0_68 = arith.constant 0 : index
    %178 = vector.load %arg8[%c1, %c0_68] : memref<2x2xf32, #tpu.memory_space<vmem>>, vector<1x2xf32>
    tpu.vector_store %arg8[%c1, %c0_68], %177 {strides = array<i32>} : memref<2x2xf32, #tpu.memory_space<vmem>>, vector<1x2xf32>,
    return
  }
}

</mosaic_0001>

<bundles_post_ra>
// kernel: tpu_custom_call.1
= control target key start
LH: loop header
LB: loop body
LE: loop exit
PB: predicated region body
PF: predicated region fallthrough
CT: control target
= control target key end

     0   :  { %13 = vsyncpa [#allocation3], 0  ;;  %s13936_s0 = inlined_call_operand.hbm [shape: bf16[16,1024], index: 0, kind: input, shape index: {}]   ;;  %s13937_s1 = inlined_call_operand.hbm [shape: bf16[16,1024], index: 1, kind: input, shape index: {}]   ;;  %s13938_s2 = inlined_call_operand.hbm [shape: bf16[1024,1024], index: 2, kind: input, shape index: {}]   ;;  %s13939_s3 = inlined_call_operand.hbm [shape: bf16[1024,1024], index: 3, kind: input, shape index: {}]   ;;  %s13940_s4 = inlined_call_operand.hbm [shape: f32[1,1024], index: 4, kind: input, shape index: {}]   ;;  %s13941_s5 = inlined_call_operand.hbm [shape: f32[1,1024], index: 5, kind: input, shape index: {}]   ;;  %s13942_s6 = inlined_call_operand.vmem [shape: bf16[1024,16], index: 6, kind: input, shape index: {}]   ;;  %s13943_s7 = inlined_call_operand.hbm [shape: f32[1,2], index: 7, kind: input, shape index: {}]   ;;  %s13944_s8 = inlined_call_operand.hbm [shape: f32[2,2], index: 8, kind: output, shape index: {}]  }
   0x1   :  { %14 = vsyncpa [#allocation6], 0 }
   0x2   :  { %15 = vsyncpa [#allocation9], 0 }
   0x3   :  { %16 = vsyncpa [#allocation12], 0 }
   0x4   :  { %17 = vsyncpa [#allocation4], 0  ;;  %s12856_s27 = smov [#allocation5]   ;;  %s12857_s29 = smov [#allocation8]  }
   0x5   :  { %s35_s28 = sshll.u32 %s12856_s27, 4  ;;  %s59_s30 = sshll.u32 %s12857_s29, 4  ;;  %s36_s28 = int_to_ptr.vmem [resolvable:$true] %s35_s28  ;;  %s60_s30 = int_to_ptr.vmem [resolvable:$true] %s59_s30 }
   0x6   :  { %s12694_s9 = scalar_lea.vmem %s36_s28, 1024  ;;  %p12699_p1 = scmp.lt.s32.totalorder %s36_s28, %s36_s28 }
   0x7   :  { %p12695_p0 = scmp.ne.s32.totalorder %s36_s28, %s12694_s9  ;;  %p12700_p2 = scmp.lt.s32.totalorder %s12694_s9, %s12694_s9 }
   0x9   :  { %p12701_p3 = por %p12700_p2, %p12699_p1 }
   0xb   :  { %p12702_p4 = pnand %p12701_p3, %p12695_p0 }
   0xd   :  { %12705 = shalt.err (!%p12702_p4)
}
   0xe   :  { %s12858_s10 = smov 512   ;;  %s12859_s11 = smov 32  }
   0xf   :  { %41 = dma.hbm_to_vmem [thread:$0]  %s13937_s1, 1024, %s36_s28, [#allocation6], %s12858_s10, %s12858_s10, %s12859_s11  }
  0x10   :  { %s12714_s14 = scalar_lea.vmem %s60_s30, 65536  ;;  %p12719_p6 = scmp.lt.s32.totalorder %s60_s30, %s60_s30 }
  0x11   :  { %p12715_p5 = scmp.ne.s32.totalorder %s60_s30, %s12714_s14  ;;  %p12720_p7 = scmp.lt.s32.totalorder %s12714_s14, %s12714_s14 }
  0x13   :  { %p12721_p8 = por %p12720_p7, %p12719_p6 }
  0x15   :  { %p12722_p9 = pnand %p12721_p8, %p12715_p5 }
  0x17   :  { %12725 = shalt.err (!%p12722_p9)
}
  0x18   :  { %65 = dma.hbm_to_vmem [thread:$0]  %s13939_s3, 65536, %s60_s30, [#allocation9], %s12858_s10, %s12858_s10, %s12859_s11  }
  0x19   :  { %s12860_s17 = smov [#allocation11]   ;;  %s12861_s19 = smov [#allocation2]  }
  0x1a   :  { %s82_s18 = sshll.u32 %s12860_s17, 4  ;;  %s23_s20 = sshll.u32 %s12861_s19, 4  ;;  %s83_s18 = int_to_ptr.vmem [resolvable:$true] %s82_s18  ;;  %s24_s20 = int_to_ptr.vmem [resolvable:$true] %s23_s20 }
  0x1b   :  { %s12734_s1 = scalar_lea.vmem %s83_s18, 128  ;;  %p12739_p11 = scmp.lt.s32.totalorder %s83_s18, %s83_s18 }
  0x1c   :  { %p12735_p10 = scmp.ne.s32.totalorder %s83_s18, %s12734_s1  ;;  %p12740_p12 = scmp.lt.s32.totalorder %s12734_s1, %s12734_s1 }
  0x1e   :  { %p12741_p13 = por %p12740_p12, %p12739_p11 }
  0x20   :  { %p12742_p0 = pnand %p12741_p13, %p12735_p10 }
  0x22   :  { %12745 = shalt.err (!%p12742_p0)
}
  0x23   :  { %85 = dma.hbm_to_vmem [thread:$0]  %s13941_s5, 128, %s83_s18, [#allocation12]  }
  0x24   :  { %s12754_s23 = scalar_lea.vmem %s24_s20, 1024  ;;  %p12759_p2 = scmp.lt.s32.totalorder %s24_s20, %s24_s20 }
  0x25   :  { %p12755_p1 = scmp.ne.s32.totalorder %s24_s20, %s12754_s23  ;;  %p12760_p3 = scmp.lt.s32.totalorder %s12754_s23, %s12754_s23 }
  0x27   :  { %p12761_p4 = por %p12760_p3, %p12759_p2 }
  0x29   :  { %p12762_p5 = pnand %p12761_p4, %p12755_p1 }
  0x2b   :  { %12765 = shalt.err (!%p12762_p5)
}
  0x2c   :  { %29 = dma.hbm_to_vmem [thread:$0]  %s13936_s0, 1024, %s24_s20, [#allocation3], %s12858_s10, %s12858_s10, %s12859_s11  }
  0x2d   :  { %s12862_s25 = smov [#allocation7]   ;;  %s12863_s27 = smov [#allocation10]  }
  0x2e   :  { %s47_s26 = sshll.u32 %s12862_s25, 4  ;;  %s72_s28 = sshll.u32 %s12863_s27, 4  ;;  %s48_s26 = int_to_ptr.vmem [resolvable:$true] %s47_s26  ;;  %s73_s28 = int_to_ptr.vmem [resolvable:$true] %s72_s28 }
  0x2f   :  { %s12774_s5 = scalar_lea.vmem %s48_s26, 65536  ;;  %p12779_p7 = scmp.lt.s32.totalorder %s48_s26, %s48_s26 }
  0x30   :  { %p12775_p6 = scmp.ne.s32.totalorder %s48_s26, %s12774_s5  ;;  %p12780_p8 = scmp.lt.s32.totalorder %s12774_s5, %s12774_s5 }
  0x32   :  { %p12781_p9 = por %p12780_p8, %p12779_p7 }
  0x34   :  { %p12782_p10 = pnand %p12781_p9, %p12775_p6 }
  0x36   :  { %12785 = shalt.err (!%p12782_p10)
}
  0x37   :  { %53 = dma.hbm_to_vmem [thread:$0]  %s13938_s2, 65536, %s48_s26, [#allocation6], %s12858_s10, %s12858_s10, %s12859_s11  }
  0x38   :  { %s12794_s0 = scalar_lea.vmem %s73_s28, 128  ;;  %p12799_p12 = scmp.lt.s32.totalorder %s73_s28, %s73_s28 }
  0x39   :  { %p12795_p11 = scmp.ne.s32.totalorder %s73_s28, %s12794_s0  ;;  %p12800_p13 = scmp.lt.s32.totalorder %s12794_s0, %s12794_s0 }
  0x3b   :  { %p12801_p0 = por %p12800_p13, %p12799_p12 }
  0x3d   :  { %p12802_p1 = pnand %p12801_p0, %p12795_p11 }
  0x3f   :  { %12805 = shalt.err (!%p12802_p1)
}
  0x40   :  { %75 = dma.hbm_to_vmem [thread:$0]  %s13940_s4, 128, %s73_s28, [#allocation9]  }
  0x41   :  { %s12864_s13 = smov [#allocation13]  }
  0x42   :  { %s94_s14 = sshll.u32 %s12864_s13, 4  ;;  %s95_s14 = int_to_ptr.vmem [resolvable:$true] %s94_s14 }
  0x43   :  { %s12814_s15 = scalar_lea.vmem %s95_s14, 16  ;;  %s12818_s16 = scalar_lea.vmem %s95_s14, 32 }
  0x44   :  { %p12815_p2 = scmp.ne.s32.totalorder %s95_s14, %s12814_s15  ;;  %p12819_p3 = scmp.lt.s32.totalorder %s95_s14, %s95_s14 }
  0x45   :  { %p12820_p4 = scmp.lt.s32.totalorder %s12818_s16, %s12814_s15 }
  0x47   :  { %p12821_p5 = por %p12820_p4, %p12819_p3 }
  0x49   :  { %p12822_p6 = pnand %p12821_p5, %p12815_p2 }
  0x4b   :  { %12825 = shalt.err (!%p12822_p6)
}
  0x4c   :  { %97 = dma.hbm_to_vmem [thread:$0]  %s13943_s7, 16, %s95_s14, [#allocation12]  }
  0x4d   :  { %12846 = dma.done.wait [#allocation3], 1024  }
  0x4e   :  { %12847 = vsyncadd [#allocation3], 4294966272 }
  0x4f   :  { %12848 = dma.done.wait [#allocation6], 66560  }
  0x50   :  { %12849 = vsyncadd [#allocation6], 4294900736 }
  0x51   :  { %12850 = dma.done.wait [#allocation9], 65664  }
  0x52   :  { %12851 = vsyncadd [#allocation9], 4294901632 }
  0x53   :  { %12852 = dma.done.wait [#allocation12], 144  }
  0x54   :  { %12853 = vsyncadd [#allocation12], 4294967152  ;;  %v184_v0 = vld [vmem:[#allocation7 + $0x1c0] sm:$0xff]  ;;  %v12961_v59 = vld [vmem:[#allocation2 + $0x8] sm:$0xff]  ;;  %vm12866_vm0 = vmmov 0   ;;  %s12868_s24 = smov 126  }
  0x55   :  { %v188_v1 = vld [vmem:[#allocation7 + $0x1e0] sm:$0xff]  ;;  %v12963_v60 = vld [vmem:[#allocation2 + $0x28] sm:$0xff]  ;;  %s12869_s25 = smov 120   ;;  %s12870_s26 = smov 122   ;;  %vm9632_vm1 = vcmask 64512   ;;  %vm10421_vm2 = vcmask 15360  }
  0x56   :  { %v312_v2 = vld [vmem:[#allocation7 + $0x5c0] sm:$0xff]  ;;  %v11162_v3 = vcombine.high %v184_v0, %v188_v1  ;;  %v11161_v5 = vcombine.low %v184_v0, %v188_v1  ;;  %v12967_v63 = vcombine.high %v12961_v59, %v12963_v60  ;;  %s12871_s27 = smov 116   ;;  %s12872_s28 = smov 118   ;;  %vm10432_vm3 = vcmask 8192  }
  0x57   :  { %v316_v4 = vld [vmem:[#allocation7 + $0x5e0] sm:$0xff]  ;;  %s12873_s5 = smov 114   ;;  %s12874_s29 = smov [#allocation14]  }
  0x58   :  { %v176_v6 = vld [vmem:[#allocation7 + $0x180] sm:$0xff]  ;;  %v11290_v8 = vcombine.high %v312_v2, %v316_v4  ;;  %v11289_v9 = vcombine.low %v312_v2, %v316_v4  ;;  %3282 = vmatprep.subr.bf16.mxu0 %v11162_v3  ;;  %3357 = vmatprep.mubr.bf16.mxu1 %v12967_v63  ;;  %s11085_s30 = sshll.u32 %s12874_s29, 4  ;;  %s11086_s30 = int_to_ptr.vmem [resolvable:$true] %s11085_s30 }
  0x59   :  { %v180_v7 = vld [vmem:[#allocation7 + $0x1a0] sm:$0xff]  ;;  %3283 = vmatpush1.bf16.msra.mxu0 %v11161_v5  ;;  %s12826_s0 = scalar_lea.vmem %s11086_s30, 32  ;;  %p12831_p8 = scmp.lt.s32.totalorder %s11086_s30, %s11086_s30 }
  0x5a   :  { %v11154_v10 = vcombine.high %v176_v6, %v180_v7  ;;  %v304_v11 = vld [vmem:[#allocation7 + $0x580] sm:$0xff]  ;;  %3325 = vmatprep.subr.bf16.mxu1 %v11290_v8  ;;  %v11153_v18 = vcombine.low %v176_v6, %v180_v7  ;;  %p12827_p7 = scmp.ne.s32.totalorder %s11086_s30, %s12826_s0  ;;  %p12832_p9 = scmp.lt.s32.totalorder %s12826_s0, %s12826_s0 }
  0x5b   :  { %v308_v12 = vld [vmem:[#allocation7 + $0x5a0] sm:$0xff]  ;;  %3326 = vmatpush1.bf16.msra.mxu1 %v11289_v9 }
  0x5c   :  { %v168_v13 = vld [vmem:[#allocation7 + $0x140] sm:$0xff]  ;;  %v11282_v14 = vcombine.high %v304_v11, %v308_v12  ;;  %3284 = vmatprep.subr.bf16.mxu0 %v11154_v10  ;;  %v11281_v19 = vcombine.low %v304_v11, %v308_v12  ;;  %p12833_p10 = por %p12832_p9, %p12831_p8 }
  0x5d   :  { %v172_v15 = vld [vmem:[#allocation7 + $0x160] sm:$0xff]  ;;  %3285 = vmatpush1.bf16.msra.mxu0 %v11153_v18 }
  0x5e   :  { %v296_v16 = vld [vmem:[#allocation7 + $0x540] sm:$0xff]  ;;  %v11146_v20 = vcombine.high %v168_v13, %v172_v15  ;;  %3327 = vmatprep.subr.bf16.mxu1 %v11282_v14  ;;  %v11145_v26 = vcombine.low %v168_v13, %v172_v15  ;;  %p12834_p11 = pnand %p12833_p10, %p12827_p7 }
  0x5f   :  { %v300_v17 = vld [vmem:[#allocation7 + $0x560] sm:$0xff]  ;;  %3328 = vmatpush1.bf16.msra.mxu1 %v11281_v19 }
  0x60   :  { %v11274_v21 = vcombine.high %v296_v16, %v300_v17  ;;  %v160_v22 = vld [vmem:[#allocation7 + $0x100] sm:$0xff]  ;;  %3286 = vmatprep.subr.bf16.mxu0 %v11146_v20  ;;  %v11273_v27 = vcombine.low %v296_v16, %v300_v17 }
  0x61   :  { %v164_v23 = vld [vmem:[#allocation7 + $0x120] sm:$0xff]  ;;  %3287 = vmatpush1.bf16.msra.mxu0 %v11145_v26 }
  0x62   :  { %v288_v24 = vld [vmem:[#allocation7 + $0x500] sm:$0xff]  ;;  %v11138_v28 = vcombine.high %v160_v22, %v164_v23  ;;  %3329 = vmatprep.subr.bf16.mxu1 %v11274_v21  ;;  %v11137_v34 = vcombine.low %v160_v22, %v164_v23 }
  0x63   :  { %v292_v25 = vld [vmem:[#allocation7 + $0x520] sm:$0xff]  ;;  %3330 = vmatpush1.bf16.msra.mxu1 %v11273_v27 }
  0x64   :  { %v11266_v29 = vcombine.high %v288_v24, %v292_v25  ;;  %v152_v30 = vld [vmem:[#allocation7 + $0xc0] sm:$0xff]  ;;  %3288 = vmatprep.subr.bf16.mxu0 %v11138_v28  ;;  %v11265_v35 = vcombine.low %v288_v24, %v292_v25 }
  0x65   :  { %v156_v31 = vld [vmem:[#allocation7 + $0xe0] sm:$0xff]  ;;  %3289 = vmatpush1.bf16.msra.mxu0 %v11137_v34 }
  0x66   :  { %v280_v32 = vld [vmem:[#allocation7 + $0x4c0] sm:$0xff]  ;;  %v11130_v36 = vcombine.high %v152_v30, %v156_v31  ;;  %3331 = vmatprep.subr.bf16.mxu1 %v11266_v29  ;;  %v11129_v42 = vcombine.low %v152_v30, %v156_v31 }
  0x67   :  { %v284_v33 = vld [vmem:[#allocation7 + $0x4e0] sm:$0xff]  ;;  %3332 = vmatpush1.bf16.msra.mxu1 %v11265_v35 }
  0x68   :  { %v11258_v37 = vcombine.high %v280_v32, %v284_v33  ;;  %v144_v38 = vld [vmem:[#allocation7 + $0x80] sm:$0xff]  ;;  %3290 = vmatprep.subr.bf16.mxu0 %v11130_v36  ;;  %v11257_v43 = vcombine.low %v280_v32, %v284_v33 }
  0x69   :  { %v148_v39 = vld [vmem:[#allocation7 + $0xa0] sm:$0xff]  ;;  %3291 = vmatpush1.bf16.msra.mxu0 %v11129_v42 }
  0x6a   :  { %v272_v40 = vld [vmem:[#allocation7 + $0x480] sm:$0xff]  ;;  %v11122_v44 = vcombine.high %v144_v38, %v148_v39  ;;  %3333 = vmatprep.subr.bf16.mxu1 %v11258_v37  ;;  %v11121_v50 = vcombine.low %v144_v38, %v148_v39 }
  0x6b   :  { %v276_v41 = vld [vmem:[#allocation7 + $0x4a0] sm:$0xff]  ;;  %3334 = vmatpush1.bf16.msra.mxu1 %v11257_v43 }
  0x6c   :  { %v11250_v45 = vcombine.high %v272_v40, %v276_v41  ;;  %v136_v46 = vld [vmem:[#allocation7 + $0x40] sm:$0xff]  ;;  %3292 = vmatprep.subr.bf16.mxu0 %v11122_v44  ;;  %v11249_v51 = vcombine.low %v272_v40, %v276_v41 }
  0x6d   :  { %v140_v47 = vld [vmem:[#allocation7 + $0x60] sm:$0xff]  ;;  %3293 = vmatpush1.bf16.msra.mxu0 %v11121_v50 }
  0x6e   :  { %v264_v48 = vld [vmem:[#allocation7 + $0x440] sm:$0xff]  ;;  %v11114_v52 = vcombine.high %v136_v46, %v140_v47  ;;  %3335 = vmatprep.subr.bf16.mxu1 %v11250_v45  ;;  %v11113_v0 = vcombine.low %v136_v46, %v140_v47 }
  0x6f   :  { %v268_v49 = vld [vmem:[#allocation7 + $0x460] sm:$0xff]  ;;  %3336 = vmatpush1.bf16.msra.mxu1 %v11249_v51 }
  0x70   :  { %v128_v53 = vld [vmem:[#allocation7] sm:$0xff]  ;;  %v11242_v56 = vcombine.high %v264_v48, %v268_v49  ;;  %3294 = vmatprep.subr.bf16.mxu0 %v11114_v52  ;;  %v11241_v1 = vcombine.low %v264_v48, %v268_v49 }
  0x71   :  { %v12953_v54 = vld [vmem:[#allocation2] sm:$0xff]  ;;  %3295 = vmatpush1.bf16.msra.mxu0 %v11113_v0 }
  0x72   :  { %v12955_v55 = vld [vmem:[#allocation2 + $0x20] sm:$0xff]  ;;  %3337 = vmatprep.subr.bf16.mxu1 %v11242_v56 }
  0x73   :  { %v132_v57 = vld [vmem:[#allocation7 + $0x20] sm:$0xff]  ;;  %v12959_v58 = vcombine.high %v12953_v54, %v12955_v55  ;;  %3338 = vmatpush1.bf16.msra.mxu1 %v11241_v1 }
  0x74   :  { %v256_v61 = vld [vmem:[#allocation7 + $0x400] sm:$0xff]  ;;  %v11106_v2 = vcombine.high %v128_v53, %v132_v57  ;;  %v11105_v8 = vcombine.low %v128_v53, %v132_v57 }
  0x75   :  { %v260_v62 = vld [vmem:[#allocation7 + $0x420] sm:$0xff]  ;;  %3314 = vmatprep.mubr.bf16.mxu0 %v12959_v58 }
  0x76   :  { %v11234_v3 = vcombine.high %v256_v61, %v260_v62  ;;  %v248_v4 = vld [vmem:[#allocation7 + $0x3c0] sm:$0xff]  ;;  %3296 = vmatprep.subr.bf16.mxu0 %v11106_v2  ;;  %v11233_v9 = vcombine.low %v256_v61, %v260_v62 }
  0x77   :  { %v252_v5 = vld [vmem:[#allocation7 + $0x3e0] sm:$0xff]  ;;  %3297 = vmatpush1.bf16.msra.mxu0 %v11105_v8 }
  0x78   :  { %v376_v6 = vld [vmem:[#allocation7 + $0x7c0] sm:$0xff]  ;;  %v11226_v10 = vcombine.high %v248_v4, %v252_v5  ;;  %3339 = vmatprep.subr.bf16.mxu1 %v11234_v3  ;;  %v11225_v16 = vcombine.low %v248_v4, %v252_v5 }
  0x79   :  { %v380_v7 = vld [vmem:[#allocation7 + $0x7e0] sm:$0xff]  ;;  %3340 = vmatpush1.bf16.msra.mxu1 %v11233_v9 }
  0x7a   :  { %v11354_v11 = vcombine.high %v376_v6, %v380_v7  ;;  %v240_v12 = vld [vmem:[#allocation7 + $0x380] sm:$0xff]  ;;  %3298 = vmatprep.subr.bf16.mxu0 %v11226_v10  ;;  %v11353_v17 = vcombine.low %v376_v6, %v380_v7 }
  0x7b   :  { %v244_v13 = vld [vmem:[#allocation7 + $0x3a0] sm:$0xff]  ;;  %3299 = vmatpush2.bf16.msra.mxu0 %v11225_v16 }
  0x7c   :  { %v368_v14 = vld [vmem:[#allocation7 + $0x780] sm:$0xff]  ;;  %v11218_v18 = vcombine.high %v240_v12, %v244_v13  ;;  %3341 = vmatprep.subr.bf16.mxu1 %v11354_v11  ;;  %v11217_v24 = vcombine.low %v240_v12, %v244_v13 }
  0x7d   :  { %v372_v15 = vld [vmem:[#allocation7 + $0x7a0] sm:$0xff]  ;;  %3342 = vmatpush2.bf16.msra.mxu1 %v11353_v17 }
  0x7e   :  { %v11346_v19 = vcombine.high %v368_v14, %v372_v15  ;;  %v232_v20 = vld [vmem:[#allocation7 + $0x340] sm:$0xff]  ;;  %3300 = vmatprep.subr.bf16.mxu0 %v11218_v18  ;;  %v11345_v25 = vcombine.low %v368_v14, %v372_v15 }
  0x7f   :  { %v236_v21 = vld [vmem:[#allocation7 + $0x360] sm:$0xff]  ;;  %3301 = vmatpush2.bf16.msra.mxu0 %v11217_v24  ;;  %v12977_v24 = vld [vmem:[#allocation2 + $0x30] sm:$0xff] }
  0x80   :  { %v360_v22 = vld [vmem:[#allocation7 + $0x740] sm:$0xff]  ;;  %v11210_v26 = vcombine.high %v232_v20, %v236_v21  ;;  %3343 = vmatprep.subr.bf16.mxu1 %v11346_v19  ;;  %v11209_v32 = vcombine.low %v232_v20, %v236_v21  ;;  %v12973_v21 = vcombine.low %v12953_v54, %v12955_v55 }
  0x81   :  { %v364_v23 = vld [vmem:[#allocation7 + $0x760] sm:$0xff]  ;;  %3344 = vmatpush2.bf16.msra.mxu1 %v11345_v25  ;;  %v12981_v25 = vcombine.low %v12961_v59, %v12963_v60 }
  0x82   :  { %v11338_v27 = vcombine.high %v360_v22, %v364_v23  ;;  %v224_v28 = vld [vmem:[#allocation7 + $0x300] sm:$0xff]  ;;  %3302 = vmatprep.subr.bf16.mxu0 %v11210_v26  ;;  %v11337_v33 = vcombine.low %v360_v22, %v364_v23  ;;  %v12975_v23 = vld [vmem:[#allocation2 + $0x10] sm:$0xff] }
  0x83   :  { %v228_v29 = vld [vmem:[#allocation7 + $0x320] sm:$0xff]  ;;  %3303 = vmatpush2.bf16.msra.mxu0 %v11209_v32  ;;  %v12989_v32 = vcombine.high %v12975_v23, %v12977_v24 }
  0x84   :  { %v352_v30 = vld [vmem:[#allocation7 + $0x700] sm:$0xff]  ;;  %v11202_v34 = vcombine.high %v224_v28, %v228_v29  ;;  %3345 = vmatprep.subr.bf16.mxu1 %v11338_v27  ;;  %v11201_v40 = vcombine.low %v224_v28, %v228_v29  ;;  %v12983_v27 = vld [vmem:[#allocation2 + $0x18] sm:$0xff] }
  0x85   :  { %v356_v31 = vld [vmem:[#allocation7 + $0x720] sm:$0xff]  ;;  %3346 = vmatpush2.bf16.msra.mxu1 %v11337_v33  ;;  %v12985_v28 = vld [vmem:[#allocation2 + $0x38] sm:$0xff] }
  0x86   :  { %v11330_v35 = vcombine.high %v352_v30, %v356_v31  ;;  %v216_v36 = vld [vmem:[#allocation7 + $0x2c0] sm:$0xff]  ;;  %3304 = vmatprep.subr.bf16.mxu0 %v11202_v34  ;;  %v11329_v41 = vcombine.low %v352_v30, %v356_v31  ;;  %v12994_v33 = vcombine.high %v12983_v27, %v12985_v28 }
  0x87   :  { %v220_v37 = vld [vmem:[#allocation7 + $0x2e0] sm:$0xff]  ;;  %3305 = vmatpush2.bf16.msra.mxu0 %v11201_v40 }
  0x88   :  { %v344_v38 = vld [vmem:[#allocation7 + $0x6c0] sm:$0xff]  ;;  %v11194_v42 = vcombine.high %v216_v36, %v220_v37  ;;  %3347 = vmatprep.subr.bf16.mxu1 %v11330_v35  ;;  %v11193_v48 = vcombine.low %v216_v36, %v220_v37 }
  0x89   :  { %v348_v39 = vld [vmem:[#allocation7 + $0x6e0] sm:$0xff]  ;;  %3348 = vmatpush2.bf16.msra.mxu1 %v11329_v41 }
  0x8a   :  { %v11322_v43 = vcombine.high %v344_v38, %v348_v39  ;;  %v208_v44 = vld [vmem:[#allocation7 + $0x280] sm:$0xff]  ;;  %3306 = vmatprep.subr.bf16.mxu0 %v11194_v42  ;;  %v11321_v49 = vcombine.low %v344_v38, %v348_v39 }
  0x8b   :  { %v212_v45 = vld [vmem:[#allocation7 + $0x2a0] sm:$0xff]  ;;  %3307 = vmatpush2.bf16.msra.mxu0 %v11193_v48 }
  0x8c   :  { %v336_v46 = vld [vmem:[#allocation7 + $0x680] sm:$0xff]  ;;  %v11186_v50 = vcombine.high %v208_v44, %v212_v45  ;;  %3349 = vmatprep.subr.bf16.mxu1 %v11322_v43  ;;  %v11185_v61 = vcombine.low %v208_v44, %v212_v45 }
  0x8d   :  { %v340_v47 = vld [vmem:[#allocation7 + $0x6a0] sm:$0xff]  ;;  %3350 = vmatpush2.bf16.msra.mxu1 %v11321_v49 }
  0x8e   :  { %v11314_v51 = vcombine.high %v336_v46, %v340_v47  ;;  %v200_v52 = vld [vmem:[#allocation7 + $0x240] sm:$0xff]  ;;  %3308 = vmatprep.subr.bf16.mxu0 %v11186_v50  ;;  %v11313_v62 = vcombine.low %v336_v46, %v340_v47 }
  0x8f   :  { %v204_v53 = vld [vmem:[#allocation7 + $0x260] sm:$0xff]  ;;  %3309 = vmatpush2.bf16.msra.mxu0 %v11185_v61 }
  0x90   :  { %v328_v56 = vld [vmem:[#allocation7 + $0x640] sm:$0xff]  ;;  %v11178_v0 = vcombine.high %v200_v52, %v204_v53  ;;  %3351 = vmatprep.subr.bf16.mxu1 %v11314_v51  ;;  %v11177_v6 = vcombine.low %v200_v52, %v204_v53 }
  0x91   :  { %v332_v57 = vld [vmem:[#allocation7 + $0x660] sm:$0xff]  ;;  %3352 = vmatpush2.bf16.msra.mxu1 %v11313_v62 }
  0x92   :  { %v11306_v1 = vcombine.high %v328_v56, %v332_v57  ;;  %v192_v2 = vld [vmem:[#allocation7 + $0x200] sm:$0xff]  ;;  %3310 = vmatprep.subr.bf16.mxu0 %v11178_v0  ;;  %v11305_v7 = vcombine.low %v328_v56, %v332_v57 }
  0x93   :  { %v196_v3 = vld [vmem:[#allocation7 + $0x220] sm:$0xff]  ;;  %3311 = vmatpush2.bf16.msra.mxu0 %v11177_v6 }
  0x94   :  { %v320_v4 = vld [vmem:[#allocation7 + $0x600] sm:$0xff]  ;;  %v11170_v8 = vcombine.high %v192_v2, %v196_v3  ;;  %3353 = vmatprep.subr.bf16.mxu1 %v11306_v1  ;;  %v11169_v14 = vcombine.low %v192_v2, %v196_v3 }
  0x95   :  { %v324_v5 = vld [vmem:[#allocation7 + $0x620] sm:$0xff]  ;;  %3354 = vmatpush2.bf16.msra.mxu1 %v11305_v7 }
  0x96   :  { %v11298_v9 = vcombine.high %v320_v4, %v324_v5  ;;  %v440_v10 = vld [vmem:[#allocation7 + $0x9c0] sm:$0xff]  ;;  %3312 = vmatprep.subr.bf16.mxu0 %v11170_v8  ;;  %v11297_v15 = vcombine.low %v320_v4, %v324_v5 }
  0x97   :  { %v444_v11 = vld [vmem:[#allocation7 + $0x9e0] sm:$0xff]  ;;  %3313 = vmatpush2.bf16.msra.mxu0 %v11169_v14 }
  0x98   :  { %v568_v12 = vld [vmem:[#allocation7 + $0xdc0] sm:$0xff]  ;;  %v11418_v16 = vcombine.high %v440_v10, %v444_v11  ;;  %3355 = vmatprep.subr.bf16.mxu1 %v11298_v9  ;;  %v11417_v26 = vcombine.low %v440_v10, %v444_v11 }
  0x99   :  { %v572_v13 = vld [vmem:[#allocation7 + $0xde0] sm:$0xff]  ;;  %3356 = vmatpush2.bf16.msra.mxu1 %v11297_v15 }
  0x9a   :  { %v11546_v17 = vcombine.high %v568_v12, %v572_v13  ;;  %v432_v18 = vld [vmem:[#allocation7 + $0x980] sm:$0xff]  ;;  %3368 = vmatprep.subr.bf16.mxu0 %v11418_v16  ;;  %v11545_v29 = vcombine.low %v568_v12, %v572_v13  ;;  %3315 = vmatmul.mubr.bf16.vlgmr.msra.gmra.mxu0 %v12973_v21 }
  0x9b   :  { %v436_v19 = vld [vmem:[#allocation7 + $0x9a0] sm:$0xff]  ;;  %3369 = vmatpush1.bf16.msra.mxu0 %v11417_v26  ;;  %3400 = vmatprep.mubr.bf16.mxu0 %v12989_v32 }
  0x9c   :  { %v560_v20 = vld [vmem:[#allocation7 + $0xd80] sm:$0xff]  ;;  %v11410_v54 = vcombine.high %v432_v18, %v436_v19  ;;  %3411 = vmatprep.subr.bf16.mxu1 %v11546_v17  ;;  %3358 = vmatmul.mubr.bf16.vlgmr.msra.gmra.mxu1 %v12981_v25  ;;  %v11409_v34 = vcombine.low %v432_v18, %v436_v19 }
  0x9d   :  { %v564_v22 = vld [vmem:[#allocation7 + $0xda0] sm:$0xff]  ;;  %3412 = vmatpush1.bf16.msra.mxu1 %v11545_v29  ;;  %3443 = vmatprep.mubr.bf16.mxu1 %v12994_v33 }
  0x9e   :  { %v11538_v55 = vcombine.high %v560_v20, %v564_v22  ;;  %v424_v30 = vld [vmem:[#allocation7 + $0x940] sm:$0xff]  ;;  %3370 = vmatprep.subr.bf16.mxu0 %v11410_v54  ;;  %v11537_v35 = vcombine.low %v560_v20, %v564_v22 }
  0x9f   :  { %v428_v31 = vld [vmem:[#allocation7 + $0x960] sm:$0xff]  ;;  %3371 = vmatpush1.bf16.msra.mxu0 %v11409_v34 }
  0xa0   :  { %v552_v59 = vld [vmem:[#allocation7 + $0xd40] sm:$0xff]  ;;  %v11402_v36 = vcombine.high %v424_v30, %v428_v31  ;;  %3413 = vmatprep.subr.bf16.mxu1 %v11538_v55  ;;  %v11401_v42 = vcombine.low %v424_v30, %v428_v31 }
  0xa1   :  { %v556_v60 = vld [vmem:[#allocation7 + $0xd60] sm:$0xff]  ;;  %3414 = vmatpush1.bf16.msra.mxu1 %v11537_v35 }
  0xa2   :  { %v416_v37 = vld [vmem:[#allocation7 + $0x900] sm:$0xff]  ;;  %v11530_v40 = vcombine.high %v552_v59, %v556_v60  ;;  %3372 = vmatprep.subr.bf16.mxu0 %v11402_v36  ;;  %v11529_v43 = vcombine.low %v552_v59, %v556_v60 }
  0xa3   :  { %v420_v38 = vld [vmem:[#allocation7 + $0x920] sm:$0xff]  ;;  %3373 = vmatpush1.bf16.msra.mxu0 %v11401_v42 }
  0xa4   :  { %v544_v39 = vld [vmem:[#allocation7 + $0xd00] sm:$0xff]  ;;  %v11394_v44 = vcombine.high %v416_v37, %v420_v38  ;;  %3415 = vmatprep.subr.bf16.mxu1 %v11530_v40  ;;  %v11393_v50 = vcombine.low %v416_v37, %v420_v38 }
  0xa5   :  { %v548_v41 = vld [vmem:[#allocation7 + $0xd20] sm:$0xff]  ;;  %3416 = vmatpush1.bf16.msra.mxu1 %v11529_v43 }
  0xa6   :  { %v408_v45 = vld [vmem:[#allocation7 + $0x8c0] sm:$0xff]  ;;  %v11522_v48 = vcombine.high %v544_v39, %v548_v41  ;;  %3374 = vmatprep.subr.bf16.mxu0 %v11394_v44  ;;  %v11521_v51 = vcombine.low %v544_v39, %v548_v41 }
  0xa7   :  { %v412_v46 = vld [vmem:[#allocation7 + $0x8e0] sm:$0xff]  ;;  %3375 = vmatpush1.bf16.msra.mxu0 %v11393_v50 }
  0xa8   :  { %v536_v47 = vld [vmem:[#allocation7 + $0xcc0] sm:$0xff]  ;;  %v11386_v52 = vcombine.high %v408_v45, %v412_v46  ;;  %3417 = vmatprep.subr.bf16.mxu1 %v11522_v48  ;;  %v11385_v0 = vcombine.low %v408_v45, %v412_v46 }
  0xa9   :  { %v540_v49 = vld [vmem:[#allocation7 + $0xce0] sm:$0xff]  ;;  %3418 = vmatpush1.bf16.msra.mxu1 %v11521_v51 }
  0xaa   :  { %v400_v53 = vld [vmem:[#allocation7 + $0x880] sm:$0xff]  ;;  %v11514_v61 = vcombine.high %v536_v47, %v540_v49  ;;  %3376 = vmatprep.subr.bf16.mxu0 %v11386_v52  ;;  %v11513_v1 = vcombine.low %v536_v47, %v540_v49 }
  0xab   :  { %v404_v56 = vld [vmem:[#allocation7 + $0x8a0] sm:$0xff]  ;;  %3377 = vmatpush1.bf16.msra.mxu0 %v11385_v0 }
  0xac   :  { %v528_v57 = vld [vmem:[#allocation7 + $0xc80] sm:$0xff]  ;;  %v11378_v2 = vcombine.high %v400_v53, %v404_v56  ;;  %3419 = vmatprep.subr.bf16.mxu1 %v11514_v61  ;;  %v11377_v8 = vcombine.low %v400_v53, %v404_v56 }
  0xad   :  { %v532_v62 = vld [vmem:[#allocation7 + $0xca0] sm:$0xff]  ;;  %3420 = vmatpush1.bf16.msra.mxu1 %v11513_v1 }
  0xae   :  { %v392_v3 = vld [vmem:[#allocation7 + $0x840] sm:$0xff]  ;;  %v11506_v6 = vcombine.high %v528_v57, %v532_v62  ;;  %3378 = vmatprep.subr.bf16.mxu0 %v11378_v2  ;;  %v11505_v9 = vcombine.low %v528_v57, %v532_v62 }
  0xaf   :  { %v396_v4 = vld [vmem:[#allocation7 + $0x860] sm:$0xff]  ;;  %3379 = vmatpush1.bf16.msra.mxu0 %v11377_v8 }
  0xb0   :  { %v520_v5 = vld [vmem:[#allocation7 + $0xc40] sm:$0xff]  ;;  %v11370_v10 = vcombine.high %v392_v3, %v396_v4  ;;  %3421 = vmatprep.subr.bf16.mxu1 %v11506_v6  ;;  %v11369_v16 = vcombine.low %v392_v3, %v396_v4 }
  0xb1   :  { %v524_v7 = vld [vmem:[#allocation7 + $0xc60] sm:$0xff]  ;;  %3422 = vmatpush1.bf16.msra.mxu1 %v11505_v9 }
  0xb2   :  { %v384_v11 = vld [vmem:[#allocation7 + $0x800] sm:$0xff]  ;;  %v11498_v14 = vcombine.high %v520_v5, %v524_v7  ;;  %3380 = vmatprep.subr.bf16.mxu0 %v11370_v10  ;;  %v11497_v17 = vcombine.low %v520_v5, %v524_v7 }
  0xb3   :  { %v388_v12 = vld [vmem:[#allocation7 + $0x820] sm:$0xff]  ;;  %3381 = vmatpush1.bf16.msra.mxu0 %v11369_v16 }
  0xb4   :  { %v512_v13 = vld [vmem:[#allocation7 + $0xc00] sm:$0xff]  ;;  %v11362_v18 = vcombine.high %v384_v11, %v388_v12  ;;  %3423 = vmatprep.subr.bf16.mxu1 %v11498_v14  ;;  %v11361_v54 = vcombine.low %v384_v11, %v388_v12 }
  0xb5   :  { %v516_v15 = vld [vmem:[#allocation7 + $0xc20] sm:$0xff]  ;;  %3424 = vmatpush1.bf16.msra.mxu1 %v11497_v17 }
  0xb6   :  { %v504_v19 = vld [vmem:[#allocation7 + $0xbc0] sm:$0xff]  ;;  %v11490_v26 = vcombine.high %v512_v13, %v516_v15  ;;  %3382 = vmatprep.subr.bf16.mxu0 %v11362_v18  ;;  %v11489_v55 = vcombine.low %v512_v13, %v516_v15 }
  0xb7   :  { %v508_v20 = vld [vmem:[#allocation7 + $0xbe0] sm:$0xff]  ;;  %3383 = vmatpush1.bf16.msra.mxu0 %v11361_v54 }
  0xb8   :  { %v632_v22 = vld [vmem:[#allocation7 + $0xfc0] sm:$0xff]  ;;  %v11482_v30 = vcombine.high %v504_v19, %v508_v20  ;;  %3425 = vmatprep.subr.bf16.mxu1 %v11490_v26  ;;  %v11481_v36 = vcombine.low %v504_v19, %v508_v20 }
  0xb9   :  { %v636_v29 = vld [vmem:[#allocation7 + $0xfe0] sm:$0xff]  ;;  %3426 = vmatpush1.bf16.msra.mxu1 %v11489_v55 }
  0xba   :  { %v496_v31 = vld [vmem:[#allocation7 + $0xb80] sm:$0xff]  ;;  %v11610_v34 = vcombine.high %v632_v22, %v636_v29  ;;  %3384 = vmatprep.subr.bf16.mxu0 %v11482_v30  ;;  %v11609_v37 = vcombine.low %v632_v22, %v636_v29 }
  0xbb   :  { %v500_v59 = vld [vmem:[#allocation7 + $0xba0] sm:$0xff]  ;;  %3385 = vmatpush2.bf16.msra.mxu0 %v11481_v36 }
  0xbc   :  { %v624_v60 = vld [vmem:[#allocation7 + $0xf80] sm:$0xff]  ;;  %v11474_v38 = vcombine.high %v496_v31, %v500_v59  ;;  %3427 = vmatprep.subr.bf16.mxu1 %v11610_v34  ;;  %v11473_v44 = vcombine.low %v496_v31, %v500_v59  ;;  %v189_v34 = vld [vmem:[#allocation7 + $0x1e8] sm:$0xff] }
  0xbd   :  { %v628_v35 = vld [vmem:[#allocation7 + $0xfa0] sm:$0xff]  ;;  %3428 = vmatpush2.bf16.msra.mxu1 %v11609_v37  ;;  %v317_v37 = vld [vmem:[#allocation7 + $0x5e8] sm:$0xff] }
  0xbe   :  { %v488_v39 = vld [vmem:[#allocation7 + $0xb40] sm:$0xff]  ;;  %v11602_v42 = vcombine.high %v624_v60, %v628_v35  ;;  %3386 = vmatprep.subr.bf16.mxu0 %v11474_v38  ;;  %v11601_v45 = vcombine.low %v624_v60, %v628_v35  ;;  %v185_v60 = vld [vmem:[#allocation7 + $0x1c8] sm:$0xff] }
  0xbf   :  { %v492_v40 = vld [vmem:[#allocation7 + $0xb60] sm:$0xff]  ;;  %3387 = vmatpush2.bf16.msra.mxu0 %v11473_v44  ;;  %v313_v35 = vld [vmem:[#allocation7 + $0x5c8] sm:$0xff] }
  0xc0   :  { %v616_v41 = vld [vmem:[#allocation7 + $0xf40] sm:$0xff]  ;;  %v11466_v46 = vcombine.high %v488_v39, %v492_v40  ;;  %3429 = vmatprep.subr.bf16.mxu1 %v11602_v42  ;;  %v11465_v52 = vcombine.low %v488_v39, %v492_v40  ;;  %v11164_v40 = vcombine.high %v185_v60, %v189_v34  ;;  %v181_v42 = vld [vmem:[#allocation7 + $0x1a8] sm:$0xff]  ;;  %v11292_v44 = vcombine.high %v313_v35, %v317_v37 }
  0xc1   :  { %v620_v43 = vld [vmem:[#allocation7 + $0xf60] sm:$0xff]  ;;  %3430 = vmatpush2.bf16.msra.mxu1 %v11601_v45  ;;  %v309_v45 = vld [vmem:[#allocation7 + $0x5a8] sm:$0xff] }
  0xc2   :  { %v480_v47 = vld [vmem:[#allocation7 + $0xb00] sm:$0xff]  ;;  %v11594_v50 = vcombine.high %v616_v41, %v620_v43  ;;  %3388 = vmatprep.subr.bf16.mxu0 %v11466_v46  ;;  %v11593_v53 = vcombine.low %v616_v41, %v620_v43  ;;  %v177_v41 = vld [vmem:[#allocation7 + $0x188] sm:$0xff]  ;;  %v13001_v46 = vcombine.low %v12975_v23, %v12977_v24 }
  0xc3   :  { %v484_v48 = vld [vmem:[#allocation7 + $0xb20] sm:$0xff]  ;;  %3389 = vmatpush2.bf16.msra.mxu0 %v11465_v52  ;;  %v305_v43 = vld [vmem:[#allocation7 + $0x588] sm:$0xff]  ;;  %v11155_v23 = vcombine.low %v177_v41, %v181_v42 }
  0xc4   :  { %v608_v49 = vld [vmem:[#allocation7 + $0xf00] sm:$0xff]  ;;  %v11458_v56 = vcombine.high %v480_v47, %v484_v48  ;;  %3431 = vmatprep.subr.bf16.mxu1 %v11594_v50  ;;  %v11457_v2 = vcombine.low %v480_v47, %v484_v48  ;;  %v13005_v47 = vcombine.low %v12983_v27, %v12985_v28  ;;  %v11163_v48 = vcombine.low %v185_v60, %v189_v34  ;;  %v129_v34 = vld [vmem:[#allocation7 + $0x8] sm:$0xff] }
  0xc5   :  { %v612_v51 = vld [vmem:[#allocation7 + $0xf20] sm:$0xff]  ;;  %3432 = vmatpush2.bf16.msra.mxu1 %v11593_v53  ;;  %v11156_v50 = vcombine.high %v177_v41, %v181_v42  ;;  %v11284_v52 = vcombine.high %v305_v43, %v309_v45  ;;  %v173_v53 = vld [vmem:[#allocation7 + $0x168] sm:$0xff]  ;;  %v11283_v24 = vcombine.low %v305_v43, %v309_v45 }
  0xc6   :  { %v472_v57 = vld [vmem:[#allocation7 + $0xac0] sm:$0xff]  ;;  %v11586_v0 = vcombine.high %v608_v49, %v612_v51  ;;  %3390 = vmatprep.subr.bf16.mxu0 %v11458_v56  ;;  %v11585_v3 = vcombine.low %v608_v49, %v612_v51  ;;  %v11291_v49 = vcombine.low %v313_v35, %v317_v37  ;;  %v169_v51 = vld [vmem:[#allocation7 + $0x148] sm:$0xff] }
  0xc7   :  { %v476_v61 = vld [vmem:[#allocation7 + $0xae0] sm:$0xff]  ;;  %3391 = vmatpush2.bf16.msra.mxu0 %v11457_v2  ;;  %v297_v56 = vld [vmem:[#allocation7 + $0x548] sm:$0xff]  ;;  %v11148_v27 = vcombine.high %v169_v51, %v173_v53  ;;  %v11147_v2 = vcombine.low %v169_v51, %v173_v53 }
  0xc8   :  { %v600_v62 = vld [vmem:[#allocation7 + $0xec0] sm:$0xff]  ;;  %v11450_v4 = vcombine.high %v472_v57, %v476_v61  ;;  %3433 = vmatprep.subr.bf16.mxu1 %v11586_v0  ;;  %v11449_v10 = vcombine.low %v472_v57, %v476_v61  ;;  %v301_v57 = vld [vmem:[#allocation7 + $0x568] sm:$0xff] }
  0xc9   :  { %v604_v1 = vld [vmem:[#allocation7 + $0xee0] sm:$0xff]  ;;  %3434 = vmatpush2.bf16.msra.mxu1 %v11585_v3  ;;  %v11276_v28 = vcombine.high %v297_v56, %v301_v57  ;;  %v161_v61 = vld [vmem:[#allocation7 + $0x108] sm:$0xff]  ;;  %v11275_v3 = vcombine.low %v297_v56, %v301_v57 }
  0xca   :  { %v464_v5 = vld [vmem:[#allocation7 + $0xa80] sm:$0xff]  ;;  %v11578_v8 = vcombine.high %v600_v62, %v604_v1  ;;  %3392 = vmatprep.subr.bf16.mxu0 %v11450_v4  ;;  %v11577_v11 = vcombine.low %v600_v62, %v604_v1  ;;  %v165_v62 = vld [vmem:[#allocation7 + $0x128] sm:$0xff] }
  0xcb   :  { %v468_v6 = vld [vmem:[#allocation7 + $0xaa0] sm:$0xff]  ;;  %3393 = vmatpush2.bf16.msra.mxu0 %v11449_v10  ;;  %v289_v0 = vld [vmem:[#allocation7 + $0x508] sm:$0xff]  ;;  %v11140_v4 = vcombine.high %v161_v61, %v165_v62  ;;  %v11139_v10 = vcombine.low %v161_v61, %v165_v62 }
  0xcc   :  { %v592_v7 = vld [vmem:[#allocation7 + $0xe80] sm:$0xff]  ;;  %v11442_v12 = vcombine.high %v464_v5, %v468_v6  ;;  %3435 = vmatprep.subr.bf16.mxu1 %v11578_v8  ;;  %v11441_v18 = vcombine.low %v464_v5, %v468_v6  ;;  %v293_v1 = vld [vmem:[#allocation7 + $0x528] sm:$0xff] }
  0xcd   :  { %v596_v9 = vld [vmem:[#allocation7 + $0xea0] sm:$0xff]  ;;  %3436 = vmatpush2.bf16.msra.mxu1 %v11577_v11  ;;  %v11268_v5 = vcombine.high %v289_v0, %v293_v1  ;;  %v153_v6 = vld [vmem:[#allocation7 + $0xc8] sm:$0xff]  ;;  %v11267_v11 = vcombine.low %v289_v0, %v293_v1 }
  0xce   :  { %v456_v13 = vld [vmem:[#allocation7 + $0xa40] sm:$0xff]  ;;  %v11570_v16 = vcombine.high %v592_v7, %v596_v9  ;;  %3394 = vmatprep.subr.bf16.mxu0 %v11442_v12  ;;  %v11569_v19 = vcombine.low %v592_v7, %v596_v9  ;;  %v157_v7 = vld [vmem:[#allocation7 + $0xe8] sm:$0xff] }
  0xcf   :  { %v460_v14 = vld [vmem:[#allocation7 + $0xa60] sm:$0xff]  ;;  %3395 = vmatpush2.bf16.msra.mxu0 %v11441_v18  ;;  %v281_v8 = vld [vmem:[#allocation7 + $0x4c8] sm:$0xff]  ;;  %v11132_v12 = vcombine.high %v153_v6, %v157_v7  ;;  %v11131_v18 = vcombine.low %v153_v6, %v157_v7 }
  0xd0   :  { %v584_v15 = vld [vmem:[#allocation7 + $0xe40] sm:$0xff]  ;;  %v11434_v20 = vcombine.high %v456_v13, %v460_v14  ;;  %3437 = vmatprep.subr.bf16.mxu1 %v11570_v16  ;;  %v11433_v30 = vcombine.low %v456_v13, %v460_v14  ;;  %v285_v9 = vld [vmem:[#allocation7 + $0x4e8] sm:$0xff] }
  0xd1   :  { %v588_v17 = vld [vmem:[#allocation7 + $0xe60] sm:$0xff]  ;;  %3438 = vmatpush2.bf16.msra.mxu1 %v11569_v19  ;;  %v11260_v13 = vcombine.high %v281_v8, %v285_v9  ;;  %v145_v14 = vld [vmem:[#allocation7 + $0x88] sm:$0xff]  ;;  %v11259_v19 = vcombine.low %v281_v8, %v285_v9 }
  0xd2   :  { %v448_v22 = vld [vmem:[#allocation7 + $0xa00] sm:$0xff]  ;;  %v11562_v54 = vcombine.high %v584_v15, %v588_v17  ;;  %3396 = vmatprep.subr.bf16.mxu0 %v11434_v20  ;;  %v11561_v31 = vcombine.low %v584_v15, %v588_v17  ;;  %v149_v15 = vld [vmem:[#allocation7 + $0xa8] sm:$0xff] }
  0xd3   :  { %v452_v26 = vld [vmem:[#allocation7 + $0xa20] sm:$0xff]  ;;  %3397 = vmatpush2.bf16.msra.mxu0 %v11433_v30  ;;  %v273_v16 = vld [vmem:[#allocation7 + $0x488] sm:$0xff]  ;;  %v11124_v20 = vcombine.high %v145_v14, %v149_v15  ;;  %v11123_v30 = vcombine.low %v145_v14, %v149_v15 }
  0xd4   :  { %v576_v29 = vld [vmem:[#allocation7 + $0xe00] sm:$0xff]  ;;  %v11426_v59 = vcombine.high %v448_v22, %v452_v26  ;;  %3439 = vmatprep.subr.bf16.mxu1 %v11562_v54  ;;  %v11425_v38 = vcombine.low %v448_v22, %v452_v26  ;;  %v277_v17 = vld [vmem:[#allocation7 + $0x4a8] sm:$0xff] }
  0xd5   :  { %v580_v55 = vld [vmem:[#allocation7 + $0xe20] sm:$0xff]  ;;  %3440 = vmatpush2.bf16.msra.mxu1 %v11561_v31  ;;  %v11252_v22 = vcombine.high %v273_v16, %v277_v17  ;;  %v137_v26 = vld [vmem:[#allocation7 + $0x48] sm:$0xff]  ;;  %v11251_v31 = vcombine.low %v273_v16, %v277_v17 }
  0xd6   :  { %v11554_v36 = vcombine.high %v576_v29, %v580_v55  ;;  %3398 = vmatprep.subr.bf16.mxu0 %v11426_v59  ;;  %v11553_v39 = vcombine.low %v576_v29, %v580_v55  ;;  %v141_v29 = vld [vmem:[#allocation7 + $0x68] sm:$0xff] }
  0xd7   :  { %3399 = vmatpush2.bf16.msra.mxu0 %v11425_v38  ;;  %v265_v54 = vld [vmem:[#allocation7 + $0x448] sm:$0xff]  ;;  %v11116_v59 = vcombine.high %v137_v26, %v141_v29  ;;  %v11115_v38 = vcombine.low %v137_v26, %v141_v29 }
  0xd8   :  { %3441 = vmatprep.subr.bf16.mxu1 %v11554_v36  ;;  %3454 = vmatprep.subr.bf16.mxu0 %v11164_v40  ;;  %v269_v55 = vld [vmem:[#allocation7 + $0x468] sm:$0xff] }
  0xd9   :  { %3442 = vmatpush2.bf16.msra.mxu1 %v11553_v39  ;;  %v11244_v60 = vcombine.high %v265_v54, %v269_v55  ;;  %v133_v35 = vld [vmem:[#allocation7 + $0x28] sm:$0xff]  ;;  %v11243_v39 = vcombine.low %v265_v54, %v269_v55 }
  0xda   :  { %3497 = vmatprep.subr.bf16.mxu1 %v11292_v44  ;;  %3401 = vmatmul.mubr.bf16.vlgmr.msra.gmra.mxu0 %v13001_v46  ;;  %v257_v36 = vld [vmem:[#allocation7 + $0x408] sm:$0xff]  ;;  %v11108_v40 = vcombine.high %v129_v34, %v133_v35 }
  0xdb   :  { %3455 = vmatpush1.bf16.msra.mxu0 %v11163_v48  ;;  %3486 = vmatprep.mubr.bf16.mxu0 %v12959_v58  ;;  %v261_v37 = vld [vmem:[#allocation7 + $0x428] sm:$0xff]  ;;  %v11107_v48 = vcombine.low %v129_v34, %v133_v35 }
  0xdc   :  { %3444 = vmatmul.mubr.bf16.vlgmr.msra.gmra.mxu1 %v13005_v47  ;;  %3456 = vmatprep.subr.bf16.mxu0 %v11156_v50  ;;  %v11236_v41 = vcombine.high %v257_v36, %v261_v37  ;;  %v249_v42 = vld [vmem:[#allocation7 + $0x3c8] sm:$0xff] }
  0xdd   :  { %3498 = vmatpush1.bf16.msra.mxu1 %v11291_v49  ;;  %3529 = vmatprep.mubr.bf16.mxu1 %v12967_v63  ;;  %v253_v43 = vld [vmem:[#allocation7 + $0x3e8] sm:$0xff]  ;;  %v11235_v49 = vcombine.low %v257_v36, %v261_v37 }
  0xde   :  { %3499 = vmatprep.subr.bf16.mxu1 %v11284_v52  ;;  %v377_v44 = vld [vmem:[#allocation7 + $0x7c8] sm:$0xff]  ;;  %v11228_v50 = vcombine.high %v249_v42, %v253_v43 }
  0xdf   :  { %3457 = vmatpush1.bf16.msra.mxu0 %v11155_v23  ;;  %v381_v45 = vld [vmem:[#allocation7 + $0x7e8] sm:$0xff]  ;;  %v11227_v23 = vcombine.low %v249_v42, %v253_v43 }
  0xe0   :  { %3458 = vmatprep.subr.bf16.mxu0 %v11148_v27  ;;  %v11356_v51 = vcombine.high %v377_v44, %v381_v45  ;;  %v241_v52 = vld [vmem:[#allocation7 + $0x388] sm:$0xff] }
  0xe1   :  { %3500 = vmatpush1.bf16.msra.mxu1 %v11283_v24  ;;  %v245_v53 = vld [vmem:[#allocation7 + $0x3a8] sm:$0xff]  ;;  %v11355_v24 = vcombine.low %v377_v44, %v381_v45 }
  0xe2   :  { %3501 = vmatprep.subr.bf16.mxu1 %v11276_v28  ;;  %v369_v56 = vld [vmem:[#allocation7 + $0x788] sm:$0xff]  ;;  %v11220_v27 = vcombine.high %v241_v52, %v245_v53 }
  0xe3   :  { %3459 = vmatpush1.bf16.msra.mxu0 %v11147_v2  ;;  %v373_v57 = vld [vmem:[#allocation7 + $0x7a8] sm:$0xff]  ;;  %v11219_v2 = vcombine.low %v241_v52, %v245_v53 }
  0xe4   :  { %3460 = vmatprep.subr.bf16.mxu0 %v11140_v4  ;;  %v11348_v28 = vcombine.high %v369_v56, %v373_v57  ;;  %v233_v61 = vld [vmem:[#allocation7 + $0x348] sm:$0xff] }
  0xe5   :  { %3502 = vmatpush1.bf16.msra.mxu1 %v11275_v3  ;;  %v237_v62 = vld [vmem:[#allocation7 + $0x368] sm:$0xff]  ;;  %v11347_v3 = vcombine.low %v369_v56, %v373_v57 }
  0xe6   :  { %3503 = vmatprep.subr.bf16.mxu1 %v11268_v5  ;;  %v361_v0 = vld [vmem:[#allocation7 + $0x748] sm:$0xff]  ;;  %v11212_v4 = vcombine.high %v233_v61, %v237_v62 }
  0xe7   :  { %3461 = vmatpush1.bf16.msra.mxu0 %v11139_v10  ;;  %v365_v1 = vld [vmem:[#allocation7 + $0x768] sm:$0xff]  ;;  %v11211_v10 = vcombine.low %v233_v61, %v237_v62 }
  0xe8   :  { %3462 = vmatprep.subr.bf16.mxu0 %v11132_v12  ;;  %v11340_v5 = vcombine.high %v361_v0, %v365_v1  ;;  %v225_v6 = vld [vmem:[#allocation7 + $0x308] sm:$0xff] }
  0xe9   :  { %3504 = vmatpush1.bf16.msra.mxu1 %v11267_v11  ;;  %v229_v7 = vld [vmem:[#allocation7 + $0x328] sm:$0xff]  ;;  %v11339_v11 = vcombine.low %v361_v0, %v365_v1 }
  0xea   :  { %3505 = vmatprep.subr.bf16.mxu1 %v11260_v13  ;;  %v353_v8 = vld [vmem:[#allocation7 + $0x708] sm:$0xff]  ;;  %v11204_v12 = vcombine.high %v225_v6, %v229_v7 }
  0xeb   :  { %3463 = vmatpush1.bf16.msra.mxu0 %v11131_v18  ;;  %v357_v9 = vld [vmem:[#allocation7 + $0x728] sm:$0xff]  ;;  %v11203_v18 = vcombine.low %v225_v6, %v229_v7 }
  0xec   :  { %3464 = vmatprep.subr.bf16.mxu0 %v11124_v20  ;;  %v11332_v13 = vcombine.high %v353_v8, %v357_v9  ;;  %v217_v14 = vld [vmem:[#allocation7 + $0x2c8] sm:$0xff] }
  0xed   :  { %3506 = vmatpush1.bf16.msra.mxu1 %v11259_v19  ;;  %v221_v15 = vld [vmem:[#allocation7 + $0x2e8] sm:$0xff]  ;;  %v11331_v19 = vcombine.low %v353_v8, %v357_v9 }
  0xee   :  { %3507 = vmatprep.subr.bf16.mxu1 %v11252_v22  ;;  %v345_v16 = vld [vmem:[#allocation7 + $0x6c8] sm:$0xff]  ;;  %v11196_v20 = vcombine.high %v217_v14, %v221_v15 }
  0xef   :  { %3465 = vmatpush1.bf16.msra.mxu0 %v11123_v30  ;;  %v349_v17 = vld [vmem:[#allocation7 + $0x6e8] sm:$0xff]  ;;  %v11195_v30 = vcombine.low %v217_v14, %v221_v15 }
  0xf0   :  { %3466 = vmatprep.subr.bf16.mxu0 %v11116_v59  ;;  %v11324_v22 = vcombine.high %v345_v16, %v349_v17  ;;  %v209_v26 = vld [vmem:[#allocation7 + $0x288] sm:$0xff] }
  0xf1   :  { %3508 = vmatpush1.bf16.msra.mxu1 %v11251_v31  ;;  %v213_v29 = vld [vmem:[#allocation7 + $0x2a8] sm:$0xff]  ;;  %v11323_v31 = vcombine.low %v345_v16, %v349_v17 }
  0xf2   :  { %3509 = vmatprep.subr.bf16.mxu1 %v11244_v60  ;;  %v337_v54 = vld [vmem:[#allocation7 + $0x688] sm:$0xff]  ;;  %v11188_v59 = vcombine.high %v209_v26, %v213_v29 }
  0xf3   :  { %3467 = vmatpush1.bf16.msra.mxu0 %v11115_v38  ;;  %v341_v55 = vld [vmem:[#allocation7 + $0x6a8] sm:$0xff]  ;;  %v11187_v38 = vcombine.low %v209_v26, %v213_v29 }
  0xf4   :  { %3468 = vmatprep.subr.bf16.mxu0 %v11108_v40  ;;  %v11316_v60 = vcombine.high %v337_v54, %v341_v55  ;;  %v201_v34 = vld [vmem:[#allocation7 + $0x248] sm:$0xff] }
  0xf5   :  { %3510 = vmatpush1.bf16.msra.mxu1 %v11243_v39  ;;  %v205_v35 = vld [vmem:[#allocation7 + $0x268] sm:$0xff]  ;;  %v11315_v39 = vcombine.low %v337_v54, %v341_v55 }
  0xf6   :  { %3511 = vmatprep.subr.bf16.mxu1 %v11236_v41  ;;  %v329_v36 = vld [vmem:[#allocation7 + $0x648] sm:$0xff]  ;;  %v11180_v40 = vcombine.high %v201_v34, %v205_v35 }
  0xf7   :  { %3469 = vmatpush1.bf16.msra.mxu0 %v11107_v48  ;;  %v333_v37 = vld [vmem:[#allocation7 + $0x668] sm:$0xff]  ;;  %v11179_v48 = vcombine.low %v201_v34, %v205_v35 }
  0xf8   :  { %3470 = vmatprep.subr.bf16.mxu0 %v11228_v50  ;;  %v11308_v41 = vcombine.high %v329_v36, %v333_v37  ;;  %v193_v42 = vld [vmem:[#allocation7 + $0x208] sm:$0xff] }
  0xf9   :  { %3512 = vmatpush1.bf16.msra.mxu1 %v11235_v49  ;;  %v197_v43 = vld [vmem:[#allocation7 + $0x228] sm:$0xff]  ;;  %v11307_v49 = vcombine.low %v329_v36, %v333_v37 }
  0xfa   :  { %3513 = vmatprep.subr.bf16.mxu1 %v11356_v51  ;;  %v321_v44 = vld [vmem:[#allocation7 + $0x608] sm:$0xff]  ;;  %v11172_v50 = vcombine.high %v193_v42, %v197_v43 }
  0xfb   :  { %3471 = vmatpush2.bf16.msra.mxu0 %v11227_v23  ;;  %v325_v45 = vld [vmem:[#allocation7 + $0x628] sm:$0xff]  ;;  %v11171_v23 = vcombine.low %v193_v42, %v197_v43 }
  0xfc   :  { %3472 = vmatprep.subr.bf16.mxu0 %v11220_v27  ;;  %v11300_v51 = vcombine.high %v321_v44, %v325_v45  ;;  %v441_v52 = vld [vmem:[#allocation7 + $0x9c8] sm:$0xff] }
  0xfd   :  { %3514 = vmatpush2.bf16.msra.mxu1 %v11355_v24  ;;  %v445_v53 = vld [vmem:[#allocation7 + $0x9e8] sm:$0xff]  ;;  %v11299_v24 = vcombine.low %v321_v44, %v325_v45 }
  0xfe   :  { %3515 = vmatprep.subr.bf16.mxu1 %v11348_v28  ;;  %v569_v56 = vld [vmem:[#allocation7 + $0xdc8] sm:$0xff]  ;;  %v11420_v27 = vcombine.high %v441_v52, %v445_v53 }
  0xff   :  { %3473 = vmatpush2.bf16.msra.mxu0 %v11219_v2  ;;  %v573_v57 = vld [vmem:[#allocation7 + $0xde8] sm:$0xff]  ;;  %v11419_v2 = vcombine.low %v441_v52, %v445_v53 }
 0x100   :  { %3474 = vmatprep.subr.bf16.mxu0 %v11212_v4  ;;  %v11548_v28 = vcombine.high %v569_v56, %v573_v57  ;;  %v433_v61 = vld [vmem:[#allocation7 + $0x988] sm:$0xff] }
 0x101   :  { %3516 = vmatpush2.bf16.msra.mxu1 %v11347_v3  ;;  %v437_v62 = vld [vmem:[#allocation7 + $0x9a8] sm:$0xff]  ;;  %v11547_v3 = vcombine.low %v569_v56, %v573_v57 }
 0x102   :  { %3517 = vmatprep.subr.bf16.mxu1 %v11340_v5  ;;  %v561_v0 = vld [vmem:[#allocation7 + $0xd88] sm:$0xff]  ;;  %v11412_v4 = vcombine.high %v433_v61, %v437_v62 }
 0x103   :  { %3475 = vmatpush2.bf16.msra.mxu0 %v11211_v10  ;;  %v565_v1 = vld [vmem:[#allocation7 + $0xda8] sm:$0xff]  ;;  %v11411_v10 = vcombine.low %v433_v61, %v437_v62 }
 0x104   :  { %3476 = vmatprep.subr.bf16.mxu0 %v11204_v12  ;;  %v11540_v5 = vcombine.high %v561_v0, %v565_v1  ;;  %v425_v6 = vld [vmem:[#allocation7 + $0x948] sm:$0xff] }
 0x105   :  { %3518 = vmatpush2.bf16.msra.mxu1 %v11339_v11  ;;  %v429_v7 = vld [vmem:[#allocation7 + $0x968] sm:$0xff]  ;;  %v11539_v11 = vcombine.low %v561_v0, %v565_v1 }
 0x106   :  { %3519 = vmatprep.subr.bf16.mxu1 %v11332_v13  ;;  %v553_v8 = vld [vmem:[#allocation7 + $0xd48] sm:$0xff]  ;;  %v11404_v12 = vcombine.high %v425_v6, %v429_v7 }
 0x107   :  { %3477 = vmatpush2.bf16.msra.mxu0 %v11203_v18  ;;  %v557_v9 = vld [vmem:[#allocation7 + $0xd68] sm:$0xff]  ;;  %v11403_v18 = vcombine.low %v425_v6, %v429_v7 }
 0x108   :  { %3478 = vmatprep.subr.bf16.mxu0 %v11196_v20  ;;  %v11532_v13 = vcombine.high %v553_v8, %v557_v9  ;;  %v417_v14 = vld [vmem:[#allocation7 + $0x908] sm:$0xff] }
 0x109   :  { %3520 = vmatpush2.bf16.msra.mxu1 %v11331_v19  ;;  %v421_v15 = vld [vmem:[#allocation7 + $0x928] sm:$0xff]  ;;  %v11531_v19 = vcombine.low %v553_v8, %v557_v9 }
 0x10a   :  { %3521 = vmatprep.subr.bf16.mxu1 %v11324_v22  ;;  %v545_v16 = vld [vmem:[#allocation7 + $0xd08] sm:$0xff]  ;;  %v11396_v20 = vcombine.high %v417_v14, %v421_v15 }
 0x10b   :  { %3479 = vmatpush2.bf16.msra.mxu0 %v11195_v30  ;;  %v549_v17 = vld [vmem:[#allocation7 + $0xd28] sm:$0xff]  ;;  %v11395_v30 = vcombine.low %v417_v14, %v421_v15 }
 0x10c   :  { %3480 = vmatprep.subr.bf16.mxu0 %v11188_v59  ;;  %v11524_v22 = vcombine.high %v545_v16, %v549_v17  ;;  %v409_v26 = vld [vmem:[#allocation7 + $0x8c8] sm:$0xff] }
 0x10d   :  { %3522 = vmatpush2.bf16.msra.mxu1 %v11323_v31  ;;  %v413_v29 = vld [vmem:[#allocation7 + $0x8e8] sm:$0xff]  ;;  %v11523_v31 = vcombine.low %v545_v16, %v549_v17 }
 0x10e   :  { %3523 = vmatprep.subr.bf16.mxu1 %v11316_v60  ;;  %v537_v54 = vld [vmem:[#allocation7 + $0xcc8] sm:$0xff]  ;;  %v11388_v59 = vcombine.high %v409_v26, %v413_v29 }
 0x10f   :  { %3481 = vmatpush2.bf16.msra.mxu0 %v11187_v38  ;;  %v541_v55 = vld [vmem:[#allocation7 + $0xce8] sm:$0xff]  ;;  %v11387_v38 = vcombine.low %v409_v26, %v413_v29 }
 0x110   :  { %3482 = vmatprep.subr.bf16.mxu0 %v11180_v40  ;;  %v11516_v60 = vcombine.high %v537_v54, %v541_v55  ;;  %v401_v34 = vld [vmem:[#allocation7 + $0x888] sm:$0xff] }
 0x111   :  { %3524 = vmatpush2.bf16.msra.mxu1 %v11315_v39  ;;  %v405_v35 = vld [vmem:[#allocation7 + $0x8a8] sm:$0xff]  ;;  %v11515_v39 = vcombine.low %v537_v54, %v541_v55 }
 0x112   :  { %3525 = vmatprep.subr.bf16.mxu1 %v11308_v41  ;;  %v529_v36 = vld [vmem:[#allocation7 + $0xc88] sm:$0xff]  ;;  %v11380_v40 = vcombine.high %v401_v34, %v405_v35 }
 0x113   :  { %3483 = vmatpush2.bf16.msra.mxu0 %v11179_v48  ;;  %v533_v37 = vld [vmem:[#allocation7 + $0xca8] sm:$0xff]  ;;  %v11379_v48 = vcombine.low %v401_v34, %v405_v35 }
 0x114   :  { %3484 = vmatprep.subr.bf16.mxu0 %v11172_v50  ;;  %v11508_v41 = vcombine.high %v529_v36, %v533_v37  ;;  %v393_v42 = vld [vmem:[#allocation7 + $0x848] sm:$0xff] }
 0x115   :  { %3526 = vmatpush2.bf16.msra.mxu1 %v11307_v49  ;;  %v397_v43 = vld [vmem:[#allocation7 + $0x868] sm:$0xff]  ;;  %v11507_v49 = vcombine.low %v529_v36, %v533_v37 }
 0x116   :  { %3527 = vmatprep.subr.bf16.mxu1 %v11300_v51  ;;  %v521_v44 = vld [vmem:[#allocation7 + $0xc48] sm:$0xff]  ;;  %v11372_v50 = vcombine.high %v393_v42, %v397_v43 }
 0x117   :  { %3485 = vmatpush2.bf16.msra.mxu0 %v11171_v23  ;;  %v525_v45 = vld [vmem:[#allocation7 + $0xc68] sm:$0xff]  ;;  %v11371_v23 = vcombine.low %v393_v42, %v397_v43 }
 0x118   :  { %3540 = vmatprep.subr.bf16.mxu0 %v11420_v27  ;;  %v11500_v51 = vcombine.high %v521_v44, %v525_v45  ;;  %v385_v52 = vld [vmem:[#allocation7 + $0x808] sm:$0xff] }
 0x119   :  { %3528 = vmatpush2.bf16.msra.mxu1 %v11299_v24  ;;  %v389_v53 = vld [vmem:[#allocation7 + $0x828] sm:$0xff]  ;;  %v11499_v24 = vcombine.low %v521_v44, %v525_v45 }
 0x11a   :  { %3583 = vmatprep.subr.bf16.mxu1 %v11548_v28  ;;  %3487 = vmatmul.mubr.bf16.vlgmr.msra.gmra.mxu0 %v12973_v21  ;;  %v513_v56 = vld [vmem:[#allocation7 + $0xc08] sm:$0xff]  ;;  %v11364_v27 = vcombine.high %v385_v52, %v389_v53 }
 0x11b   :  { %3541 = vmatpush1.bf16.msra.mxu0 %v11419_v2  ;;  %3572 = vmatprep.mubr.bf16.mxu0 %v12989_v32  ;;  %v517_v57 = vld [vmem:[#allocation7 + $0xc28] sm:$0xff]  ;;  %v11363_v2 = vcombine.low %v385_v52, %v389_v53 }
 0x11c   :  { %3530 = vmatmul.mubr.bf16.vlgmr.msra.gmra.mxu1 %v12981_v25  ;;  %3542 = vmatprep.subr.bf16.mxu0 %v11412_v4  ;;  %v11492_v28 = vcombine.high %v513_v56, %v517_v57  ;;  %v505_v61 = vld [vmem:[#allocation7 + $0xbc8] sm:$0xff] }
 0x11d   :  { %3584 = vmatpush1.bf16.msra.mxu1 %v11547_v3  ;;  %3615 = vmatprep.mubr.bf16.mxu1 %v12994_v33  ;;  %v509_v62 = vld [vmem:[#allocation7 + $0xbe8] sm:$0xff]  ;;  %v11491_v3 = vcombine.low %v513_v56, %v517_v57 }
 0x11e   :  { %3585 = vmatprep.subr.bf16.mxu1 %v11540_v5  ;;  %v633_v0 = vld [vmem:[#allocation7 + $0xfc8] sm:$0xff]  ;;  %v11484_v4 = vcombine.high %v505_v61, %v509_v62 }
 0x11f   :  { %3543 = vmatpush1.bf16.msra.mxu0 %v11411_v10  ;;  %v637_v1 = vld [vmem:[#allocation7 + $0xfe8] sm:$0xff]  ;;  %v11483_v10 = vcombine.low %v505_v61, %v509_v62 }
 0x120   :  { %3544 = vmatprep.subr.bf16.mxu0 %v11404_v12  ;;  %v11612_v5 = vcombine.high %v633_v0, %v637_v1  ;;  %v497_v6 = vld [vmem:[#allocation7 + $0xb88] sm:$0xff] }
 0x121   :  { %3586 = vmatpush1.bf16.msra.mxu1 %v11539_v11  ;;  %v501_v7 = vld [vmem:[#allocation7 + $0xba8] sm:$0xff]  ;;  %v11611_v11 = vcombine.low %v633_v0, %v637_v1 }
 0x122   :  { %3587 = vmatprep.subr.bf16.mxu1 %v11532_v13  ;;  %v625_v8 = vld [vmem:[#allocation7 + $0xf88] sm:$0xff]  ;;  %v11476_v12 = vcombine.high %v497_v6, %v501_v7 }
 0x123   :  { %3545 = vmatpush1.bf16.msra.mxu0 %v11403_v18  ;;  %v629_v9 = vld [vmem:[#allocation7 + $0xfa8] sm:$0xff]  ;;  %v11475_v18 = vcombine.low %v497_v6, %v501_v7 }
 0x124   :  { %3546 = vmatprep.subr.bf16.mxu0 %v11396_v20  ;;  %v11604_v13 = vcombine.high %v625_v8, %v629_v9  ;;  %v489_v14 = vld [vmem:[#allocation7 + $0xb48] sm:$0xff] }
 0x125   :  { %3588 = vmatpush1.bf16.msra.mxu1 %v11531_v19  ;;  %v493_v15 = vld [vmem:[#allocation7 + $0xb68] sm:$0xff]  ;;  %v11603_v19 = vcombine.low %v625_v8, %v629_v9  ;;  %v186_v8 = vld [vmem:[#allocation7 + $0x1d0] sm:$0xff] }
 0x126   :  { %3589 = vmatprep.subr.bf16.mxu1 %v11524_v22  ;;  %v617_v16 = vld [vmem:[#allocation7 + $0xf48] sm:$0xff]  ;;  %v11468_v20 = vcombine.high %v489_v14, %v493_v15  ;;  %v190_v9 = vld [vmem:[#allocation7 + $0x1f0] sm:$0xff] }
 0x127   :  { %3547 = vmatpush1.bf16.msra.mxu0 %v11395_v30  ;;  %v621_v17 = vld [vmem:[#allocation7 + $0xf68] sm:$0xff]  ;;  %v11467_v30 = vcombine.low %v489_v14, %v493_v15  ;;  %v13018_v15 = vld [vmem:[#allocation10] sm:$0xff] }
 0x128   :  { %3548 = vmatprep.subr.bf16.mxu0 %v11388_v59  ;;  %v11596_v22 = vcombine.high %v617_v16, %v621_v17  ;;  %v481_v26 = vld [vmem:[#allocation7 + $0xb08] sm:$0xff] }
 0x129   :  { %3590 = vmatpush1.bf16.msra.mxu1 %v11523_v31  ;;  %v485_v29 = vld [vmem:[#allocation7 + $0xb28] sm:$0xff]  ;;  %v11595_v31 = vcombine.low %v617_v16, %v621_v17  ;;  %v11166_v16 = vcombine.high %v186_v8, %v190_v9 }
 0x12a   :  { %3591 = vmatprep.subr.bf16.mxu1 %v11516_v60  ;;  %v609_v54 = vld [vmem:[#allocation7 + $0xf08] sm:$0xff]  ;;  %v11460_v59 = vcombine.high %v481_v26, %v485_v29 }
 0x12b   :  { %3549 = vmatpush1.bf16.msra.mxu0 %v11387_v38  ;;  %v613_v55 = vld [vmem:[#allocation7 + $0xf28] sm:$0xff]  ;;  %v11459_v38 = vcombine.low %v481_v26, %v485_v29  ;;  %v310_v26 = vld [vmem:[#allocation7 + $0x5b0] sm:$0xff] }
 0x12c   :  { %3550 = vmatprep.subr.bf16.mxu0 %v11380_v40  ;;  %v11588_v60 = vcombine.high %v609_v54, %v613_v55  ;;  %v473_v34 = vld [vmem:[#allocation7 + $0xac8] sm:$0xff] }
 0x12d   :  { %3592 = vmatpush1.bf16.msra.mxu1 %v11515_v39  ;;  %v477_v35 = vld [vmem:[#allocation7 + $0xae8] sm:$0xff]  ;;  %v11587_v39 = vcombine.low %v609_v54, %v613_v55  ;;  %v11165_v54 = vcombine.low %v186_v8, %v190_v9  ;;  %v286_v8 = vld [vmem:[#allocation7 + $0x4f0] sm:$0xff] }
 0x12e   :  { %3593 = vmatprep.subr.bf16.mxu1 %v11508_v41  ;;  %v601_v36 = vld [vmem:[#allocation7 + $0xec8] sm:$0xff]  ;;  %v11452_v40 = vcombine.high %v473_v34, %v477_v35 }
 0x12f   :  { %3551 = vmatpush1.bf16.msra.mxu0 %v11379_v48  ;;  %v605_v37 = vld [vmem:[#allocation7 + $0xee8] sm:$0xff]  ;;  %v11451_v48 = vcombine.low %v473_v34, %v477_v35  ;;  %v174_v34 = vld [vmem:[#allocation7 + $0x170] sm:$0xff] }
 0x130   :  { %3552 = vmatprep.subr.bf16.mxu0 %v11372_v50  ;;  %v11580_v41 = vcombine.high %v601_v36, %v605_v37  ;;  %v465_v42 = vld [vmem:[#allocation7 + $0xa88] sm:$0xff] }
 0x131   :  { %3594 = vmatpush1.bf16.msra.mxu1 %v11507_v49  ;;  %v469_v43 = vld [vmem:[#allocation7 + $0xaa8] sm:$0xff]  ;;  %v11579_v49 = vcombine.low %v601_v36, %v605_v37  ;;  %v298_v36 = vld [vmem:[#allocation7 + $0x550] sm:$0xff] }
 0x132   :  { %3595 = vmatprep.subr.bf16.mxu1 %v11500_v51  ;;  %v593_v44 = vld [vmem:[#allocation7 + $0xe88] sm:$0xff]  ;;  %v11444_v50 = vcombine.high %v465_v42, %v469_v43  ;;  %v302_v37 = vld [vmem:[#allocation7 + $0x570] sm:$0xff] }
 0x133   :  { %3553 = vmatpush1.bf16.msra.mxu0 %v11371_v23  ;;  %v597_v45 = vld [vmem:[#allocation7 + $0xea8] sm:$0xff]  ;;  %v11443_v23 = vcombine.low %v465_v42, %v469_v43 }
 0x134   :  { %3554 = vmatprep.subr.bf16.mxu0 %v11364_v27  ;;  %v11572_v51 = vcombine.high %v593_v44, %v597_v45  ;;  %v457_v52 = vld [vmem:[#allocation7 + $0xa48] sm:$0xff]  ;;  %v11571_v27 = vcombine.low %v593_v44, %v597_v45 }
 0x135   :  { %3596 = vmatpush1.bf16.msra.mxu1 %v11499_v24  ;;  %v461_v53 = vld [vmem:[#allocation7 + $0xa68] sm:$0xff]  ;;  %v642_v24 = vlaneseq }
 0x136   :  { %3597 = vmatprep.subr.bf16.mxu1 %v11492_v28  ;;  %v585_v56 = vld [vmem:[#allocation7 + $0xe48] sm:$0xff]  ;;  %v11436_v28 = vcombine.high %v457_v52, %v461_v53 }
 0x137   :  { %3555 = vmatpush1.bf16.msra.mxu0 %v11363_v2  ;;  %v589_v57 = vld [vmem:[#allocation7 + $0xe68] sm:$0xff] }
 0x138   :  { %3556 = vmatprep.subr.bf16.mxu0 %v11484_v4  ;;  %v11564_v61 = vcombine.high %v585_v56, %v589_v57  ;;  %v449_v62 = vld [vmem:[#allocation7 + $0xa08] sm:$0xff]  ;;  %v13015_v4 = vshrl.u32 %v642_v24, 7 }
 0x139   :  { %3598 = vmatpush1.bf16.msra.mxu1 %v11491_v3  ;;  %v453_v0 = vld [vmem:[#allocation7 + $0xa28] sm:$0xff]  ;;  %v11435_v3 = vcombine.low %v457_v52, %v461_v53  ;;  %v290_v53 = vld [vmem:[#allocation7 + $0x510] sm:$0xff] }
 0x13a   :  { %3599 = vmatprep.subr.bf16.mxu1 %v11612_v5  ;;  %v577_v1 = vld [vmem:[#allocation7 + $0xe08] sm:$0xff]  ;;  %v11563_v5 = vcombine.low %v585_v56, %v589_v57  ;;  %v11428_v6 = vcombine.high %v449_v62, %v453_v0  ;;  %v294_v56 = vld [vmem:[#allocation7 + $0x530] sm:$0xff] }
 0x13b   :  { %3557 = vmatpush2.bf16.msra.mxu0 %v11483_v10  ;;  %v581_v2 = vld [vmem:[#allocation7 + $0xe28] sm:$0xff]  ;;  %v314_v10 = vld [vmem:[#allocation7 + $0x5d0] sm:$0xff] }
 0x13c   :  { %3558 = vmatprep.subr.bf16.mxu0 %v11476_v12  ;;  %v11556_v7 = vcombine.high %v577_v1, %v581_v2  ;;  %v11427_v12 = vcombine.low %v449_v62, %v453_v0  ;;  %v11555_v14 = vcombine.low %v577_v1, %v581_v2  ;;  %v11270_v2 = vcombine.high %v290_v53, %v294_v56 }
 0x13d   :  { %3600 = vmatpush2.bf16.msra.mxu1 %v11611_v11  ;;  %v318_v11 = vld [vmem:[#allocation7 + $0x5f0] sm:$0xff] }
 0x13e   :  { %3601 = vmatprep.subr.bf16.mxu1 %v11604_v13  ;;  %v644_v13 = vsub.s32 0, %v13015_v4  ;;  %v11294_v17 = vcombine.high %v314_v10, %v318_v11  ;;  %v11293_v55 = vcombine.low %v314_v10, %v318_v11  ;;  %v11269_v11 = vcombine.low %v290_v53, %v294_v56 }
 0x13f   :  { %3559 = vmatpush2.bf16.msra.mxu0 %v11475_v18  ;;  %v648_v18 = vsub.s32 1, %v13015_v4 }
 0x140   :  { %3560 = vmatprep.subr.bf16.mxu0 %v11468_v20  ;;  %v182_v20 = vld [vmem:[#allocation7 + $0x1b0] sm:$0xff]  ;;  %v645_v29 = vrot.slane %v13018_v15, %v644_v13 }
 0x141   :  { %3602 = vmatpush2.bf16.msra.mxu1 %v11603_v19  ;;  %v178_v19 = vld [vmem:[#allocation7 + $0x190] sm:$0xff] }
 0x142   :  { %3603 = vmatprep.subr.bf16.mxu1 %v11596_v22  ;;  %v306_v22 = vld [vmem:[#allocation7 + $0x590] sm:$0xff] }
 0x143   :  { %3561 = vmatpush2.bf16.msra.mxu0 %v11467_v30  ;;  %v11158_v30 = vcombine.high %v178_v19, %v182_v20  ;;  %v11285_v42 = vcombine.low %v306_v22, %v310_v26 }
 0x144   :  { %3562 = vmatprep.subr.bf16.mxu0 %v11460_v59  ;;  %v11286_v59 = vcombine.high %v306_v22, %v310_v26 }
 0x145   :  { %3604 = vmatpush2.bf16.msra.mxu1 %v11595_v31  ;;  %v649_v31 = vrot.slane %v13018_v15, %v648_v18 }
 0x146   :  { %3605 = vmatprep.subr.bf16.mxu1 %v11588_v60  ;;  %v170_v60 = vld [vmem:[#allocation7 + $0x150] sm:$0xff] }
 0x147   :  { %3563 = vmatpush2.bf16.msra.mxu0 %v11459_v38  ;;  %v11150_v43 = vcombine.high %v170_v60, %v174_v34 }
 0x148   :  { %3564 = vmatprep.subr.bf16.mxu0 %v11452_v40  ;;  %v11157_v40 = vcombine.low %v178_v19, %v182_v20  ;;  %v274_v19 = vld [vmem:[#allocation7 + $0x490] sm:$0xff] }
 0x149   :  { %3606 = vmatpush2.bf16.msra.mxu1 %v11587_v39  ;;  %v278_v20 = vld [vmem:[#allocation7 + $0x4b0] sm:$0xff] }
 0x14a   :  { %3607 = vmatprep.subr.bf16.mxu1 %v11580_v41 }
 0x14b   :  { %3565 = vmatpush2.bf16.msra.mxu0 %v11451_v48 }
 0x14c   :  { %3566 = vmatprep.subr.bf16.mxu0 %v11444_v50  ;;  %v162_v50 = vld [vmem:[#allocation7 + $0x110] sm:$0xff] }
 0x14d   :  { %3608 = vmatpush2.bf16.msra.mxu1 %v11579_v49  ;;  %v11278_v49 = vcombine.high %v298_v36, %v302_v37 }
 0x14e   :  { %3609 = vmatprep.subr.bf16.mxu1 %v11572_v51  ;;  %v166_v51 = vld [vmem:[#allocation7 + $0x130] sm:$0xff] }
 0x14f   :  { %3567 = vmatpush2.bf16.msra.mxu0 %v11443_v23  ;;  %v11142_v62 = vcombine.high %v162_v50, %v166_v51  ;;  %v11141_v10 = vcombine.low %v162_v50, %v166_v51  ;;  %v378_v50 = vld [vmem:[#allocation7 + $0x7d0] sm:$0xff] }
 0x150   :  { %3568 = vmatprep.subr.bf16.mxu0 %v11436_v28  ;;  %v382_v51 = vld [vmem:[#allocation7 + $0x7f0] sm:$0xff] }
 0x151   :  { %3610 = vmatpush2.bf16.msra.mxu1 %v11571_v27  ;;  %v11149_v27 = vcombine.low %v170_v60, %v174_v34  ;;  %v11253_v34 = vcombine.low %v274_v19, %v278_v20 }
 0x152   :  { %3611 = vmatprep.subr.bf16.mxu1 %v11564_v61  ;;  %v11277_v61 = vcombine.low %v298_v36, %v302_v37  ;;  %v130_v37 = vld [vmem:[#allocation7 + $0x10] sm:$0xff] }
 0x153   :  { %3569 = vmatpush2.bf16.msra.mxu0 %v11435_v3  ;;  %v154_v3 = vld [vmem:[#allocation7 + $0xd0] sm:$0xff] }
 0x154   :  { %3570 = vmatprep.subr.bf16.mxu0 %v11428_v6 }
 0x155   :  { %3612 = vmatpush2.bf16.msra.mxu1 %v11563_v5  ;;  %v158_v5 = vld [vmem:[#allocation7 + $0xf0] sm:$0xff] }
 0x156   :  { %3613 = vmatprep.subr.bf16.mxu1 %v11556_v7  ;;  %v282_v7 = vld [vmem:[#allocation7 + $0x4d0] sm:$0xff]  ;;  %v11133_v22 = vcombine.low %v154_v3, %v158_v5 }
 0x157   :  { %3571 = vmatpush2.bf16.msra.mxu0 %v11427_v12  ;;  %v11134_v12 = vcombine.high %v154_v3, %v158_v5  ;;  %v11261_v26 = vcombine.low %v282_v7, %v286_v8  ;;  %v234_v5 = vld [vmem:[#allocation7 + $0x350] sm:$0xff] }
 0x158   :  { %3626 = vmatprep.subr.bf16.mxu0 %v11166_v16  ;;  %v146_v16 = vld [vmem:[#allocation7 + $0x90] sm:$0xff] }
 0x159   :  { %3614 = vmatpush2.bf16.msra.mxu1 %v11555_v14  ;;  %v11262_v14 = vcombine.high %v282_v7, %v286_v8  ;;  %v362_v7 = vld [vmem:[#allocation7 + $0x750] sm:$0xff] }
 0x15a   :  { %3669 = vmatprep.subr.bf16.mxu1 %v11294_v17  ;;  %v3316_v35 = vpop.f32.mrf.mxu0  ;;  %3573 = vmatmul.mubr.bf16.vlgmr.msra.gmra.mxu0 %v13001_v46  ;;  %v150_v17 = vld [vmem:[#allocation7 + $0xb0] sm:$0xff] }
 0x15b   :  { %v3317_v38 = vadd.f32 %v3316_v35, %v645_v29  ;;  %3627 = vmatpush1.bf16.msra.mxu0 %v11165_v54  ;;  %3658 = vmatprep.mubr.bf16.mxu0 %v12959_v58  ;;  %v11254_v54 = vcombine.high %v274_v19, %v278_v20  ;;  %v11125_v60 = vcombine.low %v146_v16, %v150_v17  ;;  %v366_v8 = vld [vmem:[#allocation7 + $0x770] sm:$0xff] }
 0x15c   :  { %v3359_v39 = vpop.f32.mrf.mxu1  ;;  %3616 = vmatmul.mubr.bf16.vlgmr.msra.gmra.mxu1 %v13005_v47  ;;  %v3318_v41 = vpop.f32.mrf.mxu0  ;;  %3628 = vmatprep.subr.bf16.mxu0 %v11158_v30  ;;  %v142_v30 = vld [vmem:[#allocation7 + $0x70] sm:$0xff] }
 0x15d   :  { %3670 = vmatpush1.bf16.msra.mxu1 %v11293_v55  ;;  %v13029_v44 = vadd.f32 %v3359_v39, %v3317_v38  ;;  %v3319_v45 = vadd.f32 %v3318_v41, %v649_v31  ;;  %3701 = vmatprep.mubr.bf16.mxu1 %v12967_v63  ;;  %v138_v55 = vld [vmem:[#allocation7 + $0x50] sm:$0xff] }
 0x15e   :  { %v3361_v48 = vpop.f32.mrf.mxu1  ;;  %3671 = vmatprep.subr.bf16.mxu1 %v11286_v59  ;;  %v3320_v52 = vpop.f32.mrf.mxu0  ;;  %v270_v59 = vld [vmem:[#allocation7 + $0x470] sm:$0xff]  ;;  %v11118_v35 = vcombine.high %v138_v55, %v142_v30  ;;  %v11117_v41 = vcombine.low %v138_v55, %v142_v30 }
 0x15f   :  { %v13033_v57 = vadd.f32 %v3361_v48, %v3319_v45  ;;  %v3321_v23 = vadd.f32 %v3320_v52, %v645_v29  ;;  %3629 = vmatpush1.bf16.msra.mxu0 %v11157_v40  ;;  %v11126_v29 = vcombine.high %v146_v16, %v150_v17  ;;  %v134_v38 = vld [vmem:[#allocation7 + $0x30] sm:$0xff] }
 0x160   :  { %v3363_v24 = vpop.f32.mrf.mxu1  ;;  %v3322_v28 = vpop.f32.mrf.mxu0  ;;  %3630 = vmatprep.subr.bf16.mxu0 %v11150_v43  ;;  %v258_v39 = vld [vmem:[#allocation7 + $0x410] sm:$0xff]  ;;  %v11110_v43 = vcombine.high %v130_v37, %v134_v38  ;;  %v11109_v52 = vcombine.low %v130_v37, %v134_v38 }
 0x161   :  { %3672 = vmatpush1.bf16.msra.mxu1 %v11285_v42  ;;  %v13035_v0 = vadd.f32 %v3363_v24, %v3321_v23  ;;  %v3323_v1 = vadd.f32 %v3322_v28, %v649_v31  ;;  %v266_v31 = vld [vmem:[#allocation7 + $0x450] sm:$0xff]  ;;  %v11358_v23 = vcombine.high %v378_v50, %v382_v51 }
 0x162   :  { %3673 = vmatprep.subr.bf16.mxu1 %v11278_v49  ;;  %v3365_v6 = vpop.f32.mrf.mxu1  ;;  %v11246_v36 = vcombine.high %v266_v31, %v270_v59  ;;  %v262_v40 = vld [vmem:[#allocation7 + $0x430] sm:$0xff]  ;;  %v11245_v42 = vcombine.low %v266_v31, %v270_v59 }
 0x163   :  { %v13037_v9 = vadd.f32 %v3365_v6, %v3323_v1  ;;  %3631 = vmatpush1.bf16.msra.mxu0 %v11149_v27  ;;  %v11238_v45 = vcombine.high %v258_v39, %v262_v40  ;;  %v250_v48 = vld [vmem:[#allocation7 + $0x3d0] sm:$0xff]  ;;  %v11237_v53 = vcombine.low %v258_v39, %v262_v40  ;;  %v11357_v1 = vcombine.low %v378_v50, %v382_v51 }
 0x164   :  { %3632 = vmatprep.subr.bf16.mxu0 %v11142_v62  ;;  %v254_v49 = vld [vmem:[#allocation7 + $0x3f0] sm:$0xff] }
 0x165   :  { %3674 = vmatpush1.bf16.msra.mxu1 %v11277_v61  ;;  %v11230_v56 = vcombine.high %v250_v48, %v254_v49  ;;  %v242_v24 = vld [vmem:[#allocation7 + $0x390] sm:$0xff]  ;;  %v11229_v62 = vcombine.low %v250_v48, %v254_v49 }
 0x166   :  { %3675 = vmatprep.subr.bf16.mxu1 %v11270_v2  ;;  %v246_v27 = vld [vmem:[#allocation7 + $0x3b0] sm:$0xff] }
 0x167   :  { %3633 = vmatpush1.bf16.msra.mxu0 %v11141_v10  ;;  %v370_v28 = vld [vmem:[#allocation7 + $0x790] sm:$0xff]  ;;  %v11222_v2 = vcombine.high %v242_v24, %v246_v27  ;;  %v11221_v10 = vcombine.low %v242_v24, %v246_v27 }
 0x168   :  { %3634 = vmatprep.subr.bf16.mxu0 %v11134_v12  ;;  %v374_v61 = vld [vmem:[#allocation7 + $0x7b0] sm:$0xff] }
 0x169   :  { %3676 = vmatpush1.bf16.msra.mxu1 %v11269_v11  ;;  %v11350_v3 = vcombine.high %v370_v28, %v374_v61  ;;  %v238_v6 = vld [vmem:[#allocation7 + $0x370] sm:$0xff]  ;;  %v11349_v11 = vcombine.low %v370_v28, %v374_v61 }
 0x16a   :  { %3677 = vmatprep.subr.bf16.mxu1 %v11262_v14  ;;  %v11214_v12 = vcombine.high %v234_v5, %v238_v6  ;;  %v11342_v14 = vcombine.high %v362_v7, %v366_v8  ;;  %v226_v16 = vld [vmem:[#allocation7 + $0x310] sm:$0xff] }
 0x16b   :  { %3635 = vmatpush1.bf16.msra.mxu0 %v11133_v22  ;;  %v230_v17 = vld [vmem:[#allocation7 + $0x330] sm:$0xff]  ;;  %v11213_v22 = vcombine.low %v234_v5, %v238_v6 }
 0x16c   :  { %3636 = vmatprep.subr.bf16.mxu0 %v11126_v29  ;;  %v354_v19 = vld [vmem:[#allocation7 + $0x710] sm:$0xff]  ;;  %v11206_v29 = vcombine.high %v226_v16, %v230_v17 }
 0x16d   :  { %3678 = vmatpush1.bf16.msra.mxu1 %v11261_v26  ;;  %v358_v20 = vld [vmem:[#allocation7 + $0x730] sm:$0xff]  ;;  %v11341_v26 = vcombine.low %v362_v7, %v366_v8 }
 0x16e   :  { %3679 = vmatprep.subr.bf16.mxu1 %v11254_v54  ;;  %v11334_v54 = vcombine.high %v354_v19, %v358_v20  ;;  %v218_v55 = vld [vmem:[#allocation7 + $0x2d0] sm:$0xff] }
 0x16f   :  { %3637 = vmatpush1.bf16.msra.mxu0 %v11125_v60  ;;  %v222_v30 = vld [vmem:[#allocation7 + $0x2f0] sm:$0xff]  ;;  %v11205_v60 = vcombine.low %v226_v16, %v230_v17 }
 0x170   :  { %3638 = vmatprep.subr.bf16.mxu0 %v11118_v35  ;;  %v346_v31 = vld [vmem:[#allocation7 + $0x6d0] sm:$0xff]  ;;  %v11198_v35 = vcombine.high %v218_v55, %v222_v30 }
 0x171   :  { %3680 = vmatpush1.bf16.msra.mxu1 %v11253_v34  ;;  %v350_v59 = vld [vmem:[#allocation7 + $0x6f0] sm:$0xff]  ;;  %v11333_v34 = vcombine.low %v354_v19, %v358_v20 }
 0x172   :  { %3681 = vmatprep.subr.bf16.mxu1 %v11246_v36  ;;  %v11326_v36 = vcombine.high %v346_v31, %v350_v59  ;;  %v210_v37 = vld [vmem:[#allocation7 + $0x290] sm:$0xff] }
 0x173   :  { %3639 = vmatpush1.bf16.msra.mxu0 %v11117_v41  ;;  %v214_v38 = vld [vmem:[#allocation7 + $0x2b0] sm:$0xff]  ;;  %v11197_v41 = vcombine.low %v218_v55, %v222_v30 }
 0x174   :  { %3640 = vmatprep.subr.bf16.mxu0 %v11110_v43  ;;  %v338_v39 = vld [vmem:[#allocation7 + $0x690] sm:$0xff]  ;;  %v11190_v43 = vcombine.high %v210_v37, %v214_v38 }
 0x175   :  { %3682 = vmatpush1.bf16.msra.mxu1 %v11245_v42  ;;  %v342_v40 = vld [vmem:[#allocation7 + $0x6b0] sm:$0xff]  ;;  %v11325_v42 = vcombine.low %v346_v31, %v350_v59 }
 0x176   :  { %3683 = vmatprep.subr.bf16.mxu1 %v11238_v45  ;;  %v11318_v45 = vcombine.high %v338_v39, %v342_v40  ;;  %v202_v48 = vld [vmem:[#allocation7 + $0x250] sm:$0xff] }
 0x177   :  { %3641 = vmatpush1.bf16.msra.mxu0 %v11109_v52  ;;  %v206_v49 = vld [vmem:[#allocation7 + $0x270] sm:$0xff]  ;;  %v11189_v52 = vcombine.low %v210_v37, %v214_v38 }
 0x178   :  { %3642 = vmatprep.subr.bf16.mxu0 %v11230_v56  ;;  %v330_v50 = vld [vmem:[#allocation7 + $0x650] sm:$0xff]  ;;  %v11182_v56 = vcombine.high %v202_v48, %v206_v49 }
 0x179   :  { %3684 = vmatpush1.bf16.msra.mxu1 %v11237_v53  ;;  %v334_v51 = vld [vmem:[#allocation7 + $0x670] sm:$0xff]  ;;  %v11317_v53 = vcombine.low %v338_v39, %v342_v40 }
 0x17a   :  { %3685 = vmatprep.subr.bf16.mxu1 %v11358_v23  ;;  %v11310_v23 = vcombine.high %v330_v50, %v334_v51  ;;  %v194_v24 = vld [vmem:[#allocation7 + $0x210] sm:$0xff] }
 0x17b   :  { %3643 = vmatpush2.bf16.msra.mxu0 %v11229_v62  ;;  %v198_v27 = vld [vmem:[#allocation7 + $0x230] sm:$0xff]  ;;  %v11181_v62 = vcombine.low %v202_v48, %v206_v49 }
 0x17c   :  { %3644 = vmatprep.subr.bf16.mxu0 %v11222_v2  ;;  %v322_v28 = vld [vmem:[#allocation7 + $0x610] sm:$0xff]  ;;  %v11174_v2 = vcombine.high %v194_v24, %v198_v27 }
 0x17d   :  { %3686 = vmatpush2.bf16.msra.mxu1 %v11357_v1  ;;  %v326_v61 = vld [vmem:[#allocation7 + $0x630] sm:$0xff]  ;;  %v11309_v1 = vcombine.low %v330_v50, %v334_v51 }
 0x17e   :  { %3687 = vmatprep.subr.bf16.mxu1 %v11350_v3  ;;  %v11302_v3 = vcombine.high %v322_v28, %v326_v61  ;;  %v442_v5 = vld [vmem:[#allocation7 + $0x9d0] sm:$0xff] }
 0x17f   :  { %3645 = vmatpush2.bf16.msra.mxu0 %v11221_v10  ;;  %v446_v6 = vld [vmem:[#allocation7 + $0x9f0] sm:$0xff]  ;;  %v11173_v10 = vcombine.low %v194_v24, %v198_v27 }
 0x180   :  { %3646 = vmatprep.subr.bf16.mxu0 %v11214_v12  ;;  %v570_v7 = vld [vmem:[#allocation7 + $0xdd0] sm:$0xff]  ;;  %v11422_v12 = vcombine.high %v442_v5, %v446_v6 }
 0x181   :  { %3688 = vmatpush2.bf16.msra.mxu1 %v11349_v11  ;;  %v574_v8 = vld [vmem:[#allocation7 + $0xdf0] sm:$0xff]  ;;  %v11301_v11 = vcombine.low %v322_v28, %v326_v61 }
 0x182   :  { %3689 = vmatprep.subr.bf16.mxu1 %v11342_v14  ;;  %v11550_v14 = vcombine.high %v570_v7, %v574_v8  ;;  %v434_v16 = vld [vmem:[#allocation7 + $0x990] sm:$0xff] }
 0x183   :  { %3647 = vmatpush2.bf16.msra.mxu0 %v11213_v22  ;;  %v438_v17 = vld [vmem:[#allocation7 + $0x9b0] sm:$0xff]  ;;  %v11421_v22 = vcombine.low %v442_v5, %v446_v6 }
 0x184   :  { %3648 = vmatprep.subr.bf16.mxu0 %v11206_v29  ;;  %v562_v19 = vld [vmem:[#allocation7 + $0xd90] sm:$0xff]  ;;  %v11414_v29 = vcombine.high %v434_v16, %v438_v17 }
 0x185   :  { %3690 = vmatpush2.bf16.msra.mxu1 %v11341_v26  ;;  %v566_v20 = vld [vmem:[#allocation7 + $0xdb0] sm:$0xff]  ;;  %v11549_v26 = vcombine.low %v570_v7, %v574_v8 }
 0x186   :  { %3691 = vmatprep.subr.bf16.mxu1 %v11334_v54  ;;  %v11542_v54 = vcombine.high %v562_v19, %v566_v20  ;;  %v426_v55 = vld [vmem:[#allocation7 + $0x950] sm:$0xff]  ;;  %v11541_v38 = vcombine.low %v562_v19, %v566_v20 }
 0x187   :  { %3649 = vmatpush2.bf16.msra.mxu0 %v11205_v60  ;;  %v430_v30 = vld [vmem:[#allocation7 + $0x970] sm:$0xff] }
 0x188   :  { %3650 = vmatprep.subr.bf16.mxu0 %v11198_v35  ;;  %v554_v59 = vld [vmem:[#allocation7 + $0xd50] sm:$0xff]  ;;  %v11406_v39 = vcombine.high %v426_v55, %v430_v30 }
 0x189   :  { %3692 = vmatpush2.bf16.msra.mxu1 %v11333_v34  ;;  %v558_v60 = vld [vmem:[#allocation7 + $0xd70] sm:$0xff] }
 0x18a   :  { %3693 = vmatprep.subr.bf16.mxu1 %v11326_v36  ;;  %v11413_v36 = vcombine.low %v434_v16, %v438_v17  ;;  %v422_v48 = vld [vmem:[#allocation7 + $0x930] sm:$0xff] }
 0x18b   :  { %3651 = vmatpush2.bf16.msra.mxu0 %v11197_v41  ;;  %v546_v49 = vld [vmem:[#allocation7 + $0xd10] sm:$0xff] }
 0x18c   :  { %3652 = vmatprep.subr.bf16.mxu0 %v11190_v43  ;;  %v11534_v43 = vcombine.high %v554_v59, %v558_v60  ;;  %v550_v50 = vld [vmem:[#allocation7 + $0xd30] sm:$0xff] }
 0x18d   :  { %3694 = vmatpush2.bf16.msra.mxu1 %v11325_v42  ;;  %v11526_v61 = vcombine.high %v546_v49, %v550_v50  ;;  %v542_v5 = vld [vmem:[#allocation7 + $0xcf0] sm:$0xff]  ;;  %v11525_v7 = vcombine.low %v546_v49, %v550_v50 }
 0x18e   :  { %3695 = vmatprep.subr.bf16.mxu1 %v11318_v45  ;;  %v418_v45 = vld [vmem:[#allocation7 + $0x910] sm:$0xff] }
 0x18f   :  { %3653 = vmatpush2.bf16.msra.mxu0 %v11189_v52  ;;  %v11398_v24 = vcombine.high %v418_v45, %v422_v48  ;;  %v11397_v6 = vcombine.low %v418_v45, %v422_v48  ;;  %v634_v45 = vld [vmem:[#allocation7 + $0xfd0] sm:$0xff] }
 0x190   :  { %3654 = vmatprep.subr.bf16.mxu0 %v11182_v56  ;;  %v11405_v56 = vcombine.low %v426_v55, %v430_v30  ;;  %v638_v48 = vld [vmem:[#allocation7 + $0xff0] sm:$0xff] }
 0x191   :  { %3696 = vmatpush2.bf16.msra.mxu1 %v11317_v53 }
 0x192   :  { %3697 = vmatprep.subr.bf16.mxu1 %v11310_v23  ;;  %v11533_v23 = vcombine.low %v554_v59, %v558_v60  ;;  %v386_v60 = vld [vmem:[#allocation7 + $0x810] sm:$0xff] }
 0x193   :  { %3655 = vmatpush2.bf16.msra.mxu0 %v11181_v62  ;;  %v410_v62 = vld [vmem:[#allocation7 + $0x8d0] sm:$0xff] }
 0x194   :  { %3656 = vmatprep.subr.bf16.mxu0 %v11174_v2 }
 0x195   :  { %3698 = vmatpush2.bf16.msra.mxu1 %v11309_v1  ;;  %v414_v1 = vld [vmem:[#allocation7 + $0x8f0] sm:$0xff] }
 0x196   :  { %3699 = vmatprep.subr.bf16.mxu1 %v11302_v3  ;;  %v538_v3 = vld [vmem:[#allocation7 + $0xcd0] sm:$0xff]  ;;  %v11390_v8 = vcombine.high %v410_v62, %v414_v1  ;;  %v11389_v16 = vcombine.low %v410_v62, %v414_v1 }
 0x197   :  { %3657 = vmatpush2.bf16.msra.mxu0 %v11173_v10  ;;  %v11518_v10 = vcombine.high %v538_v3, %v542_v5  ;;  %v11517_v17 = vcombine.low %v538_v3, %v542_v5  ;;  %v490_v1 = vld [vmem:[#allocation7 + $0xb50] sm:$0xff] }
 0x198   :  { %3712 = vmatprep.subr.bf16.mxu0 %v11422_v12  ;;  %v406_v12 = vld [vmem:[#allocation7 + $0x8b0] sm:$0xff] }
 0x199   :  { %3700 = vmatpush2.bf16.msra.mxu1 %v11301_v11  ;;  %v402_v11 = vld [vmem:[#allocation7 + $0x890] sm:$0xff] }
 0x19a   :  { %3755 = vmatprep.subr.bf16.mxu1 %v11550_v14  ;;  %v3402_v31 = vpop.f32.mrf.mxu0  ;;  %3659 = vmatmul.mubr.bf16.vlgmr.msra.gmra.mxu0 %v12973_v21  ;;  %v534_v14 = vld [vmem:[#allocation7 + $0xcb0] sm:$0xff]  ;;  %v11382_v19 = vcombine.high %v402_v11, %v406_v12  ;;  %v11381_v55 = vcombine.low %v402_v11, %v406_v12 }
 0x19b   :  { %v3403_v34 = vadd.f32 %v3402_v31, %v13029_v44  ;;  %3713 = vmatpush1.bf16.msra.mxu0 %v11421_v22  ;;  %3744 = vmatprep.mubr.bf16.mxu0 %v12989_v32  ;;  %v394_v22 = vld [vmem:[#allocation7 + $0x850] sm:$0xff] }
 0x19c   :  { %v3445_v35 = vpop.f32.mrf.mxu1  ;;  %3702 = vmatmul.mubr.bf16.vlgmr.msra.gmra.mxu1 %v12981_v25  ;;  %v3404_v37 = vpop.f32.mrf.mxu0  ;;  %3714 = vmatprep.subr.bf16.mxu0 %v11414_v29  ;;  %v522_v29 = vld [vmem:[#allocation7 + $0xc50] sm:$0xff] }
 0x19d   :  { %3756 = vmatpush1.bf16.msra.mxu1 %v11549_v26  ;;  %v13042_v40 = vadd.f32 %v3445_v35, %v3403_v34  ;;  %v3405_v41 = vadd.f32 %v3404_v37, %v13033_v57  ;;  %3787 = vmatprep.mubr.bf16.mxu1 %v12994_v33  ;;  %v398_v26 = vld [vmem:[#allocation7 + $0x870] sm:$0xff] }
 0x19e   :  { %v3447_v42 = vpop.f32.mrf.mxu1  ;;  %3757 = vmatprep.subr.bf16.mxu1 %v11542_v54  ;;  %v3406_v44 = vpop.f32.mrf.mxu0  ;;  %v526_v54 = vld [vmem:[#allocation7 + $0xc70] sm:$0xff]  ;;  %v11374_v31 = vcombine.high %v394_v22, %v398_v26  ;;  %v11373_v37 = vcombine.low %v394_v22, %v398_v26 }
 0x19f   :  { %v13047_v51 = vadd.f32 %v3447_v42, %v3405_v41  ;;  %v3407_v52 = vadd.f32 %v3406_v44, %v13035_v0  ;;  %3715 = vmatpush1.bf16.msra.mxu0 %v11413_v36  ;;  %v11502_v59 = vcombine.high %v522_v29, %v526_v54  ;;  %v390_v34 = vld [vmem:[#allocation7 + $0x830] sm:$0xff] }
 0x1a0   :  { %v3449_v53 = vpop.f32.mrf.mxu1  ;;  %v3408_v57 = vpop.f32.mrf.mxu0  ;;  %3716 = vmatprep.subr.bf16.mxu0 %v11406_v39  ;;  %v514_v35 = vld [vmem:[#allocation7 + $0xc10] sm:$0xff]  ;;  %v11366_v39 = vcombine.high %v386_v60, %v390_v34  ;;  %v11365_v44 = vcombine.low %v386_v60, %v390_v34 }
 0x1a1   :  { %3758 = vmatpush1.bf16.msra.mxu1 %v11541_v38  ;;  %v13050_v27 = vadd.f32 %v3449_v53, %v3407_v52  ;;  %v3409_v28 = vadd.f32 %v3408_v57, %v13037_v9  ;;  %v530_v9 = vld [vmem:[#allocation7 + $0xc90] sm:$0xff]  ;;  %v11501_v38 = vcombine.low %v522_v29, %v526_v54  ;;  %v11614_v52 = vcombine.high %v634_v45, %v638_v48 }
 0x1a2   :  { %3759 = vmatprep.subr.bf16.mxu1 %v11534_v43  ;;  %v3451_v2 = vpop.f32.mrf.mxu1  ;;  %v11510_v20 = vcombine.high %v530_v9, %v534_v14  ;;  %v11509_v30 = vcombine.low %v530_v9, %v534_v14  ;;  %v518_v36 = vld [vmem:[#allocation7 + $0xc30] sm:$0xff] }
 0x1a3   :  { %13951 = vst [vmem:[#allocation20_spill] sm:$0xff] %v13050_v27  ;;  %v13053_v0 = vadd.f32 %v3451_v2, %v3409_v28  ;;  %3717 = vmatpush1.bf16.msra.mxu0 %v11405_v56  ;;  %v11494_v41 = vcombine.high %v514_v35, %v518_v36  ;;  %v506_v42 = vld [vmem:[#allocation7 + $0xbd0] sm:$0xff]  ;;  %v11493_v49 = vcombine.low %v514_v35, %v518_v36  ;;  %v4261_v27 = vld [vmem:[#allocation8 + $0x8d8] sm:$0xff] }
 0x1a4   :  { %3718 = vmatprep.subr.bf16.mxu0 %v11398_v24  ;;  %v510_v43 = vld [vmem:[#allocation7 + $0xbf0] sm:$0xff]  ;;  %v11613_v28 = vcombine.low %v634_v45, %v638_v48 }
 0x1a5   :  { %13952 = vst [vmem:[#allocation21_spill] sm:$0xff] %v13053_v0  ;;  %3760 = vmatpush1.bf16.msra.mxu1 %v11533_v23  ;;  %v11486_v50 = vcombine.high %v506_v42, %v510_v43  ;;  %v498_v53 = vld [vmem:[#allocation7 + $0xb90] sm:$0xff]  ;;  %v11485_v24 = vcombine.low %v506_v42, %v510_v43 }
 0x1a6   :  { %3761 = vmatprep.subr.bf16.mxu1 %v11526_v61  ;;  %v502_v56 = vld [vmem:[#allocation7 + $0xbb0] sm:$0xff] }
 0x1a7   :  { %3719 = vmatpush1.bf16.msra.mxu0 %v11397_v6  ;;  %v626_v57 = vld [vmem:[#allocation7 + $0xf90] sm:$0xff]  ;;  %v11478_v61 = vcombine.high %v498_v53, %v502_v56  ;;  %v11477_v6 = vcombine.low %v498_v53, %v502_v56 }
 0x1a8   :  { %3720 = vmatprep.subr.bf16.mxu0 %v11390_v8  ;;  %v630_v23 = vld [vmem:[#allocation7 + $0xfb0] sm:$0xff] }
 0x1a9   :  { %3762 = vmatpush1.bf16.msra.mxu1 %v11525_v7  ;;  %v11606_v62 = vcombine.high %v626_v57, %v630_v23  ;;  %v494_v2 = vld [vmem:[#allocation7 + $0xb70] sm:$0xff]  ;;  %v11605_v7 = vcombine.low %v626_v57, %v630_v23 }
 0x1aa   :  { %3763 = vmatprep.subr.bf16.mxu1 %v11518_v10  ;;  %v618_v3 = vld [vmem:[#allocation7 + $0xf50] sm:$0xff]  ;;  %v11470_v8 = vcombine.high %v490_v1, %v494_v2 }
 0x1ab   :  { %3721 = vmatpush1.bf16.msra.mxu0 %v11389_v16  ;;  %v622_v5 = vld [vmem:[#allocation7 + $0xf70] sm:$0xff]  ;;  %v11469_v16 = vcombine.low %v490_v1, %v494_v2  ;;  %v187_v1 = vld [vmem:[#allocation7 + $0x1d8] sm:$0xff] }
 0x1ac   :  { %3722 = vmatprep.subr.bf16.mxu0 %v11382_v19  ;;  %v11598_v10 = vcombine.high %v618_v3, %v622_v5  ;;  %v482_v11 = vld [vmem:[#allocation7 + $0xb10] sm:$0xff]  ;;  %v191_v2 = vld [vmem:[#allocation7 + $0x1f8] sm:$0xff] }
 0x1ad   :  { %3764 = vmatpush1.bf16.msra.mxu1 %v11517_v17  ;;  %v486_v12 = vld [vmem:[#allocation7 + $0xb30] sm:$0xff]  ;;  %v11597_v17 = vcombine.low %v618_v3, %v622_v5  ;;  %v315_v3 = vld [vmem:[#allocation7 + $0x5d8] sm:$0xff] }
 0x1ae   :  { %3765 = vmatprep.subr.bf16.mxu1 %v11510_v20  ;;  %v610_v9 = vld [vmem:[#allocation7 + $0xf10] sm:$0xff]  ;;  %v11462_v19 = vcombine.high %v482_v11, %v486_v12  ;;  %v319_v5 = vld [vmem:[#allocation7 + $0x5f8] sm:$0xff] }
 0x1af   :  { %3723 = vmatpush1.bf16.msra.mxu0 %v11381_v55  ;;  %v614_v14 = vld [vmem:[#allocation7 + $0xf30] sm:$0xff]  ;;  %v11461_v55 = vcombine.low %v482_v11, %v486_v12  ;;  %v11296_v11 = vcombine.high %v315_v3, %v319_v5  ;;  %v13949_v12 = vsub.s32 3, %v13015_v4 }
 0x1b0   :  { %3724 = vmatprep.subr.bf16.mxu0 %v11374_v31  ;;  %v11590_v20 = vcombine.high %v610_v9, %v614_v14  ;;  %v474_v22 = vld [vmem:[#allocation7 + $0xad0] sm:$0xff] }
 0x1b1   :  { %3766 = vmatpush1.bf16.msra.mxu1 %v11509_v30  ;;  %v478_v26 = vld [vmem:[#allocation7 + $0xaf0] sm:$0xff]  ;;  %v11589_v30 = vcombine.low %v610_v9, %v614_v14  ;;  %v179_v9 = vld [vmem:[#allocation7 + $0x198] sm:$0xff] }
 0x1b2   :  { %3767 = vmatprep.subr.bf16.mxu1 %v11502_v59  ;;  %v602_v29 = vld [vmem:[#allocation7 + $0xed0] sm:$0xff]  ;;  %v11454_v31 = vcombine.high %v474_v22, %v478_v26  ;;  %v183_v14 = vld [vmem:[#allocation7 + $0x1b8] sm:$0xff] }
 0x1b3   :  { %3725 = vmatpush1.bf16.msra.mxu0 %v11373_v37  ;;  %v606_v54 = vld [vmem:[#allocation7 + $0xef0] sm:$0xff]  ;;  %v11453_v37 = vcombine.low %v474_v22, %v478_v26  ;;  %v11295_v22 = vcombine.low %v315_v3, %v319_v5  ;;  %v11160_v26 = vcombine.high %v179_v9, %v183_v14  ;;  %v287_v5 = vld [vmem:[#allocation7 + $0x4f8] sm:$0xff] }
 0x1b4   :  { %3726 = vmatprep.subr.bf16.mxu0 %v11366_v39  ;;  %v11582_v59 = vcombine.high %v602_v29, %v606_v54  ;;  %v466_v60 = vld [vmem:[#allocation7 + $0xa90] sm:$0xff] }
 0x1b5   :  { %3768 = vmatpush1.bf16.msra.mxu1 %v11501_v38  ;;  %v470_v34 = vld [vmem:[#allocation7 + $0xab0] sm:$0xff]  ;;  %v11581_v38 = vcombine.low %v602_v29, %v606_v54  ;;  %v657_v29 = vrot.slane %v13018_v15, %v13949_v12 }
 0x1b6   :  { %3769 = vmatprep.subr.bf16.mxu1 %v11494_v41  ;;  %v594_v35 = vld [vmem:[#allocation7 + $0xe90] sm:$0xff]  ;;  %v11446_v39 = vcombine.high %v466_v60, %v470_v34 }
 0x1b7   :  { %3727 = vmatpush1.bf16.msra.mxu0 %v11365_v44  ;;  %v598_v36 = vld [vmem:[#allocation7 + $0xeb0] sm:$0xff]  ;;  %v11445_v44 = vcombine.low %v466_v60, %v470_v34  ;;  %v303_v60 = vld [vmem:[#allocation7 + $0x578] sm:$0xff] }
 0x1b8   :  { %3728 = vmatprep.subr.bf16.mxu0 %v11486_v50  ;;  %v11574_v41 = vcombine.high %v594_v35, %v598_v36  ;;  %v458_v42 = vld [vmem:[#allocation7 + $0xa50] sm:$0xff] }
 0x1b9   :  { %3770 = vmatpush1.bf16.msra.mxu1 %v11493_v49  ;;  %v462_v43 = vld [vmem:[#allocation7 + $0xa70] sm:$0xff]  ;;  %v11573_v49 = vcombine.low %v594_v35, %v598_v36  ;;  %v11159_v36 = vcombine.low %v179_v9, %v183_v14  ;;  %v147_v14 = vld [vmem:[#allocation7 + $0x98] sm:$0xff] }
 0x1ba   :  { %3771 = vmatprep.subr.bf16.mxu1 %v11614_v52  ;;  %v586_v45 = vld [vmem:[#allocation7 + $0xe50] sm:$0xff]  ;;  %v11438_v50 = vcombine.high %v458_v42, %v462_v43 }
 0x1bb   :  { %3729 = vmatpush2.bf16.msra.mxu0 %v11485_v24  ;;  %v590_v48 = vld [vmem:[#allocation7 + $0xe70] sm:$0xff]  ;;  %v11437_v24 = vcombine.low %v458_v42, %v462_v43 }
 0x1bc   :  { %3730 = vmatprep.subr.bf16.mxu0 %v11478_v61  ;;  %v11566_v52 = vcombine.high %v586_v45, %v590_v48  ;;  %v450_v53 = vld [vmem:[#allocation7 + $0xa10] sm:$0xff] }
 0x1bd   :  { %3772 = vmatpush2.bf16.msra.mxu1 %v11613_v28  ;;  %v454_v56 = vld [vmem:[#allocation7 + $0xa30] sm:$0xff]  ;;  %v11565_v28 = vcombine.low %v586_v45, %v590_v48  ;;  %v163_v45 = vld [vmem:[#allocation7 + $0x118] sm:$0xff] }
 0x1be   :  { %3773 = vmatprep.subr.bf16.mxu1 %v11606_v62  ;;  %v578_v57 = vld [vmem:[#allocation7 + $0xe10] sm:$0xff]  ;;  %v11430_v61 = vcombine.high %v450_v53, %v454_v56  ;;  %v167_v48 = vld [vmem:[#allocation7 + $0x138] sm:$0xff] }
 0x1bf   :  { %3731 = vmatpush2.bf16.msra.mxu0 %v11477_v6  ;;  %v582_v23 = vld [vmem:[#allocation7 + $0xe30] sm:$0xff]  ;;  %v11429_v6 = vcombine.low %v450_v53, %v454_v56 }
 0x1c0   :  { %3732 = vmatprep.subr.bf16.mxu0 %v11470_v8  ;;  %v11558_v62 = vcombine.high %v578_v57, %v582_v23  ;;  %v11557_v8 = vcombine.low %v578_v57, %v582_v23 }
 0x1c1   :  { %3774 = vmatpush2.bf16.msra.mxu1 %v11605_v7  ;;  %v13950_v7 = vsub.s32 2, %v13015_v4 }
 0x1c2   :  { %3775 = vmatprep.subr.bf16.mxu1 %v11598_v10  ;;  %v11168_v10 = vcombine.high %v187_v1, %v191_v2 }
 0x1c3   :  { %3733 = vmatpush2.bf16.msra.mxu0 %v11469_v16  ;;  %v307_v16 = vld [vmem:[#allocation7 + $0x598] sm:$0xff] }
 0x1c4   :  { %3734 = vmatprep.subr.bf16.mxu0 %v11462_v19  ;;  %v653_v19 = vrot.slane %v13018_v15, %v13950_v7  ;;  %v4388_v7 = vld [vmem:[#allocation8 + $0xcd0] sm:$0xff] }
 0x1c5   :  { %3776 = vmatpush2.bf16.msra.mxu1 %v11597_v17  ;;  %v311_v17 = vld [vmem:[#allocation7 + $0x5b8] sm:$0xff] }
 0x1c6   :  { %3777 = vmatprep.subr.bf16.mxu1 %v11590_v20  ;;  %v11167_v20 = vcombine.low %v187_v1, %v191_v2  ;;  %v11288_v54 = vcombine.high %v307_v16, %v311_v17  ;;  %v155_v1 = vld [vmem:[#allocation7 + $0xd8] sm:$0xff] }
 0x1c7   :  { %3735 = vmatpush2.bf16.msra.mxu0 %v11461_v55  ;;  %v171_v55 = vld [vmem:[#allocation7 + $0x158] sm:$0xff] }
 0x1c8   :  { %3736 = vmatprep.subr.bf16.mxu0 %v11454_v31  ;;  %v159_v2 = vld [vmem:[#allocation7 + $0xf8] sm:$0xff] }
 0x1c9   :  { %3778 = vmatpush2.bf16.msra.mxu1 %v11589_v30  ;;  %v175_v30 = vld [vmem:[#allocation7 + $0x178] sm:$0xff] }
 0x1ca   :  { %3779 = vmatprep.subr.bf16.mxu1 %v11582_v59  ;;  %v299_v59 = vld [vmem:[#allocation7 + $0x558] sm:$0xff]  ;;  %v11151_v57 = vcombine.low %v171_v55, %v175_v30 }
 0x1cb   :  { %3737 = vmatpush2.bf16.msra.mxu0 %v11453_v37  ;;  %v11280_v43 = vcombine.high %v299_v59, %v303_v60 }
 0x1cc   :  { %3738 = vmatprep.subr.bf16.mxu0 %v11446_v39  ;;  %v11152_v39 = vcombine.high %v171_v55, %v175_v30  ;;  %v143_v55 = vld [vmem:[#allocation7 + $0x78] sm:$0xff] }
 0x1cd   :  { %3780 = vmatpush2.bf16.msra.mxu1 %v11581_v38  ;;  %v11287_v38 = vcombine.low %v307_v16, %v311_v17  ;;  %v151_v16 = vld [vmem:[#allocation7 + $0xb8] sm:$0xff] }
 0x1ce   :  { %3781 = vmatprep.subr.bf16.mxu1 %v11574_v41  ;;  %v275_v17 = vld [vmem:[#allocation7 + $0x498] sm:$0xff] }
 0x1cf   :  { %3739 = vmatpush2.bf16.msra.mxu0 %v11445_v44  ;;  %v267_v30 = vld [vmem:[#allocation7 + $0x458] sm:$0xff] }
 0x1d0   :  { %3740 = vmatprep.subr.bf16.mxu0 %v11438_v50  ;;  %v295_v50 = vld [vmem:[#allocation7 + $0x538] sm:$0xff] }
 0x1d1   :  { %3782 = vmatpush2.bf16.msra.mxu1 %v11573_v49  ;;  %v291_v49 = vld [vmem:[#allocation7 + $0x518] sm:$0xff] }
 0x1d2   :  { %3783 = vmatprep.subr.bf16.mxu1 %v11566_v52 }
 0x1d3   :  { %3741 = vmatpush2.bf16.msra.mxu0 %v11437_v24  ;;  %v11279_v24 = vcombine.low %v299_v59, %v303_v60  ;;  %v11127_v59 = vcombine.low %v147_v14, %v151_v16 }
 0x1d4   :  { %3742 = vmatprep.subr.bf16.mxu0 %v11430_v61 }
 0x1d5   :  { %3784 = vmatpush2.bf16.msra.mxu1 %v11565_v28  ;;  %v11144_v28 = vcombine.high %v163_v45, %v167_v48 }
 0x1d6   :  { %3785 = vmatprep.subr.bf16.mxu1 %v11558_v62 }
 0x1d7   :  { %3743 = vmatpush2.bf16.msra.mxu0 %v11429_v6 }
 0x1d8   :  { %3798 = vmatprep.subr.bf16.mxu0 %v11168_v10  ;;  %v11271_v10 = vcombine.low %v291_v49, %v295_v50 }
 0x1d9   :  { %3786 = vmatpush2.bf16.msra.mxu1 %v11557_v8  ;;  %v11143_v8 = vcombine.low %v163_v45, %v167_v48  ;;  %v251_v48 = vld [vmem:[#allocation7 + $0x3d8] sm:$0xff] }
 0x1da   :  { %3841 = vmatprep.subr.bf16.mxu1 %v11296_v11  ;;  %v3488_v31 = vpop.f32.mrf.mxu0  ;;  %3745 = vmatmul.mubr.bf16.vlgmr.msra.gmra.mxu0 %v13001_v46  ;;  %v11136_v11 = vcombine.high %v155_v1, %v159_v2 }
 0x1db   :  { %v3489_v34 = vadd.f32 %v3488_v31, %v653_v19  ;;  %3799 = vmatpush1.bf16.msra.mxu0 %v11167_v20  ;;  %3830 = vmatprep.mubr.bf16.mxu0 %v12959_v58  ;;  %v11272_v58 = vcombine.high %v291_v49, %v295_v50  ;;  %v11135_v20 = vcombine.low %v155_v1, %v159_v2  ;;  %v271_v31 = vld [vmem:[#allocation7 + $0x478] sm:$0xff] }
 0x1dc   :  { %v3531_v35 = vpop.f32.mrf.mxu1  ;;  %3788 = vmatmul.mubr.bf16.vlgmr.msra.gmra.mxu1 %v13005_v47  ;;  %v3490_v37 = vpop.f32.mrf.mxu0  ;;  %3800 = vmatprep.subr.bf16.mxu0 %v11160_v26  ;;  %v11128_v26 = vcombine.high %v147_v14, %v151_v16  ;;  %v379_v49 = vld [vmem:[#allocation7 + $0x7d8] sm:$0xff] }
 0x1dd   :  { %3842 = vmatpush1.bf16.msra.mxu1 %v11295_v22  ;;  %v13065_v15 = vadd.f32 %v3531_v35, %v3489_v34  ;;  %v3491_v41 = vadd.f32 %v3490_v37, %v657_v29  ;;  %3873 = vmatprep.mubr.bf16.mxu1 %v12967_v63  ;;  %v283_v63 = vld [vmem:[#allocation7 + $0x4d8] sm:$0xff]  ;;  %v11248_v35 = vcombine.high %v267_v30, %v271_v31 }
 0x1de   :  { %v3533_v42 = vpop.f32.mrf.mxu1  ;;  %3843 = vmatprep.subr.bf16.mxu1 %v11288_v54  ;;  %v3492_v44 = vpop.f32.mrf.mxu0  ;;  %v11264_v9 = vcombine.high %v283_v63, %v287_v5  ;;  %v11263_v22 = vcombine.low %v283_v63, %v287_v5  ;;  %v139_v54 = vld [vmem:[#allocation7 + $0x58] sm:$0xff] }
 0x1df   :  { %v13069_v52 = vadd.f32 %v3533_v42, %v3491_v41  ;;  %v3493_v53 = vadd.f32 %v3492_v44, %v653_v19  ;;  %3801 = vmatpush1.bf16.msra.mxu0 %v11159_v36  ;;  %v279_v19 = vld [vmem:[#allocation7 + $0x4b8] sm:$0xff]  ;;  %v11120_v34 = vcombine.high %v139_v54, %v143_v55  ;;  %v11119_v41 = vcombine.low %v139_v54, %v143_v55 }
 0x1e0   :  { %v3535_v56 = vpop.f32.mrf.mxu1  ;;  %v3494_v23 = vpop.f32.mrf.mxu0  ;;  %3802 = vmatprep.subr.bf16.mxu0 %v11152_v39  ;;  %v11255_v60 = vcombine.low %v275_v17, %v279_v19  ;;  %v131_v36 = vld [vmem:[#allocation7 + $0x18] sm:$0xff]  ;;  %v11247_v42 = vcombine.low %v267_v30, %v271_v31 }
 0x1e1   :  { %3844 = vmatpush1.bf16.msra.mxu1 %v11287_v38  ;;  %v13071_v61 = vadd.f32 %v3535_v56, %v3493_v53  ;;  %v3495_v62 = vadd.f32 %v3494_v23, %v657_v29  ;;  %v11256_v29 = vcombine.high %v275_v17, %v279_v19  ;;  %v135_v37 = vld [vmem:[#allocation7 + $0x38] sm:$0xff] }
 0x1e2   :  { %3845 = vmatprep.subr.bf16.mxu1 %v11280_v43  ;;  %v3537_v3 = vpop.f32.mrf.mxu1  ;;  %v259_v38 = vld [vmem:[#allocation7 + $0x418] sm:$0xff]  ;;  %v11112_v43 = vcombine.high %v131_v36, %v135_v37  ;;  %v11111_v53 = vcombine.low %v131_v36, %v135_v37 }
 0x1e3   :  { %v13073_v6 = vadd.f32 %v3537_v3, %v3495_v62  ;;  %3803 = vmatpush1.bf16.msra.mxu0 %v11151_v57  ;;  %v263_v39 = vld [vmem:[#allocation7 + $0x438] sm:$0xff] }
 0x1e4   :  { %3804 = vmatprep.subr.bf16.mxu0 %v11144_v28  ;;  %v11240_v45 = vcombine.high %v259_v38, %v263_v39  ;;  %v255_v44 = vld [vmem:[#allocation7 + $0x3f8] sm:$0xff]  ;;  %v11239_v56 = vcombine.low %v259_v38, %v263_v39 }
 0x1e5   :  { %3846 = vmatpush1.bf16.msra.mxu1 %v11279_v24  ;;  %v383_v50 = vld [vmem:[#allocation7 + $0x7f8] sm:$0xff]  ;;  %v11232_v57 = vcombine.high %v251_v48, %v255_v44  ;;  %v11231_v1 = vcombine.low %v251_v48, %v255_v44 }
 0x1e6   :  { %3847 = vmatprep.subr.bf16.mxu1 %v11272_v58  ;;  %v11360_v23 = vcombine.high %v379_v49, %v383_v50  ;;  %v243_v24 = vld [vmem:[#allocation7 + $0x398] sm:$0xff]  ;;  %v11359_v2 = vcombine.low %v379_v49, %v383_v50 }
 0x1e7   :  { %3805 = vmatpush1.bf16.msra.mxu0 %v11143_v8  ;;  %v247_v28 = vld [vmem:[#allocation7 + $0x3b8] sm:$0xff] }
 0x1e8   :  { %3806 = vmatprep.subr.bf16.mxu0 %v11136_v11  ;;  %v371_v62 = vld [vmem:[#allocation7 + $0x798] sm:$0xff]  ;;  %v11224_v3 = vcombine.high %v243_v24, %v247_v28 }
 0x1e9   :  { %3848 = vmatpush1.bf16.msra.mxu1 %v11271_v10  ;;  %v375_v58 = vld [vmem:[#allocation7 + $0x7b8] sm:$0xff] }
 0x1ea   :  { %3849 = vmatprep.subr.bf16.mxu1 %v11264_v9  ;;  %v11352_v63 = vcombine.high %v371_v62, %v375_v58  ;;  %v235_v5 = vld [vmem:[#allocation7 + $0x358] sm:$0xff]  ;;  %v11223_v9 = vcombine.low %v243_v24, %v247_v28  ;;  %v11351_v14 = vcombine.low %v371_v62, %v375_v58 }
 0x1eb   :  { %3807 = vmatpush1.bf16.msra.mxu0 %v11135_v20  ;;  %v239_v8 = vld [vmem:[#allocation7 + $0x378] sm:$0xff] }
 0x1ec   :  { %3808 = vmatprep.subr.bf16.mxu0 %v11128_v26  ;;  %v363_v10 = vld [vmem:[#allocation7 + $0x758] sm:$0xff]  ;;  %v11216_v16 = vcombine.high %v235_v5, %v239_v8 }
 0x1ed   :  { %3850 = vmatpush1.bf16.msra.mxu1 %v11263_v22  ;;  %v367_v11 = vld [vmem:[#allocation7 + $0x778] sm:$0xff] }
 0x1ee   :  { %3851 = vmatprep.subr.bf16.mxu1 %v11256_v29  ;;  %v11344_v17 = vcombine.high %v363_v10, %v367_v11  ;;  %v227_v19 = vld [vmem:[#allocation7 + $0x318] sm:$0xff]  ;;  %v11215_v29 = vcombine.low %v235_v5, %v239_v8  ;;  %v11343_v54 = vcombine.low %v363_v10, %v367_v11 }
 0x1ef   :  { %3809 = vmatpush1.bf16.msra.mxu0 %v11127_v59  ;;  %v231_v20 = vld [vmem:[#allocation7 + $0x338] sm:$0xff] }
 0x1f0   :  { %3810 = vmatprep.subr.bf16.mxu0 %v11120_v34  ;;  %v355_v22 = vld [vmem:[#allocation7 + $0x718] sm:$0xff]  ;;  %v11208_v55 = vcombine.high %v227_v19, %v231_v20 }
 0x1f1   :  { %3852 = vmatpush1.bf16.msra.mxu1 %v11255_v60  ;;  %v359_v26 = vld [vmem:[#allocation7 + $0x738] sm:$0xff] }
 0x1f2   :  { %3853 = vmatprep.subr.bf16.mxu1 %v11248_v35  ;;  %v11336_v30 = vcombine.high %v355_v22, %v359_v26  ;;  %v219_v31 = vld [vmem:[#allocation7 + $0x2d8] sm:$0xff]  ;;  %v11207_v35 = vcombine.low %v227_v19, %v231_v20  ;;  %v11335_v36 = vcombine.low %v355_v22, %v359_v26 }
 0x1f3   :  { %3811 = vmatpush1.bf16.msra.mxu0 %v11119_v41  ;;  %v223_v59 = vld [vmem:[#allocation7 + $0x2f8] sm:$0xff] }
 0x1f4   :  { %3812 = vmatprep.subr.bf16.mxu0 %v11112_v43  ;;  %v347_v60 = vld [vmem:[#allocation7 + $0x6d8] sm:$0xff]  ;;  %v11200_v37 = vcombine.high %v219_v31, %v223_v59 }
 0x1f5   :  { %3854 = vmatpush1.bf16.msra.mxu1 %v11247_v42  ;;  %v351_v34 = vld [vmem:[#allocation7 + $0x6f8] sm:$0xff] }
 0x1f6   :  { %3855 = vmatprep.subr.bf16.mxu1 %v11240_v45  ;;  %v11328_v38 = vcombine.high %v347_v60, %v351_v34  ;;  %v211_v39 = vld [vmem:[#allocation7 + $0x298] sm:$0xff]  ;;  %v11199_v45 = vcombine.low %v219_v31, %v223_v59  ;;  %v11327_v48 = vcombine.low %v347_v60, %v351_v34 }
 0x1f7   :  { %3813 = vmatpush1.bf16.msra.mxu0 %v11111_v53  ;;  %v215_v41 = vld [vmem:[#allocation7 + $0x2b8] sm:$0xff] }
 0x1f8   :  { %3814 = vmatprep.subr.bf16.mxu0 %v11232_v57  ;;  %v339_v42 = vld [vmem:[#allocation7 + $0x698] sm:$0xff]  ;;  %v11192_v44 = vcombine.high %v211_v39, %v215_v41 }
 0x1f9   :  { %3856 = vmatpush1.bf16.msra.mxu1 %v11239_v56  ;;  %v343_v43 = vld [vmem:[#allocation7 + $0x6b8] sm:$0xff] }
 0x1fa   :  { %3857 = vmatprep.subr.bf16.mxu1 %v11360_v23  ;;  %v11320_v49 = vcombine.high %v339_v42, %v343_v43  ;;  %v203_v50 = vld [vmem:[#allocation7 + $0x258] sm:$0xff]  ;;  %v11191_v23 = vcombine.low %v211_v39, %v215_v41  ;;  %v11319_v24 = vcombine.low %v339_v42, %v343_v43 }
 0x1fb   :  { %3815 = vmatpush2.bf16.msra.mxu0 %v11231_v1  ;;  %v207_v53 = vld [vmem:[#allocation7 + $0x278] sm:$0xff] }
 0x1fc   :  { %3816 = vmatprep.subr.bf16.mxu0 %v11224_v3  ;;  %v331_v56 = vld [vmem:[#allocation7 + $0x658] sm:$0xff]  ;;  %v11184_v28 = vcombine.high %v203_v50, %v207_v53 }
 0x1fd   :  { %3858 = vmatpush2.bf16.msra.mxu1 %v11359_v2  ;;  %v335_v57 = vld [vmem:[#allocation7 + $0x678] sm:$0xff] }
 0x1fe   :  { %3859 = vmatprep.subr.bf16.mxu1 %v11352_v63  ;;  %v11312_v62 = vcombine.high %v331_v56, %v335_v57  ;;  %v195_v58 = vld [vmem:[#allocation7 + $0x218] sm:$0xff]  ;;  %v11183_v63 = vcombine.low %v203_v50, %v207_v53  ;;  %v11311_v5 = vcombine.low %v331_v56, %v335_v57 }
 0x1ff   :  { %3817 = vmatpush2.bf16.msra.mxu0 %v11223_v9  ;;  %v199_v1 = vld [vmem:[#allocation7 + $0x238] sm:$0xff] }
 0x200   :  { %3818 = vmatprep.subr.bf16.mxu0 %v11216_v16  ;;  %v323_v2 = vld [vmem:[#allocation7 + $0x618] sm:$0xff]  ;;  %v11176_v8 = vcombine.high %v195_v58, %v199_v1 }
 0x201   :  { %3860 = vmatpush2.bf16.msra.mxu1 %v11351_v14  ;;  %v327_v3 = vld [vmem:[#allocation7 + $0x638] sm:$0xff] }
 0x202   :  { %3861 = vmatprep.subr.bf16.mxu1 %v11344_v17  ;;  %v11304_v10 = vcombine.high %v323_v2, %v327_v3  ;;  %v443_v11 = vld [vmem:[#allocation7 + $0x9d8] sm:$0xff]  ;;  %v11175_v17 = vcombine.low %v195_v58, %v199_v1  ;;  %v11303_v19 = vcombine.low %v323_v2, %v327_v3 }
 0x203   :  { %3819 = vmatpush2.bf16.msra.mxu0 %v11215_v29  ;;  %v447_v9 = vld [vmem:[#allocation7 + $0x9f8] sm:$0xff] }
 0x204   :  { %3820 = vmatprep.subr.bf16.mxu0 %v11208_v55  ;;  %v571_v14 = vld [vmem:[#allocation7 + $0xdd8] sm:$0xff]  ;;  %v11424_v20 = vcombine.high %v443_v11, %v447_v9 }
 0x205   :  { %3862 = vmatpush2.bf16.msra.mxu1 %v11343_v54  ;;  %v575_v16 = vld [vmem:[#allocation7 + $0xdf8] sm:$0xff] }
 0x206   :  { %3863 = vmatprep.subr.bf16.mxu1 %v11336_v30  ;;  %v11552_v22 = vcombine.high %v571_v14, %v575_v16  ;;  %v435_v26 = vld [vmem:[#allocation7 + $0x998] sm:$0xff]  ;;  %v11423_v30 = vcombine.low %v443_v11, %v447_v9  ;;  %v11551_v31 = vcombine.low %v571_v14, %v575_v16 }
 0x207   :  { %3821 = vmatpush2.bf16.msra.mxu0 %v11207_v35  ;;  %v439_v29 = vld [vmem:[#allocation7 + $0x9b8] sm:$0xff] }
 0x208   :  { %3822 = vmatprep.subr.bf16.mxu0 %v11200_v37  ;;  %v563_v54 = vld [vmem:[#allocation7 + $0xd98] sm:$0xff]  ;;  %v11416_v59 = vcombine.high %v435_v26, %v439_v29  ;;  %v11415_v42 = vcombine.low %v435_v26, %v439_v29 }
 0x209   :  { %3864 = vmatpush2.bf16.msra.mxu1 %v11335_v36  ;;  %v567_v55 = vld [vmem:[#allocation7 + $0xdb8] sm:$0xff] }
 0x20a   :  { %3865 = vmatprep.subr.bf16.mxu1 %v11328_v38  ;;  %v11544_v60 = vcombine.high %v563_v54, %v567_v55  ;;  %v427_v34 = vld [vmem:[#allocation7 + $0x958] sm:$0xff] }
 0x20b   :  { %3823 = vmatpush2.bf16.msra.mxu0 %v11199_v45  ;;  %v431_v35 = vld [vmem:[#allocation7 + $0x978] sm:$0xff]  ;;  %v11543_v45 = vcombine.low %v563_v54, %v567_v55 }
 0x20c   :  { %3824 = vmatprep.subr.bf16.mxu0 %v11192_v44  ;;  %v555_v37 = vld [vmem:[#allocation7 + $0xd58] sm:$0xff] }
 0x20d   :  { %3866 = vmatpush2.bf16.msra.mxu1 %v11327_v48  ;;  %v559_v38 = vld [vmem:[#allocation7 + $0xd78] sm:$0xff]  ;;  %v11408_v48 = vcombine.high %v427_v34, %v431_v35 }
 0x20e   :  { %3867 = vmatprep.subr.bf16.mxu1 %v11320_v49  ;;  %v419_v53 = vld [vmem:[#allocation7 + $0x918] sm:$0xff]  ;;  %v11535_v58 = vcombine.low %v555_v37, %v559_v38 }
 0x20f   :  { %3825 = vmatpush2.bf16.msra.mxu0 %v11191_v23  ;;  %v423_v56 = vld [vmem:[#allocation7 + $0x938] sm:$0xff] }
 0x210   :  { %3826 = vmatprep.subr.bf16.mxu0 %v11184_v28  ;;  %v551_v57 = vld [vmem:[#allocation7 + $0xd38] sm:$0xff]  ;;  %v11400_v1 = vcombine.high %v419_v53, %v423_v56  ;;  %v11399_v11 = vcombine.low %v419_v53, %v423_v56 }
 0x211   :  { %3868 = vmatpush2.bf16.msra.mxu1 %v11319_v24  ;;  %v395_v55 = vld [vmem:[#allocation7 + $0x858] sm:$0xff] }
 0x212   :  { %3869 = vmatprep.subr.bf16.mxu1 %v11312_v62  ;;  %v11407_v62 = vcombine.low %v427_v34, %v431_v35  ;;  %v639_v53 = vld [vmem:[#allocation7 + $0xff8] sm:$0xff] }
 0x213   :  { %3827 = vmatpush2.bf16.msra.mxu0 %v11183_v63  ;;  %v411_v63 = vld [vmem:[#allocation7 + $0x8d8] sm:$0xff] }
 0x214   :  { %3828 = vmatprep.subr.bf16.mxu0 %v11176_v8  ;;  %v539_v8 = vld [vmem:[#allocation7 + $0xcd8] sm:$0xff] }
 0x215   :  { %3870 = vmatpush2.bf16.msra.mxu1 %v11311_v5 }
 0x216   :  { %3871 = vmatprep.subr.bf16.mxu1 %v11304_v10  ;;  %v543_v10 = vld [vmem:[#allocation7 + $0xcf8] sm:$0xff] }
 0x217   :  { %3829 = vmatpush2.bf16.msra.mxu0 %v11175_v17  ;;  %v11520_v16 = vcombine.high %v539_v8, %v543_v10  ;;  %v403_v17 = vld [vmem:[#allocation7 + $0x898] sm:$0xff]  ;;  %v11519_v26 = vcombine.low %v539_v8, %v543_v10 }
 0x218   :  { %3884 = vmatprep.subr.bf16.mxu0 %v11424_v20  ;;  %v535_v20 = vld [vmem:[#allocation7 + $0xcb8] sm:$0xff] }
 0x219   :  { %3872 = vmatpush2.bf16.msra.mxu1 %v11303_v19  ;;  %v407_v19 = vld [vmem:[#allocation7 + $0x8b8] sm:$0xff] }
 0x21a   :  { %3927 = vmatprep.subr.bf16.mxu1 %v11552_v22  ;;  %v3574_v36 = vpop.f32.mrf.mxu0  ;;  %3831 = vmatmul.mubr.bf16.vlgmr.msra.gmra.mxu0 %v12973_v21  ;;  %v11536_v21 = vcombine.high %v555_v37, %v559_v38  ;;  %v11384_v29 = vcombine.high %v403_v17, %v407_v19  ;;  %v387_v37 = vld [vmem:[#allocation7 + $0x818] sm:$0xff] }
 0x21b   :  { %v3575_v39 = vadd.f32 %v3574_v36, %v13065_v15  ;;  %3885 = vmatpush1.bf16.msra.mxu0 %v11423_v30  ;;  %3916 = vmatprep.mubr.bf16.mxu0 %v12989_v32  ;;  %v399_v30 = vld [vmem:[#allocation7 + $0x878] sm:$0xff] }
 0x21c   :  { %v3617_v41 = vpop.f32.mrf.mxu1  ;;  %3874 = vmatmul.mubr.bf16.vlgmr.msra.gmra.mxu1 %v12981_v25  ;;  %v3576_v43 = vpop.f32.mrf.mxu0  ;;  %3886 = vmatprep.subr.bf16.mxu0 %v11416_v59  ;;  %v547_v25 = vld [vmem:[#allocation7 + $0xd18] sm:$0xff]  ;;  %v11376_v35 = vcombine.high %v395_v55, %v399_v30 }
 0x21d   :  { %3928 = vmatpush1.bf16.msra.mxu1 %v11551_v31  ;;  %v13078_v44 = vadd.f32 %v3617_v41, %v3575_v39  ;;  %v3577_v49 = vadd.f32 %v3576_v43, %v13069_v52  ;;  %3959 = vmatprep.mubr.bf16.mxu1 %v12994_v33  ;;  %v11528_v3 = vcombine.high %v547_v25, %v551_v57  ;;  %v415_v33 = vld [vmem:[#allocation7 + $0x8f8] sm:$0xff] }
 0x21e   :  { %v3619_v50 = vpop.f32.mrf.mxu1  ;;  %3929 = vmatprep.subr.bf16.mxu1 %v11544_v60  ;;  %v3578_v15 = vpop.f32.mrf.mxu0  ;;  %v11527_v9 = vcombine.low %v547_v25, %v551_v57  ;;  %v11392_v14 = vcombine.high %v411_v63, %v415_v33  ;;  %v11391_v22 = vcombine.low %v411_v63, %v415_v33  ;;  %v523_v31 = vld [vmem:[#allocation7 + $0xc58] sm:$0xff]  ;;  %v11383_v60 = vcombine.low %v403_v17, %v407_v19 }
 0x21f   :  { %v13083_v23 = vadd.f32 %v3619_v50, %v3577_v49  ;;  %v3579_v24 = vadd.f32 %v3578_v15, %v13071_v61  ;;  %3887 = vmatpush1.bf16.msra.mxu0 %v11415_v42  ;;  %v527_v59 = vld [vmem:[#allocation7 + $0xc78] sm:$0xff]  ;;  %v11375_v42 = vcombine.low %v395_v55, %v399_v30 }
 0x220   :  { %v3621_v28 = vpop.f32.mrf.mxu1  ;;  %v3580_v52 = vpop.f32.mrf.mxu0  ;;  %3888 = vmatprep.subr.bf16.mxu0 %v11408_v48  ;;  %v11504_v36 = vcombine.high %v523_v31, %v527_v59  ;;  %v391_v38 = vld [vmem:[#allocation7 + $0x838] sm:$0xff]  ;;  %v11503_v43 = vcombine.low %v523_v31, %v527_v59 }
 0x221   :  { %3930 = vmatpush1.bf16.msra.mxu1 %v11543_v45  ;;  %v13086_v2 = vadd.f32 %v3621_v28, %v3579_v24  ;;  %v3581_v32 = vadd.f32 %v3580_v52, %v13073_v6  ;;  %v531_v6 = vld [vmem:[#allocation7 + $0xc98] sm:$0xff]  ;;  %v11368_v45 = vcombine.high %v387_v37, %v391_v38  ;;  %v11367_v56 = vcombine.low %v387_v37, %v391_v38 }
 0x222   :  { %3931 = vmatprep.subr.bf16.mxu1 %v11536_v21  ;;  %v3623_v5 = vpop.f32.mrf.mxu1  ;;  %v11512_v54 = vcombine.high %v531_v6, %v535_v20  ;;  %v11511_v34 = vcombine.low %v531_v6, %v535_v20  ;;  %v515_v39 = vld [vmem:[#allocation7 + $0xc18] sm:$0xff] }
 0x223   :  { %13953 = vst [vmem:[#allocation22_spill] sm:$0xff] %v13086_v2  ;;  %v13089_v61 = vadd.f32 %v3623_v5, %v3581_v32  ;;  %3889 = vmatpush1.bf16.msra.mxu0 %v11407_v62  ;;  %v519_v41 = vld [vmem:[#allocation7 + $0xc38] sm:$0xff] }
 0x224   :  { %3890 = vmatprep.subr.bf16.mxu0 %v11400_v1  ;;  %v11496_v48 = vcombine.high %v515_v39, %v519_v41  ;;  %v507_v49 = vld [vmem:[#allocation7 + $0xbd8] sm:$0xff]  ;;  %v11495_v15 = vcombine.low %v515_v39, %v519_v41 }
 0x225   :  { %13954 = vst [vmem:[#allocation23_spill] sm:$0xff] %v13089_v61  ;;  %3932 = vmatpush1.bf16.msra.mxu1 %v11535_v58  ;;  %v511_v50 = vld [vmem:[#allocation7 + $0xbf8] sm:$0xff] }
 0x226   :  { %3933 = vmatprep.subr.bf16.mxu1 %v11528_v3  ;;  %v635_v21 = vld [vmem:[#allocation7 + $0xfd8] sm:$0xff]  ;;  %v11488_v25 = vcombine.high %v507_v49, %v511_v50  ;;  %v11487_v58 = vcombine.low %v507_v49, %v511_v50 }
 0x227   :  { %3891 = vmatpush1.bf16.msra.mxu0 %v11399_v11  ;;  %v11616_v57 = vcombine.high %v635_v21, %v639_v53  ;;  %v499_v24 = vld [vmem:[#allocation7 + $0xb98] sm:$0xff]  ;;  %v11615_v1 = vcombine.low %v635_v21, %v639_v53 }
 0x228   :  { %3892 = vmatprep.subr.bf16.mxu0 %v11392_v14  ;;  %v503_v28 = vld [vmem:[#allocation7 + $0xbb8] sm:$0xff] }
 0x229   :  { %3934 = vmatpush1.bf16.msra.mxu1 %v11527_v9  ;;  %v627_v62 = vld [vmem:[#allocation7 + $0xf98] sm:$0xff]  ;;  %v11480_v32 = vcombine.high %v499_v24, %v503_v28  ;;  %v11479_v10 = vcombine.low %v499_v24, %v503_v28 }
 0x22a   :  { %3935 = vmatprep.subr.bf16.mxu1 %v11520_v16  ;;  %v631_v52 = vld [vmem:[#allocation7 + $0xfb8] sm:$0xff] }
 0x22b   :  { %3893 = vmatpush1.bf16.msra.mxu0 %v11391_v22  ;;  %v11608_v3 = vcombine.high %v627_v62, %v631_v52  ;;  %v491_v63 = vld [vmem:[#allocation7 + $0xb58] sm:$0xff]  ;;  %v11607_v11 = vcombine.low %v627_v62, %v631_v52 }
 0x22c   :  { %3894 = vmatprep.subr.bf16.mxu0 %v11384_v29  ;;  %v495_v33 = vld [vmem:[#allocation7 + $0xb78] sm:$0xff] }
 0x22d   :  { %3936 = vmatpush1.bf16.msra.mxu1 %v11519_v26  ;;  %v619_v5 = vld [vmem:[#allocation7 + $0xf58] sm:$0xff]  ;;  %v11472_v9 = vcombine.high %v491_v63, %v495_v33  ;;  %v11471_v20 = vcombine.low %v491_v63, %v495_v33  ;;  %v4038_v63 = vld [vmem:[#allocation8 + $0x1e0] sm:$0xff] }
 0x22e   :  { %3937 = vmatprep.subr.bf16.mxu1 %v11512_v54  ;;  %v623_v8 = vld [vmem:[#allocation7 + $0xf78] sm:$0xff]  ;;  %v4162_v33 = vld [vmem:[#allocation8 + $0x5c0] sm:$0xff] }
 0x22f   :  { %3895 = vmatpush1.bf16.msra.mxu0 %v11383_v60  ;;  %v11600_v14 = vcombine.high %v619_v5, %v623_v8  ;;  %v483_v16 = vld [vmem:[#allocation7 + $0xb18] sm:$0xff]  ;;  %v11599_v22 = vcombine.low %v619_v5, %v623_v8  ;;  %v4166_v5 = vld [vmem:[#allocation8 + $0x5e0] sm:$0xff] }
 0x230   :  { %3896 = vmatprep.subr.bf16.mxu0 %v11376_v35  ;;  %v487_v17 = vld [vmem:[#allocation7 + $0xb38] sm:$0xff] }
 0x231   :  { %3938 = vmatpush1.bf16.msra.mxu1 %v11511_v34  ;;  %v611_v19 = vld [vmem:[#allocation7 + $0xf18] sm:$0xff]  ;;  %v11464_v26 = vcombine.high %v483_v16, %v487_v17  ;;  %v11463_v59 = vcombine.low %v483_v16, %v487_v17  ;;  %v13947_v16 = vsub.s32 5, %v13015_v4  ;;  %v4026_v17 = vld [vmem:[#allocation8 + $0x180] sm:$0xff] }
 0x232   :  { %3939 = vmatprep.subr.bf16.mxu1 %v11504_v36  ;;  %v615_v6 = vld [vmem:[#allocation7 + $0xf38] sm:$0xff] }
 0x233   :  { %3897 = vmatpush1.bf16.msra.mxu0 %v11375_v42  ;;  %v11592_v29 = vcombine.high %v611_v19, %v615_v6  ;;  %v475_v54 = vld [vmem:[#allocation7 + $0xad8] sm:$0xff]  ;;  %v11591_v60 = vcombine.low %v611_v19, %v615_v6  ;;  %v4030_v19 = vld [vmem:[#allocation8 + $0x1a0] sm:$0xff] }
 0x234   :  { %3898 = vmatprep.subr.bf16.mxu0 %v11368_v45  ;;  %v479_v55 = vld [vmem:[#allocation7 + $0xaf8] sm:$0xff]  ;;  %v4154_v6 = vld [vmem:[#allocation8 + $0x580] sm:$0xff] }
 0x235   :  { %3940 = vmatpush1.bf16.msra.mxu1 %v11503_v43  ;;  %v603_v30 = vld [vmem:[#allocation7 + $0xed8] sm:$0xff]  ;;  %v11456_v34 = vcombine.high %v475_v54, %v479_v55  ;;  %v11455_v41 = vcombine.low %v475_v54, %v479_v55 }
 0x236   :  { %3941 = vmatprep.subr.bf16.mxu1 %v11496_v48  ;;  %v607_v31 = vld [vmem:[#allocation7 + $0xef8] sm:$0xff] }
 0x237   :  { %3899 = vmatpush1.bf16.msra.mxu0 %v11367_v56  ;;  %v11584_v35 = vcombine.high %v603_v30, %v607_v31  ;;  %v467_v36 = vld [vmem:[#allocation7 + $0xa98] sm:$0xff]  ;;  %v11583_v42 = vcombine.low %v603_v30, %v607_v31  ;;  %v13102_v30 = vld [vmem:[#allocation5 + $0x8] sm:$0xff] }
 0x238   :  { %3900 = vmatprep.subr.bf16.mxu0 %v11488_v25  ;;  %v471_v37 = vld [vmem:[#allocation7 + $0xab8] sm:$0xff]  ;;  %v13104_v31 = vld [vmem:[#allocation5 + $0x28] sm:$0xff] }
 0x239   :  { %3942 = vmatpush1.bf16.msra.mxu1 %v11495_v15  ;;  %v595_v38 = vld [vmem:[#allocation7 + $0xe98] sm:$0xff]  ;;  %v11448_v43 = vcombine.high %v467_v36, %v471_v37  ;;  %v11447_v53 = vcombine.low %v467_v36, %v471_v37  ;;  %v4018_v36 = vld [vmem:[#allocation8 + $0x140] sm:$0xff] }
 0x23a   :  { %3943 = vmatprep.subr.bf16.mxu1 %v11616_v57  ;;  %v599_v39 = vld [vmem:[#allocation7 + $0xeb8] sm:$0xff]  ;;  %v4022_v37 = vld [vmem:[#allocation8 + $0x160] sm:$0xff] }
 0x23b   :  { %3901 = vmatpush2.bf16.msra.mxu0 %v11487_v58  ;;  %v11576_v45 = vcombine.high %v595_v38, %v599_v39  ;;  %v459_v48 = vld [vmem:[#allocation7 + $0xa58] sm:$0xff]  ;;  %v11575_v56 = vcombine.low %v595_v38, %v599_v39 }
 0x23c   :  { %3902 = vmatprep.subr.bf16.mxu0 %v11480_v32  ;;  %v463_v49 = vld [vmem:[#allocation7 + $0xa78] sm:$0xff] }
 0x23d   :  { %3944 = vmatpush2.bf16.msra.mxu1 %v11615_v1  ;;  %v587_v50 = vld [vmem:[#allocation7 + $0xe58] sm:$0xff]  ;;  %v11440_v15 = vcombine.high %v459_v48, %v463_v49  ;;  %v11439_v52 = vcombine.low %v459_v48, %v463_v49  ;;  %v11673_v49 = vcombine.low %v4026_v17, %v4030_v19 }
 0x23e   :  { %3945 = vmatprep.subr.bf16.mxu1 %v11608_v3  ;;  %v591_v21 = vld [vmem:[#allocation7 + $0xe78] sm:$0xff]  ;;  %v4034_v3 = vld [vmem:[#allocation8 + $0x1c0] sm:$0xff] }
 0x23f   :  { %3903 = vmatpush2.bf16.msra.mxu0 %v11479_v10  ;;  %v11568_v25 = vcombine.high %v587_v50, %v591_v21  ;;  %v451_v57 = vld [vmem:[#allocation7 + $0xa18] sm:$0xff]  ;;  %v11567_v58 = vcombine.low %v587_v50, %v591_v21  ;;  %v13948_v10 = vsub.s32 4, %v13015_v4  ;;  %v11681_v55 = vcombine.low %v4034_v3, %v4038_v63 }
 0x240   :  { %3904 = vmatprep.subr.bf16.mxu0 %v11472_v9  ;;  %v455_v24 = vld [vmem:[#allocation7 + $0xa38] sm:$0xff]  ;;  %v11682_v9 = vcombine.high %v4034_v3, %v4038_v63 }
 0x241   :  { %3946 = vmatpush2.bf16.msra.mxu1 %v11607_v11  ;;  %v579_v28 = vld [vmem:[#allocation7 + $0xe18] sm:$0xff]  ;;  %v11432_v1 = vcombine.high %v451_v57, %v455_v24  ;;  %v11431_v8 = vcombine.low %v451_v57, %v455_v24  ;;  %v4010_v57 = vld [vmem:[#allocation8 + $0x100] sm:$0xff] }
 0x242   :  { %3947 = vmatprep.subr.bf16.mxu1 %v11600_v14  ;;  %v583_v62 = vld [vmem:[#allocation7 + $0xe38] sm:$0xff]  ;;  %v11810_v14 = vcombine.high %v4162_v33, %v4166_v5  ;;  %v4014_v24 = vld [vmem:[#allocation8 + $0x120] sm:$0xff] }
 0x243   :  { %3905 = vmatpush2.bf16.msra.mxu0 %v11471_v20  ;;  %v11560_v32 = vcombine.high %v579_v28, %v583_v62  ;;  %v11559_v11 = vcombine.low %v579_v28, %v583_v62  ;;  %v4158_v20 = vld [vmem:[#allocation8 + $0x5a0] sm:$0xff]  ;;  %v4009_v61 = vld [vmem:[#allocation8 + $0xf8] sm:$0xff] }
 0x244   :  { %3906 = vmatprep.subr.bf16.mxu0 %v11464_v26  ;;  %v13095_v26 = vld [vmem:[#allocation5 + $0x20] sm:$0xff]  ;;  %v11801_v21 = vcombine.low %v4154_v6, %v4158_v20  ;;  %v4137_v2 = vld [vmem:[#allocation8 + $0x4f8] sm:$0xff] }
 0x245   :  { %3948 = vmatpush2.bf16.msra.mxu1 %v11599_v22  ;;  %v13093_v22 = vld [vmem:[#allocation5] sm:$0xff] }
 0x246   :  { %3949 = vmatprep.subr.bf16.mxu1 %v11592_v29  ;;  %v13097_v29 = vld [vmem:[#allocation10] sm:$0xff]  ;;  %v13111_v38 = vcombine.high %v13093_v22, %v13095_v26 }
 0x247   :  { %3907 = vmatpush2.bf16.msra.mxu0 %v11463_v59  ;;  %v661_v54 = vrot.slane %v13097_v29, %v13948_v10  ;;  %v11809_v59 = vcombine.low %v4162_v33, %v4166_v5  ;;  %v4138_v62 = vld [vmem:[#allocation8 + $0x500] sm:$0xff]  ;;  %v11658_v33 = vcombine.high %v4010_v57, %v4014_v24  ;;  %v4264_v10 = vld [vmem:[#allocation8 + $0x8f0] sm:$0xff] }
 0x248   :  { %3908 = vmatprep.subr.bf16.mxu0 %v11456_v34  ;;  %v665_v34 = vrot.slane %v13097_v29, %v13947_v16  ;;  %v4260_v16 = vld [vmem:[#allocation8 + $0x8d0] sm:$0xff] }
 0x249   :  { %3950 = vmatpush2.bf16.msra.mxu1 %v11591_v60  ;;  %v11674_v60 = vcombine.high %v4026_v17, %v4030_v19  ;;  %v4130_v19 = vld [vmem:[#allocation8 + $0x4c0] sm:$0xff] }
 0x24a   :  { %3951 = vmatprep.subr.bf16.mxu1 %v11584_v35  ;;  %v11802_v35 = vcombine.high %v4154_v6, %v4158_v20  ;;  %v4134_v6 = vld [vmem:[#allocation8 + $0x4e0] sm:$0xff] }
 0x24b   :  { %3909 = vmatpush2.bf16.msra.mxu0 %v11455_v41  ;;  %v4146_v41 = vld [vmem:[#allocation8 + $0x540] sm:$0xff] }
 0x24c   :  { %3910 = vmatprep.subr.bf16.mxu0 %v11448_v43  ;;  %v13116_v43 = vcombine.high %v13102_v30, %v13104_v31 }
 0x24d   :  { %3952 = vmatpush2.bf16.msra.mxu1 %v11583_v42  ;;  %v4150_v42 = vld [vmem:[#allocation8 + $0x560] sm:$0xff] }
 0x24e   :  { %3953 = vmatprep.subr.bf16.mxu1 %v11576_v45  ;;  %v11793_v63 = vcombine.low %v4146_v41, %v4150_v42 }
 0x24f   :  { %3911 = vmatpush2.bf16.msra.mxu0 %v11447_v53  ;;  %v11666_v53 = vcombine.high %v4018_v36, %v4022_v37 }
 0x250   :  { %3912 = vmatprep.subr.bf16.mxu0 %v11440_v15 }
 0x251   :  { %3954 = vmatpush2.bf16.msra.mxu1 %v11575_v56 }
 0x252   :  { %3955 = vmatprep.subr.bf16.mxu1 %v11568_v25  ;;  %v11794_v25 = vcombine.high %v4146_v41, %v4150_v42  ;;  %v11777_v41 = vcombine.low %v4130_v19, %v4134_v6 }
 0x253   :  { %3913 = vmatpush2.bf16.msra.mxu0 %v11439_v52 }
 0x254   :  { %3914 = vmatprep.subr.bf16.mxu0 %v11432_v1 }
 0x255   :  { %3956 = vmatpush2.bf16.msra.mxu1 %v11567_v58 }
 0x256   :  { %3957 = vmatprep.subr.bf16.mxu1 %v11560_v32  ;;  %v11665_v32 = vcombine.low %v4018_v36, %v4022_v37  ;;  %v3998_v36 = vld [vmem:[#allocation8 + $0xa0] sm:$0xff] }
 0x257   :  { %3915 = vmatpush2.bf16.msra.mxu0 %v11431_v8  ;;  %v4126_v37 = vld [vmem:[#allocation8 + $0x4a0] sm:$0xff] }
 0x258   :  { %7132 = vmatprep.subr.bf16.mxu0 %v11682_v9  ;;  %v4002_v9 = vld [vmem:[#allocation8 + $0xc0] sm:$0xff] }
 0x259   :  { %3958 = vmatpush2.bf16.msra.mxu1 %v11559_v11 }
 0x25a   :  { %7175 = vmatprep.subr.bf16.mxu1 %v11810_v14  ;;  %v3660_v39 = vpop.f32.mrf.mxu0  ;;  %3917 = vmatmul.mubr.bf16.vlgmr.msra.gmra.mxu0 %v13001_v46  ;;  %v4006_v14 = vld [vmem:[#allocation8 + $0xe0] sm:$0xff] }
 0x25b   :  { %v3661_v45 = vadd.f32 %v3660_v39, %v661_v54  ;;  %7133 = vmatpush1.bf16.msra.mxu0 %v11681_v55  ;;  %7164 = vmatprep.mubr.bf16.mxu0 %v13111_v38  ;;  %v11649_v39 = vcombine.low %v4002_v9, %v4006_v14 }
 0x25c   :  { %v3703_v48 = vpop.f32.mrf.mxu1  ;;  %3960 = vmatmul.mubr.bf16.vlgmr.msra.gmra.mxu1 %v13005_v47  ;;  %v3662_v50 = vpop.f32.mrf.mxu0  ;;  %7134 = vmatprep.subr.bf16.mxu0 %v11674_v60  ;;  %v4142_v47 = vld [vmem:[#allocation8 + $0x520] sm:$0xff]  ;;  %v11778_v60 = vcombine.high %v4130_v19, %v4134_v6 }
 0x25d   :  { %7176 = vmatpush1.bf16.msra.mxu1 %v11809_v59  ;;  %v13119_v56 = vadd.f32 %v3703_v48, %v3661_v45  ;;  %v3663_v46 = vadd.f32 %v3662_v50, %v665_v34  ;;  %7207 = vmatprep.mubr.bf16.mxu1 %v13116_v43  ;;  %v11786_v11 = vcombine.high %v4138_v62, %v4142_v47  ;;  %v3986_v48 = vld [vmem:[#allocation8 + $0x40] sm:$0xff] }
 0x25e   :  { %v3705_v15 = vpop.f32.mrf.mxu1  ;;  %7177 = vmatprep.subr.bf16.mxu1 %v11802_v35  ;;  %v3664_v28 = vpop.f32.mrf.mxu0  ;;  %v11785_v55 = vcombine.low %v4138_v62, %v4142_v47  ;;  %v11650_v59 = vcombine.high %v4002_v9, %v4006_v14  ;;  %v3994_v35 = vld [vmem:[#allocation8 + $0x80] sm:$0xff] }
 0x25f   :  { %v13123_v52 = vadd.f32 %v3705_v15, %v3663_v46  ;;  %v3665_v58 = vadd.f32 %v3664_v28, %v661_v54  ;;  %7135 = vmatpush1.bf16.msra.mxu0 %v11673_v49  ;;  %v11657_v54 = vcombine.low %v4010_v57, %v4014_v24  ;;  %v11642_v42 = vcombine.high %v3994_v35, %v3998_v36  ;;  %v3990_v49 = vld [vmem:[#allocation8 + $0x60] sm:$0xff] }
 0x260   :  { %v3707_v1 = vpop.f32.mrf.mxu1  ;;  %v3666_v3 = vpop.f32.mrf.mxu0  ;;  %7136 = vmatprep.subr.bf16.mxu0 %v11666_v53  ;;  %v4114_v50 = vld [vmem:[#allocation8 + $0x440] sm:$0xff]  ;;  %v11641_v53 = vcombine.low %v3994_v35, %v3998_v36  ;;  %v11634_v15 = vcombine.high %v3986_v48, %v3990_v49  ;;  %v11633_v47 = vcombine.low %v3986_v48, %v3990_v49 }
 0x261   :  { %7178 = vmatpush1.bf16.msra.mxu1 %v11801_v21  ;;  %v13125_v5 = vadd.f32 %v3707_v1, %v3665_v58  ;;  %v3667_v8 = vadd.f32 %v3666_v3, %v665_v34  ;;  %v4122_v34 = vld [vmem:[#allocation8 + $0x480] sm:$0xff] }
 0x262   :  { %7179 = vmatprep.subr.bf16.mxu1 %v11794_v25  ;;  %v3709_v17 = vpop.f32.mrf.mxu1  ;;  %v11770_v45 = vcombine.high %v4122_v34, %v4126_v37  ;;  %v4118_v21 = vld [vmem:[#allocation8 + $0x460] sm:$0xff]  ;;  %v11769_v46 = vcombine.low %v4122_v34, %v4126_v37 }
 0x263   :  { %v13127_v20 = vadd.f32 %v3709_v17, %v3667_v8  ;;  %7137 = vmatpush1.bf16.msra.mxu0 %v11665_v32  ;;  %v11762_v25 = vcombine.high %v4114_v50, %v4118_v21  ;;  %v3978_v57 = vld [vmem:[#allocation8] sm:$0xff]  ;;  %v11761_v58 = vcombine.low %v4114_v50, %v4118_v21 }
 0x264   :  { %7138 = vmatprep.subr.bf16.mxu0 %v11658_v33  ;;  %v3982_v24 = vld [vmem:[#allocation8 + $0x20] sm:$0xff] }
 0x265   :  { %7180 = vmatpush1.bf16.msra.mxu1 %v11793_v63  ;;  %v4106_v28 = vld [vmem:[#allocation8 + $0x400] sm:$0xff]  ;;  %v11626_v1 = vcombine.high %v3978_v57, %v3982_v24 }
 0x266   :  { %7181 = vmatprep.subr.bf16.mxu1 %v11786_v11  ;;  %v4110_v62 = vld [vmem:[#allocation8 + $0x420] sm:$0xff]  ;;  %v11625_v11 = vcombine.low %v3978_v57, %v3982_v24 }
 0x267   :  { %7139 = vmatpush1.bf16.msra.mxu0 %v11657_v54  ;;  %v11754_v32 = vcombine.high %v4106_v28, %v4110_v62  ;;  %v4098_v3 = vld [vmem:[#allocation8 + $0x3c0] sm:$0xff]  ;;  %v11753_v9 = vcombine.low %v4106_v28, %v4110_v62 }
 0x268   :  { %7140 = vmatprep.subr.bf16.mxu0 %v11650_v59  ;;  %v4102_v63 = vld [vmem:[#allocation8 + $0x3e0] sm:$0xff] }
 0x269   :  { %7182 = vmatpush1.bf16.msra.mxu1 %v11785_v55  ;;  %v4226_v33 = vld [vmem:[#allocation8 + $0x7c0] sm:$0xff]  ;;  %v11746_v14 = vcombine.high %v4098_v3, %v4102_v63  ;;  %v11745_v59 = vcombine.low %v4098_v3, %v4102_v63 }
 0x26a   :  { %7183 = vmatprep.subr.bf16.mxu1 %v11778_v60  ;;  %v4230_v8 = vld [vmem:[#allocation8 + $0x7e0] sm:$0xff] }
 0x26b   :  { %7141 = vmatpush1.bf16.msra.mxu0 %v11649_v39  ;;  %v11874_v17 = vcombine.high %v4226_v33, %v4230_v8  ;;  %v4090_v19 = vld [vmem:[#allocation8 + $0x380] sm:$0xff]  ;;  %v11873_v60 = vcombine.low %v4226_v33, %v4230_v8 }
 0x26c   :  { %7142 = vmatprep.subr.bf16.mxu0 %v11642_v42  ;;  %v4094_v6 = vld [vmem:[#allocation8 + $0x3a0] sm:$0xff] }
 0x26d   :  { %7184 = vmatpush1.bf16.msra.mxu1 %v11777_v41  ;;  %v4218_v54 = vld [vmem:[#allocation8 + $0x780] sm:$0xff]  ;;  %v11738_v35 = vcombine.high %v4090_v19, %v4094_v6  ;;  %v11737_v42 = vcombine.low %v4090_v19, %v4094_v6 }
 0x26e   :  { %7185 = vmatprep.subr.bf16.mxu1 %v11770_v45  ;;  %v4222_v55 = vld [vmem:[#allocation8 + $0x7a0] sm:$0xff] }
 0x26f   :  { %7143 = vmatpush1.bf16.msra.mxu0 %v11641_v53  ;;  %v11866_v36 = vcombine.high %v4218_v54, %v4222_v55  ;;  %v4082_v34 = vld [vmem:[#allocation8 + $0x340] sm:$0xff]  ;;  %v11865_v45 = vcombine.low %v4218_v54, %v4222_v55 }
 0x270   :  { %7144 = vmatprep.subr.bf16.mxu0 %v11634_v15  ;;  %v4086_v37 = vld [vmem:[#allocation8 + $0x360] sm:$0xff] }
 0x271   :  { %7186 = vmatpush1.bf16.msra.mxu1 %v11769_v46  ;;  %v4210_v39 = vld [vmem:[#allocation8 + $0x740] sm:$0xff]  ;;  %v11730_v48 = vcombine.high %v4082_v34, %v4086_v37  ;;  %v11729_v15 = vcombine.low %v4082_v34, %v4086_v37 }
 0x272   :  { %7187 = vmatprep.subr.bf16.mxu1 %v11762_v25  ;;  %v4214_v41 = vld [vmem:[#allocation8 + $0x760] sm:$0xff] }
 0x273   :  { %7145 = vmatpush1.bf16.msra.mxu0 %v11633_v47  ;;  %v11858_v49 = vcombine.high %v4210_v39, %v4214_v41  ;;  %v4074_v50 = vld [vmem:[#allocation8 + $0x300] sm:$0xff]  ;;  %v11857_v25 = vcombine.low %v4210_v39, %v4214_v41 }
 0x274   :  { %7146 = vmatprep.subr.bf16.mxu0 %v11626_v1  ;;  %v4078_v21 = vld [vmem:[#allocation8 + $0x320] sm:$0xff] }
 0x275   :  { %7188 = vmatpush1.bf16.msra.mxu1 %v11761_v58  ;;  %v4202_v53 = vld [vmem:[#allocation8 + $0x700] sm:$0xff]  ;;  %v11722_v57 = vcombine.high %v4074_v50, %v4078_v21  ;;  %v11721_v1 = vcombine.low %v4074_v50, %v4078_v21 }
 0x276   :  { %7189 = vmatprep.subr.bf16.mxu1 %v11754_v32  ;;  %v4206_v46 = vld [vmem:[#allocation8 + $0x720] sm:$0xff] }
 0x277   :  { %7147 = vmatpush1.bf16.msra.mxu0 %v11625_v11  ;;  %v11850_v24 = vcombine.high %v4202_v53, %v4206_v46  ;;  %v4066_v28 = vld [vmem:[#allocation8 + $0x2c0] sm:$0xff]  ;;  %v11849_v32 = vcombine.low %v4202_v53, %v4206_v46 }
 0x278   :  { %7148 = vmatprep.subr.bf16.mxu0 %v11746_v14  ;;  %v4070_v62 = vld [vmem:[#allocation8 + $0x2e0] sm:$0xff] }
 0x279   :  { %7190 = vmatpush1.bf16.msra.mxu1 %v11753_v9  ;;  %v4194_v47 = vld [vmem:[#allocation8 + $0x6c0] sm:$0xff]  ;;  %v11714_v3 = vcombine.high %v4066_v28, %v4070_v62  ;;  %v11713_v14 = vcombine.low %v4066_v28, %v4070_v62 }
 0x27a   :  { %7191 = vmatprep.subr.bf16.mxu1 %v11874_v17  ;;  %v4198_v58 = vld [vmem:[#allocation8 + $0x6e0] sm:$0xff] }
 0x27b   :  { %7149 = vmatpush2.bf16.msra.mxu0 %v11745_v59  ;;  %v11842_v63 = vcombine.high %v4194_v47, %v4198_v58  ;;  %v4058_v33 = vld [vmem:[#allocation8 + $0x280] sm:$0xff]  ;;  %v11841_v17 = vcombine.low %v4194_v47, %v4198_v58 }
 0x27c   :  { %7150 = vmatprep.subr.bf16.mxu0 %v11738_v35  ;;  %v4062_v8 = vld [vmem:[#allocation8 + $0x2a0] sm:$0xff] }
 0x27d   :  { %7192 = vmatpush2.bf16.msra.mxu1 %v11873_v60  ;;  %v4186_v11 = vld [vmem:[#allocation8 + $0x680] sm:$0xff]  ;;  %v11706_v19 = vcombine.high %v4058_v33, %v4062_v8  ;;  %v11705_v35 = vcombine.low %v4058_v33, %v4062_v8  ;;  %v13135_v33 = vld [vmem:[#allocation5 + $0x30] sm:$0xff]  ;;  %v13139_v8 = vcombine.low %v13102_v30, %v13104_v31 }
 0x27e   :  { %7193 = vmatprep.subr.bf16.mxu1 %v11866_v36  ;;  %v4190_v9 = vld [vmem:[#allocation8 + $0x6a0] sm:$0xff] }
 0x27f   :  { %7151 = vmatpush2.bf16.msra.mxu0 %v11737_v42  ;;  %v11834_v6 = vcombine.high %v4186_v11, %v4190_v9  ;;  %v4050_v54 = vld [vmem:[#allocation8 + $0x240] sm:$0xff]  ;;  %v11833_v36 = vcombine.low %v4186_v11, %v4190_v9  ;;  %v13141_v9 = vld [vmem:[#allocation5 + $0x18] sm:$0xff] }
 0x280   :  { %7152 = vmatprep.subr.bf16.mxu0 %v11730_v48  ;;  %v4054_v55 = vld [vmem:[#allocation8 + $0x260] sm:$0xff] }
 0x281   :  { %7194 = vmatpush2.bf16.msra.mxu1 %v11865_v45  ;;  %v4178_v59 = vld [vmem:[#allocation8 + $0x640] sm:$0xff]  ;;  %v11698_v34 = vcombine.high %v4050_v54, %v4054_v55  ;;  %v11697_v48 = vcombine.low %v4050_v54, %v4054_v55 }
 0x282   :  { %7195 = vmatprep.subr.bf16.mxu1 %v11858_v49  ;;  %v4182_v60 = vld [vmem:[#allocation8 + $0x660] sm:$0xff] }
 0x283   :  { %7153 = vmatpush2.bf16.msra.mxu0 %v11729_v15  ;;  %v11826_v37 = vcombine.high %v4178_v59, %v4182_v60  ;;  %v4042_v39 = vld [vmem:[#allocation8 + $0x200] sm:$0xff]  ;;  %v11825_v49 = vcombine.low %v4178_v59, %v4182_v60 }
 0x284   :  { %7154 = vmatprep.subr.bf16.mxu0 %v11722_v57  ;;  %v4046_v41 = vld [vmem:[#allocation8 + $0x220] sm:$0xff] }
 0x285   :  { %7196 = vmatpush2.bf16.msra.mxu1 %v11857_v25  ;;  %v4170_v42 = vld [vmem:[#allocation8 + $0x600] sm:$0xff]  ;;  %v11690_v50 = vcombine.high %v4042_v39, %v4046_v41  ;;  %v11689_v57 = vcombine.low %v4042_v39, %v4046_v41 }
 0x286   :  { %7197 = vmatprep.subr.bf16.mxu1 %v11850_v24  ;;  %v4174_v45 = vld [vmem:[#allocation8 + $0x620] sm:$0xff] }
 0x287   :  { %7155 = vmatpush2.bf16.msra.mxu0 %v11721_v1  ;;  %v11818_v21 = vcombine.high %v4170_v42, %v4174_v45  ;;  %v4290_v53 = vld [vmem:[#allocation8 + $0x9c0] sm:$0xff]  ;;  %v11817_v24 = vcombine.low %v4170_v42, %v4174_v45 }
 0x288   :  { %7156 = vmatprep.subr.bf16.mxu0 %v11714_v3  ;;  %v4294_v46 = vld [vmem:[#allocation8 + $0x9e0] sm:$0xff] }
 0x289   :  { %7198 = vmatpush2.bf16.msra.mxu1 %v11849_v32  ;;  %v4418_v15 = vld [vmem:[#allocation8 + $0xdc0] sm:$0xff]  ;;  %v11938_v28 = vcombine.high %v4290_v53, %v4294_v46  ;;  %v13131_v32 = vcombine.low %v13093_v22, %v13095_v26  ;;  %v11937_v11 = vcombine.low %v4290_v53, %v4294_v46 }
 0x28a   :  { %7199 = vmatprep.subr.bf16.mxu1 %v11842_v63  ;;  %v4422_v25 = vld [vmem:[#allocation8 + $0xde0] sm:$0xff]  ;;  %v13133_v63 = vld [vmem:[#allocation5 + $0x10] sm:$0xff] }
 0x28b   :  { %7157 = vmatpush2.bf16.msra.mxu0 %v11713_v14  ;;  %v12066_v62 = vcombine.high %v4418_v15, %v4422_v25  ;;  %v4282_v47 = vld [vmem:[#allocation8 + $0x980] sm:$0xff]  ;;  %v13143_v14 = vld [vmem:[#allocation5 + $0x38] sm:$0xff]  ;;  %v13147_v54 = vcombine.high %v13133_v63, %v13135_v33 }
 0x28c   :  { %7158 = vmatprep.subr.bf16.mxu0 %v11706_v19  ;;  %v4286_v58 = vld [vmem:[#allocation8 + $0x9a0] sm:$0xff]  ;;  %v13152_v59 = vcombine.high %v13141_v9, %v13143_v14 }
 0x28d   :  { %7200 = vmatpush2.bf16.msra.mxu1 %v11841_v17  ;;  %v4410_v1 = vld [vmem:[#allocation8 + $0xd80] sm:$0xff]  ;;  %v12065_v17 = vcombine.low %v4418_v15, %v4422_v25  ;;  %v11930_v22 = vcombine.high %v4282_v47, %v4286_v58 }
 0x28e   :  { %7201 = vmatprep.subr.bf16.mxu1 %v11834_v6  ;;  %v4414_v3 = vld [vmem:[#allocation8 + $0xda0] sm:$0xff] }
 0x28f   :  { %7159 = vmatpush2.bf16.msra.mxu0 %v11705_v35  ;;  %v12058_v26 = vcombine.high %v4410_v1, %v4414_v3  ;;  %v4274_v19 = vld [vmem:[#allocation8 + $0x940] sm:$0xff] }
 0x290   :  { %7160 = vmatprep.subr.bf16.mxu0 %v11698_v34  ;;  %v4278_v6 = vld [vmem:[#allocation8 + $0x960] sm:$0xff] }
 0x291   :  { %7202 = vmatpush2.bf16.msra.mxu1 %v11833_v36  ;;  %v4402_v30 = vld [vmem:[#allocation8 + $0xd40] sm:$0xff]  ;;  %v11929_v36 = vcombine.low %v4282_v47, %v4286_v58  ;;  %v11922_v39 = vcombine.high %v4274_v19, %v4278_v6 }
 0x292   :  { %7203 = vmatprep.subr.bf16.mxu1 %v11826_v37  ;;  %v4406_v31 = vld [vmem:[#allocation8 + $0xd60] sm:$0xff]  ;;  %v12057_v37 = vcombine.low %v4410_v1, %v4414_v3 }
 0x293   :  { %7161 = vmatpush2.bf16.msra.mxu0 %v11697_v48  ;;  %v12050_v48 = vcombine.high %v4402_v30, %v4406_v31  ;;  %v4398_v53 = vld [vmem:[#allocation8 + $0xd20] sm:$0xff] }
 0x294   :  { %7162 = vmatprep.subr.bf16.mxu0 %v11690_v50  ;;  %v4270_v50 = vld [vmem:[#allocation8 + $0x920] sm:$0xff] }
 0x295   :  { %7204 = vmatpush2.bf16.msra.mxu1 %v11825_v49  ;;  %v4266_v49 = vld [vmem:[#allocation8 + $0x900] sm:$0xff] }
 0x296   :  { %7205 = vmatprep.subr.bf16.mxu1 %v11818_v21  ;;  %v4394_v21 = vld [vmem:[#allocation8 + $0xd00] sm:$0xff] }
 0x297   :  { %7163 = vmatpush2.bf16.msra.mxu0 %v11689_v57  ;;  %v11921_v57 = vcombine.low %v4274_v19, %v4278_v6  ;;  %v12042_v58 = vcombine.high %v4394_v21, %v4398_v53  ;;  %v4258_v1 = vld [vmem:[#allocation8 + $0x8c0] sm:$0xff]  ;;  %v12041_v19 = vcombine.low %v4394_v21, %v4398_v53 }
 0x298   :  { %7218 = vmatprep.subr.bf16.mxu0 %v11938_v28  ;;  %v11914_v28 = vcombine.high %v4266_v49, %v4270_v50  ;;  %v4262_v3 = vld [vmem:[#allocation8 + $0x8e0] sm:$0xff] }
 0x299   :  { %7206 = vmatpush2.bf16.msra.mxu1 %v11817_v24  ;;  %v12049_v24 = vcombine.low %v4402_v30, %v4406_v31  ;;  %v11906_v6 = vcombine.high %v4258_v1, %v4262_v3  ;;  %v4250_v30 = vld [vmem:[#allocation8 + $0x880] sm:$0xff] }
 0x29a   :  { %7261 = vmatprep.subr.bf16.mxu1 %v12066_v62  ;;  %v3746_v55 = vpop.f32.mrf.mxu0  ;;  %7165 = vmatmul.mubr.bf16.vlgmr.msra.gmra.mxu0 %v13131_v32  ;;  %v4254_v31 = vld [vmem:[#allocation8 + $0x8a0] sm:$0xff] }
 0x29b   :  { %v3747_v60 = vadd.f32 %v3746_v55, %v13119_v56  ;;  %7219 = vmatpush1.bf16.msra.mxu0 %v11937_v11  ;;  %7250 = vmatprep.mubr.bf16.mxu0 %v13147_v54  ;;  %v4234_v53 = vld [vmem:[#allocation8 + $0x800] sm:$0xff] }
 0x29c   :  { %v3789_v35 = vpop.f32.mrf.mxu1  ;;  %7208 = vmatmul.mubr.bf16.vlgmr.msra.gmra.mxu1 %v13139_v8  ;;  %v3748_v34 = vpop.f32.mrf.mxu0  ;;  %7220 = vmatprep.subr.bf16.mxu0 %v11930_v22  ;;  %v4390_v22 = vld [vmem:[#allocation8 + $0xce0] sm:$0xff] }
 0x29d   :  { %7262 = vmatpush1.bf16.msra.mxu1 %v12065_v17  ;;  %v13156_v41 = vadd.f32 %v3789_v35, %v3747_v60  ;;  %v3749_v42 = vadd.f32 %v3748_v34, %v13123_v52  ;;  %7293 = vmatprep.mubr.bf16.mxu1 %v13152_v59  ;;  %v4386_v17 = vld [vmem:[#allocation8 + $0xcc0] sm:$0xff]  ;;  %v11905_v35 = vcombine.low %v4258_v1, %v4262_v3 }
 0x29e   :  { %v3791_v45 = vpop.f32.mrf.mxu1  ;;  %7263 = vmatprep.subr.bf16.mxu1 %v12058_v26  ;;  %v3750_v56 = vpop.f32.mrf.mxu0  ;;  %v11913_v26 = vcombine.low %v4266_v49, %v4270_v50  ;;  %v12034_v55 = vcombine.high %v4386_v17, %v4390_v22  ;;  %v4382_v60 = vld [vmem:[#allocation8 + $0xca0] sm:$0xff]  ;;  %v11898_v34 = vcombine.high %v4250_v30, %v4254_v31  ;;  %v11897_v49 = vcombine.low %v4250_v30, %v4254_v31 }
 0x29f   :  { %v13161_v46 = vadd.f32 %v3791_v45, %v3749_v42  ;;  %v3751_v15 = vadd.f32 %v3750_v56, %v13125_v5  ;;  %7221 = vmatpush1.bf16.msra.mxu0 %v11929_v36  ;;  %v12033_v36 = vcombine.low %v4386_v17, %v4390_v22  ;;  %v4246_v42 = vld [vmem:[#allocation8 + $0x860] sm:$0xff] }
 0x2a0   :  { %v3793_v25 = vpop.f32.mrf.mxu1  ;;  %v3752_v52 = vpop.f32.mrf.mxu0  ;;  %7222 = vmatprep.subr.bf16.mxu0 %v11922_v39  ;;  %v4242_v39 = vld [vmem:[#allocation8 + $0x840] sm:$0xff] }
 0x2a1   :  { %7264 = vmatpush1.bf16.msra.mxu1 %v12057_v37  ;;  %v13164_v62 = vadd.f32 %v3793_v25, %v3751_v15  ;;  %v3753_v47 = vadd.f32 %v3752_v52, %v13127_v20  ;;  %v4378_v20 = vld [vmem:[#allocation8 + $0xc80] sm:$0xff]  ;;  %v11890_v56 = vcombine.high %v4242_v39, %v4246_v42  ;;  %v11889_v52 = vcombine.low %v4242_v39, %v4246_v42 }
 0x2a2   :  { %7265 = vmatprep.subr.bf16.mxu1 %v12050_v48  ;;  %v3795_v11 = vpop.f32.mrf.mxu1  ;;  %v12026_v37 = vcombine.high %v4378_v20, %v4382_v60  ;;  %v4370_v45 = vld [vmem:[#allocation8 + $0xc40] sm:$0xff]  ;;  %v12025_v50 = vcombine.low %v4378_v20, %v4382_v60 }
 0x2a3   :  { %13955 = vst [vmem:[#allocation24_spill] sm:$0xff] %v13164_v62  ;;  %v13167_v5 = vadd.f32 %v3795_v11, %v3753_v47  ;;  %7223 = vmatpush1.bf16.msra.mxu0 %v11921_v57  ;;  %v4374_v48 = vld [vmem:[#allocation8 + $0xc60] sm:$0xff]  ;;  %v4005_v62 = vld [vmem:[#allocation8 + $0xd8] sm:$0xff] }
 0x2a4   :  { %7224 = vmatprep.subr.bf16.mxu0 %v11914_v28  ;;  %v12018_v21 = vcombine.high %v4370_v45, %v4374_v48  ;;  %v4238_v15 = vld [vmem:[#allocation8 + $0x820] sm:$0xff] }
 0x2a5   :  { %13956 = vst [vmem:[#allocation25_spill] sm:$0xff] %v13167_v5  ;;  %7266 = vmatpush1.bf16.msra.mxu1 %v12049_v24  ;;  %v4362_v25 = vld [vmem:[#allocation8 + $0xc00] sm:$0xff]  ;;  %v12017_v24 = vcombine.low %v4370_v45, %v4374_v48  ;;  %v11882_v28 = vcombine.high %v4234_v53, %v4238_v15  ;;  %v11881_v17 = vcombine.low %v4234_v53, %v4238_v15 }
 0x2a6   :  { %7267 = vmatprep.subr.bf16.mxu1 %v12042_v58  ;;  %v4366_v57 = vld [vmem:[#allocation8 + $0xc20] sm:$0xff] }
 0x2a7   :  { %7225 = vmatpush1.bf16.msra.mxu0 %v11913_v26  ;;  %v12010_v47 = vcombine.high %v4362_v25, %v4366_v57  ;;  %v4354_v58 = vld [vmem:[#allocation8 + $0xbc0] sm:$0xff]  ;;  %v12009_v22 = vcombine.low %v4362_v25, %v4366_v57 }
 0x2a8   :  { %7226 = vmatprep.subr.bf16.mxu0 %v11906_v6  ;;  %v4358_v1 = vld [vmem:[#allocation8 + $0xbe0] sm:$0xff] }
 0x2a9   :  { %7268 = vmatpush1.bf16.msra.mxu1 %v12041_v19  ;;  %v4482_v3 = vld [vmem:[#allocation8 + $0xfc0] sm:$0xff]  ;;  %v12002_v26 = vcombine.high %v4354_v58, %v4358_v1  ;;  %v12001_v20 = vcombine.low %v4354_v58, %v4358_v1 }
 0x2aa   :  { %7269 = vmatprep.subr.bf16.mxu1 %v12034_v55  ;;  %v4486_v11 = vld [vmem:[#allocation8 + $0xfe0] sm:$0xff] }
 0x2ab   :  { %7227 = vmatpush1.bf16.msra.mxu0 %v11905_v35  ;;  %v12130_v19 = vcombine.high %v4482_v3, %v4486_v11  ;;  %v4346_v6 = vld [vmem:[#allocation8 + $0xb80] sm:$0xff]  ;;  %v12129_v60 = vcombine.low %v4482_v3, %v4486_v11 }
 0x2ac   :  { %7228 = vmatprep.subr.bf16.mxu0 %v11898_v34  ;;  %v4350_v55 = vld [vmem:[#allocation8 + $0xba0] sm:$0xff] }
 0x2ad   :  { %7270 = vmatpush1.bf16.msra.mxu1 %v12033_v36  ;;  %v4474_v30 = vld [vmem:[#allocation8 + $0xf80] sm:$0xff]  ;;  %v11994_v35 = vcombine.high %v4346_v6, %v4350_v55  ;;  %v11993_v45 = vcombine.low %v4346_v6, %v4350_v55 }
 0x2ae   :  { %7271 = vmatprep.subr.bf16.mxu1 %v12026_v37  ;;  %v4478_v31 = vld [vmem:[#allocation8 + $0xfa0] sm:$0xff] }
 0x2af   :  { %7229 = vmatpush1.bf16.msra.mxu0 %v11897_v49  ;;  %v12122_v36 = vcombine.high %v4474_v30, %v4478_v31  ;;  %v4338_v34 = vld [vmem:[#allocation8 + $0xb40] sm:$0xff]  ;;  %v12121_v48 = vcombine.low %v4474_v30, %v4478_v31 }
 0x2b0   :  { %7230 = vmatprep.subr.bf16.mxu0 %v11890_v56  ;;  %v4342_v37 = vld [vmem:[#allocation8 + $0xb60] sm:$0xff] }
 0x2b1   :  { %7272 = vmatpush1.bf16.msra.mxu1 %v12025_v50  ;;  %v4466_v39 = vld [vmem:[#allocation8 + $0xf40] sm:$0xff]  ;;  %v11986_v49 = vcombine.high %v4338_v34, %v4342_v37  ;;  %v11985_v25 = vcombine.low %v4338_v34, %v4342_v37 }
 0x2b2   :  { %7273 = vmatprep.subr.bf16.mxu1 %v12018_v21  ;;  %v4470_v42 = vld [vmem:[#allocation8 + $0xf60] sm:$0xff] }
 0x2b3   :  { %7231 = vmatpush1.bf16.msra.mxu0 %v11889_v52  ;;  %v12114_v50 = vcombine.high %v4466_v39, %v4470_v42  ;;  %v4330_v56 = vld [vmem:[#allocation8 + $0xb00] sm:$0xff]  ;;  %v12113_v57 = vcombine.low %v4466_v39, %v4470_v42 }
 0x2b4   :  { %7232 = vmatprep.subr.bf16.mxu0 %v11882_v28  ;;  %v4334_v21 = vld [vmem:[#allocation8 + $0xb20] sm:$0xff] }
 0x2b5   :  { %7274 = vmatpush1.bf16.msra.mxu1 %v12017_v24  ;;  %v4458_v53 = vld [vmem:[#allocation8 + $0xf00] sm:$0xff]  ;;  %v11978_v52 = vcombine.high %v4330_v56, %v4334_v21  ;;  %v11977_v3 = vcombine.low %v4330_v56, %v4334_v21 }
 0x2b6   :  { %7275 = vmatprep.subr.bf16.mxu1 %v12010_v47  ;;  %v4462_v15 = vld [vmem:[#allocation8 + $0xf20] sm:$0xff] }
 0x2b7   :  { %7233 = vmatpush1.bf16.msra.mxu0 %v11881_v17  ;;  %v12106_v24 = vcombine.high %v4458_v53, %v4462_v15  ;;  %v4322_v28 = vld [vmem:[#allocation8 + $0xac0] sm:$0xff]  ;;  %v12105_v11 = vcombine.low %v4458_v53, %v4462_v15 }
 0x2b8   :  { %7234 = vmatprep.subr.bf16.mxu0 %v12002_v26  ;;  %v4326_v47 = vld [vmem:[#allocation8 + $0xae0] sm:$0xff] }
 0x2b9   :  { %7276 = vmatpush1.bf16.msra.mxu1 %v12009_v22  ;;  %v4450_v58 = vld [vmem:[#allocation8 + $0xec0] sm:$0xff]  ;;  %v11970_v17 = vcombine.high %v4322_v28, %v4326_v47  ;;  %v11969_v30 = vcombine.low %v4322_v28, %v4326_v47  ;;  %v4163_v28 = vld [vmem:[#allocation8 + $0x5c8] sm:$0xff] }
 0x2ba   :  { %7277 = vmatprep.subr.bf16.mxu1 %v12130_v19  ;;  %v4454_v1 = vld [vmem:[#allocation8 + $0xee0] sm:$0xff]  ;;  %v4167_v47 = vld [vmem:[#allocation8 + $0x5e8] sm:$0xff] }
 0x2bb   :  { %7235 = vmatpush2.bf16.msra.mxu0 %v12001_v20  ;;  %v12098_v22 = vcombine.high %v4450_v58, %v4454_v1  ;;  %v4314_v26 = vld [vmem:[#allocation8 + $0xa80] sm:$0xff]  ;;  %v12097_v31 = vcombine.low %v4450_v58, %v4454_v1  ;;  %v13946_v1 = vsub.s32 6, %v13015_v4 }
 0x2bc   :  { %7236 = vmatprep.subr.bf16.mxu0 %v11994_v35  ;;  %v4318_v19 = vld [vmem:[#allocation8 + $0xaa0] sm:$0xff] }
 0x2bd   :  { %7278 = vmatpush2.bf16.msra.mxu1 %v12129_v60  ;;  %v4442_v6 = vld [vmem:[#allocation8 + $0xe80] sm:$0xff]  ;;  %v11962_v20 = vcombine.high %v4314_v26, %v4318_v19  ;;  %v11961_v39 = vcombine.low %v4314_v26, %v4318_v19  ;;  %v4027_v26 = vld [vmem:[#allocation8 + $0x188] sm:$0xff] }
 0x2be   :  { %7279 = vmatprep.subr.bf16.mxu1 %v12122_v36  ;;  %v4446_v55 = vld [vmem:[#allocation8 + $0xea0] sm:$0xff]  ;;  %v4031_v19 = vld [vmem:[#allocation8 + $0x1a8] sm:$0xff] }
 0x2bf   :  { %7237 = vmatpush2.bf16.msra.mxu0 %v11993_v45  ;;  %v12090_v60 = vcombine.high %v4442_v6, %v4446_v55  ;;  %v4306_v35 = vld [vmem:[#allocation8 + $0xa40] sm:$0xff]  ;;  %v12089_v42 = vcombine.low %v4442_v6, %v4446_v55  ;;  %v13173_v6 = vcombine.low %v13133_v63, %v13135_v33  ;;  %v4155_v55 = vld [vmem:[#allocation8 + $0x588] sm:$0xff] }
 0x2c0   :  { %7238 = vmatprep.subr.bf16.mxu0 %v11986_v49  ;;  %v4310_v36 = vld [vmem:[#allocation8 + $0xa60] sm:$0xff] }
 0x2c1   :  { %7280 = vmatpush2.bf16.msra.mxu1 %v12121_v48  ;;  %v4434_v34 = vld [vmem:[#allocation8 + $0xe40] sm:$0xff]  ;;  %v11954_v45 = vcombine.high %v4306_v35, %v4310_v36  ;;  %v11953_v53 = vcombine.low %v4306_v35, %v4310_v36  ;;  %v11811_v35 = vcombine.low %v4163_v28, %v4167_v47  ;;  %v11676_v36 = vcombine.high %v4027_v26, %v4031_v19 }
 0x2c2   :  { %7281 = vmatprep.subr.bf16.mxu1 %v12114_v50  ;;  %v4438_v37 = vld [vmem:[#allocation8 + $0xe60] sm:$0xff] }
 0x2c3   :  { %7239 = vmatpush2.bf16.msra.mxu0 %v11985_v25  ;;  %v12082_v48 = vcombine.high %v4434_v34, %v4438_v37  ;;  %v4298_v49 = vld [vmem:[#allocation8 + $0xa00] sm:$0xff]  ;;  %v12081_v15 = vcombine.low %v4434_v34, %v4438_v37  ;;  %v4019_v34 = vld [vmem:[#allocation8 + $0x148] sm:$0xff] }
 0x2c4   :  { %7240 = vmatprep.subr.bf16.mxu0 %v11978_v52  ;;  %v4302_v50 = vld [vmem:[#allocation8 + $0xa20] sm:$0xff]  ;;  %v4035_v52 = vld [vmem:[#allocation8 + $0x1c8] sm:$0xff] }
 0x2c5   :  { %7282 = vmatpush2.bf16.msra.mxu1 %v12113_v57  ;;  %v4426_v56 = vld [vmem:[#allocation8 + $0xe00] sm:$0xff]  ;;  %v11946_v25 = vcombine.high %v4298_v49, %v4302_v50  ;;  %v11945_v58 = vcombine.low %v4298_v49, %v4302_v50  ;;  %v4023_v37 = vld [vmem:[#allocation8 + $0x168] sm:$0xff] }
 0x2c6   :  { %7283 = vmatprep.subr.bf16.mxu1 %v12106_v24  ;;  %v4430_v21 = vld [vmem:[#allocation8 + $0xe20] sm:$0xff]  ;;  %v4039_v24 = vld [vmem:[#allocation8 + $0x1e8] sm:$0xff] }
 0x2c7   :  { %7241 = vmatpush2.bf16.msra.mxu0 %v11977_v3  ;;  %v12074_v57 = vcombine.high %v4426_v56, %v4430_v21  ;;  %v12073_v3 = vcombine.low %v4426_v56, %v4430_v21  ;;  %v11668_v56 = vcombine.high %v4019_v34, %v4023_v37 }
 0x2c8   :  { %7242 = vmatprep.subr.bf16.mxu0 %v11970_v17  ;;  %v11812_v17 = vcombine.high %v4163_v28, %v4167_v47  ;;  %v4143_v28 = vld [vmem:[#allocation8 + $0x528] sm:$0xff] }
 0x2c9   :  { %7284 = vmatpush2.bf16.msra.mxu1 %v12105_v11  ;;  %v11684_v11 = vcombine.high %v4035_v52, %v4039_v24 }
 0x2ca   :  { %7285 = vmatprep.subr.bf16.mxu1 %v12098_v22  ;;  %v13945_v22 = vsub.s32 7, %v13015_v4 }
 0x2cb   :  { %7243 = vmatpush2.bf16.msra.mxu0 %v11969_v30  ;;  %v4159_v30 = vld [vmem:[#allocation8 + $0x5a8] sm:$0xff] }
 0x2cc   :  { %7244 = vmatprep.subr.bf16.mxu0 %v11962_v20  ;;  %v13180_v20 = vcombine.low %v13141_v9, %v13143_v14  ;;  %v673_v63 = vrot.slane %v13097_v29, %v13945_v22  ;;  %v11804_v33 = vcombine.high %v4155_v55, %v4159_v30  ;;  %v11803_v50 = vcombine.low %v4155_v55, %v4159_v30  ;;  %v4136_v22 = vld [vmem:[#allocation8 + $0x4f0] sm:$0xff] }
 0x2cd   :  { %7286 = vmatpush2.bf16.msra.mxu1 %v12097_v31  ;;  %v669_v31 = vrot.slane %v13097_v29, %v13946_v1 }
 0x2ce   :  { %7287 = vmatprep.subr.bf16.mxu1 %v12090_v60  ;;  %v11683_v60 = vcombine.low %v4035_v52, %v4039_v24  ;;  %v4139_v24 = vld [vmem:[#allocation8 + $0x508] sm:$0xff] }
 0x2cf   :  { %7245 = vmatpush2.bf16.msra.mxu0 %v11961_v39 }
 0x2d0   :  { %7246 = vmatprep.subr.bf16.mxu0 %v11954_v45  ;;  %v4151_v45 = vld [vmem:[#allocation8 + $0x568] sm:$0xff] }
 0x2d1   :  { %7288 = vmatpush2.bf16.msra.mxu1 %v12089_v42  ;;  %v4147_v42 = vld [vmem:[#allocation8 + $0x548] sm:$0xff] }
 0x2d2   :  { %7289 = vmatprep.subr.bf16.mxu1 %v12082_v48  ;;  %v11675_v48 = vcombine.low %v4027_v26, %v4031_v19  ;;  %v11795_v26 = vcombine.low %v4147_v42, %v4151_v45 }
 0x2d3   :  { %7247 = vmatpush2.bf16.msra.mxu0 %v11953_v53 }
 0x2d4   :  { %7248 = vmatprep.subr.bf16.mxu0 %v11946_v25  ;;  %v4011_v25 = vld [vmem:[#allocation8 + $0x108] sm:$0xff] }
 0x2d5   :  { %7290 = vmatpush2.bf16.msra.mxu1 %v12081_v15  ;;  %v11796_v15 = vcombine.high %v4147_v42, %v4151_v45  ;;  %v3995_v45 = vld [vmem:[#allocation8 + $0x88] sm:$0xff] }
 0x2d6   :  { %7291 = vmatprep.subr.bf16.mxu1 %v12074_v57  ;;  %v4015_v57 = vld [vmem:[#allocation8 + $0x128] sm:$0xff] }
 0x2d7   :  { %7249 = vmatpush2.bf16.msra.mxu0 %v11945_v58  ;;  %v11660_v19 = vcombine.high %v4011_v25, %v4015_v57 }
 0x2d8   :  { %7304 = vmatprep.subr.bf16.mxu0 %v11684_v11  ;;  %v11667_v11 = vcombine.low %v4019_v34, %v4023_v37  ;;  %v11787_v34 = vcombine.low %v4139_v24, %v4143_v28 }
 0x2d9   :  { %7292 = vmatpush2.bf16.msra.mxu1 %v12073_v3 }
 0x2da   :  { %7347 = vmatprep.subr.bf16.mxu1 %v11812_v17  ;;  %v3832_v39 = vpop.f32.mrf.mxu0  ;;  %7251 = vmatmul.mubr.bf16.vlgmr.msra.gmra.mxu0 %v13173_v6 }
 0x2db   :  { %v3833_v9 = vadd.f32 %v3832_v39, %v669_v31  ;;  %7305 = vmatpush1.bf16.msra.mxu0 %v11683_v60  ;;  %7336 = vmatprep.mubr.bf16.mxu0 %v13111_v38  ;;  %v11788_v60 = vcombine.high %v4139_v24, %v4143_v28  ;;  %v4131_v39 = vld [vmem:[#allocation8 + $0x4c8] sm:$0xff] }
 0x2dc   :  { %v3875_v14 = vpop.f32.mrf.mxu1  ;;  %7294 = vmatmul.mubr.bf16.vlgmr.msra.gmra.mxu1 %v13180_v20  ;;  %v3834_v49 = vpop.f32.mrf.mxu0  ;;  %7306 = vmatprep.subr.bf16.mxu0 %v11676_v36  ;;  %v4007_v36 = vld [vmem:[#allocation8 + $0xe8] sm:$0xff] }
 0x2dd   :  { %7348 = vmatpush1.bf16.msra.mxu1 %v11811_v35  ;;  %v13187_v29 = vadd.f32 %v3875_v14, %v3833_v9  ;;  %v3835_v21 = vadd.f32 %v3834_v49, %v673_v63  ;;  %7379 = vmatprep.mubr.bf16.mxu1 %v13116_v43  ;;  %v4003_v35 = vld [vmem:[#allocation8 + $0xc8] sm:$0xff] }
 0x2de   :  { %v3877_v53 = vpop.f32.mrf.mxu1  ;;  %7349 = vmatprep.subr.bf16.mxu1 %v11804_v33  ;;  %v3836_v52 = vpop.f32.mrf.mxu0  ;;  %v4135_v9 = vld [vmem:[#allocation8 + $0x4e8] sm:$0xff]  ;;  %v11652_v37 = vcombine.high %v4003_v35, %v4007_v36 }
 0x2df   :  { %v13191_v47 = vadd.f32 %v3877_v53, %v3835_v21  ;;  %v3837_v58 = vadd.f32 %v3836_v52, %v669_v31  ;;  %7307 = vmatpush1.bf16.msra.mxu0 %v11675_v48  ;;  %v11659_v31 = vcombine.low %v4011_v25, %v4015_v57  ;;  %v11780_v42 = vcombine.high %v4131_v39, %v4135_v9  ;;  %v3999_v48 = vld [vmem:[#allocation8 + $0xa8] sm:$0xff] }
 0x2e0   :  { %v3879_v3 = vpop.f32.mrf.mxu1  ;;  %v3838_v17 = vpop.f32.mrf.mxu0  ;;  %7308 = vmatprep.subr.bf16.mxu0 %v11668_v56  ;;  %v4127_v49 = vld [vmem:[#allocation8 + $0x4a8] sm:$0xff]  ;;  %v11779_v56 = vcombine.low %v4131_v39, %v4135_v9  ;;  %v11644_v21 = vcombine.high %v3995_v45, %v3999_v48  ;;  %v11643_v24 = vcombine.low %v3995_v45, %v3999_v48 }
 0x2e1   :  { %7350 = vmatpush1.bf16.msra.mxu1 %v11803_v50  ;;  %v13193_v55 = vadd.f32 %v3879_v3, %v3837_v58  ;;  %v3839_v30 = vadd.f32 %v3838_v17, %v673_v63  ;;  %v4123_v63 = vld [vmem:[#allocation8 + $0x488] sm:$0xff]  ;;  %v11651_v50 = vcombine.low %v4003_v35, %v4007_v36 }
 0x2e2   :  { %7351 = vmatprep.subr.bf16.mxu1 %v11796_v15  ;;  %v3881_v33 = vpop.f32.mrf.mxu1  ;;  %v11772_v53 = vcombine.high %v4123_v63, %v4127_v49  ;;  %v3987_v15 = vld [vmem:[#allocation8 + $0x48] sm:$0xff]  ;;  %v11771_v28 = vcombine.low %v4123_v63, %v4127_v49 }
 0x2e3   :  { %v13195_v14 = vadd.f32 %v3881_v33, %v3839_v30  ;;  %7309 = vmatpush1.bf16.msra.mxu0 %v11667_v11  ;;  %v3991_v25 = vld [vmem:[#allocation8 + $0x68] sm:$0xff] }
 0x2e4   :  { %7310 = vmatprep.subr.bf16.mxu0 %v11660_v19  ;;  %v4115_v57 = vld [vmem:[#allocation8 + $0x448] sm:$0xff]  ;;  %v11636_v58 = vcombine.high %v3987_v15, %v3991_v25  ;;  %v11635_v30 = vcombine.low %v3987_v15, %v3991_v25 }
 0x2e5   :  { %7352 = vmatpush1.bf16.msra.mxu1 %v11795_v26  ;;  %v4119_v52 = vld [vmem:[#allocation8 + $0x468] sm:$0xff] }
 0x2e6   :  { %7353 = vmatprep.subr.bf16.mxu1 %v11788_v60  ;;  %v11764_v3 = vcombine.high %v4115_v57, %v4119_v52  ;;  %v3979_v11 = vld [vmem:[#allocation8 + $0x8] sm:$0xff]  ;;  %v11763_v60 = vcombine.low %v4115_v57, %v4119_v52 }
 0x2e7   :  { %7311 = vmatpush1.bf16.msra.mxu0 %v11659_v31  ;;  %v3983_v17 = vld [vmem:[#allocation8 + $0x28] sm:$0xff] }
 0x2e8   :  { %7312 = vmatprep.subr.bf16.mxu0 %v11652_v37  ;;  %v4107_v26 = vld [vmem:[#allocation8 + $0x408] sm:$0xff]  ;;  %v11628_v35 = vcombine.high %v3979_v11, %v3983_v17 }
 0x2e9   :  { %7354 = vmatpush1.bf16.msra.mxu1 %v11787_v34  ;;  %v4111_v19 = vld [vmem:[#allocation8 + $0x428] sm:$0xff]  ;;  %v11627_v34 = vcombine.low %v3979_v11, %v3983_v17 }
 0x2ea   :  { %7355 = vmatprep.subr.bf16.mxu1 %v11780_v42  ;;  %v11756_v36 = vcombine.high %v4107_v26, %v4111_v19  ;;  %v4099_v33 = vld [vmem:[#allocation8 + $0x3c8] sm:$0xff]  ;;  %v11755_v37 = vcombine.low %v4107_v26, %v4111_v19 }
 0x2eb   :  { %7313 = vmatpush1.bf16.msra.mxu0 %v11651_v50  ;;  %v4103_v39 = vld [vmem:[#allocation8 + $0x3e8] sm:$0xff] }
 0x2ec   :  { %7314 = vmatprep.subr.bf16.mxu0 %v11644_v21  ;;  %v4227_v9 = vld [vmem:[#allocation8 + $0x7c8] sm:$0xff]  ;;  %v11748_v42 = vcombine.high %v4099_v33, %v4103_v39 }
 0x2ed   :  { %7356 = vmatpush1.bf16.msra.mxu1 %v11779_v56  ;;  %v4231_v31 = vld [vmem:[#allocation8 + $0x7e8] sm:$0xff]  ;;  %v11747_v56 = vcombine.low %v4099_v33, %v4103_v39 }
 0x2ee   :  { %7357 = vmatprep.subr.bf16.mxu1 %v11772_v53  ;;  %v11876_v45 = vcombine.high %v4227_v9, %v4231_v31  ;;  %v4091_v48 = vld [vmem:[#allocation8 + $0x388] sm:$0xff]  ;;  %v11875_v21 = vcombine.low %v4227_v9, %v4231_v31 }
 0x2ef   :  { %7315 = vmatpush1.bf16.msra.mxu0 %v11643_v24  ;;  %v4095_v63 = vld [vmem:[#allocation8 + $0x3a8] sm:$0xff] }
 0x2f0   :  { %7316 = vmatprep.subr.bf16.mxu0 %v11636_v58  ;;  %v4219_v49 = vld [vmem:[#allocation8 + $0x788] sm:$0xff]  ;;  %v11740_v53 = vcombine.high %v4091_v48, %v4095_v63 }
 0x2f1   :  { %7358 = vmatpush1.bf16.msra.mxu1 %v11771_v28  ;;  %v4223_v50 = vld [vmem:[#allocation8 + $0x7a8] sm:$0xff]  ;;  %v11739_v28 = vcombine.low %v4091_v48, %v4095_v63 }
 0x2f2   :  { %7359 = vmatprep.subr.bf16.mxu1 %v11764_v3  ;;  %v11868_v15 = vcombine.high %v4219_v49, %v4223_v50  ;;  %v4083_v25 = vld [vmem:[#allocation8 + $0x348] sm:$0xff]  ;;  %v11867_v58 = vcombine.low %v4219_v49, %v4223_v50 }
 0x2f3   :  { %7317 = vmatpush1.bf16.msra.mxu0 %v11635_v30  ;;  %v4087_v57 = vld [vmem:[#allocation8 + $0x368] sm:$0xff] }
 0x2f4   :  { %7318 = vmatprep.subr.bf16.mxu0 %v11628_v35  ;;  %v4211_v52 = vld [vmem:[#allocation8 + $0x748] sm:$0xff]  ;;  %v11732_v3 = vcombine.high %v4083_v25, %v4087_v57 }
 0x2f5   :  { %7360 = vmatpush1.bf16.msra.mxu1 %v11763_v60  ;;  %v4215_v24 = vld [vmem:[#allocation8 + $0x768] sm:$0xff]  ;;  %v11731_v60 = vcombine.low %v4083_v25, %v4087_v57 }
 0x2f6   :  { %7361 = vmatprep.subr.bf16.mxu1 %v11756_v36  ;;  %v11860_v11 = vcombine.high %v4211_v52, %v4215_v24  ;;  %v4075_v17 = vld [vmem:[#allocation8 + $0x308] sm:$0xff]  ;;  %v11859_v35 = vcombine.low %v4211_v52, %v4215_v24 }
 0x2f7   :  { %7319 = vmatpush1.bf16.msra.mxu0 %v11627_v34  ;;  %v4079_v26 = vld [vmem:[#allocation8 + $0x328] sm:$0xff] }
 0x2f8   :  { %7320 = vmatprep.subr.bf16.mxu0 %v11748_v42  ;;  %v4203_v19 = vld [vmem:[#allocation8 + $0x708] sm:$0xff]  ;;  %v11724_v36 = vcombine.high %v4075_v17, %v4079_v26 }
 0x2f9   :  { %7362 = vmatpush1.bf16.msra.mxu1 %v11755_v37  ;;  %v4207_v30 = vld [vmem:[#allocation8 + $0x728] sm:$0xff]  ;;  %v11723_v37 = vcombine.low %v4075_v17, %v4079_v26 }
 0x2fa   :  { %7363 = vmatprep.subr.bf16.mxu1 %v11876_v45  ;;  %v11852_v33 = vcombine.high %v4203_v19, %v4207_v30  ;;  %v4067_v39 = vld [vmem:[#allocation8 + $0x2c8] sm:$0xff]  ;;  %v11851_v42 = vcombine.low %v4203_v19, %v4207_v30 }
 0x2fb   :  { %7321 = vmatpush2.bf16.msra.mxu0 %v11747_v56  ;;  %v4071_v9 = vld [vmem:[#allocation8 + $0x2e8] sm:$0xff] }
 0x2fc   :  { %7322 = vmatprep.subr.bf16.mxu0 %v11740_v53  ;;  %v4195_v31 = vld [vmem:[#allocation8 + $0x6c8] sm:$0xff]  ;;  %v11716_v45 = vcombine.high %v4067_v39, %v4071_v9 }
 0x2fd   :  { %7364 = vmatpush2.bf16.msra.mxu1 %v11875_v21  ;;  %v4199_v34 = vld [vmem:[#allocation8 + $0x6e8] sm:$0xff]  ;;  %v11715_v21 = vcombine.low %v4067_v39, %v4071_v9 }
 0x2fe   :  { %7365 = vmatprep.subr.bf16.mxu1 %v11868_v15  ;;  %v11844_v48 = vcombine.high %v4195_v31, %v4199_v34  ;;  %v4059_v63 = vld [vmem:[#allocation8 + $0x288] sm:$0xff]  ;;  %v11843_v53 = vcombine.low %v4195_v31, %v4199_v34 }
 0x2ff   :  { %7323 = vmatpush2.bf16.msra.mxu0 %v11739_v28  ;;  %v4063_v49 = vld [vmem:[#allocation8 + $0x2a8] sm:$0xff] }
 0x300   :  { %7324 = vmatprep.subr.bf16.mxu0 %v11732_v3  ;;  %v4187_v50 = vld [vmem:[#allocation8 + $0x688] sm:$0xff]  ;;  %v11708_v15 = vcombine.high %v4059_v63, %v4063_v49 }
 0x301   :  { %7366 = vmatpush2.bf16.msra.mxu1 %v11867_v58  ;;  %v4191_v56 = vld [vmem:[#allocation8 + $0x6a8] sm:$0xff]  ;;  %v11707_v58 = vcombine.low %v4059_v63, %v4063_v49 }
 0x302   :  { %7367 = vmatprep.subr.bf16.mxu1 %v11860_v11  ;;  %v11836_v25 = vcombine.high %v4187_v50, %v4191_v56  ;;  %v4051_v57 = vld [vmem:[#allocation8 + $0x248] sm:$0xff]  ;;  %v11835_v3 = vcombine.low %v4187_v50, %v4191_v56 }
 0x303   :  { %7325 = vmatpush2.bf16.msra.mxu0 %v11731_v60  ;;  %v4055_v52 = vld [vmem:[#allocation8 + $0x268] sm:$0xff] }
 0x304   :  { %7326 = vmatprep.subr.bf16.mxu0 %v11724_v36  ;;  %v4179_v24 = vld [vmem:[#allocation8 + $0x648] sm:$0xff]  ;;  %v11700_v11 = vcombine.high %v4051_v57, %v4055_v52 }
 0x305   :  { %7368 = vmatpush2.bf16.msra.mxu1 %v11859_v35  ;;  %v4183_v28 = vld [vmem:[#allocation8 + $0x668] sm:$0xff]  ;;  %v11699_v35 = vcombine.low %v4051_v57, %v4055_v52 }
 0x306   :  { %7369 = vmatprep.subr.bf16.mxu1 %v11852_v33  ;;  %v11828_v17 = vcombine.high %v4179_v24, %v4183_v28  ;;  %v4043_v26 = vld [vmem:[#allocation8 + $0x208] sm:$0xff]  ;;  %v11827_v36 = vcombine.low %v4179_v24, %v4183_v28 }
 0x307   :  { %7327 = vmatpush2.bf16.msra.mxu0 %v11723_v37  ;;  %v4047_v19 = vld [vmem:[#allocation8 + $0x228] sm:$0xff] }
 0x308   :  { %7328 = vmatprep.subr.bf16.mxu0 %v11716_v45  ;;  %v4171_v30 = vld [vmem:[#allocation8 + $0x608] sm:$0xff]  ;;  %v11692_v33 = vcombine.high %v4043_v26, %v4047_v19 }
 0x309   :  { %7370 = vmatpush2.bf16.msra.mxu1 %v11851_v42  ;;  %v4175_v60 = vld [vmem:[#allocation8 + $0x628] sm:$0xff]  ;;  %v11691_v42 = vcombine.low %v4043_v26, %v4047_v19 }
 0x30a   :  { %7371 = vmatprep.subr.bf16.mxu1 %v11844_v48  ;;  %v11820_v39 = vcombine.high %v4171_v30, %v4175_v60  ;;  %v4291_v9 = vld [vmem:[#allocation8 + $0x9c8] sm:$0xff]  ;;  %v11819_v45 = vcombine.low %v4171_v30, %v4175_v60 }
 0x30b   :  { %7329 = vmatpush2.bf16.msra.mxu0 %v11715_v21  ;;  %v4295_v31 = vld [vmem:[#allocation8 + $0x9e8] sm:$0xff] }
 0x30c   :  { %7330 = vmatprep.subr.bf16.mxu0 %v11708_v15  ;;  %v4419_v34 = vld [vmem:[#allocation8 + $0xdc8] sm:$0xff]  ;;  %v11940_v48 = vcombine.high %v4291_v9, %v4295_v31 }
 0x30d   :  { %7372 = vmatpush2.bf16.msra.mxu1 %v11843_v53  ;;  %v4423_v37 = vld [vmem:[#allocation8 + $0xde8] sm:$0xff]  ;;  %v11939_v53 = vcombine.low %v4291_v9, %v4295_v31 }
 0x30e   :  { %7373 = vmatprep.subr.bf16.mxu1 %v11836_v25  ;;  %v12068_v63 = vcombine.high %v4419_v34, %v4423_v37  ;;  %v4283_v49 = vld [vmem:[#allocation8 + $0x988] sm:$0xff]  ;;  %v12067_v15 = vcombine.low %v4419_v34, %v4423_v37 }
 0x30f   :  { %7331 = vmatpush2.bf16.msra.mxu0 %v11707_v58  ;;  %v4287_v50 = vld [vmem:[#allocation8 + $0x9a8] sm:$0xff] }
 0x310   :  { %7332 = vmatprep.subr.bf16.mxu0 %v11700_v11  ;;  %v4411_v56 = vld [vmem:[#allocation8 + $0xd88] sm:$0xff]  ;;  %v11932_v25 = vcombine.high %v4283_v49, %v4287_v50  ;;  %v11931_v26 = vcombine.low %v4283_v49, %v4287_v50 }
 0x311   :  { %7374 = vmatpush2.bf16.msra.mxu1 %v11835_v3  ;;  %v4415_v21 = vld [vmem:[#allocation8 + $0xda8] sm:$0xff] }
 0x312   :  { %7375 = vmatprep.subr.bf16.mxu1 %v11828_v17  ;;  %v12060_v57 = vcombine.high %v4411_v56, %v4415_v21  ;;  %v4275_v52 = vld [vmem:[#allocation8 + $0x948] sm:$0xff]  ;;  %v12059_v30 = vcombine.low %v4411_v56, %v4415_v21 }
 0x313   :  { %7333 = vmatpush2.bf16.msra.mxu0 %v11699_v35  ;;  %v4279_v24 = vld [vmem:[#allocation8 + $0x968] sm:$0xff] }
 0x314   :  { %7334 = vmatprep.subr.bf16.mxu0 %v11692_v33  ;;  %v4403_v58 = vld [vmem:[#allocation8 + $0xd48] sm:$0xff]  ;;  %v11924_v60 = vcombine.high %v4275_v52, %v4279_v24 }
 0x315   :  { %7376 = vmatpush2.bf16.msra.mxu1 %v11827_v36  ;;  %v4407_v3 = vld [vmem:[#allocation8 + $0xd68] sm:$0xff] }
 0x316   :  { %7377 = vmatprep.subr.bf16.mxu1 %v11820_v39  ;;  %v12052_v39 = vcombine.high %v4403_v58, %v4407_v3  ;;  %v4267_v9 = vld [vmem:[#allocation8 + $0x908] sm:$0xff]  ;;  %v12051_v49 = vcombine.low %v4403_v58, %v4407_v3 }
 0x317   :  { %7335 = vmatpush2.bf16.msra.mxu0 %v11691_v42  ;;  %v4271_v31 = vld [vmem:[#allocation8 + $0x928] sm:$0xff] }
 0x318   :  { %7390 = vmatprep.subr.bf16.mxu0 %v11940_v48  ;;  %v4395_v34 = vld [vmem:[#allocation8 + $0xd08] sm:$0xff]  ;;  %v11916_v50 = vcombine.high %v4267_v9, %v4271_v31 }
 0x319   :  { %7378 = vmatpush2.bf16.msra.mxu1 %v11819_v45  ;;  %v4399_v37 = vld [vmem:[#allocation8 + $0xd28] sm:$0xff] }
 0x31a   :  { %7433 = vmatprep.subr.bf16.mxu1 %v12068_v63  ;;  %v3918_v28 = vpop.f32.mrf.mxu0  ;;  %7337 = vmatmul.mubr.bf16.vlgmr.msra.gmra.mxu0 %v13131_v32  ;;  %v11923_v63 = vcombine.low %v4275_v52, %v4279_v24  ;;  %v11915_v52 = vcombine.low %v4267_v9, %v4271_v31  ;;  %v12043_v24 = vcombine.low %v4395_v34, %v4399_v37  ;;  %v4247_v9 = vld [vmem:[#allocation8 + $0x868] sm:$0xff] }
 0x31b   :  { %v3919_v11 = vadd.f32 %v3918_v28, %v13187_v29  ;;  %7391 = vmatpush1.bf16.msra.mxu0 %v11939_v53  ;;  %7422 = vmatprep.mubr.bf16.mxu0 %v13147_v54  ;;  %v12044_v53 = vcombine.high %v4395_v34, %v4399_v37  ;;  %v4387_v28 = vld [vmem:[#allocation8 + $0xcc8] sm:$0xff] }
 0x31c   :  { %v3961_v17 = vpop.f32.mrf.mxu1  ;;  %7380 = vmatmul.mubr.bf16.vlgmr.msra.gmra.mxu1 %v13139_v8  ;;  %v3920_v19 = vpop.f32.mrf.mxu0  ;;  %7392 = vmatprep.subr.bf16.mxu0 %v11932_v25  ;;  %v4263_v25 = vld [vmem:[#allocation8 + $0x8e8] sm:$0xff] }
 0x31d   :  { %7434 = vmatpush1.bf16.msra.mxu1 %v12067_v15  ;;  %v13200_v35 = vadd.f32 %v3961_v17, %v3919_v11  ;;  %v3921_v36 = vadd.f32 %v3920_v19, %v13191_v47  ;;  %7465 = vmatprep.mubr.bf16.mxu1 %v13152_v59  ;;  %v4259_v15 = vld [vmem:[#allocation8 + $0x8c8] sm:$0xff] }
 0x31e   :  { %v3963_v33 = vpop.f32.mrf.mxu1  ;;  %7435 = vmatprep.subr.bf16.mxu1 %v12060_v57  ;;  %v3922_v29 = vpop.f32.mrf.mxu0  ;;  %v4391_v11 = vld [vmem:[#allocation8 + $0xce8] sm:$0xff]  ;;  %v11908_v58 = vcombine.high %v4259_v15, %v4263_v25 }
 0x31f   :  { %13957 = vst [vmem:[#allocation26_spill] sm:$0xff] %v13200_v35  ;;  %v13205_v42 = vadd.f32 %v3963_v33, %v3921_v36  ;;  %v3923_v45 = vadd.f32 %v3922_v29, %v13193_v55  ;;  %7393 = vmatpush1.bf16.msra.mxu0 %v11931_v26  ;;  %v12036_v3 = vcombine.high %v4387_v28, %v4391_v11  ;;  %v4251_v17 = vld [vmem:[#allocation8 + $0x888] sm:$0xff]  ;;  %v4393_v35 = vld [vmem:[#allocation8 + $0xcf8] sm:$0xff] }
 0x320   :  { %v3965_v48 = vpop.f32.mrf.mxu1  ;;  %v3924_v47 = vpop.f32.mrf.mxu0  ;;  %7394 = vmatprep.subr.bf16.mxu0 %v11924_v60  ;;  %v4255_v26 = vld [vmem:[#allocation8 + $0x8a8] sm:$0xff]  ;;  %v12035_v60 = vcombine.low %v4387_v28, %v4391_v11 }
 0x321   :  { %13958 = vst [vmem:[#allocation27_spill] sm:$0xff] %v13205_v42  ;;  %7436 = vmatpush1.bf16.msra.mxu1 %v12059_v30  ;;  %v13208_v56 = vadd.f32 %v3965_v48, %v3923_v45  ;;  %v3925_v21 = vadd.f32 %v3924_v47, %v13195_v14  ;;  %v4379_v14 = vld [vmem:[#allocation8 + $0xc88] sm:$0xff]  ;;  %v11907_v30 = vcombine.low %v4259_v15, %v4263_v25 }
 0x322   :  { %7437 = vmatprep.subr.bf16.mxu1 %v12052_v39  ;;  %v3967_v57 = vpop.f32.mrf.mxu1  ;;  %v4383_v19 = vld [vmem:[#allocation8 + $0xca8] sm:$0xff]  ;;  %v11900_v36 = vcombine.high %v4251_v17, %v4255_v26  ;;  %v11899_v34 = vcombine.low %v4251_v17, %v4255_v26 }
 0x323   :  { %13959 = vst [vmem:[#allocation28_spill] sm:$0xff] %v13208_v56  ;;  %v13211_v55 = vadd.f32 %v3967_v57, %v3925_v21  ;;  %7395 = vmatpush1.bf16.msra.mxu0 %v11923_v63  ;;  %v12028_v33 = vcombine.high %v4379_v14, %v4383_v19  ;;  %v4243_v39 = vld [vmem:[#allocation8 + $0x848] sm:$0xff]  ;;  %v12027_v37 = vcombine.low %v4379_v14, %v4383_v19 }
 0x324   :  { %7396 = vmatprep.subr.bf16.mxu0 %v11916_v50  ;;  %v4371_v31 = vld [vmem:[#allocation8 + $0xc48] sm:$0xff]  ;;  %v11892_v45 = vcombine.high %v4243_v39, %v4247_v9  ;;  %v11891_v21 = vcombine.low %v4243_v39, %v4247_v9 }
 0x325   :  { %13960 = vst [vmem:[#allocation29_spill] sm:$0xff] %v13211_v55  ;;  %7438 = vmatpush1.bf16.msra.mxu1 %v12051_v49  ;;  %v4375_v29 = vld [vmem:[#allocation8 + $0xc68] sm:$0xff]  ;;  %v4392_v55 = vld [vmem:[#allocation8 + $0xcf0] sm:$0xff] }
 0x326   :  { %7439 = vmatprep.subr.bf16.mxu1 %v12044_v53  ;;  %v12020_v48 = vcombine.high %v4371_v31, %v4375_v29  ;;  %v4235_v63 = vld [vmem:[#allocation8 + $0x808] sm:$0xff]  ;;  %v12019_v53 = vcombine.low %v4371_v31, %v4375_v29 }
 0x327   :  { %7397 = vmatpush1.bf16.msra.mxu0 %v11915_v52  ;;  %v4239_v47 = vld [vmem:[#allocation8 + $0x828] sm:$0xff] }
 0x328   :  { %7398 = vmatprep.subr.bf16.mxu0 %v11908_v58  ;;  %v4363_v49 = vld [vmem:[#allocation8 + $0xc08] sm:$0xff]  ;;  %v11884_v15 = vcombine.high %v4235_v63, %v4239_v47 }
 0x329   :  { %7440 = vmatpush1.bf16.msra.mxu1 %v12043_v24  ;;  %v4367_v50 = vld [vmem:[#allocation8 + $0xc28] sm:$0xff]  ;;  %v11883_v24 = vcombine.low %v4235_v63, %v4239_v47 }
 0x32a   :  { %7441 = vmatprep.subr.bf16.mxu1 %v12036_v3  ;;  %v12012_v25 = vcombine.high %v4363_v49, %v4367_v50  ;;  %v4355_v57 = vld [vmem:[#allocation8 + $0xbc8] sm:$0xff]  ;;  %v12011_v58 = vcombine.low %v4363_v49, %v4367_v50 }
 0x32b   :  { %7399 = vmatpush1.bf16.msra.mxu0 %v11907_v30  ;;  %v4359_v28 = vld [vmem:[#allocation8 + $0xbe8] sm:$0xff] }
 0x32c   :  { %7400 = vmatprep.subr.bf16.mxu0 %v11900_v36  ;;  %v4483_v11 = vld [vmem:[#allocation8 + $0xfc8] sm:$0xff]  ;;  %v12004_v3 = vcombine.high %v4355_v57, %v4359_v28 }
 0x32d   :  { %7442 = vmatpush1.bf16.msra.mxu1 %v12035_v60  ;;  %v4487_v52 = vld [vmem:[#allocation8 + $0xfe8] sm:$0xff]  ;;  %v12003_v60 = vcombine.low %v4355_v57, %v4359_v28 }
 0x32e   :  { %7443 = vmatprep.subr.bf16.mxu1 %v12028_v33  ;;  %v12132_v17 = vcombine.high %v4483_v11, %v4487_v52  ;;  %v4347_v26 = vld [vmem:[#allocation8 + $0xb88] sm:$0xff]  ;;  %v12131_v36 = vcombine.low %v4483_v11, %v4487_v52 }
 0x32f   :  { %7401 = vmatpush1.bf16.msra.mxu0 %v11899_v34  ;;  %v4351_v14 = vld [vmem:[#allocation8 + $0xba8] sm:$0xff] }
 0x330   :  { %7402 = vmatprep.subr.bf16.mxu0 %v11892_v45  ;;  %v4475_v19 = vld [vmem:[#allocation8 + $0xf88] sm:$0xff]  ;;  %v11996_v33 = vcombine.high %v4347_v26, %v4351_v14 }
 0x331   :  { %7444 = vmatpush1.bf16.msra.mxu1 %v12027_v37  ;;  %v4479_v30 = vld [vmem:[#allocation8 + $0xfa8] sm:$0xff]  ;;  %v11995_v37 = vcombine.low %v4347_v26, %v4351_v14 }
 0x332   :  { %7445 = vmatprep.subr.bf16.mxu1 %v12020_v48  ;;  %v12124_v39 = vcombine.high %v4475_v19, %v4479_v30  ;;  %v4339_v9 = vld [vmem:[#allocation8 + $0xb48] sm:$0xff]  ;;  %v12123_v45 = vcombine.low %v4475_v19, %v4479_v30 }
 0x333   :  { %7403 = vmatpush1.bf16.msra.mxu0 %v11891_v21  ;;  %v4343_v31 = vld [vmem:[#allocation8 + $0xb68] sm:$0xff] }
 0x334   :  { %7404 = vmatprep.subr.bf16.mxu0 %v11884_v15  ;;  %v4467_v29 = vld [vmem:[#allocation8 + $0xf48] sm:$0xff]  ;;  %v11988_v48 = vcombine.high %v4339_v9, %v4343_v31 }
 0x335   :  { %7446 = vmatpush1.bf16.msra.mxu1 %v12019_v53  ;;  %v4471_v34 = vld [vmem:[#allocation8 + $0xf68] sm:$0xff]  ;;  %v11987_v53 = vcombine.low %v4339_v9, %v4343_v31 }
 0x336   :  { %7447 = vmatprep.subr.bf16.mxu1 %v12012_v25  ;;  %v12116_v63 = vcombine.high %v4467_v29, %v4471_v34  ;;  %v4331_v47 = vld [vmem:[#allocation8 + $0xb08] sm:$0xff]  ;;  %v12115_v15 = vcombine.low %v4467_v29, %v4471_v34 }
 0x337   :  { %7405 = vmatpush1.bf16.msra.mxu0 %v11883_v24  ;;  %v4335_v49 = vld [vmem:[#allocation8 + $0xb28] sm:$0xff] }
 0x338   :  { %7406 = vmatprep.subr.bf16.mxu0 %v12004_v3  ;;  %v4459_v50 = vld [vmem:[#allocation8 + $0xf08] sm:$0xff]  ;;  %v11980_v25 = vcombine.high %v4331_v47, %v4335_v49 }
 0x339   :  { %7448 = vmatpush1.bf16.msra.mxu1 %v12011_v58  ;;  %v4463_v21 = vld [vmem:[#allocation8 + $0xf28] sm:$0xff]  ;;  %v11979_v58 = vcombine.low %v4331_v47, %v4335_v49 }
 0x33a   :  { %7449 = vmatprep.subr.bf16.mxu1 %v12132_v17  ;;  %v12108_v57 = vcombine.high %v4459_v50, %v4463_v21  ;;  %v4323_v28 = vld [vmem:[#allocation8 + $0xac8] sm:$0xff]  ;;  %v12107_v3 = vcombine.low %v4459_v50, %v4463_v21 }
 0x33b   :  { %7407 = vmatpush2.bf16.msra.mxu0 %v12003_v60  ;;  %v4327_v11 = vld [vmem:[#allocation8 + $0xae8] sm:$0xff] }
 0x33c   :  { %7408 = vmatprep.subr.bf16.mxu0 %v11996_v33  ;;  %v4451_v52 = vld [vmem:[#allocation8 + $0xec8] sm:$0xff]  ;;  %v11972_v17 = vcombine.high %v4323_v28, %v4327_v11 }
 0x33d   :  { %7450 = vmatpush2.bf16.msra.mxu1 %v12131_v36  ;;  %v4455_v24 = vld [vmem:[#allocation8 + $0xee8] sm:$0xff]  ;;  %v11971_v36 = vcombine.low %v4323_v28, %v4327_v11  ;;  %v4036_v11 = vld [vmem:[#allocation8 + $0x1d0] sm:$0xff] }
 0x33e   :  { %7451 = vmatprep.subr.bf16.mxu1 %v12124_v39  ;;  %v12100_v26 = vcombine.high %v4451_v52, %v4455_v24  ;;  %v4315_v14 = vld [vmem:[#allocation8 + $0xa88] sm:$0xff]  ;;  %v12099_v33 = vcombine.low %v4451_v52, %v4455_v24  ;;  %v4040_v52 = vld [vmem:[#allocation8 + $0x1f0] sm:$0xff] }
 0x33f   :  { %7409 = vmatpush2.bf16.msra.mxu0 %v11995_v37  ;;  %v4319_v19 = vld [vmem:[#allocation8 + $0xaa8] sm:$0xff]  ;;  %v4164_v24 = vld [vmem:[#allocation8 + $0x5d0] sm:$0xff] }
 0x340   :  { %7410 = vmatprep.subr.bf16.mxu0 %v11988_v48  ;;  %v4443_v30 = vld [vmem:[#allocation8 + $0xe88] sm:$0xff]  ;;  %v11964_v39 = vcombine.high %v4315_v14, %v4319_v19 }
 0x341   :  { %7452 = vmatpush2.bf16.msra.mxu1 %v12123_v45  ;;  %v4447_v60 = vld [vmem:[#allocation8 + $0xea8] sm:$0xff]  ;;  %v11963_v45 = vcombine.low %v4315_v14, %v4319_v19  ;;  %v4028_v19 = vld [vmem:[#allocation8 + $0x190] sm:$0xff] }
 0x342   :  { %7453 = vmatprep.subr.bf16.mxu1 %v12116_v63  ;;  %v12092_v9 = vcombine.high %v4443_v30, %v4447_v60  ;;  %v4307_v31 = vld [vmem:[#allocation8 + $0xa48] sm:$0xff]  ;;  %v12091_v48 = vcombine.low %v4443_v30, %v4447_v60  ;;  %v4032_v30 = vld [vmem:[#allocation8 + $0x1b0] sm:$0xff] }
 0x343   :  { %7411 = vmatpush2.bf16.msra.mxu0 %v11987_v53  ;;  %v4311_v29 = vld [vmem:[#allocation8 + $0xa68] sm:$0xff]  ;;  %v4156_v60 = vld [vmem:[#allocation8 + $0x590] sm:$0xff] }
 0x344   :  { %7412 = vmatprep.subr.bf16.mxu0 %v11980_v25  ;;  %v4435_v34 = vld [vmem:[#allocation8 + $0xe48] sm:$0xff]  ;;  %v11956_v63 = vcombine.high %v4307_v31, %v4311_v29 }
 0x345   :  { %7454 = vmatpush2.bf16.msra.mxu1 %v12115_v15  ;;  %v4439_v37 = vld [vmem:[#allocation8 + $0xe68] sm:$0xff]  ;;  %v11955_v15 = vcombine.low %v4307_v31, %v4311_v29  ;;  %v4020_v29 = vld [vmem:[#allocation8 + $0x150] sm:$0xff] }
 0x346   :  { %7455 = vmatprep.subr.bf16.mxu1 %v12108_v57  ;;  %v12084_v47 = vcombine.high %v4435_v34, %v4439_v37  ;;  %v4299_v49 = vld [vmem:[#allocation8 + $0xa08] sm:$0xff]  ;;  %v12083_v25 = vcombine.low %v4435_v34, %v4439_v37  ;;  %v4024_v34 = vld [vmem:[#allocation8 + $0x170] sm:$0xff] }
 0x347   :  { %7413 = vmatpush2.bf16.msra.mxu0 %v11979_v58  ;;  %v4303_v50 = vld [vmem:[#allocation8 + $0xa28] sm:$0xff]  ;;  %v4168_v58 = vld [vmem:[#allocation8 + $0x5f0] sm:$0xff] }
 0x348   :  { %7414 = vmatprep.subr.bf16.mxu0 %v11972_v17  ;;  %v4427_v21 = vld [vmem:[#allocation8 + $0xe08] sm:$0xff]  ;;  %v11948_v57 = vcombine.high %v4299_v49, %v4303_v50  ;;  %v11814_v14 = vcombine.high %v4164_v24, %v4168_v58 }
 0x349   :  { %7456 = vmatpush2.bf16.msra.mxu1 %v12107_v3  ;;  %v4431_v53 = vld [vmem:[#allocation8 + $0xe28] sm:$0xff]  ;;  %v11947_v3 = vcombine.low %v4299_v49, %v4303_v50  ;;  %v11677_v49 = vcombine.low %v4028_v19, %v4032_v30 }
 0x34a   :  { %7457 = vmatprep.subr.bf16.mxu1 %v12100_v26  ;;  %v12076_v28 = vcombine.high %v4427_v21, %v4431_v53  ;;  %v12075_v17 = vcombine.low %v4427_v21, %v4431_v53  ;;  %v11686_v26 = vcombine.high %v4036_v11, %v4040_v52  ;;  %v13213_v37 = vld [vmem:[#allocation11] sm:$0xff]  ;;  %v11670_v53 = vcombine.high %v4020_v29, %v4024_v34 }
 0x34b   :  { %7415 = vmatpush2.bf16.msra.mxu0 %v11971_v36  ;;  %v4160_v36 = vld [vmem:[#allocation8 + $0x5b0] sm:$0xff] }
 0x34c   :  { %7416 = vmatprep.subr.bf16.mxu0 %v11964_v39  ;;  %v11813_v39 = vcombine.low %v4164_v24, %v4168_v58  ;;  %v11806_v31 = vcombine.high %v4156_v60, %v4160_v36  ;;  %v11805_v21 = vcombine.low %v4156_v60, %v4160_v36  ;;  %v4140_v24 = vld [vmem:[#allocation8 + $0x510] sm:$0xff] }
 0x34d   :  { %7458 = vmatpush2.bf16.msra.mxu1 %v12099_v33  ;;  %v11685_v33 = vcombine.low %v4036_v11, %v4040_v52  ;;  %v4016_v11 = vld [vmem:[#allocation8 + $0x130] sm:$0xff] }
 0x34e   :  { %7459 = vmatprep.subr.bf16.mxu1 %v12092_v9  ;;  %v11678_v9 = vcombine.high %v4028_v19, %v4032_v30  ;;  %v4144_v58 = vld [vmem:[#allocation8 + $0x530] sm:$0xff] }
 0x34f   :  { %7417 = vmatpush2.bf16.msra.mxu0 %v11963_v45 }
 0x350   :  { %7418 = vmatprep.subr.bf16.mxu0 %v11956_v63  ;;  %v4152_v63 = vld [vmem:[#allocation8 + $0x570] sm:$0xff] }
 0x351   :  { %7460 = vmatpush2.bf16.msra.mxu1 %v12091_v48  ;;  %v4148_v48 = vld [vmem:[#allocation8 + $0x550] sm:$0xff] }
 0x352   :  { %7461 = vmatprep.subr.bf16.mxu1 %v12084_v47  ;;  %v11797_v19 = vcombine.low %v4148_v48, %v4152_v63 }
 0x353   :  { %7419 = vmatpush2.bf16.msra.mxu0 %v11955_v15  ;;  %v13226_v15 = vrot.slane %v13213_v37, %v644_v13 }
 0x354   :  { %7420 = vmatprep.subr.bf16.mxu0 %v11948_v57  ;;  %v11798_v57 = vcombine.high %v4148_v48, %v4152_v63 }
 0x355   :  { %7462 = vmatpush2.bf16.msra.mxu1 %v12083_v25 }
 0x356   :  { %7463 = vmatprep.subr.bf16.mxu1 %v12076_v28  ;;  %v4012_v28 = vld [vmem:[#allocation8 + $0x110] sm:$0xff] }
 0x357   :  { %7421 = vmatpush2.bf16.msra.mxu0 %v11947_v3  ;;  %v13235_v3 = vrot.slane %v13213_v37, %v648_v18  ;;  %v11662_v30 = vcombine.high %v4012_v28, %v4016_v11 }
 0x358   :  { %7476 = vmatprep.subr.bf16.mxu0 %v11686_v26  ;;  %v11669_v26 = vcombine.low %v4020_v29, %v4024_v34  ;;  %v11661_v29 = vcombine.low %v4012_v28, %v4016_v11  ;;  %v11789_v34 = vcombine.low %v4140_v24, %v4144_v58  ;;  %v3992_v28 = vld [vmem:[#allocation8 + $0x70] sm:$0xff] }
 0x359   :  { %7464 = vmatpush2.bf16.msra.mxu1 %v12075_v17  ;;  %v4116_v11 = vld [vmem:[#allocation8 + $0x450] sm:$0xff] }
 0x35a   :  { %7519 = vmatprep.subr.bf16.mxu1 %v11814_v14  ;;  %v13215_v45 = vpop.f32.mrf.mxu0  ;;  %7423 = vmatmul.mubr.bf16.vlgmr.msra.gmra.mxu0 %v13173_v6 }
 0x35b   :  { %7477 = vmatpush1.bf16.msra.mxu0 %v11685_v33  ;;  %7508 = vmatprep.mubr.bf16.mxu0 %v13111_v38  ;;  %v11790_v33 = vcombine.high %v4140_v24, %v4144_v58 }
 0x35c   :  { %v13218_v47 = vpop.f32.mrf.mxu1  ;;  %7466 = vmatmul.mubr.bf16.vlgmr.msra.gmra.mxu1 %v13180_v20  ;;  %v13221_v50 = vpop.f32.mrf.mxu0  ;;  %7478 = vmatprep.subr.bf16.mxu0 %v11678_v9  ;;  %v4008_v9 = vld [vmem:[#allocation8 + $0xf0] sm:$0xff] }
 0x35d   :  { %7520 = vmatpush1.bf16.msra.mxu1 %v11813_v39  ;;  %7551 = vmatprep.mubr.bf16.mxu1 %v13116_v43  ;;  %v4004_v39 = vld [vmem:[#allocation8 + $0xd0] sm:$0xff] }
 0x35e   :  { %v13228_v25 = vpop.f32.mrf.mxu1  ;;  %7521 = vmatprep.subr.bf16.mxu1 %v11806_v31  ;;  %v7170_v52 = vpop.f32.mrf.mxu0  ;;  %v4132_v31 = vld [vmem:[#allocation8 + $0x4d0] sm:$0xff]  ;;  %v11654_v48 = vcombine.high %v4004_v39, %v4008_v9 }
 0x35f   :  { %v7171_v13 = vadd.f32 %v7170_v52, %v13226_v15  ;;  %7479 = vmatpush1.bf16.msra.mxu0 %v11677_v49  ;;  %v11782_v63 = vcombine.high %v4132_v31, %v4136_v22  ;;  %v3996_v49 = vld [vmem:[#allocation8 + $0x90] sm:$0xff] }
 0x360   :  { %v7213_v17 = vpop.f32.mrf.mxu1  ;;  %v7172_v14 = vpop.f32.mrf.mxu0  ;;  %7480 = vmatprep.subr.bf16.mxu0 %v11670_v53  ;;  %v4124_v53 = vld [vmem:[#allocation8 + $0x490] sm:$0xff] }
 0x361   :  { %7522 = vmatpush1.bf16.msra.mxu1 %v11805_v21  ;;  %v13238_v60 = vadd.f32 %v7213_v17, %v7171_v13  ;;  %v7173_v36 = vadd.f32 %v7172_v14, %v13235_v3  ;;  %v4000_v21 = vld [vmem:[#allocation8 + $0xb0] sm:$0xff]  ;;  %v11653_v13 = vcombine.low %v4004_v39, %v4008_v9  ;;  %v11781_v17 = vcombine.low %v4132_v31, %v4136_v22 }
 0x362   :  { %7523 = vmatprep.subr.bf16.mxu1 %v11798_v57  ;;  %v7215_v18 = vpop.f32.mrf.mxu1  ;;  %v4128_v57 = vld [vmem:[#allocation8 + $0x4b0] sm:$0xff]  ;;  %v11646_v14 = vcombine.high %v3996_v49, %v4000_v21  ;;  %v11645_v24 = vcombine.low %v3996_v49, %v4000_v21 }
 0x363   :  { %v13241_v52 = vadd.f32 %v7215_v18, %v7173_v36  ;;  %7481 = vmatpush1.bf16.msra.mxu0 %v11669_v26  ;;  %v11774_v36 = vcombine.high %v4124_v53, %v4128_v57  ;;  %v3988_v26 = vld [vmem:[#allocation8 + $0x50] sm:$0xff]  ;;  %v11773_v58 = vcombine.low %v4124_v53, %v4128_v57 }
 0x364   :  { %7482 = vmatprep.subr.bf16.mxu0 %v11662_v30  ;;  %v11638_v30 = vcombine.high %v3988_v26, %v3992_v28  ;;  %v3980_v18 = vld [vmem:[#allocation8 + $0x10] sm:$0xff]  ;;  %v11637_v22 = vcombine.low %v3988_v26, %v3992_v28 }
 0x365   :  { %7524 = vmatpush1.bf16.msra.mxu1 %v11797_v19  ;;  %v4120_v19 = vld [vmem:[#allocation8 + $0x470] sm:$0xff] }
 0x366   :  { %7525 = vmatprep.subr.bf16.mxu1 %v11790_v33  ;;  %v11766_v33 = vcombine.high %v4116_v11, %v4120_v19  ;;  %v3984_v39 = vld [vmem:[#allocation8 + $0x30] sm:$0xff]  ;;  %v11765_v31 = vcombine.low %v4116_v11, %v4120_v19 }
 0x367   :  { %7483 = vmatpush1.bf16.msra.mxu0 %v11661_v29  ;;  %v4108_v9 = vld [vmem:[#allocation8 + $0x410] sm:$0xff]  ;;  %v11629_v53 = vcombine.low %v3980_v18, %v3984_v39 }
 0x368   :  { %7484 = vmatprep.subr.bf16.mxu0 %v11654_v48  ;;  %v4112_v29 = vld [vmem:[#allocation8 + $0x430] sm:$0xff] }
 0x369   :  { %7526 = vmatpush1.bf16.msra.mxu1 %v11789_v34  ;;  %v11630_v34 = vcombine.high %v3980_v18, %v3984_v39  ;;  %v11758_v48 = vcombine.high %v4108_v9, %v4112_v29  ;;  %v4104_v49 = vld [vmem:[#allocation8 + $0x3f0] sm:$0xff]  ;;  %v11757_v57 = vcombine.low %v4108_v9, %v4112_v29 }
 0x36a   :  { %7527 = vmatprep.subr.bf16.mxu1 %v11782_v63  ;;  %v4100_v63 = vld [vmem:[#allocation8 + $0x3d0] sm:$0xff] }
 0x36b   :  { %7485 = vmatpush1.bf16.msra.mxu0 %v11653_v13  ;;  %v4228_v21 = vld [vmem:[#allocation8 + $0x7d0] sm:$0xff]  ;;  %v11749_v11 = vcombine.low %v4100_v63, %v4104_v49 }
 0x36c   :  { %7486 = vmatprep.subr.bf16.mxu0 %v11646_v14  ;;  %v4232_v13 = vld [vmem:[#allocation8 + $0x7f0] sm:$0xff] }
 0x36d   :  { %7528 = vmatpush1.bf16.msra.mxu1 %v11781_v17  ;;  %v11750_v17 = vcombine.high %v4100_v63, %v4104_v49  ;;  %v11878_v14 = vcombine.high %v4228_v21, %v4232_v13  ;;  %v4096_v26 = vld [vmem:[#allocation8 + $0x3b0] sm:$0xff]  ;;  %v11877_v19 = vcombine.low %v4228_v21, %v4232_v13 }
 0x36e   :  { %7529 = vmatprep.subr.bf16.mxu1 %v11774_v36  ;;  %v4092_v36 = vld [vmem:[#allocation8 + $0x390] sm:$0xff] }
 0x36f   :  { %7487 = vmatpush1.bf16.msra.mxu0 %v11645_v24  ;;  %v4220_v28 = vld [vmem:[#allocation8 + $0x790] sm:$0xff]  ;;  %v11741_v9 = vcombine.low %v4092_v36, %v4096_v26 }
 0x370   :  { %7488 = vmatprep.subr.bf16.mxu0 %v11638_v30  ;;  %v4224_v24 = vld [vmem:[#allocation8 + $0x7b0] sm:$0xff] }
 0x371   :  { %7530 = vmatpush1.bf16.msra.mxu1 %v11773_v58  ;;  %v11742_v58 = vcombine.high %v4092_v36, %v4096_v26  ;;  %v11870_v30 = vcombine.high %v4220_v28, %v4224_v24  ;;  %v4088_v18 = vld [vmem:[#allocation8 + $0x370] sm:$0xff]  ;;  %v11869_v29 = vcombine.low %v4220_v28, %v4224_v24 }
 0x372   :  { %7531 = vmatprep.subr.bf16.mxu1 %v11766_v33  ;;  %v4084_v33 = vld [vmem:[#allocation8 + $0x350] sm:$0xff] }
 0x373   :  { %7489 = vmatpush1.bf16.msra.mxu0 %v11637_v22  ;;  %v4212_v39 = vld [vmem:[#allocation8 + $0x750] sm:$0xff]  ;;  %v11733_v21 = vcombine.low %v4084_v33, %v4088_v18 }
 0x374   :  { %7490 = vmatprep.subr.bf16.mxu0 %v11630_v34  ;;  %v4216_v22 = vld [vmem:[#allocation8 + $0x770] sm:$0xff] }
 0x375   :  { %7532 = vmatpush1.bf16.msra.mxu1 %v11765_v31  ;;  %v11734_v31 = vcombine.high %v4084_v33, %v4088_v18  ;;  %v11862_v34 = vcombine.high %v4212_v39, %v4216_v22  ;;  %v4080_v63 = vld [vmem:[#allocation8 + $0x330] sm:$0xff]  ;;  %v11861_v13 = vcombine.low %v4212_v39, %v4216_v22 }
 0x376   :  { %7533 = vmatprep.subr.bf16.mxu1 %v11758_v48  ;;  %v4076_v48 = vld [vmem:[#allocation8 + $0x310] sm:$0xff] }
 0x377   :  { %7491 = vmatpush1.bf16.msra.mxu0 %v11629_v53  ;;  %v4204_v49 = vld [vmem:[#allocation8 + $0x710] sm:$0xff]  ;;  %v11725_v28 = vcombine.low %v4076_v48, %v4080_v63 }
 0x378   :  { %7492 = vmatprep.subr.bf16.mxu0 %v11750_v17  ;;  %v4208_v53 = vld [vmem:[#allocation8 + $0x730] sm:$0xff] }
 0x379   :  { %7534 = vmatpush1.bf16.msra.mxu1 %v11757_v57  ;;  %v11726_v57 = vcombine.high %v4076_v48, %v4080_v63  ;;  %v11854_v17 = vcombine.high %v4204_v49, %v4208_v53  ;;  %v4072_v36 = vld [vmem:[#allocation8 + $0x2f0] sm:$0xff]  ;;  %v11853_v24 = vcombine.low %v4204_v49, %v4208_v53 }
 0x37a   :  { %7535 = vmatprep.subr.bf16.mxu1 %v11878_v14  ;;  %v4068_v14 = vld [vmem:[#allocation8 + $0x2d0] sm:$0xff] }
 0x37b   :  { %7493 = vmatpush2.bf16.msra.mxu0 %v11749_v11  ;;  %v4196_v26 = vld [vmem:[#allocation8 + $0x6d0] sm:$0xff]  ;;  %v11717_v39 = vcombine.low %v4068_v14, %v4072_v36 }
 0x37c   :  { %7494 = vmatprep.subr.bf16.mxu0 %v11742_v58  ;;  %v4200_v11 = vld [vmem:[#allocation8 + $0x6f0] sm:$0xff] }
 0x37d   :  { %7536 = vmatpush2.bf16.msra.mxu1 %v11877_v19  ;;  %v11718_v19 = vcombine.high %v4068_v14, %v4072_v36  ;;  %v11846_v58 = vcombine.high %v4196_v26, %v4200_v11  ;;  %v4064_v33 = vld [vmem:[#allocation8 + $0x2b0] sm:$0xff]  ;;  %v11845_v22 = vcombine.low %v4196_v26, %v4200_v11 }
 0x37e   :  { %7537 = vmatprep.subr.bf16.mxu1 %v11870_v30  ;;  %v4060_v30 = vld [vmem:[#allocation8 + $0x290] sm:$0xff] }
 0x37f   :  { %7495 = vmatpush2.bf16.msra.mxu0 %v11741_v9  ;;  %v4188_v18 = vld [vmem:[#allocation8 + $0x690] sm:$0xff]  ;;  %v11709_v49 = vcombine.low %v4060_v30, %v4064_v33 }
 0x380   :  { %7496 = vmatprep.subr.bf16.mxu0 %v11734_v31  ;;  %v4192_v9 = vld [vmem:[#allocation8 + $0x6b0] sm:$0xff] }
 0x381   :  { %7538 = vmatpush2.bf16.msra.mxu1 %v11869_v29  ;;  %v11710_v29 = vcombine.high %v4060_v30, %v4064_v33  ;;  %v11838_v31 = vcombine.high %v4188_v18, %v4192_v9  ;;  %v4056_v48 = vld [vmem:[#allocation8 + $0x270] sm:$0xff]  ;;  %v11837_v53 = vcombine.low %v4188_v18, %v4192_v9 }
 0x382   :  { %7539 = vmatprep.subr.bf16.mxu1 %v11862_v34  ;;  %v4052_v34 = vld [vmem:[#allocation8 + $0x250] sm:$0xff] }
 0x383   :  { %7497 = vmatpush2.bf16.msra.mxu0 %v11733_v21  ;;  %v4180_v63 = vld [vmem:[#allocation8 + $0x650] sm:$0xff]  ;;  %v11701_v26 = vcombine.low %v4052_v34, %v4056_v48 }
 0x384   :  { %7498 = vmatprep.subr.bf16.mxu0 %v11726_v57  ;;  %v4184_v21 = vld [vmem:[#allocation8 + $0x670] sm:$0xff] }
 0x385   :  { %7540 = vmatpush2.bf16.msra.mxu1 %v11861_v13  ;;  %v11702_v13 = vcombine.high %v4052_v34, %v4056_v48  ;;  %v11830_v57 = vcombine.high %v4180_v63, %v4184_v21  ;;  %v4048_v14 = vld [vmem:[#allocation8 + $0x230] sm:$0xff]  ;;  %v11829_v11 = vcombine.low %v4180_v63, %v4184_v21 }
 0x386   :  { %7541 = vmatprep.subr.bf16.mxu1 %v11854_v17  ;;  %v4044_v17 = vld [vmem:[#allocation8 + $0x210] sm:$0xff] }
 0x387   :  { %7499 = vmatpush2.bf16.msra.mxu0 %v11725_v28  ;;  %v4172_v36 = vld [vmem:[#allocation8 + $0x610] sm:$0xff]  ;;  %v11693_v18 = vcombine.low %v4044_v17, %v4048_v14 }
 0x388   :  { %7500 = vmatprep.subr.bf16.mxu0 %v11718_v19  ;;  %v4176_v28 = vld [vmem:[#allocation8 + $0x630] sm:$0xff] }
 0x389   :  { %7542 = vmatpush2.bf16.msra.mxu1 %v11853_v24  ;;  %v11694_v24 = vcombine.high %v4044_v17, %v4048_v14  ;;  %v11822_v19 = vcombine.high %v4172_v36, %v4176_v28  ;;  %v4296_v30 = vld [vmem:[#allocation8 + $0x9f0] sm:$0xff]  ;;  %v11821_v9 = vcombine.low %v4172_v36, %v4176_v28 }
 0x38a   :  { %7543 = vmatprep.subr.bf16.mxu1 %v11846_v58  ;;  %v4292_v58 = vld [vmem:[#allocation8 + $0x9d0] sm:$0xff] }
 0x38b   :  { %7501 = vmatpush2.bf16.msra.mxu0 %v11717_v39  ;;  %v4420_v33 = vld [vmem:[#allocation8 + $0xdd0] sm:$0xff]  ;;  %v11941_v63 = vcombine.low %v4292_v58, %v4296_v30 }
 0x38c   :  { %7502 = vmatprep.subr.bf16.mxu0 %v11710_v29  ;;  %v4424_v39 = vld [vmem:[#allocation8 + $0xdf0] sm:$0xff] }
 0x38d   :  { %7544 = vmatpush2.bf16.msra.mxu1 %v11845_v22  ;;  %v11942_v22 = vcombine.high %v4292_v58, %v4296_v30  ;;  %v12070_v29 = vcombine.high %v4420_v33, %v4424_v39  ;;  %v4288_v34 = vld [vmem:[#allocation8 + $0x9b0] sm:$0xff]  ;;  %v12069_v21 = vcombine.low %v4420_v33, %v4424_v39 }
 0x38e   :  { %7545 = vmatprep.subr.bf16.mxu1 %v11838_v31  ;;  %v4284_v31 = vld [vmem:[#allocation8 + $0x990] sm:$0xff] }
 0x38f   :  { %7503 = vmatpush2.bf16.msra.mxu0 %v11709_v49  ;;  %v4412_v48 = vld [vmem:[#allocation8 + $0xd90] sm:$0xff] }
 0x390   :  { %7504 = vmatprep.subr.bf16.mxu0 %v11702_v13  ;;  %v4416_v49 = vld [vmem:[#allocation8 + $0xdb0] sm:$0xff] }
 0x391   :  { %7546 = vmatpush2.bf16.msra.mxu1 %v11837_v53  ;;  %v11934_v53 = vcombine.high %v4284_v31, %v4288_v34  ;;  %v12062_v13 = vcombine.high %v4412_v48, %v4416_v49  ;;  %v4280_v17 = vld [vmem:[#allocation8 + $0x970] sm:$0xff] }
 0x392   :  { %7547 = vmatprep.subr.bf16.mxu1 %v11830_v57  ;;  %v4276_v57 = vld [vmem:[#allocation8 + $0x950] sm:$0xff] }
 0x393   :  { %7505 = vmatpush2.bf16.msra.mxu0 %v11701_v26  ;;  %v4404_v36 = vld [vmem:[#allocation8 + $0xd50] sm:$0xff]  ;;  %v11926_v58 = vcombine.high %v4276_v57, %v4280_v17 }
 0x394   :  { %7506 = vmatprep.subr.bf16.mxu0 %v11694_v24  ;;  %v4408_v28 = vld [vmem:[#allocation8 + $0xd70] sm:$0xff] }
 0x395   :  { %7548 = vmatpush2.bf16.msra.mxu1 %v11829_v11  ;;  %v11933_v11 = vcombine.low %v4284_v31, %v4288_v34  ;;  %v12054_v33 = vcombine.high %v4404_v36, %v4408_v28  ;;  %v4268_v39 = vld [vmem:[#allocation8 + $0x910] sm:$0xff] }
 0x396   :  { %7549 = vmatprep.subr.bf16.mxu1 %v11822_v19  ;;  %v12061_v19 = vcombine.low %v4412_v48, %v4416_v49  ;;  %v12053_v49 = vcombine.low %v4404_v36, %v4408_v28  ;;  %v11910_v36 = vcombine.high %v4260_v16, %v4264_v10  ;;  %v12038_v28 = vcombine.high %v4388_v7, %v4392_v55 }
 0x397   :  { %7507 = vmatpush2.bf16.msra.mxu0 %v11693_v18  ;;  %v4272_v18 = vld [vmem:[#allocation8 + $0x930] sm:$0xff] }
 0x398   :  { %7562 = vmatprep.subr.bf16.mxu0 %v11942_v22  ;;  %v4396_v22 = vld [vmem:[#allocation8 + $0xd10] sm:$0xff] }
 0x399   :  { %7550 = vmatpush2.bf16.msra.mxu1 %v11821_v9 }
 0x39a   :  { %7605 = vmatprep.subr.bf16.mxu1 %v12070_v29  ;;  %v13243_v14 = vpop.f32.mrf.mxu0  ;;  %7509 = vmatmul.mubr.bf16.vlgmr.msra.gmra.mxu0 %v13131_v32  ;;  %v4400_v29 = vld [vmem:[#allocation8 + $0xd30] sm:$0xff] }
 0x39b   :  { %7563 = vmatpush1.bf16.msra.mxu0 %v11941_v63  ;;  %7594 = vmatprep.mubr.bf16.mxu0 %v13147_v54  ;;  %v11925_v63 = vcombine.low %v4276_v57, %v4280_v17  ;;  %v12046_v1 = vcombine.high %v4396_v22, %v4400_v29  ;;  %v11917_v57 = vcombine.low %v4268_v39, %v4272_v18 }
 0x39c   :  { %v13246_v26 = vpop.f32.mrf.mxu1  ;;  %7552 = vmatmul.mubr.bf16.vlgmr.msra.gmra.mxu1 %v13139_v8  ;;  %v13249_v24 = vpop.f32.mrf.mxu0  ;;  %7564 = vmatprep.subr.bf16.mxu0 %v11934_v53  ;;  %v12045_v17 = vcombine.low %v4396_v22, %v4400_v29 }
 0x39d   :  { %7606 = vmatpush1.bf16.msra.mxu1 %v12069_v21  ;;  %7637 = vmatprep.mubr.bf16.mxu1 %v13152_v59  ;;  %v11918_v21 = vcombine.high %v4268_v39, %v4272_v18  ;;  %v4248_v39 = vld [vmem:[#allocation8 + $0x870] sm:$0xff] }
 0x39e   :  { %v13251_v30 = vpop.f32.mrf.mxu1  ;;  %7607 = vmatprep.subr.bf16.mxu1 %v12062_v13  ;;  %v7256_v9 = vpop.f32.mrf.mxu0  ;;  %v4372_v18 = vld [vmem:[#allocation8 + $0xc50] sm:$0xff] }
 0x39f   :  { %v7257_v31 = vadd.f32 %v7256_v9, %v13238_v60  ;;  %7565 = vmatpush1.bf16.msra.mxu0 %v11933_v11  ;;  %v4252_v11 = vld [vmem:[#allocation8 + $0x890] sm:$0xff]  ;;  %v12037_v9 = vcombine.low %v4388_v7, %v4392_v55 }
 0x3a0   :  { %v7299_v34 = vpop.f32.mrf.mxu1  ;;  %v7258_v48 = vpop.f32.mrf.mxu0  ;;  %7566 = vmatprep.subr.bf16.mxu0 %v11926_v58  ;;  %v4384_v58 = vld [vmem:[#allocation8 + $0xcb0] sm:$0xff] }
 0x3a1   :  { %7608 = vmatpush1.bf16.msra.mxu1 %v12061_v19  ;;  %v13256_v53 = vadd.f32 %v7299_v34, %v7257_v31  ;;  %v7259_v13 = vadd.f32 %v7258_v48, %v13241_v52  ;;  %v4256_v19 = vld [vmem:[#allocation8 + $0x8b0] sm:$0xff] }
 0x3a2   :  { %7609 = vmatprep.subr.bf16.mxu1 %v12054_v33  ;;  %v7301_v12 = vpop.f32.mrf.mxu1  ;;  %v4380_v52 = vld [vmem:[#allocation8 + $0xc90] sm:$0xff]  ;;  %v11909_v33 = vcombine.low %v4260_v16, %v4264_v10  ;;  %v11902_v31 = vcombine.high %v4252_v11, %v4256_v19  ;;  %v11901_v22 = vcombine.low %v4252_v11, %v4256_v19 }
 0x3a3   :  { %13961 = vst [vmem:[#allocation30_spill] sm:$0xff] %v13256_v53  ;;  %v13259_v60 = vadd.f32 %v7301_v12, %v7259_v13  ;;  %7567 = vmatpush1.bf16.msra.mxu0 %v11925_v63  ;;  %v12030_v12 = vcombine.high %v4380_v52, %v4384_v58  ;;  %v4244_v34 = vld [vmem:[#allocation8 + $0x850] sm:$0xff]  ;;  %v4389_v53 = vld [vmem:[#allocation8 + $0xcd8] sm:$0xff] }
 0x3a4   :  { %7568 = vmatprep.subr.bf16.mxu0 %v11918_v21  ;;  %v4376_v63 = vld [vmem:[#allocation8 + $0xc70] sm:$0xff]  ;;  %v11894_v29 = vcombine.high %v4244_v34, %v4248_v39  ;;  %v11893_v7 = vcombine.low %v4244_v34, %v4248_v39 }
 0x3a5   :  { %13962 = vst [vmem:[#allocation31_spill] sm:$0xff] %v13259_v60  ;;  %7610 = vmatpush1.bf16.msra.mxu1 %v12053_v49  ;;  %v12022_v48 = vcombine.high %v4372_v18, %v4376_v63  ;;  %v4236_v49 = vld [vmem:[#allocation8 + $0x810] sm:$0xff]  ;;  %v12021_v55 = vcombine.low %v4372_v18, %v4376_v63  ;;  %v4265_v60 = vld [vmem:[#allocation8 + $0x8f8] sm:$0xff] }
 0x3a6   :  { %7611 = vmatprep.subr.bf16.mxu1 %v12046_v1  ;;  %v12029_v1 = vcombine.low %v4380_v52, %v4384_v58  ;;  %v4240_v10 = vld [vmem:[#allocation8 + $0x830] sm:$0xff] }
 0x3a7   :  { %7569 = vmatpush1.bf16.msra.mxu0 %v11917_v57  ;;  %v4364_v16 = vld [vmem:[#allocation8 + $0xc10] sm:$0xff]  ;;  %v11886_v13 = vcombine.high %v4236_v49, %v4240_v10  ;;  %v11885_v19 = vcombine.low %v4236_v49, %v4240_v10 }
 0x3a8   :  { %7570 = vmatprep.subr.bf16.mxu0 %v11910_v36  ;;  %v4368_v21 = vld [vmem:[#allocation8 + $0xc30] sm:$0xff] }
 0x3a9   :  { %7612 = vmatpush1.bf16.msra.mxu1 %v12045_v17  ;;  %v12014_v57 = vcombine.high %v4364_v16, %v4368_v21  ;;  %v4356_v17 = vld [vmem:[#allocation8 + $0xbd0] sm:$0xff]  ;;  %v12013_v52 = vcombine.low %v4364_v16, %v4368_v21 }
 0x3aa   :  { %7613 = vmatprep.subr.bf16.mxu1 %v12038_v28  ;;  %v4360_v36 = vld [vmem:[#allocation8 + $0xbf0] sm:$0xff] }
 0x3ab   :  { %7571 = vmatpush1.bf16.msra.mxu0 %v11909_v33  ;;  %v4484_v28 = vld [vmem:[#allocation8 + $0xfd0] sm:$0xff]  ;;  %v12006_v58 = vcombine.high %v4356_v17, %v4360_v36  ;;  %v12005_v39 = vcombine.low %v4356_v17, %v4360_v36 }
 0x3ac   :  { %7572 = vmatprep.subr.bf16.mxu0 %v11902_v31  ;;  %v4488_v11 = vld [vmem:[#allocation8 + $0xff0] sm:$0xff] }
 0x3ad   :  { %7614 = vmatpush1.bf16.msra.mxu1 %v12037_v9  ;;  %v12134_v33 = vcombine.high %v4484_v28, %v4488_v11  ;;  %v4348_v9 = vld [vmem:[#allocation8 + $0xb90] sm:$0xff]  ;;  %v12133_v18 = vcombine.low %v4484_v28, %v4488_v11 }
 0x3ae   :  { %7615 = vmatprep.subr.bf16.mxu1 %v12030_v12  ;;  %v4352_v31 = vld [vmem:[#allocation8 + $0xbb0] sm:$0xff] }
 0x3af   :  { %7573 = vmatpush1.bf16.msra.mxu0 %v11901_v22  ;;  %v4476_v12 = vld [vmem:[#allocation8 + $0xf90] sm:$0xff]  ;;  %v11998_v63 = vcombine.high %v4348_v9, %v4352_v31  ;;  %v11997_v10 = vcombine.low %v4348_v9, %v4352_v31 }
 0x3b0   :  { %7574 = vmatprep.subr.bf16.mxu0 %v11894_v29  ;;  %v4480_v34 = vld [vmem:[#allocation8 + $0xfb0] sm:$0xff] }
 0x3b1   :  { %7616 = vmatpush1.bf16.msra.mxu1 %v12029_v1  ;;  %v12126_v22 = vcombine.high %v4476_v12, %v4480_v34  ;;  %v4340_v1 = vld [vmem:[#allocation8 + $0xb50] sm:$0xff]  ;;  %v12125_v16 = vcombine.low %v4476_v12, %v4480_v34 }
 0x3b2   :  { %7617 = vmatprep.subr.bf16.mxu1 %v12022_v48  ;;  %v4344_v29 = vld [vmem:[#allocation8 + $0xb70] sm:$0xff] }
 0x3b3   :  { %7575 = vmatpush1.bf16.msra.mxu0 %v11893_v7  ;;  %v4468_v48 = vld [vmem:[#allocation8 + $0xf50] sm:$0xff]  ;;  %v11990_v21 = vcombine.high %v4340_v1, %v4344_v29  ;;  %v11989_v36 = vcombine.low %v4340_v1, %v4344_v29 }
 0x3b4   :  { %7576 = vmatprep.subr.bf16.mxu0 %v11886_v13  ;;  %v4472_v49 = vld [vmem:[#allocation8 + $0xf70] sm:$0xff] }
 0x3b5   :  { %7618 = vmatpush1.bf16.msra.mxu1 %v12021_v55  ;;  %v12118_v7 = vcombine.high %v4468_v48, %v4472_v49  ;;  %v4332_v55 = vld [vmem:[#allocation8 + $0xb10] sm:$0xff]  ;;  %v12117_v28 = vcombine.low %v4468_v48, %v4472_v49 }
 0x3b6   :  { %7619 = vmatprep.subr.bf16.mxu1 %v12014_v57  ;;  %v4336_v13 = vld [vmem:[#allocation8 + $0xb30] sm:$0xff] }
 0x3b7   :  { %7577 = vmatpush1.bf16.msra.mxu0 %v11885_v19  ;;  %v4460_v57 = vld [vmem:[#allocation8 + $0xf10] sm:$0xff]  ;;  %v11982_v11 = vcombine.high %v4332_v55, %v4336_v13  ;;  %v11981_v31 = vcombine.low %v4332_v55, %v4336_v13 }
 0x3b8   :  { %7578 = vmatprep.subr.bf16.mxu0 %v12006_v58  ;;  %v4464_v17 = vld [vmem:[#allocation8 + $0xf30] sm:$0xff] }
 0x3b9   :  { %7620 = vmatpush1.bf16.msra.mxu1 %v12013_v52  ;;  %v12110_v19 = vcombine.high %v4460_v57, %v4464_v17  ;;  %v4324_v52 = vld [vmem:[#allocation8 + $0xad0] sm:$0xff]  ;;  %v12109_v12 = vcombine.low %v4460_v57, %v4464_v17 }
 0x3ba   :  { %7621 = vmatprep.subr.bf16.mxu1 %v12134_v33  ;;  %v4328_v58 = vld [vmem:[#allocation8 + $0xaf0] sm:$0xff] }
 0x3bb   :  { %7579 = vmatpush2.bf16.msra.mxu0 %v12005_v39  ;;  %v4452_v33 = vld [vmem:[#allocation8 + $0xed0] sm:$0xff]  ;;  %v11974_v34 = vcombine.high %v4324_v52, %v4328_v58  ;;  %v11973_v29 = vcombine.low %v4324_v52, %v4328_v58 }
 0x3bc   :  { %7580 = vmatprep.subr.bf16.mxu0 %v11998_v63  ;;  %v4456_v9 = vld [vmem:[#allocation8 + $0xef0] sm:$0xff] }
 0x3bd   :  { %7622 = vmatpush2.bf16.msra.mxu1 %v12133_v18  ;;  %v12102_v39 = vcombine.high %v4452_v33, %v4456_v9  ;;  %v4316_v18 = vld [vmem:[#allocation8 + $0xa90] sm:$0xff]  ;;  %v12101_v48 = vcombine.low %v4452_v33, %v4456_v9 }
 0x3be   :  { %7623 = vmatprep.subr.bf16.mxu1 %v12126_v22  ;;  %v4320_v63 = vld [vmem:[#allocation8 + $0xab0] sm:$0xff] }
 0x3bf   :  { %7581 = vmatpush2.bf16.msra.mxu0 %v11997_v10  ;;  %v4444_v22 = vld [vmem:[#allocation8 + $0xe90] sm:$0xff]  ;;  %v11966_v49 = vcombine.high %v4316_v18, %v4320_v63  ;;  %v11965_v13 = vcombine.low %v4316_v18, %v4320_v63  ;;  %v4169_v18 = vld [vmem:[#allocation8 + $0x5f8] sm:$0xff] }
 0x3c0   :  { %7582 = vmatprep.subr.bf16.mxu0 %v11990_v21  ;;  %v4448_v1 = vld [vmem:[#allocation8 + $0xeb0] sm:$0xff] }
 0x3c1   :  { %7624 = vmatpush2.bf16.msra.mxu1 %v12125_v16  ;;  %v12094_v10 = vcombine.high %v4444_v22, %v4448_v1  ;;  %v4308_v16 = vld [vmem:[#allocation8 + $0xa50] sm:$0xff]  ;;  %v12093_v57 = vcombine.low %v4444_v22, %v4448_v1 }
 0x3c2   :  { %7625 = vmatprep.subr.bf16.mxu1 %v12118_v7  ;;  %v4312_v21 = vld [vmem:[#allocation8 + $0xa70] sm:$0xff] }
 0x3c3   :  { %7583 = vmatpush2.bf16.msra.mxu0 %v11989_v36  ;;  %v4436_v7 = vld [vmem:[#allocation8 + $0xe50] sm:$0xff]  ;;  %v11958_v17 = vcombine.high %v4308_v16, %v4312_v21  ;;  %v11957_v58 = vcombine.low %v4308_v16, %v4312_v21  ;;  %v4161_v16 = vld [vmem:[#allocation8 + $0x5b8] sm:$0xff] }
 0x3c4   :  { %7584 = vmatprep.subr.bf16.mxu0 %v11982_v11  ;;  %v4440_v55 = vld [vmem:[#allocation8 + $0xe70] sm:$0xff] }
 0x3c5   :  { %7626 = vmatpush2.bf16.msra.mxu1 %v12117_v28  ;;  %v12086_v36 = vcombine.high %v4436_v7, %v4440_v55  ;;  %v4300_v28 = vld [vmem:[#allocation8 + $0xa10] sm:$0xff]  ;;  %v12085_v33 = vcombine.low %v4436_v7, %v4440_v55 }
 0x3c6   :  { %7627 = vmatprep.subr.bf16.mxu1 %v12110_v19  ;;  %v4304_v11 = vld [vmem:[#allocation8 + $0xa30] sm:$0xff] }
 0x3c7   :  { %7585 = vmatpush2.bf16.msra.mxu0 %v11981_v31  ;;  %v4428_v19 = vld [vmem:[#allocation8 + $0xe10] sm:$0xff]  ;;  %v11950_v9 = vcombine.high %v4300_v28, %v4304_v11  ;;  %v11949_v63 = vcombine.low %v4300_v28, %v4304_v11  ;;  %v4149_v28 = vld [vmem:[#allocation8 + $0x558] sm:$0xff] }
 0x3c8   :  { %7586 = vmatprep.subr.bf16.mxu0 %v11974_v34  ;;  %v4432_v52 = vld [vmem:[#allocation8 + $0xe30] sm:$0xff]  ;;  %v4041_v34 = vld [vmem:[#allocation8 + $0x1f8] sm:$0xff] }
 0x3c9   :  { %7628 = vmatpush2.bf16.msra.mxu1 %v12109_v12  ;;  %v12078_v31 = vcombine.high %v4428_v19, %v4432_v52  ;;  %v4037_v12 = vld [vmem:[#allocation8 + $0x1d8] sm:$0xff]  ;;  %v12077_v22 = vcombine.low %v4428_v19, %v4432_v52 }
 0x3ca   :  { %7629 = vmatprep.subr.bf16.mxu1 %v12102_v39  ;;  %v4165_v39 = vld [vmem:[#allocation8 + $0x5d8] sm:$0xff]  ;;  %v11688_v1 = vcombine.high %v4037_v12, %v4041_v34  ;;  %v11687_v21 = vcombine.low %v4037_v12, %v4041_v34 }
 0x3cb   :  { %7587 = vmatpush2.bf16.msra.mxu0 %v11973_v29  ;;  %v11816_v29 = vcombine.high %v4165_v39, %v4169_v18  ;;  %v11815_v7 = vcombine.low %v4165_v39, %v4169_v18  ;;  %v4153_v11 = vld [vmem:[#allocation8 + $0x578] sm:$0xff] }
 0x3cc   :  { %7588 = vmatprep.subr.bf16.mxu0 %v11966_v49  ;;  %v4033_v49 = vld [vmem:[#allocation8 + $0x1b8] sm:$0xff]  ;;  %v11800_v39 = vcombine.high %v4149_v28, %v4153_v11 }
 0x3cd   :  { %7630 = vmatpush2.bf16.msra.mxu1 %v12101_v48  ;;  %v4029_v48 = vld [vmem:[#allocation8 + $0x198] sm:$0xff] }
 0x3ce   :  { %7631 = vmatprep.subr.bf16.mxu1 %v12094_v10  ;;  %v4157_v10 = vld [vmem:[#allocation8 + $0x598] sm:$0xff]  ;;  %v11680_v55 = vcombine.high %v4029_v48, %v4033_v49  ;;  %v11679_v52 = vcombine.low %v4029_v48, %v4033_v49  ;;  %v13964_v48 = vsub.s32 3, %v13015_v4 }
 0x3cf   :  { %7589 = vmatpush2.bf16.msra.mxu0 %v11965_v13  ;;  %v11808_v13 = vcombine.high %v4157_v10, %v4161_v16  ;;  %v4013_v18 = vld [vmem:[#allocation8 + $0x118] sm:$0xff] }
 0x3d0   :  { %7590 = vmatprep.subr.bf16.mxu0 %v11958_v17  ;;  %v4025_v17 = vld [vmem:[#allocation8 + $0x178] sm:$0xff]  ;;  %v13281_v49 = vrot.slane %v13213_v37, %v13964_v48 }
 0x3d1   :  { %7632 = vmatpush2.bf16.msra.mxu1 %v12093_v57  ;;  %v4021_v57 = vld [vmem:[#allocation8 + $0x158] sm:$0xff] }
 0x3d2   :  { %7633 = vmatprep.subr.bf16.mxu1 %v12086_v36  ;;  %v4133_v48 = vld [vmem:[#allocation8 + $0x4d8] sm:$0xff] }
 0x3d3   :  { %7591 = vmatpush2.bf16.msra.mxu0 %v11957_v58 }
 0x3d4   :  { %7592 = vmatprep.subr.bf16.mxu0 %v11950_v9  ;;  %v11672_v9 = vcombine.high %v4021_v57, %v4025_v17 }
 0x3d5   :  { %7634 = vmatpush2.bf16.msra.mxu1 %v12085_v33  ;;  %v11807_v33 = vcombine.low %v4157_v10, %v4161_v16 }
 0x3d6   :  { %7635 = vmatprep.subr.bf16.mxu1 %v12078_v31  ;;  %v13963_v31 = vsub.s32 2, %v13015_v4 }
 0x3d7   :  { %7593 = vmatpush2.bf16.msra.mxu0 %v11949_v63  ;;  %v4017_v63 = vld [vmem:[#allocation8 + $0x138] sm:$0xff] }
 0x3d8   :  { %7648 = vmatprep.subr.bf16.mxu0 %v11688_v1  ;;  %v13272_v12 = vrot.slane %v13213_v37, %v13963_v31  ;;  %v4141_v1 = vld [vmem:[#allocation8 + $0x518] sm:$0xff] }
 0x3d9   :  { %7636 = vmatpush2.bf16.msra.mxu1 %v12077_v22 }
 0x3da   :  { %7691 = vmatprep.subr.bf16.mxu1 %v11816_v29  ;;  %v13261_v36 = vpop.f32.mrf.mxu0  ;;  %7595 = vmatmul.mubr.bf16.vlgmr.msra.gmra.mxu0 %v13173_v6  ;;  %v4145_v29 = vld [vmem:[#allocation8 + $0x538] sm:$0xff] }
 0x3db   :  { %7649 = vmatpush1.bf16.msra.mxu0 %v11687_v21  ;;  %7680 = vmatprep.mubr.bf16.mxu0 %v13111_v38  ;;  %v11671_v21 = vcombine.low %v4021_v57, %v4025_v17  ;;  %v11792_v5 = vcombine.high %v4141_v1, %v4145_v29  ;;  %v11663_v57 = vcombine.low %v4013_v18, %v4017_v63 }
 0x3dc   :  { %v13264_v19 = vpop.f32.mrf.mxu1  ;;  %7638 = vmatmul.mubr.bf16.vlgmr.msra.gmra.mxu1 %v13180_v20  ;;  %v13267_v58 = vpop.f32.mrf.mxu0  ;;  %7650 = vmatprep.subr.bf16.mxu0 %v11680_v55  ;;  %v11799_v55 = vcombine.low %v4149_v28, %v4153_v11  ;;  %v11791_v17 = vcombine.low %v4141_v1, %v4145_v29  ;;  %v11656_v28 = vcombine.high %v4005_v62, %v4009_v61 }
 0x3dd   :  { %7692 = vmatpush1.bf16.msra.mxu1 %v11815_v7  ;;  %7723 = vmatprep.mubr.bf16.mxu1 %v13116_v43  ;;  %v11784_v11 = vcombine.high %v4133_v48, %v4137_v2 }
 0x3de   :  { %v13274_v34 = vpop.f32.mrf.mxu1  ;;  %7693 = vmatprep.subr.bf16.mxu1 %v11808_v13  ;;  %v7342_v22 = vpop.f32.mrf.mxu0  ;;  %v11664_v13 = vcombine.high %v4013_v18, %v4017_v63  ;;  %v3993_v18 = vld [vmem:[#allocation8 + $0x78] sm:$0xff] }
 0x3df   :  { %v7343_v10 = vadd.f32 %v7342_v22, %v13272_v12  ;;  %7651 = vmatpush1.bf16.msra.mxu0 %v11679_v52  ;;  %v3997_v52 = vld [vmem:[#allocation8 + $0x98] sm:$0xff] }
 0x3e0   :  { %v7385_v16 = vpop.f32.mrf.mxu1  ;;  %v7344_v7 = vpop.f32.mrf.mxu0  ;;  %7652 = vmatprep.subr.bf16.mxu0 %v11672_v9  ;;  %v4125_v9 = vld [vmem:[#allocation8 + $0x498] sm:$0xff] }
 0x3e1   :  { %7694 = vmatpush1.bf16.msra.mxu1 %v11807_v33  ;;  %v13284_v31 = vadd.f32 %v7385_v16, %v7343_v10  ;;  %v7345_v56 = vadd.f32 %v7344_v7, %v13281_v49  ;;  %v4001_v33 = vld [vmem:[#allocation8 + $0xb8] sm:$0xff]  ;;  %v11655_v10 = vcombine.low %v4005_v62, %v4009_v61  ;;  %v11783_v16 = vcombine.low %v4133_v48, %v4137_v2 }
 0x3e2   :  { %7695 = vmatprep.subr.bf16.mxu1 %v11800_v39  ;;  %v7387_v37 = vpop.f32.mrf.mxu1  ;;  %v4129_v39 = vld [vmem:[#allocation8 + $0x4b8] sm:$0xff]  ;;  %v11648_v7 = vcombine.high %v3997_v52, %v4001_v33  ;;  %v11647_v1 = vcombine.low %v3997_v52, %v4001_v33 }
 0x3e3   :  { %v13287_v22 = vadd.f32 %v7387_v37, %v7345_v56  ;;  %7653 = vmatpush1.bf16.msra.mxu0 %v11671_v21  ;;  %v11776_v56 = vcombine.high %v4125_v9, %v4129_v39  ;;  %v3989_v21 = vld [vmem:[#allocation8 + $0x58] sm:$0xff] }
 0x3e4   :  { %7654 = vmatprep.subr.bf16.mxu0 %v11664_v13  ;;  %v4117_v63 = vld [vmem:[#allocation8 + $0x458] sm:$0xff]  ;;  %v11640_v29 = vcombine.high %v3989_v21, %v3993_v18  ;;  %v11639_v2 = vcombine.low %v3989_v21, %v3993_v18 }
 0x3e5   :  { %7696 = vmatpush1.bf16.msra.mxu1 %v11799_v55  ;;  %v4121_v55 = vld [vmem:[#allocation8 + $0x478] sm:$0xff] }
 0x3e6   :  { %7697 = vmatprep.subr.bf16.mxu1 %v11792_v5  ;;  %v11775_v5 = vcombine.low %v4125_v9, %v4129_v39  ;;  %v11768_v13 = vcombine.high %v4117_v63, %v4121_v55  ;;  %v3981_v37 = vld [vmem:[#allocation8 + $0x18] sm:$0xff]  ;;  %v11767_v48 = vcombine.low %v4117_v63, %v4121_v55 }
 0x3e7   :  { %7655 = vmatpush1.bf16.msra.mxu0 %v11663_v57  ;;  %v3985_v61 = vld [vmem:[#allocation8 + $0x38] sm:$0xff] }
 0x3e8   :  { %7656 = vmatprep.subr.bf16.mxu0 %v11656_v28  ;;  %v4109_v62 = vld [vmem:[#allocation8 + $0x418] sm:$0xff]  ;;  %v11631_v9 = vcombine.low %v3981_v37, %v3985_v61 }
 0x3e9   :  { %7698 = vmatpush1.bf16.msra.mxu1 %v11791_v17  ;;  %v4113_v57 = vld [vmem:[#allocation8 + $0x438] sm:$0xff]  ;;  %v11632_v17 = vcombine.high %v3981_v37, %v3985_v61 }
 0x3ea   :  { %7699 = vmatprep.subr.bf16.mxu1 %v11784_v11  ;;  %v11760_v28 = vcombine.high %v4109_v62, %v4113_v57  ;;  %v4101_v11 = vld [vmem:[#allocation8 + $0x3d8] sm:$0xff]  ;;  %v11759_v39 = vcombine.low %v4109_v62, %v4113_v57 }
 0x3eb   :  { %7657 = vmatpush1.bf16.msra.mxu0 %v11655_v10  ;;  %v4105_v52 = vld [vmem:[#allocation8 + $0x3f8] sm:$0xff] }
 0x3ec   :  { %7658 = vmatprep.subr.bf16.mxu0 %v11648_v7  ;;  %v4229_v33 = vld [vmem:[#allocation8 + $0x7d8] sm:$0xff]  ;;  %v11751_v63 = vcombine.low %v4101_v11, %v4105_v52 }
 0x3ed   :  { %7700 = vmatpush1.bf16.msra.mxu1 %v11783_v16  ;;  %v4233_v10 = vld [vmem:[#allocation8 + $0x7f8] sm:$0xff]  ;;  %v11752_v16 = vcombine.high %v4101_v11, %v4105_v52 }
 0x3ee   :  { %7701 = vmatprep.subr.bf16.mxu1 %v11776_v56  ;;  %v11880_v7 = vcombine.high %v4229_v33, %v4233_v10  ;;  %v4093_v56 = vld [vmem:[#allocation8 + $0x398] sm:$0xff]  ;;  %v11879_v55 = vcombine.low %v4229_v33, %v4233_v10 }
 0x3ef   :  { %7659 = vmatpush1.bf16.msra.mxu0 %v11647_v1  ;;  %v4097_v21 = vld [vmem:[#allocation8 + $0x3b8] sm:$0xff] }
 0x3f0   :  { %7660 = vmatprep.subr.bf16.mxu0 %v11640_v29  ;;  %v4221_v18 = vld [vmem:[#allocation8 + $0x798] sm:$0xff]  ;;  %v11743_v62 = vcombine.low %v4093_v56, %v4097_v21 }
 0x3f1   :  { %7702 = vmatpush1.bf16.msra.mxu1 %v11775_v5  ;;  %v4225_v1 = vld [vmem:[#allocation8 + $0x7b8] sm:$0xff]  ;;  %v11744_v5 = vcombine.high %v4093_v56, %v4097_v21 }
 0x3f2   :  { %7703 = vmatprep.subr.bf16.mxu1 %v11768_v13  ;;  %v11872_v29 = vcombine.high %v4221_v18, %v4225_v1  ;;  %v4085_v13 = vld [vmem:[#allocation8 + $0x358] sm:$0xff]  ;;  %v11871_v57 = vcombine.low %v4221_v18, %v4225_v1 }
 0x3f3   :  { %7661 = vmatpush1.bf16.msra.mxu0 %v11639_v2  ;;  %v4089_v37 = vld [vmem:[#allocation8 + $0x378] sm:$0xff] }
 0x3f4   :  { %7662 = vmatprep.subr.bf16.mxu0 %v11632_v17  ;;  %v4213_v61 = vld [vmem:[#allocation8 + $0x758] sm:$0xff]  ;;  %v11735_v33 = vcombine.low %v4085_v13, %v4089_v37 }
 0x3f5   :  { %7704 = vmatpush1.bf16.msra.mxu1 %v11767_v48  ;;  %v4217_v2 = vld [vmem:[#allocation8 + $0x778] sm:$0xff]  ;;  %v11736_v48 = vcombine.high %v4085_v13, %v4089_v37 }
 0x3f6   :  { %7705 = vmatprep.subr.bf16.mxu1 %v11760_v28  ;;  %v11864_v17 = vcombine.high %v4213_v61, %v4217_v2  ;;  %v4077_v28 = vld [vmem:[#allocation8 + $0x318] sm:$0xff]  ;;  %v11863_v10 = vcombine.low %v4213_v61, %v4217_v2 }
 0x3f7   :  { %7663 = vmatpush1.bf16.msra.mxu0 %v11631_v9  ;;  %v4081_v11 = vld [vmem:[#allocation8 + $0x338] sm:$0xff] }
 0x3f8   :  { %7664 = vmatprep.subr.bf16.mxu0 %v11752_v16  ;;  %v4205_v52 = vld [vmem:[#allocation8 + $0x718] sm:$0xff]  ;;  %v11727_v18 = vcombine.low %v4077_v28, %v4081_v11 }
 0x3f9   :  { %7706 = vmatpush1.bf16.msra.mxu1 %v11759_v39  ;;  %v4209_v9 = vld [vmem:[#allocation8 + $0x738] sm:$0xff]  ;;  %v11728_v39 = vcombine.high %v4077_v28, %v4081_v11 }
 0x3fa   :  { %7707 = vmatprep.subr.bf16.mxu1 %v11880_v7  ;;  %v11856_v16 = vcombine.high %v4205_v52, %v4209_v9  ;;  %v4069_v7 = vld [vmem:[#allocation8 + $0x2d8] sm:$0xff]  ;;  %v11855_v1 = vcombine.low %v4205_v52, %v4209_v9 }
 0x3fb   :  { %7665 = vmatpush2.bf16.msra.mxu0 %v11751_v63  ;;  %v4073_v56 = vld [vmem:[#allocation8 + $0x2f8] sm:$0xff] }
 0x3fc   :  { %7666 = vmatprep.subr.bf16.mxu0 %v11744_v5  ;;  %v4197_v21 = vld [vmem:[#allocation8 + $0x6d8] sm:$0xff]  ;;  %v11719_v61 = vcombine.low %v4069_v7, %v4073_v56 }
 0x3fd   :  { %7708 = vmatpush2.bf16.msra.mxu1 %v11879_v55  ;;  %v4201_v63 = vld [vmem:[#allocation8 + $0x6f8] sm:$0xff]  ;;  %v11720_v55 = vcombine.high %v4069_v7, %v4073_v56 }
 0x3fe   :  { %7709 = vmatprep.subr.bf16.mxu1 %v11872_v29  ;;  %v11848_v5 = vcombine.high %v4197_v21, %v4201_v63  ;;  %v4061_v29 = vld [vmem:[#allocation8 + $0x298] sm:$0xff]  ;;  %v11847_v2 = vcombine.low %v4197_v21, %v4201_v63 }
 0x3ff   :  { %7667 = vmatpush2.bf16.msra.mxu0 %v11743_v62  ;;  %v4065_v13 = vld [vmem:[#allocation8 + $0x2b8] sm:$0xff] }
 0x400   :  { %7668 = vmatprep.subr.bf16.mxu0 %v11736_v48  ;;  %v4189_v37 = vld [vmem:[#allocation8 + $0x698] sm:$0xff]  ;;  %v11711_v52 = vcombine.low %v4061_v29, %v4065_v13 }
 0x401   :  { %7710 = vmatpush2.bf16.msra.mxu1 %v11871_v57  ;;  %v4193_v62 = vld [vmem:[#allocation8 + $0x6b8] sm:$0xff]  ;;  %v11712_v57 = vcombine.high %v4061_v29, %v4065_v13 }
 0x402   :  { %7711 = vmatprep.subr.bf16.mxu1 %v11864_v17  ;;  %v11840_v48 = vcombine.high %v4189_v37, %v4193_v62  ;;  %v4053_v17 = vld [vmem:[#allocation8 + $0x258] sm:$0xff]  ;;  %v11839_v9 = vcombine.low %v4189_v37, %v4193_v62 }
 0x403   :  { %7669 = vmatpush2.bf16.msra.mxu0 %v11735_v33  ;;  %v4057_v28 = vld [vmem:[#allocation8 + $0x278] sm:$0xff] }
 0x404   :  { %7670 = vmatprep.subr.bf16.mxu0 %v11728_v39  ;;  %v4181_v11 = vld [vmem:[#allocation8 + $0x658] sm:$0xff]  ;;  %v11703_v21 = vcombine.low %v4053_v17, %v4057_v28 }
 0x405   :  { %7712 = vmatpush2.bf16.msra.mxu1 %v11863_v10  ;;  %v4185_v33 = vld [vmem:[#allocation8 + $0x678] sm:$0xff]  ;;  %v11704_v10 = vcombine.high %v4053_v17, %v4057_v28 }
 0x406   :  { %7713 = vmatprep.subr.bf16.mxu1 %v11856_v16  ;;  %v11832_v39 = vcombine.high %v4181_v11, %v4185_v33  ;;  %v4045_v16 = vld [vmem:[#allocation8 + $0x218] sm:$0xff]  ;;  %v11831_v63 = vcombine.low %v4181_v11, %v4185_v33 }
 0x407   :  { %7671 = vmatpush2.bf16.msra.mxu0 %v11727_v18  ;;  %v4049_v7 = vld [vmem:[#allocation8 + $0x238] sm:$0xff] }
 0x408   :  { %7672 = vmatprep.subr.bf16.mxu0 %v11720_v55  ;;  %v4173_v56 = vld [vmem:[#allocation8 + $0x618] sm:$0xff]  ;;  %v11695_v37 = vcombine.low %v4045_v16, %v4049_v7 }
 0x409   :  { %7714 = vmatpush2.bf16.msra.mxu1 %v11855_v1  ;;  %v4177_v18 = vld [vmem:[#allocation8 + $0x638] sm:$0xff]  ;;  %v11696_v1 = vcombine.high %v4045_v16, %v4049_v7 }
 0x40a   :  { %7715 = vmatprep.subr.bf16.mxu1 %v11848_v5  ;;  %v11824_v55 = vcombine.high %v4173_v56, %v4177_v18  ;;  %v4293_v5 = vld [vmem:[#allocation8 + $0x9d8] sm:$0xff]  ;;  %v11823_v62 = vcombine.low %v4173_v56, %v4177_v18 }
 0x40b   :  { %7673 = vmatpush2.bf16.msra.mxu0 %v11719_v61  ;;  %v4297_v29 = vld [vmem:[#allocation8 + $0x9f8] sm:$0xff] }
 0x40c   :  { %7674 = vmatprep.subr.bf16.mxu0 %v11712_v57  ;;  %v4421_v13 = vld [vmem:[#allocation8 + $0xdd8] sm:$0xff]  ;;  %v11943_v11 = vcombine.low %v4293_v5, %v4297_v29 }
 0x40d   :  { %7716 = vmatpush2.bf16.msra.mxu1 %v11847_v2  ;;  %v4425_v61 = vld [vmem:[#allocation8 + $0xdf8] sm:$0xff]  ;;  %v11944_v2 = vcombine.high %v4293_v5, %v4297_v29 }
 0x40e   :  { %7717 = vmatprep.subr.bf16.mxu1 %v11840_v48  ;;  %v12072_v57 = vcombine.high %v4421_v13, %v4425_v61  ;;  %v4285_v48 = vld [vmem:[#allocation8 + $0x998] sm:$0xff]  ;;  %v12071_v33 = vcombine.low %v4421_v13, %v4425_v61 }
 0x40f   :  { %7675 = vmatpush2.bf16.msra.mxu0 %v11711_v52  ;;  %v4289_v17 = vld [vmem:[#allocation8 + $0x9b8] sm:$0xff] }
 0x410   :  { %7676 = vmatprep.subr.bf16.mxu0 %v11704_v10  ;;  %v4413_v28 = vld [vmem:[#allocation8 + $0xd98] sm:$0xff] }
 0x411   :  { %7718 = vmatpush2.bf16.msra.mxu1 %v11839_v9  ;;  %v4417_v52 = vld [vmem:[#allocation8 + $0xdb8] sm:$0xff]  ;;  %v11936_v9 = vcombine.high %v4285_v48, %v4289_v17 }
 0x412   :  { %7719 = vmatprep.subr.bf16.mxu1 %v11832_v39  ;;  %v12064_v10 = vcombine.high %v4413_v28, %v4417_v52  ;;  %v4277_v39 = vld [vmem:[#allocation8 + $0x958] sm:$0xff] }
 0x413   :  { %7677 = vmatpush2.bf16.msra.mxu0 %v11703_v21  ;;  %v4281_v16 = vld [vmem:[#allocation8 + $0x978] sm:$0xff] }
 0x414   :  { %7678 = vmatprep.subr.bf16.mxu0 %v11696_v1  ;;  %v4405_v56 = vld [vmem:[#allocation8 + $0xd58] sm:$0xff]  ;;  %v11928_v5 = vcombine.high %v4277_v39, %v4281_v16 }
 0x415   :  { %7720 = vmatpush2.bf16.msra.mxu1 %v11831_v63  ;;  %v4409_v18 = vld [vmem:[#allocation8 + $0xd78] sm:$0xff]  ;;  %v11935_v63 = vcombine.low %v4285_v48, %v4289_v17 }
 0x416   :  { %7721 = vmatprep.subr.bf16.mxu1 %v11824_v55  ;;  %v12063_v55 = vcombine.low %v4413_v28, %v4417_v52  ;;  %v12056_v13 = vcombine.high %v4405_v56, %v4409_v18  ;;  %v4269_v61 = vld [vmem:[#allocation8 + $0x918] sm:$0xff]  ;;  %v12055_v52 = vcombine.low %v4405_v56, %v4409_v18  ;;  %v11912_v56 = vcombine.high %v4261_v27, %v4265_v60 }
 0x417   :  { %7679 = vmatpush2.bf16.msra.mxu0 %v11695_v37  ;;  %v4273_v37 = vld [vmem:[#allocation8 + $0x938] sm:$0xff]  ;;  %v12040_v18 = vcombine.high %v4389_v53, %v4393_v35 }
 0x418   :  { %7734 = vmatprep.subr.bf16.mxu0 %v11944_v2  ;;  %v4397_v2 = vld [vmem:[#allocation8 + $0xd18] sm:$0xff] }
 0x419   :  { %7722 = vmatpush2.bf16.msra.mxu1 %v11823_v62 }
 0x41a   :  { %7777 = vmatprep.subr.bf16.mxu1 %v12072_v57  ;;  %v13289_v7 = vpop.f32.mrf.mxu0  ;;  %7681 = vmatmul.mubr.bf16.vlgmr.msra.gmra.mxu0 %v13131_v32  ;;  %v4401_v57 = vld [vmem:[#allocation8 + $0xd38] sm:$0xff] }
 0x41b   :  { %7735 = vmatpush1.bf16.msra.mxu0 %v11943_v11  ;;  %7766 = vmatprep.mubr.bf16.mxu0 %v13147_v54  ;;  %v11927_v11 = vcombine.low %v4277_v39, %v4281_v16  ;;  %v12048_v0 = vcombine.high %v4397_v2, %v4401_v57  ;;  %v11919_v39 = vcombine.low %v4269_v61, %v4273_v37 }
 0x41c   :  { %v13292_v21 = vpop.f32.mrf.mxu1  ;;  %7724 = vmatmul.mubr.bf16.vlgmr.msra.gmra.mxu1 %v13139_v8  ;;  %v13295_v1 = vpop.f32.mrf.mxu0  ;;  %7736 = vmatprep.subr.bf16.mxu0 %v11936_v9  ;;  %v12047_v16 = vcombine.low %v4397_v2, %v4401_v57 }
 0x41d   :  { %7778 = vmatpush1.bf16.msra.mxu1 %v12071_v33  ;;  %7809 = vmatprep.mubr.bf16.mxu1 %v13152_v59  ;;  %v11920_v33 = vcombine.high %v4269_v61, %v4273_v37  ;;  %v4249_v61 = vld [vmem:[#allocation8 + $0x878] sm:$0xff] }
 0x41e   :  { %v13297_v29 = vpop.f32.mrf.mxu1  ;;  %7779 = vmatprep.subr.bf16.mxu1 %v12064_v10  ;;  %v7428_v62 = vpop.f32.mrf.mxu0  ;;  %v4373_v37 = vld [vmem:[#allocation8 + $0xc58] sm:$0xff] }
 0x41f   :  { %v7429_v48 = vadd.f32 %v7428_v62, %v13284_v31  ;;  %7737 = vmatpush1.bf16.msra.mxu0 %v11935_v63  ;;  %v4253_v63 = vld [vmem:[#allocation8 + $0x898] sm:$0xff]  ;;  %v12039_v62 = vcombine.low %v4389_v53, %v4393_v35 }
 0x420   :  { %v7471_v17 = vpop.f32.mrf.mxu1  ;;  %v7430_v28 = vpop.f32.mrf.mxu0  ;;  %7738 = vmatprep.subr.bf16.mxu0 %v11928_v5  ;;  %v4385_v5 = vld [vmem:[#allocation8 + $0xcb8] sm:$0xff] }
 0x421   :  { %7780 = vmatpush1.bf16.msra.mxu1 %v12063_v55  ;;  %v13302_v9 = vadd.f32 %v7471_v17, %v7429_v48  ;;  %v7431_v10 = vadd.f32 %v7430_v28, %v13287_v22  ;;  %v4257_v55 = vld [vmem:[#allocation8 + $0x8b8] sm:$0xff] }
 0x422   :  { %7781 = vmatprep.subr.bf16.mxu1 %v12056_v13  ;;  %v7473_v42 = vpop.f32.mrf.mxu1  ;;  %v4381_v22 = vld [vmem:[#allocation8 + $0xc98] sm:$0xff]  ;;  %v11911_v13 = vcombine.low %v4261_v27, %v4265_v60  ;;  %v11904_v48 = vcombine.high %v4253_v63, %v4257_v55  ;;  %v11903_v2 = vcombine.low %v4253_v63, %v4257_v55 }
 0x423   :  { %v13305_v31 = vadd.f32 %v7473_v42, %v7431_v10  ;;  %7739 = vmatpush1.bf16.msra.mxu0 %v11927_v11  ;;  %v12032_v42 = vcombine.high %v4381_v22, %v4385_v5  ;;  %v4245_v17 = vld [vmem:[#allocation8 + $0x858] sm:$0xff] }
 0x424   :  { %7740 = vmatprep.subr.bf16.mxu0 %v11920_v33  ;;  %v4377_v11 = vld [vmem:[#allocation8 + $0xc78] sm:$0xff]  ;;  %v11896_v57 = vcombine.high %v4245_v17, %v4249_v61  ;;  %v11895_v35 = vcombine.low %v4245_v17, %v4249_v61 }
 0x425   :  { %7782 = vmatpush1.bf16.msra.mxu1 %v12055_v52  ;;  %v12024_v28 = vcombine.high %v4373_v37, %v4377_v11  ;;  %v4237_v52 = vld [vmem:[#allocation8 + $0x818] sm:$0xff]  ;;  %v12023_v53 = vcombine.low %v4373_v37, %v4377_v11 }
 0x426   :  { %7783 = vmatprep.subr.bf16.mxu1 %v12048_v0  ;;  %v12031_v0 = vcombine.low %v4381_v22, %v4385_v5  ;;  %v4241_v27 = vld [vmem:[#allocation8 + $0x838] sm:$0xff] }
 0x427   :  { %7741 = vmatpush1.bf16.msra.mxu0 %v11919_v39  ;;  %v4365_v60 = vld [vmem:[#allocation8 + $0xc18] sm:$0xff]  ;;  %v11888_v10 = vcombine.high %v4237_v52, %v4241_v27  ;;  %v11887_v55 = vcombine.low %v4237_v52, %v4241_v27 }
 0x428   :  { %7742 = vmatprep.subr.bf16.mxu0 %v11912_v56  ;;  %v4369_v33 = vld [vmem:[#allocation8 + $0xc38] sm:$0xff] }
 0x429   :  { %7784 = vmatpush1.bf16.msra.mxu1 %v12047_v16  ;;  %v12016_v39 = vcombine.high %v4365_v60, %v4369_v33  ;;  %v4357_v16 = vld [vmem:[#allocation8 + $0xbd8] sm:$0xff]  ;;  %v12015_v22 = vcombine.low %v4365_v60, %v4369_v33 }
 0x42a   :  { %7785 = vmatprep.subr.bf16.mxu1 %v12040_v18  ;;  %v4361_v56 = vld [vmem:[#allocation8 + $0xbf8] sm:$0xff] }
 0x42b   :  { %7743 = vmatpush1.bf16.msra.mxu0 %v11911_v13  ;;  %v4485_v18 = vld [vmem:[#allocation8 + $0xfd8] sm:$0xff]  ;;  %v12008_v5 = vcombine.high %v4357_v16, %v4361_v56  ;;  %v12007_v61 = vcombine.low %v4357_v16, %v4361_v56 }
 0x42c   :  { %7744 = vmatprep.subr.bf16.mxu0 %v11904_v48  ;;  %v4489_v63 = vld [vmem:[#allocation8 + $0xff8] sm:$0xff] }
 0x42d   :  { %7786 = vmatpush1.bf16.msra.mxu1 %v12039_v62  ;;  %v12136_v13 = vcombine.high %v4485_v18, %v4489_v63  ;;  %v4349_v62 = vld [vmem:[#allocation8 + $0xb98] sm:$0xff]  ;;  %v12135_v37 = vcombine.low %v4485_v18, %v4489_v63 }
 0x42e   :  { %7787 = vmatprep.subr.bf16.mxu1 %v12032_v42  ;;  %v4353_v48 = vld [vmem:[#allocation8 + $0xbb8] sm:$0xff] }
 0x42f   :  { %7745 = vmatpush1.bf16.msra.mxu0 %v11903_v2  ;;  %v4477_v42 = vld [vmem:[#allocation8 + $0xf98] sm:$0xff]  ;;  %v12000_v11 = vcombine.high %v4349_v62, %v4353_v48  ;;  %v11999_v27 = vcombine.low %v4349_v62, %v4353_v48 }
 0x430   :  { %7746 = vmatprep.subr.bf16.mxu0 %v11896_v57  ;;  %v4481_v17 = vld [vmem:[#allocation8 + $0xfb8] sm:$0xff] }
 0x431   :  { %7788 = vmatpush1.bf16.msra.mxu1 %v12031_v0  ;;  %v12128_v2 = vcombine.high %v4477_v42, %v4481_v17  ;;  %v4341_v0 = vld [vmem:[#allocation8 + $0xb58] sm:$0xff]  ;;  %v12127_v60 = vcombine.low %v4477_v42, %v4481_v17 }
 0x432   :  { %7789 = vmatprep.subr.bf16.mxu1 %v12024_v28  ;;  %v4345_v57 = vld [vmem:[#allocation8 + $0xb78] sm:$0xff] }
 0x433   :  { %7747 = vmatpush1.bf16.msra.mxu0 %v11895_v35  ;;  %v4469_v28 = vld [vmem:[#allocation8 + $0xf58] sm:$0xff]  ;;  %v11992_v33 = vcombine.high %v4341_v0, %v4345_v57  ;;  %v11991_v56 = vcombine.low %v4341_v0, %v4345_v57 }
 0x434   :  { %7748 = vmatprep.subr.bf16.mxu0 %v11888_v10  ;;  %v4473_v52 = vld [vmem:[#allocation8 + $0xf78] sm:$0xff] }
 0x435   :  { %7790 = vmatpush1.bf16.msra.mxu1 %v12023_v53  ;;  %v12120_v35 = vcombine.high %v4469_v28, %v4473_v52  ;;  %v4333_v53 = vld [vmem:[#allocation8 + $0xb18] sm:$0xff]  ;;  %v12119_v18 = vcombine.low %v4469_v28, %v4473_v52 }
 0x436   :  { %7791 = vmatprep.subr.bf16.mxu1 %v12016_v39  ;;  %v4337_v10 = vld [vmem:[#allocation8 + $0xb38] sm:$0xff] }
 0x437   :  { %7749 = vmatpush1.bf16.msra.mxu0 %v11887_v55  ;;  %v4461_v39 = vld [vmem:[#allocation8 + $0xf18] sm:$0xff]  ;;  %v11984_v63 = vcombine.high %v4333_v53, %v4337_v10  ;;  %v11983_v48 = vcombine.low %v4333_v53, %v4337_v10 }
 0x438   :  { %7750 = vmatprep.subr.bf16.mxu0 %v12008_v5  ;;  %v4465_v16 = vld [vmem:[#allocation8 + $0xf38] sm:$0xff] }
 0x439   :  { %7792 = vmatpush1.bf16.msra.mxu1 %v12015_v22  ;;  %v12112_v55 = vcombine.high %v4461_v39, %v4465_v16  ;;  %v4325_v22 = vld [vmem:[#allocation8 + $0xad8] sm:$0xff]  ;;  %v12111_v42 = vcombine.low %v4461_v39, %v4465_v16 }
 0x43a   :  { %7793 = vmatprep.subr.bf16.mxu1 %v12136_v13  ;;  %v4329_v5 = vld [vmem:[#allocation8 + $0xaf8] sm:$0xff] }
 0x43b   :  { %7751 = vmatpush2.bf16.msra.mxu0 %v12007_v61  ;;  %v4453_v13 = vld [vmem:[#allocation8 + $0xed8] sm:$0xff]  ;;  %v11976_v17 = vcombine.high %v4325_v22, %v4329_v5  ;;  %v11975_v57 = vcombine.low %v4325_v22, %v4329_v5 }
 0x43c   :  { %7752 = vmatprep.subr.bf16.mxu0 %v12000_v11  ;;  %v4457_v62 = vld [vmem:[#allocation8 + $0xef8] sm:$0xff] }
 0x43d   :  { %7794 = vmatpush2.bf16.msra.mxu1 %v12135_v37  ;;  %v12104_v61 = vcombine.high %v4453_v13, %v4457_v62  ;;  %v4317_v37 = vld [vmem:[#allocation8 + $0xa98] sm:$0xff]  ;;  %v12103_v28 = vcombine.low %v4453_v13, %v4457_v62 }
 0x43e   :  { %7795 = vmatprep.subr.bf16.mxu1 %v12128_v2  ;;  %v4321_v11 = vld [vmem:[#allocation8 + $0xab8] sm:$0xff] }
 0x43f   :  { %7753 = vmatpush2.bf16.msra.mxu0 %v11999_v27  ;;  %v4445_v2 = vld [vmem:[#allocation8 + $0xe98] sm:$0xff]  ;;  %v11968_v52 = vcombine.high %v4317_v37, %v4321_v11  ;;  %v11967_v10 = vcombine.low %v4317_v37, %v4321_v11 }
 0x440   :  { %7754 = vmatprep.subr.bf16.mxu0 %v11992_v33  ;;  %v4449_v0 = vld [vmem:[#allocation8 + $0xeb8] sm:$0xff] }
 0x441   :  { %7796 = vmatpush2.bf16.msra.mxu1 %v12127_v60  ;;  %v12096_v27 = vcombine.high %v4445_v2, %v4449_v0  ;;  %v4309_v60 = vld [vmem:[#allocation8 + $0xa58] sm:$0xff]  ;;  %v12095_v39 = vcombine.low %v4445_v2, %v4449_v0  ;;  %v12552_v0 = vld [vmem:[%s13942_s6 + $0x70] sm:$0xff]  }
 0x442   :  { %7797 = vmatprep.subr.bf16.mxu1 %v12120_v35  ;;  %v4313_v33 = vld [vmem:[#allocation8 + $0xa78] sm:$0xff] }
 0x443   :  { %7755 = vmatpush2.bf16.msra.mxu0 %v11991_v56  ;;  %v4437_v35 = vld [vmem:[#allocation8 + $0xe58] sm:$0xff]  ;;  %v11960_v16 = vcombine.high %v4309_v60, %v4313_v33  ;;  %v11959_v5 = vcombine.low %v4309_v60, %v4313_v33  ;;  %v12555_v33 = vld [vmem:[%s13942_s6 + $0xb0] sm:$0xff]  }
 0x444   :  { %7756 = vmatprep.subr.bf16.mxu0 %v11984_v63  ;;  %v4441_v53 = vld [vmem:[#allocation8 + $0xe78] sm:$0xff] }
 0x445   :  { %7798 = vmatpush2.bf16.msra.mxu1 %v12119_v18  ;;  %v12088_v56 = vcombine.high %v4437_v35, %v4441_v53  ;;  %v4301_v18 = vld [vmem:[#allocation8 + $0xa18] sm:$0xff]  ;;  %v12087_v13 = vcombine.low %v4437_v35, %v4441_v53  ;;  %v12556_v35 = vld [vmem:[%s13942_s6 + $0x68] sm:$0xff]  }
 0x446   :  { %7799 = vmatprep.subr.bf16.mxu1 %v12112_v55  ;;  %v4305_v63 = vld [vmem:[#allocation8 + $0xa38] sm:$0xff]  ;;  %v13342_v53 = vld [vmem:[#allocation11] sm:$0xff] }
 0x447   :  { %7757 = vmatpush2.bf16.msra.mxu0 %v11983_v48  ;;  %v4429_v55 = vld [vmem:[#allocation8 + $0xe18] sm:$0xff]  ;;  %v11952_v62 = vcombine.high %v4301_v18, %v4305_v63 }
 0x448   :  { %7758 = vmatprep.subr.bf16.mxu0 %v11976_v17  ;;  %v4433_v22 = vld [vmem:[#allocation8 + $0xe38] sm:$0xff] }
 0x449   :  { %7800 = vmatpush2.bf16.msra.mxu1 %v12111_v42  ;;  %v12080_v48 = vcombine.high %v4429_v55, %v4433_v22  ;;  %v11951_v42 = vcombine.low %v4301_v18, %v4305_v63  ;;  %v12079_v17 = vcombine.low %v4429_v55, %v4433_v22  ;;  %v12549_v37 = vld [vmem:[%s13942_s6 + $0xf8] sm:$0xff]   ;;  %v13966_v63 = vsub.s32 5, %v13015_v4 }
 0x44a   :  { %7801 = vmatprep.subr.bf16.mxu1 %v12104_v61  ;;  %v12548_v61 = vld [vmem:[%s13942_s6 + $0x78] sm:$0xff]  }
 0x44b   :  { %7759 = vmatpush2.bf16.msra.mxu0 %v11975_v57  ;;  %v12550_v11 = vld [vmem:[%s13942_s6 + $0x38] sm:$0xff]   ;;  %v12553_v57 = vld [vmem:[%s13942_s6 + $0xf0] sm:$0xff]   ;;  %v13359_v55 = vrot.slane %v13342_v53, %v13966_v63  ;;  %v12572_v63 = vld [vmem:[%s13942_s6 + $0x48] sm:$0xff]  }
 0x44c   :  { %7760 = vmatprep.subr.bf16.mxu0 %v11968_v52  ;;  %v12551_v2 = vld [vmem:[%s13942_s6 + $0xb8] sm:$0xff]  }
 0x44d   :  { %7802 = vmatpush2.bf16.msra.mxu1 %v12103_v28 }
 0x44e   :  { %7803 = vmatprep.subr.bf16.mxu1 %v12096_v27  ;;  %v12554_v27 = vld [vmem:[%s13942_s6 + $0x30] sm:$0xff]  }
 0x44f   :  { %7761 = vmatpush2.bf16.msra.mxu0 %v11967_v10  ;;  %v13965_v10 = vsub.s32 4, %v13015_v4 }
 0x450   :  { %7762 = vmatprep.subr.bf16.mxu0 %v11960_v16 }
 0x451   :  { %7804 = vmatpush2.bf16.msra.mxu1 %v12095_v39  ;;  %v13347_v39 = vrot.slane %v13342_v53, %v13965_v10  ;;  %v12569_v10 = vld [vmem:[%s13942_s6 + $0xd0] sm:$0xff]  }
 0x452   :  { %7805 = vmatprep.subr.bf16.mxu1 %v12088_v56  ;;  %v12557_v56 = vld [vmem:[%s13942_s6 + $0xe8] sm:$0xff]  }
 0x453   :  { %7763 = vmatpush2.bf16.msra.mxu0 %v11959_v5 }
 0x454   :  { %7764 = vmatprep.subr.bf16.mxu0 %v11952_v62 }
 0x455   :  { %7806 = vmatpush2.bf16.msra.mxu1 %v12087_v13  ;;  %v12558_v13 = vld [vmem:[%s13942_s6 + $0x28] sm:$0xff]  }
 0x456   :  { %7807 = vmatprep.subr.bf16.mxu1 %v12080_v48 }
 0x457   :  { %7765 = vmatpush2.bf16.msra.mxu0 %v11951_v42 }
 0x458   :  { %12217 = vmatprep.subr.bf16.mxu0 %v12548_v61 }
 0x459   :  { %7808 = vmatpush2.bf16.msra.mxu1 %v12079_v17  ;;  %v12561_v17 = vld [vmem:[%s13942_s6 + $0xe0] sm:$0xff]  }
 0x45a   :  { %12239 = vmatprep.subr.bf16.mxu1 %v12549_v37  ;;  %v13325_v28 = vpop.f32.mrf.mxu0  ;;  %7767 = vmatmul.mubr.bf16.vlgmr.msra.gmra.mxu0 %v13173_v6 }
 0x45b   :  { %12218 = vmatpush3.bf16.msra.mxu0 %v12550_v11  ;;  %8364 = vmatprep.mubr.bf16.mxu0 %v13111_v38  ;;  %v12559_v38 = vld [vmem:[%s13942_s6 + $0xa8] sm:$0xff]   ;;  %v12562_v11 = vld [vmem:[%s13942_s6 + $0x20] sm:$0xff]  }
 0x45c   :  { %v13328_v52 = vpop.f32.mrf.mxu1  ;;  %7810 = vmatmul.mubr.bf16.vlgmr.msra.gmra.mxu1 %v13180_v20  ;;  %v13334_v60 = vpop.f32.mrf.mxu0  ;;  %12219 = vmatprep.subr.bf16.mxu0 %v12552_v0  ;;  %v12564_v0 = vld [vmem:[%s13942_s6 + $0x58] sm:$0xff]  }
 0x45d   :  { %12240 = vmatpush3.bf16.msra.mxu1 %v12551_v2  ;;  %8405 = vmatprep.mubr.bf16.mxu1 %v13116_v43  ;;  %v12560_v43 = vld [vmem:[%s13942_s6 + $0x60] sm:$0xff]  }
 0x45e   :  { %v13349_v16 = vpop.f32.mrf.mxu1  ;;  %12241 = vmatprep.subr.bf16.mxu1 %v12553_v57  ;;  %v7514_v18 = vpop.f32.mrf.mxu0  ;;  %v12563_v2 = vld [vmem:[%s13942_s6 + $0xa0] sm:$0xff]   ;;  %v12565_v57 = vld [vmem:[%s13942_s6 + $0xd8] sm:$0xff]  }
 0x45f   :  { %v7515_v22 = vadd.f32 %v7514_v18, %v13347_v39  ;;  %12220 = vmatpush3.bf16.msra.mxu0 %v12554_v27  ;;  %v12566_v27 = vld [vmem:[%s13942_s6 + $0x18] sm:$0xff]   ;;  %v12571_v18 = vld [vmem:[%s13942_s6 + $0x90] sm:$0xff]  }
 0x460   :  { %v7557_v5 = vpop.f32.mrf.mxu1  ;;  %v7516_v62 = vpop.f32.mrf.mxu0  ;;  %12221 = vmatprep.subr.bf16.mxu0 %v12556_v35  ;;  %v12568_v35 = vld [vmem:[%s13942_s6 + $0x50] sm:$0xff]  }
 0x461   :  { %12242 = vmatpush3.bf16.msra.mxu1 %v12555_v33  ;;  %v13371_v48 = vadd.f32 %v7557_v5, %v7515_v22  ;;  %v7517_v42 = vadd.f32 %v7516_v62, %v13359_v55  ;;  %v12567_v33 = vld [vmem:[%s13942_s6 + $0x98] sm:$0xff]   ;;  %v12573_v22 = vld [vmem:[%s13942_s6 + $0xc8] sm:$0xff]   ;;  %v12576_v62 = vld [vmem:[%s13942_s6 + $0x40] sm:$0xff]  }
 0x462   :  { %12243 = vmatprep.subr.bf16.mxu1 %v12557_v56  ;;  %v7559_v61 = vpop.f32.mrf.mxu1  ;;  %v12570_v56 = vld [vmem:[%s13942_s6 + $0x10] sm:$0xff]   ;;  %v12574_v5 = vld [vmem:[%s13942_s6 + $0x8] sm:$0xff]  }
 0x463   :  { %v13377_v37 = vadd.f32 %v7559_v61, %v7517_v42  ;;  %12222 = vmatpush3.bf16.msra.mxu0 %v12558_v13  ;;  %v12575_v13 = vld [vmem:[%s13942_s6 + $0x88] sm:$0xff]   ;;  %v12579_v42 = vld [vmem:[%s13942_s6 + $0x80] sm:$0xff]   ;;  %v12581_v61 = vld [vmem:[%s13942_s6 + $0x1f8] sm:$0xff]  }
 0x464   :  { %12223 = vmatprep.subr.bf16.mxu0 %v12560_v43  ;;  %v12578_v43 = vld [vmem:[%s13942_s6] sm:$0xff]  }
 0x465   :  { %12244 = vmatpush3.bf16.msra.mxu1 %v12559_v38  ;;  %v12577_v38 = vld [vmem:[%s13942_s6 + $0xc0] sm:$0xff]  }
 0x466   :  { %12245 = vmatprep.subr.bf16.mxu1 %v12561_v17  ;;  %v12580_v17 = vld [vmem:[%s13942_s6 + $0x178] sm:$0xff]  }
 0x467   :  { %12224 = vmatpush3.bf16.msra.mxu0 %v12562_v11  ;;  %v12582_v11 = vld [vmem:[%s13942_s6 + $0x138] sm:$0xff]  }
 0x468   :  { %12225 = vmatprep.subr.bf16.mxu0 %v12564_v0  ;;  %v12584_v0 = vld [vmem:[%s13942_s6 + $0x170] sm:$0xff]  }
 0x469   :  { %12246 = vmatpush3.bf16.msra.mxu1 %v12563_v2  ;;  %v12583_v2 = vld [vmem:[%s13942_s6 + $0x1b8] sm:$0xff]  }
 0x46a   :  { %12247 = vmatprep.subr.bf16.mxu1 %v12565_v57  ;;  %v12585_v57 = vld [vmem:[%s13942_s6 + $0x1f0] sm:$0xff]  }
 0x46b   :  { %12226 = vmatpush3.bf16.msra.mxu0 %v12566_v27  ;;  %v12586_v27 = vld [vmem:[%s13942_s6 + $0x130] sm:$0xff]  }
 0x46c   :  { %12227 = vmatprep.subr.bf16.mxu0 %v12568_v35  ;;  %v12588_v35 = vld [vmem:[%s13942_s6 + $0x168] sm:$0xff]  }
 0x46d   :  { %12248 = vmatpush3.bf16.msra.mxu1 %v12567_v33  ;;  %v12587_v33 = vld [vmem:[%s13942_s6 + $0x1b0] sm:$0xff]  }
 0x46e   :  { %12249 = vmatprep.subr.bf16.mxu1 %v12569_v10  ;;  %v12591_v10 = vld [vmem:[%s13942_s6 + $0x1a8] sm:$0xff]  }
 0x46f   :  { %12228 = vmatpush3.bf16.msra.mxu0 %v12570_v56  ;;  %v12592_v56 = vld [vmem:[%s13942_s6 + $0x160] sm:$0xff]  }
 0x470   :  { %12229 = vmatprep.subr.bf16.mxu0 %v12572_v63  ;;  %v12596_v63 = vld [vmem:[%s13942_s6 + $0x158] sm:$0xff]  }
 0x471   :  { %12250 = vmatpush3.bf16.msra.mxu1 %v12571_v18  ;;  %v12595_v18 = vld [vmem:[%s13942_s6 + $0x1a0] sm:$0xff]  }
 0x472   :  { %12251 = vmatprep.subr.bf16.mxu1 %v12573_v22  ;;  %v12597_v22 = vld [vmem:[%s13942_s6 + $0x1d8] sm:$0xff]  }
 0x473   :  { %12230 = vmatpush3.bf16.msra.mxu0 %v12574_v5  ;;  %v12598_v5 = vld [vmem:[%s13942_s6 + $0x118] sm:$0xff]  }
 0x474   :  { %12231 = vmatprep.subr.bf16.mxu0 %v12576_v62  ;;  %v12600_v62 = vld [vmem:[%s13942_s6 + $0x150] sm:$0xff]  }
 0x475   :  { %12252 = vmatpush3.bf16.msra.mxu1 %v12575_v13  ;;  %v12599_v13 = vld [vmem:[%s13942_s6 + $0x198] sm:$0xff]  }
 0x476   :  { %12253 = vmatprep.subr.bf16.mxu1 %v12577_v38  ;;  %v12601_v38 = vld [vmem:[%s13942_s6 + $0x1d0] sm:$0xff]  }
 0x477   :  { %12232 = vmatpush3.bf16.msra.mxu0 %v12578_v43  ;;  %v12602_v43 = vld [vmem:[%s13942_s6 + $0x110] sm:$0xff]  }
 0x478   :  { %12261 = vmatprep.subr.bf16.mxu0 %v12580_v17  ;;  %v12604_v17 = vld [vmem:[%s13942_s6 + $0x148] sm:$0xff]  }
 0x479   :  { %12254 = vmatpush3.bf16.msra.mxu1 %v12579_v42  ;;  %v12603_v42 = vld [vmem:[%s13942_s6 + $0x190] sm:$0xff]  }
 0x47a   :  { %12283 = vmatprep.subr.bf16.mxu1 %v12581_v61  ;;  %8365 = vmatmul.mubr.bf16.vlgmr.msra.gmra.mxu0 %v13131_v32  ;;  %v12589_v32 = vld [vmem:[%s13942_s6 + $0x1e8] sm:$0xff]  }
 0x47b   :  { %12262 = vmatpush3.bf16.msra.mxu0 %v12582_v11  ;;  %8446 = vmatprep.mubr.bf16.mxu0 %v13147_v54  ;;  %v12593_v54 = vld [vmem:[%s13942_s6 + $0x1e0] sm:$0xff]   ;;  %v12605_v61 = vld [vmem:[%s13942_s6 + $0x1c8] sm:$0xff]   ;;  %v7167_v11 = vadd.f32 %v13215_v45, %v13226_v15 }
 0x47c   :  { %8406 = vmatmul.mubr.bf16.vlgmr.msra.gmra.mxu1 %v13139_v8  ;;  %12263 = vmatprep.subr.bf16.mxu0 %v12584_v0  ;;  %v12590_v8 = vld [vmem:[%s13942_s6 + $0x128] sm:$0xff]   ;;  %v7169_v0 = vadd.f32 %v13221_v50, %v13235_v3  ;;  %v12609_v45 = vld [vmem:[%s13942_s6 + $0x1c0] sm:$0xff]  }
 0x47d   :  { %12284 = vmatpush3.bf16.msra.mxu1 %v12583_v2  ;;  %8487 = vmatprep.mubr.bf16.mxu1 %v13152_v59  ;;  %v12594_v59 = vld [vmem:[%s13942_s6 + $0x120] sm:$0xff]   ;;  %v12606_v2 = vld [vmem:[%s13942_s6 + $0x108] sm:$0xff]   ;;  %v7210_v15 = vadd.f32 %v13218_v47, %v7167_v11  ;;  %v7339_v47 = vadd.f32 %v13261_v36, %v13272_v12  ;;  %v7511_v36 = vadd.f32 %v13325_v28, %v13347_v39 }
 0x47e   :  { %12285 = vmatprep.subr.bf16.mxu1 %v12585_v57  ;;  %v12607_v57 = vld [vmem:[%s13942_s6 + $0x188] sm:$0xff]   ;;  %v12610_v50 = vld [vmem:[%s13942_s6 + $0x100] sm:$0xff]   ;;  %v7212_v3 = vadd.f32 %v13228_v25, %v7169_v0  ;;  %v12865_v25 = vmov 0.0  }
 0x47f   :  { %12264 = vmatpush3.bf16.msra.mxu0 %v12586_v27  ;;  %v12608_v27 = vld [vmem:[%s13942_s6 + $0x140] sm:$0xff]  }
 0x480   :  { %12265 = vmatprep.subr.bf16.mxu0 %v12588_v35  ;;  %v7253_v35 = vadd.f32 %v13243_v14, %v7210_v15 }
 0x481   :  { %12286 = vmatpush3.bf16.msra.mxu1 %v12587_v33  ;;  %v12611_v33 = vld [vmem:[%s13942_s6 + $0x180] sm:$0xff]   ;;  %s12867_s6 = smov 124  }
 0x482   :  { %12287 = vmatprep.subr.bf16.mxu1 %v12589_v32  ;;  %v7255_v32 = vadd.f32 %v13249_v24, %v7212_v3  ;;  %v7382_v24 = vadd.f32 %v13264_v19, %v7339_v47 }
 0x483   :  { %12266 = vmatpush3.bf16.msra.mxu0 %v12590_v8  ;;  %v7341_v8 = vadd.f32 %v13267_v58, %v13281_v49 }
 0x484   :  { %12267 = vmatprep.subr.bf16.mxu0 %v12592_v56  ;;  %v7298_v14 = vadd.f32 %v13251_v30, %v7255_v32  ;;  %v7554_v30 = vadd.f32 %v13328_v52, %v7511_v36  ;;  %v13967_v56 = vsub.s32 6, %v13015_v4  ;;  %v13973_v32 = vld [vmem:[#allocation20_spill] sm:$0xff] }
 0x485   :  { %12288 = vmatpush3.bf16.msra.mxu1 %v12591_v10  ;;  %v7296_v10 = vadd.f32 %v13246_v26, %v7253_v35  ;;  %v7384_v58 = vadd.f32 %v13274_v34, %v7341_v8  ;;  %v7513_v26 = vadd.f32 %v13334_v60, %v13359_v55  ;;  %v13972_v35 = vld [vmem:[#allocation31_spill] sm:$0xff] }
 0x486   :  { %12289 = vmatprep.subr.bf16.mxu1 %v12593_v54 }
 0x487   :  { %12268 = vmatpush3.bf16.msra.mxu0 %v12594_v59  ;;  %v7556_v34 = vadd.f32 %v13349_v16, %v7513_v26  ;;  %v13976_v26 = vld [vmem:[#allocation23_spill] sm:$0xff] }
 0x488   :  { %12269 = vmatprep.subr.bf16.mxu0 %v12596_v63 }
 0x489   :  { %12290 = vmatpush3.bf16.msra.mxu1 %v12595_v18 }
 0x48a   :  { %12291 = vmatprep.subr.bf16.mxu1 %v12597_v22 }
 0x48b   :  { %12270 = vmatpush3.bf16.msra.mxu0 %v12598_v5 }
 0x48c   :  { %12271 = vmatprep.subr.bf16.mxu0 %v12600_v62 }
 0x48d   :  { %12292 = vmatpush3.bf16.msra.mxu1 %v12599_v13 }
 0x48e   :  { %12293 = vmatprep.subr.bf16.mxu1 %v12601_v38 }
 0x48f   :  { %12272 = vmatpush3.bf16.msra.mxu0 %v12602_v43 }
 0x490   :  { %12273 = vmatprep.subr.bf16.mxu0 %v12604_v17 }
 0x491   :  { %12294 = vmatpush3.bf16.msra.mxu1 %v12603_v42 }
 0x492   :  { %12295 = vmatprep.subr.bf16.mxu1 %v12605_v61 }
 0x493   :  { %12274 = vmatpush3.bf16.msra.mxu0 %v12606_v2 }
 0x494   :  { %12275 = vmatprep.subr.bf16.mxu0 %v12608_v27 }
 0x495   :  { %12296 = vmatpush3.bf16.msra.mxu1 %v12607_v57 }
 0x496   :  { %12297 = vmatprep.subr.bf16.mxu1 %v12609_v45  ;;  %v13970_v45 = vld [vmem:[#allocation30_spill] sm:$0xff] }
 0x497   :  { %12276 = vmatpush3.bf16.msra.mxu0 %v12610_v50  ;;  %v13971_v50 = vld [vmem:[#allocation27_spill] sm:$0xff] }
 0x498   :  { %12369 = vmatprep.subr.mxu0 %v12865_v25 }
 0x499   :  { %12298 = vmatpush3.bf16.msra.mxu1 %v12611_v33 }
 0x49a   :  { %12374 = vmatprep.subr.mxu1 %v12865_v25  ;;  %8447 = vmatmul.mubr.bf16.vlgmr.msra.gmra.mxu0 %v13173_v6  ;;  %v7596_v12 = vpop.f32.mrf.mxu0  ;;  %v7425_v6 = vadd.f32 %v13289_v7, %v7382_v24 }
 0x49b   :  { %12370 = vmatpush3.xpose.msra.mxu0 %v7296_v10  ;;  %12371 = vmatprep.mubr.msk.f32.mxu0 %vm12866_vm0, %v12865_v25  ;;  %v7597_v28 = vadd.f32 %v7596_v12, %v7554_v30  ;;  %v13975_v12 = vld [vmem:[#allocation22_spill] sm:$0xff] }
 0x49c   :  { %8488 = vmatmul.mubr.bf16.vlgmr.msra.gmra.mxu1 %v13180_v20  ;;  %12379 = vmatprep.subr.mxu0 %v12865_v25  ;;  %v7427_v20 = vadd.f32 %v13295_v1, %v7384_v58  ;;  %v7598_v19 = vpop.f32.mrf.mxu0  ;;  %v7468_v49 = vadd.f32 %v13292_v21, %v7425_v6  ;;  %v7639_v60 = vpop.f32.mrf.mxu1 }
 0x49d   :  { %12375 = vmatpush3.xpose.msra.mxu1 %v7298_v14  ;;  %12376 = vmatprep.mubr.msk.f32.mxu1 %vm12866_vm0, %v12865_v25  ;;  %v7599_v39 = vadd.f32 %v7598_v19, %v7556_v34  ;;  %v7640_v1 = vadd.f32 %v7639_v60, %v7597_v28  ;;  %v13978_v19 = vld [vmem:[#allocation25_spill] sm:$0xff]  ;;  %v13979_v34 = vld [vmem:[#allocation28_spill] sm:$0xff] }
 0x49e   :  { %12384 = vmatprep.subr.mxu1 %v12865_v25  ;;  %v7470_v7 = vadd.f32 %v13297_v29, %v7427_v20  ;;  %v7641_v52 = vpop.f32.mrf.mxu1  ;;  %v13977_v20 = vld [vmem:[#allocation24_spill] sm:$0xff] }
 0x49f   :  { %v7642_v21 = vadd.f32 %v7641_v52, %v7599_v39 }
 0x4a2   :  { %12372 = vmatmul.mubr.f32.vlgmr.msra.gmra.mxu0 %v13042_v40  ;;  %v7600_v40 = vpop.f32.mrf.mxu0 }
 0x4a3   :  { %12380 = vmatpush3.xpose.msra.mxu0 %v7468_v49  ;;  %12381 = vmatprep.mubr.msk.f32.mxu0 %vm12866_vm0, %v12865_v25  ;;  %v7601_v3 = vadd.f32 %v7600_v40, %v13371_v48  ;;  %v13974_v48 = vld [vmem:[#allocation21_spill] sm:$0xff] }
 0x4a4   :  { %12377 = vmatmul.mubr.f32.vlgmr.msra.gmra.mxu1 %v13047_v51  ;;  %12389 = vmatprep.subr.mxu0 %v12865_v25  ;;  %v7643_v51 = vpop.f32.mrf.mxu1  ;;  %v13980_v49 = vld [vmem:[#allocation29_spill] sm:$0xff] }
 0x4a5   :  { %12385 = vmatpush3.xpose.msra.mxu1 %v7470_v7  ;;  %12386 = vmatprep.mubr.msk.f32.mxu1 %vm12866_vm0, %v12865_v25  ;;  %v7644_v14 = vadd.f32 %v7643_v51, %v7601_v3 }
 0x4a6   :  { %12394 = vmatprep.subr.mxu1 %v12865_v25  ;;  %12382 = vmatmul.mubr.f32.vlgmr.msra.gmra.mxu0 %v13078_v44  ;;  %v7602_v44 = vpop.f32.mrf.mxu0 }
 0x4a7   :  { %12390 = vmatpush3.xpose.msra.mxu0 %v7640_v1  ;;  %12391 = vmatprep.mubr.msk.f32.mxu0 %vm12866_vm0, %v12865_v25  ;;  %v7603_v47 = vadd.f32 %v7602_v44, %v13377_v37 }
 0x4a8   :  { %12387 = vmatmul.mubr.f32.vlgmr.msra.gmra.mxu1 %v13083_v23  ;;  %12399 = vmatprep.subr.mxu0 %v12865_v25  ;;  %v7645_v23 = vpop.f32.mrf.mxu1 }
 0x4a9   :  { %12395 = vmatpush3.xpose.msra.mxu1 %v7642_v21  ;;  %12396 = vmatprep.mubr.msk.f32.mxu1 %vm12866_vm0, %v12865_v25 }
 0x4aa   :  { %12392 = vmatmul.mubr.f32.vlgmr.msra.gmra.mxu0 %v13156_v41  ;;  %12404 = vmatprep.subr.mxu1 %v12865_v25  ;;  %v4519_v41 = vrot.slane %v13342_v53, %v13967_v56 }
 0x4ab   :  { %12401 = vmatprep.mubr.msk.f32.mxu0 %vm12866_vm0, %v12865_v25 }
 0x4ac   :  { %12397 = vmatmul.mubr.f32.vlgmr.msra.gmra.mxu1 %v13161_v46  ;;  %v13968_v46 = vsub.s32 7, %v13015_v4  ;;  %v13969_v4 = vld [vmem:[#allocation26_spill] sm:$0xff] }
 0x4ad   :  { %12406 = vmatprep.mubr.msk.f32.mxu1 %vm12866_vm0, %v12865_v25 }
 0x4ae   :  { %v4523_v59 = vrot.slane %v13342_v53, %v13968_v46 }
 0x4da   :  { %v7682_v29 = vpop.f32.mrf.mxu0 }
 0x4db   :  { %v7683_v63 = vadd.f32 %v7682_v29, %v4519_v41 }
 0x4dc   :  { %v7725_v16 = vpop.f32.mrf.mxu1  ;;  %v7684_v55 = vpop.f32.mrf.mxu0 }
 0x4dd   :  { %v7685_v5 = vadd.f32 %v7684_v55, %v4523_v59  ;;  %v7726_v62 = vadd.f32 %v7725_v16, %v7683_v63 }
 0x4de   :  { %v7727_v54 = vpop.f32.mrf.mxu1  ;;  %v7686_v18 = vpop.f32.mrf.mxu0 }
 0x4df   :  { %v7728_v42 = vadd.f32 %v7727_v54, %v7685_v5  ;;  %v7687_v53 = vadd.f32 %v7686_v18, %v4519_v41 }
 0x4e0   :  { %v7729_v22 = vpop.f32.mrf.mxu1  ;;  %v7688_v13 = vpop.f32.mrf.mxu0 }
 0x4e1   :  { %v7689_v33 = vadd.f32 %v7688_v13, %v4523_v59  ;;  %v7730_v8 = vadd.f32 %v7729_v22, %v7687_v53 }
 0x4e2   :  { %v7731_v38 = vpop.f32.mrf.mxu1 }
 0x4e3   :  { %v7732_v24 = vadd.f32 %v7731_v38, %v7689_v33 }
 0x51a   :  { %v7768_v43 = vpop.f32.mrf.mxu0 }
 0x51b   :  { %v7769_v17 = vadd.f32 %v7768_v43, %v7726_v62 }
 0x51c   :  { %v7811_v61 = vpop.f32.mrf.mxu1  ;;  %v7770_v11 = vpop.f32.mrf.mxu0 }
 0x51d   :  { %v7812_v2 = vadd.f32 %v7811_v61, %v7769_v17  ;;  %v7771_v0 = vadd.f32 %v7770_v11, %v7728_v42 }
 0x51e   :  { %v7813_v57 = vpop.f32.mrf.mxu1  ;;  %v7772_v15 = vpop.f32.mrf.mxu0 }
 0x51f   :  { %v7814_v27 = vadd.f32 %v7813_v57, %v7771_v0  ;;  %12400 = vmatpush3.xpose.msra.mxu0 %v7812_v2  ;;  %v7773_v36 = vadd.f32 %v7772_v15, %v7730_v8 }
 0x520   :  { %12409 = vmatprep.subr.mxu0 %v12865_v25  ;;  %v7774_v10 = vpop.f32.mrf.mxu0  ;;  %v7815_v37 = vpop.f32.mrf.mxu1 }
 0x521   :  { %12405 = vmatpush3.xpose.msra.mxu1 %v7814_v27  ;;  %v7775_v58 = vadd.f32 %v7774_v10, %v7732_v24  ;;  %v7816_v6 = vadd.f32 %v7815_v37, %v7773_v36 }
 0x522   :  { %12402 = vmatmul.mubr.f32.vlgmr.msra.gmra.mxu0 %v13969_v4  ;;  %12414 = vmatprep.subr.mxu1 %v12865_v25 }
 0x523   :  { %12410 = vmatpush3.xpose.msra.mxu0 %v13970_v45  ;;  %12411 = vmatprep.mubr.msk.f32.mxu0 %vm12866_vm0, %v12865_v25 }
 0x524   :  { %12407 = vmatmul.mubr.f32.vlgmr.msra.gmra.mxu1 %v13971_v50  ;;  %12419 = vmatprep.subr.mxu0 %v12865_v25 }
 0x525   :  { %12415 = vmatpush3.xpose.msra.mxu1 %v13972_v35  ;;  %12416 = vmatprep.mubr.msk.f32.mxu1 %vm12866_vm0, %v12865_v25 }
 0x526   :  { %12412 = vmatmul.mubr.f32.vlgmr.msra.gmra.mxu0 %v13973_v32  ;;  %12424 = vmatprep.subr.mxu1 %v12865_v25 }
 0x527   :  { %12420 = vmatpush3.xpose.msra.mxu0 %v13302_v9  ;;  %12421 = vmatprep.mubr.msk.f32.mxu0 %vm12866_vm0, %v12865_v25  ;;  %v7646_v9 = vadd.f32 %v7645_v23, %v7603_v47 }
 0x528   :  { %12417 = vmatmul.mubr.f32.vlgmr.msra.gmra.mxu1 %v13974_v48  ;;  %12429 = vmatprep.subr.mxu0 %v12865_v25 }
 0x529   :  { %12425 = vmatpush3.xpose.msra.mxu1 %v13305_v31  ;;  %12426 = vmatprep.mubr.msk.f32.mxu1 %vm12866_vm0, %v12865_v25  ;;  %v7817_v31 = vpop.f32.mrf.mxu1 }
 0x52a   :  { %12422 = vmatmul.mubr.f32.vlgmr.msra.gmra.mxu0 %v13975_v12  ;;  %12434 = vmatprep.subr.mxu1 %v12865_v25  ;;  %v7818_v30 = vadd.f32 %v7817_v31, %v7775_v58 }
 0x52b   :  { %12430 = vmatpush3.xpose.msra.mxu0 %v7644_v14  ;;  %12431 = vmatprep.mubr.msk.f32.mxu0 %vm12866_vm0, %v12865_v25 }
 0x52c   :  { %12427 = vmatmul.mubr.f32.vlgmr.msra.gmra.mxu1 %v13976_v26  ;;  %12439 = vmatprep.subr.mxu0 %v12865_v25 }
 0x52d   :  { %12435 = vmatpush3.xpose.msra.mxu1 %v7646_v9  ;;  %12436 = vmatprep.mubr.msk.f32.mxu1 %vm12866_vm0, %v12865_v25 }
 0x52e   :  { %12432 = vmatmul.mubr.f32.vlgmr.msra.gmra.mxu0 %v13977_v20  ;;  %12444 = vmatprep.subr.mxu1 %v12865_v25 }
 0x52f   :  { %12440 = vmatpush3.xpose.msra.mxu0 %v7816_v6  ;;  %12441 = vmatprep.mubr.msk.f32.mxu0 %vm12866_vm0, %v12865_v25 }
 0x530   :  { %12437 = vmatmul.mubr.f32.vlgmr.msra.gmra.mxu1 %v13978_v19  ;;  %12449 = vmatprep.subr.mxu0 %v12865_v25 }
 0x531   :  { %12445 = vmatpush3.xpose.msra.mxu1 %v7818_v30  ;;  %12446 = vmatprep.mubr.msk.f32.mxu1 %vm12866_vm0, %v12865_v25 }
 0x532   :  { %12442 = vmatmul.mubr.f32.vlgmr.msra.gmra.mxu0 %v13979_v34  ;;  %12454 = vmatprep.subr.mxu1 %v12865_v25 }
 0x533   :  { %12451 = vmatprep.mubr.msk.f32.mxu0 %vm12866_vm0, %v12865_v25 }
 0x534   :  { %12447 = vmatmul.mubr.f32.vlgmr.msra.gmra.mxu1 %v13980_v49 }
 0x535   :  { %12456 = vmatprep.mubr.msk.f32.mxu1 %vm12866_vm0, %v12865_v25 }
 0x53a   :  { %v12233_v28 = vpop.f32.mrf.mxu0 }
 0x53c   :  { %v12255_v60 = vpop.f32.mrf.mxu1  ;;  %v12234_v7 = vpop.f32.mrf.mxu0 }
 0x53d   :  { %v12235_v29 = vadd.f32 %v12234_v7, %v12233_v28 }
 0x53e   :  { %v12256_v39 = vpop.f32.mrf.mxu1  ;;  %v12236_v1 = vpop.f32.mrf.mxu0 }
 0x53f   :  { %v12257_v16 = vadd.f32 %v12256_v39, %v12255_v60 }
 0x540   :  { %v12258_v52 = vpop.f32.mrf.mxu1  ;;  %v12237_v21 = vpop.f32.mrf.mxu0 }
 0x541   :  { %v12238_v40 = vadd.f32 %v12237_v21, %v12236_v1  ;;  %v8408_v56 = vadd.f32 %v12257_v16, %v12235_v29 }
 0x542   :  { %v12259_v51 = vpop.f32.mrf.mxu1 }
 0x543   :  { %v12260_v44 = vadd.f32 %v12259_v51, %v12258_v52 }
 0x545   :  { %v8411_v23 = vadd.f32 %v12260_v44, %v12238_v40 }
 0x55a   :  { %v12277_v55 = vpop.f32.mrf.mxu0 }
 0x55c   :  { %v12299_v41 = vpop.f32.mrf.mxu1  ;;  %v12278_v54 = vpop.f32.mrf.mxu0 }
 0x55d   :  { %v12279_v46 = vadd.f32 %v12278_v54, %v12277_v55 }
 0x55e   :  { %v12300_v59 = vpop.f32.mrf.mxu1  ;;  %v12280_v63 = vpop.f32.mrf.mxu0 }
 0x55f   :  { %v12301_v18 = vadd.f32 %v12300_v59, %v12299_v41  ;;  %v8449_v22 = vadd.f32 %v12279_v46, %v8408_v56 }
 0x560   :  { %v12302_v5 = vpop.f32.mrf.mxu1  ;;  %v12281_v13 = vpop.f32.mrf.mxu0 }
 0x561   :  { %v13643_v62 = vadd.f32 %v12301_v18, %v8449_v22  ;;  %v12282_v38 = vadd.f32 %v12281_v13, %v12280_v63 }
 0x562   :  { %v12303_v43 = vpop.f32.mrf.mxu1  ;;  %v8562_v17 = vpop.f32.mrf.mxu0 }
 0x563   :  { %v12304_v42 = vadd.f32 %v12303_v43, %v12302_v5  ;;  %v8452_v61 = vadd.f32 %v12282_v38, %v8411_v23  ;;  %9959 = vrot.lane.b32.xlu1 %v13643_v62, %s12867_s6  ;;  %9810 = vrot.lane.b32.xlu0 %v13643_v62, %s12868_s24  ;;  %v13661_v32 = vmul.f32 0.088388346, %v8562_v17 }
 0x564   :  { %v8632_v11 = vpop.f32.mrf.mxu1  ;;  %v12373_v2 = vpop.f32.mrf.mxu0  ;;  %12455 = vmatpush3.msra.mxu1 %v13643_v62 }
 0x565   :  { %v13650_v0 = vadd.f32 %v12304_v42, %v8452_v61  ;;  %12464 = vmatprep.subr.mxu1 %v12865_v25  ;;  %v13659_v35 = vmul.f32 0.088388346, %v8632_v11  ;;  %v9633_v8 = vsel %vm9632_vm1, %v13661_v32, -inf }
 0x566   :  { %v12378_v57 = vpop.f32.mrf.mxu1  ;;  %v8702_v27 = vpop.f32.mrf.mxu0 }
 0x567   :  { %10113 = vrot.lane.b32.xlu1 %v13643_v62, %s12869_s25  ;;  %10036 = vrot.lane.b32.xlu0 %v13643_v62, %s12870_s26  ;;  %v9636_v47 = vsel %vm9632_vm1, %v13659_v35, -inf  ;;  %v13667_v10 = vmul.f32 0.088388346, %v8702_v27 }
 0x568   :  { %v8772_v4 = vpop.f32.mrf.mxu1  ;;  %v12383_v53 = vpop.f32.mrf.mxu0 }
 0x569   :  { %v13669_v48 = vmul.f32 0.088388346, %v8772_v4  ;;  %v9639_v14 = vsel %vm9632_vm1, %v13667_v10, -inf }
 0x56a   :  { %v12388_v45 = vpop.f32.mrf.mxu1  ;;  %v8842_v15 = vpop.f32.mrf.mxu0 }
 0x56b   :  { %10267 = vrot.lane.b32.xlu1 %v13643_v62, %s12871_s27  ;;  %v9642_v36 = vsel %vm9632_vm1, %v13669_v48, -inf  ;;  %v13681_v12 = vmul.f32 0.088388346, %v8842_v15 }
 0x56c   :  { %v8912_v50 = vpop.f32.mrf.mxu1  ;;  %v12393_v3 = vpop.f32.mrf.mxu0 }
 0x56d   :  { %v13673_v24 = vmul.f32 0.088388346, %v8912_v50  ;;  %v9645_v9 = vsel %vm9632_vm1, %v13681_v12, -inf }
 0x56e   :  { %v12398_v33 = vpop.f32.mrf.mxu1 }
 0x56f   :  { %v9648_v37 = vsel %vm9632_vm1, %v13673_v24, -inf }
 0x586   :  { %9637 = vmax.xlane.f32.xlu0 %v9636_v47 }
 0x58a   :  { %9634 = vmax.xlane.f32.xlu0 %v9633_v8 }
 0x58f   :  { %9640 = vmax.xlane.f32.xlu1 %v9639_v14 }
 0x593   :  { %9643 = vmax.xlane.f32.xlu1 %v9642_v36 }
 0x597   :  { %9649 = vmax.xlane.f32.xlu1 %v9648_v37 }
 0x5a0   :  { %10190 = vrot.lane.b32.xlu0 %v13643_v62, %s12872_s28 }
 0x5bf   :  { %9646 = vmax.xlane.f32.xlu0 %v9645_v9 }
 0x5d5   :  { %v9811_v58 = vpop.permute.xlu0 %9810  ;;  %v13726_v2 = vpop.permute.xlu1 %9959 }
 0x5d6   :  { %12450 = vmatpush3.msra.mxu0 %v9811_v58 }
 0x5d7   :  { %12459 = vmatprep.subr.mxu0 %v12865_v25 }
 0x5d9   :  { %v13732_v57 = vpop.permute.xlu1 %10113  ;;  %v13734_v27 = vpop.permute.xlu0 %10036 }
 0x5dd   :  { %v13738_v4 = vpop.permute.xlu1 %10267 }
 0x5e2   :  { %v8982_v26 = vpop.f32.mrf.mxu0 }
 0x5e3   :  { %v13686_v6 = vmul.f32 0.088388346, %v8982_v26 }
 0x5e4   :  { %v12403_v31 = vpop.f32.mrf.mxu0  ;;  %v9052_v20 = vpop.f32.mrf.mxu1 }
 0x5e5   :  { %v13688_v30 = vmul.f32 0.088388346, %v9052_v20  ;;  %v9651_v19 = vsel %vm9632_vm1, %v13686_v6, -inf }
 0x5e6   :  { %v12408_v34 = vpop.f32.mrf.mxu1  ;;  %9652 = vmax.xlane.f32.xlu0 %v9651_v19  ;;  %v9122_v49 = vpop.f32.mrf.mxu0 }
 0x5e7   :  { %v13692_v28 = vmul.f32 0.088388346, %v9122_v49  ;;  %v9654_v60 = vsel %vm9632_vm1, %v13688_v30, -inf }
 0x5e8   :  { %v9192_v7 = vpop.f32.mrf.mxu1  ;;  %9655 = vmax.xlane.f32.xlu1 %v9654_v60  ;;  %v12413_v39 = vpop.f32.mrf.mxu0 }
 0x5e9   :  { %v13696_v1 = vmul.f32 0.088388346, %v9192_v7  ;;  %v9657_v44 = vsel %vm9632_vm1, %v13692_v28, -inf }
 0x5ea   :  { %v12418_v52 = vpop.f32.mrf.mxu1  ;;  %v9262_v21 = vpop.f32.mrf.mxu0 }
 0x5eb   :  { %v13698_v40 = vmul.f32 0.088388346, %v9262_v21  ;;  %v9660_v51 = vsel %vm9632_vm1, %v13696_v1, -inf }
 0x5ec   :  { %v9332_v23 = vpop.f32.mrf.mxu1  ;;  %9661 = vmax.xlane.f32.xlu0 %v9660_v51  ;;  %9658 = vmax.xlane.f32.xlu1 %v9657_v44  ;;  %v12423_v29 = vpop.f32.mrf.mxu0 }
 0x5ed   :  { %v13704_v16 = vmul.f32 0.088388346, %v9332_v23  ;;  %v9663_v46 = vsel %vm9632_vm1, %v13698_v40, -inf }
 0x5ee   :  { %v12428_v55 = vpop.f32.mrf.mxu1  ;;  %v9402_v56 = vpop.f32.mrf.mxu0 }
 0x5ef   :  { %v13706_v41 = vmul.f32 0.088388346, %v9402_v56  ;;  %v9666_v54 = vsel %vm9632_vm1, %v13704_v16, -inf }
 0x5f0   :  { %v9472_v59 = vpop.f32.mrf.mxu1  ;;  %9667 = vmax.xlane.f32.xlu1 %v9666_v54  ;;  %9664 = vmax.xlane.f32.xlu0 %v9663_v46  ;;  %v12433_v18 = vpop.f32.mrf.mxu0 }
 0x5f1   :  { %v13712_v63 = vmul.f32 0.088388346, %v9472_v59  ;;  %v9669_v43 = vsel %vm9632_vm1, %v13706_v41, -inf }
 0x5f2   :  { %v12438_v22 = vpop.f32.mrf.mxu1  ;;  %v9542_v5 = vpop.f32.mrf.mxu0 }
 0x5f3   :  { %v13714_v13 = vmul.f32 0.088388346, %v9542_v5  ;;  %v9672_v38 = vsel %vm9632_vm1, %v13712_v63, -inf }
 0x5f4   :  { %v9612_v42 = vpop.f32.mrf.mxu1  ;;  %9673 = vmax.xlane.f32.xlu1 %v9672_v38  ;;  %9670 = vmax.xlane.f32.xlu0 %v9669_v43  ;;  %v12443_v17 = vpop.f32.mrf.mxu0 }
 0x5f5   :  { %v9675_v11 = vsel %vm9632_vm1, %v13714_v13, -inf  ;;  %v13742_v33 = vmul.f32 0.088388346, %v9612_v42 }
 0x5f6   :  { %v12448_v61 = vpop.f32.mrf.mxu1 }
 0x5f7   :  { %v9678_v47 = vsel %vm9632_vm1, %v13742_v33, -inf }
 0x5f8   :  { %9676 = vmax.xlane.f32.xlu0 %v9675_v11 }
 0x605   :  { %10446 = vrot.lane.b32.xlu1 %v13650_v0, %s12868_s24 }
 0x609   :  { %10672 = vrot.lane.b32.xlu1 %v13650_v0, %s12870_s26 }
 0x60e   :  { %10344 = vrot.lane.b32.xlu0 %v13643_v62, %s12873_s5 }
 0x60f   :  { %v9638_v53 = vpop.xlane.xlu0 %9637 }
 0x610   :  { %v9682_v45 = vsub.f32 %v13659_v35, %v9638_v53 }
 0x612   :  { %10595 = vrot.lane.b32.xlu0 %v13650_v0, %s12867_s6  ;;  %v9699_v50 = vmul.f32 1.442695, %v9682_v45 }
 0x614   :  { %12612 = vpow2.f32 %v9699_v50 }
 0x616   :  { %10749 = vrot.lane.b32.xlu0 %v13650_v0, %s12869_s25 }
 0x618   :  { %v9641_v15 = vpop.xlane.xlu1 %9640 }
 0x619   :  { %v9683_v3 = vsub.f32 %v13667_v10, %v9641_v15  ;;  %v9635_v10 = vpop.xlane.xlu0 %9634 }
 0x61a   :  { %v9681_v26 = vsub.f32 %v13661_v32, %v9635_v10 }
 0x61b   :  { %v9701_v62 = vmul.f32 1.442695, %v9683_v3 }
 0x61c   :  { %v9644_v9 = vpop.xlane.xlu1 %9643  ;;  %v9697_v19 = vmul.f32 1.442695, %v9681_v26 }
 0x61d   :  { %12614 = vpow2.f32 %v9701_v62  ;;  %v13756_v37 = vpop.permute.xlu0 %10190  ;;  %v9684_v34 = vsub.f32 %v13669_v48, %v9644_v9 }
 0x61f   :  { %v9703_v60 = vmul.f32 1.442695, %v9684_v34 }
 0x620   :  { %v9650_v49 = vpop.xlane.xlu1 %9649 }
 0x621   :  { %v13746_v8 = vpop.eup %12612  ;;  %v9686_v7 = vsub.f32 %v13673_v24, %v9650_v49 }
 0x622   :  { %v9732_v14 = vsel %vm9632_vm1, %v13746_v8, 0.0 }
 0x623   :  { %v9707_v39 = vmul.f32 1.442695, %v9686_v7 }
 0x62a   :  { %v13750_v36 = vpop.eup %12614 }
 0x62b   :  { %v9735_v35 = vsel %vm9632_vm1, %v13750_v36, 0.0 }
 0x62d   :  { %9679 = vmax.xlane.f32.xlu1 %v9678_v47 }
 0x635   :  { %9733 = vadd.xlane.f32.xlu0 %v9732_v14 }
 0x639   :  { %9736 = vadd.xlane.f32.xlu0 %v9735_v35 }
 0x63e   :  { %10826 = vrot.lane.b32.xlu1 %v13650_v0, %s12872_s28 }
 0x648   :  { %v9647_v58 = vpop.xlane.xlu0 %9646 }
 0x649   :  { %v9685_v31 = vsub.f32 %v13681_v12, %v9647_v58 }
 0x64b   :  { %v9705_v20 = vmul.f32 1.442695, %v9685_v31 }
 0x64d   :  { %12616 = vpow2.f32 %v9705_v20 }
 0x64e   :  { %12618 = vpow2.f32 %v9697_v19 }
 0x64f   :  { %12620 = vpow2.f32 %v9703_v60 }
 0x650   :  { %12622 = vpow2.f32 %v9707_v39 }
 0x65a   :  { %v13762_v52 = vpop.eup %12616 }
 0x65b   :  { %v9741_v32 = vsel %vm9632_vm1, %v13762_v52, 0.0  ;;  %v13766_v12 = vpop.eup %12618 }
 0x65c   :  { %9742 = vadd.xlane.f32.xlu0 %v9741_v32  ;;  %v9729_v48 = vsel %vm9632_vm1, %v13766_v12, 0.0  ;;  %v13770_v21 = vpop.eup %12620 }
 0x65d   :  { %v9738_v24 = vsel %vm9632_vm1, %v13770_v21, 0.0  ;;  %v13774_v51 = vpop.eup %12622 }
 0x65e   :  { %v9744_v44 = vsel %vm9632_vm1, %v13774_v51, 0.0 }
 0x662   :  { %9730 = vadd.xlane.f32.xlu1 %v9729_v48 }
 0x666   :  { %9739 = vadd.xlane.f32.xlu1 %v9738_v24 }
 0x66a   :  { %9745 = vadd.xlane.f32.xlu1 %v9744_v44 }
 0x66f   :  { %v9653_v23 = vpop.xlane.xlu0 %9652 }
 0x670   :  { %v9687_v29 = vsub.f32 %v13686_v6, %v9653_v23 }
 0x671   :  { %v9656_v55 = vpop.xlane.xlu1 %9655 }
 0x672   :  { %v9709_v56 = vmul.f32 1.442695, %v9687_v29  ;;  %v9688_v54 = vsub.f32 %v13688_v30, %v9656_v55 }
 0x674   :  { %12624 = vpow2.f32 %v9709_v56  ;;  %v9711_v46 = vmul.f32 1.442695, %v9688_v54 }
 0x675   :  { %v9662_v59 = vpop.xlane.xlu0 %9661  ;;  %v9659_v18 = vpop.xlane.xlu1 %9658 }
 0x676   :  { %12626 = vpow2.f32 %v9711_v46  ;;  %v9690_v22 = vsub.f32 %v13696_v1, %v9662_v59  ;;  %v9689_v5 = vsub.f32 %v13692_v28, %v9659_v18 }
 0x678   :  { %v9715_v38 = vmul.f32 1.442695, %v9690_v22  ;;  %v9713_v43 = vmul.f32 1.442695, %v9689_v5 }
 0x679   :  { %v9668_v42 = vpop.xlane.xlu1 %9667  ;;  %v9665_v17 = vpop.xlane.xlu0 %9664 }
 0x67a   :  { %12628 = vpow2.f32 %v9715_v38  ;;  %v9692_v6 = vsub.f32 %v13704_v16, %v9668_v42  ;;  %v9691_v61 = vsub.f32 %v13698_v40, %v9665_v17 }
 0x67b   :  { %12630 = vpow2.f32 %v9713_v43 }
 0x67c   :  { %v9719_v30 = vmul.f32 1.442695, %v9692_v6  ;;  %v9717_v11 = vmul.f32 1.442695, %v9691_v61 }
 0x67d   :  { %v9674_v53 = vpop.xlane.xlu1 %9673  ;;  %v9671_v45 = vpop.xlane.xlu0 %9670 }
 0x67e   :  { %12632 = vpow2.f32 %v9719_v30  ;;  %v9694_v15 = vsub.f32 %v13712_v63, %v9674_v53  ;;  %v9693_v1 = vsub.f32 %v13706_v41, %v9671_v45 }
 0x67f   :  { %12634 = vpow2.f32 %v9717_v11 }
 0x680   :  { %v9723_v28 = vmul.f32 1.442695, %v9694_v15  ;;  %v9721_v50 = vmul.f32 1.442695, %v9693_v1 }
 0x681   :  { %v13786_v3 = vpop.eup %12624  ;;  %v9677_v62 = vpop.xlane.xlu0 %9676 }
 0x682   :  { %12636 = vpow2.f32 %v9723_v28  ;;  %v9695_v16 = vsub.f32 %v13714_v13, %v9677_v62  ;;  %v9747_v40 = vsel %vm9632_vm1, %v13786_v3, 0.0  ;;  %v13825_v39 = vpop.permute.xlu1 %10446 }
 0x683   :  { %v13791_v47 = vpop.eup %12626  ;;  %12638 = vpow2.f32 %v9721_v50  ;;  %9748 = vadd.xlane.f32.xlu0 %v9747_v40 }
 0x684   :  { %v9725_v14 = vmul.f32 1.442695, %v9695_v16  ;;  %v9750_v41 = vsel %vm9632_vm1, %v13791_v47, 0.0 }
 0x685   :  { %9751 = vadd.xlane.f32.xlu1 %v9750_v41  ;;  %v10345_v32 = vpop.permute.xlu0 %10344 }
 0x686   :  { %12640 = vpow2.f32 %v9725_v14  ;;  %v13827_v48 = vpop.permute.xlu1 %10672 }
 0x687   :  { %v13795_v63 = vpop.eup %12628 }
 0x688   :  { %v13797_v35 = vpop.eup %12630  ;;  %v9756_v13 = vsel %vm9632_vm1, %v13795_v63, 0.0 }
 0x689   :  { %v9753_v10 = vsel %vm9632_vm1, %v13797_v35, 0.0  ;;  %9757 = vadd.xlane.f32.xlu0 %v9756_v13  ;;  %v13829_v24 = vpop.permute.xlu0 %10595 }
 0x68a   :  { %9754 = vadd.xlane.f32.xlu1 %v9753_v10 }
 0x68b   :  { %v13803_v9 = vpop.eup %12632 }
 0x68c   :  { %v13805_v58 = vpop.eup %12634  ;;  %v9762_v26 = vsel %vm9632_vm1, %v13803_v9, 0.0 }
 0x68d   :  { %v9759_v31 = vsel %vm9632_vm1, %v13805_v58, 0.0  ;;  %v13832_v55 = vpop.permute.xlu0 %10749 }
 0x68e   :  { %9763 = vadd.xlane.f32.xlu1 %v9762_v26  ;;  %9760 = vadd.xlane.f32.xlu0 %v9759_v31 }
 0x68f   :  { %v13811_v20 = vpop.eup %12636 }
 0x690   :  { %v13813_v19 = vpop.eup %12638  ;;  %v9768_v34 = vsel %vm9632_vm1, %v13811_v20, 0.0 }
 0x691   :  { %v9765_v49 = vsel %vm9632_vm1, %v13813_v19, 0.0 }
 0x692   :  { %9769 = vadd.xlane.f32.xlu1 %v9768_v34  ;;  %9766 = vadd.xlane.f32.xlu0 %v9765_v49 }
 0x693   :  { %v13819_v60 = vpop.eup %12640 }
 0x694   :  { %v9771_v7 = vsel %vm9632_vm1, %v13819_v60, 0.0 }
 0x696   :  { %9772 = vadd.xlane.f32.xlu1 %v9771_v7 }
 0x6a8   :  { %10903 = vrot.lane.b32.xlu0 %v13650_v0, %s12871_s27 }
 0x6b6   :  { %v9680_v44 = vpop.xlane.xlu1 %9679 }
 0x6b7   :  { %v9696_v23 = vsub.f32 %v13742_v33, %v9680_v44 }
 0x6b9   :  { %v9727_v29 = vmul.f32 1.442695, %v9696_v23 }
 0x6bb   :  { %12642 = vpow2.f32 %v9727_v29 }
 0x6be   :  { %v9734_v56 = vpop.xlane.xlu0 %9733 }
 0x6bf   :  { %12644 = vrcp.f32 %v9734_v56 }
 0x6c2   :  { %v9737_v54 = vpop.xlane.xlu0 %9736 }
 0x6c3   :  { %12646 = vrcp.f32 %v9737_v54 }
 0x6c8   :  { %v13834_v46 = vpop.eup %12642 }
 0x6c9   :  { %v9774_v59 = vsel %vm9632_vm1, %v13834_v46, 0.0 }
 0x6ca   :  { %9775 = vadd.xlane.f32.xlu1 %v9774_v59 }
 0x6cc   :  { %v12645_v18 = vpop.eup %12644 }
 0x6cd   :  { %v9780_v22 = vmul.f32 %v12645_v18, %v13746_v8  ;;  %v13852_v8 = vpop.permute.xlu1 %10826 }
 0x6cf   :  { %12452 = vmatmul.mubr.msk.f32.vlgmr.msra.gmra.mxu0 %vm9632_vm1, %v9780_v22 }
 0x6d0   :  { %v12647_v33 = vpop.eup %12646  ;;  %12460 = vmatpush3.msra.mxu0 %v13726_v2  ;;  %12461 = vmatprep.mubr.msk.f32.mxu0 %vm12866_vm0, %v12865_v25 }
 0x6d1   :  { %12469 = vmatprep.subr.mxu0 %v12865_v25  ;;  %v9782_v5 = vmul.f32 %v12647_v33, %v13750_v36 }
 0x6d3   :  { %12462 = vmatmul.mubr.msk.f32.vlgmr.msra.gmra.mxu0 %vm9632_vm1, %v9782_v5 }
 0x6d4   :  { %12470 = vmatpush3.msra.mxu0 %v13732_v57  ;;  %12471 = vmatprep.mubr.msk.f32.mxu0 %vm12866_vm0, %v12865_v25 }
 0x6d5   :  { %12479 = vmatprep.subr.mxu0 %v12865_v25 }
 0x6db   :  { %10980 = vrot.lane.b32.xlu1 %v13650_v0, %s12873_s5 }
 0x6e5   :  { %v9743_v2 = vpop.xlane.xlu0 %9742 }
 0x6e6   :  { %12648 = vrcp.f32 %v9743_v2 }
 0x6eb   :  { %v9731_v38 = vpop.xlane.xlu1 %9730 }
 0x6ec   :  { %12650 = vrcp.f32 %v9731_v38 }
 0x6ef   :  { %v9740_v43 = vpop.xlane.xlu1 %9739 }
 0x6f0   :  { %12652 = vrcp.f32 %v9740_v43 }
 0x6f3   :  { %v12649_v36 = vpop.eup %12648  ;;  %v9746_v42 = vpop.xlane.xlu1 %9745 }
 0x6f4   :  { %12654 = vrcp.f32 %v9746_v42  ;;  %v9786_v57 = vmul.f32 %v12649_v36, %v13762_v52 }
 0x6f6   :  { %12472 = vmatmul.mubr.msk.f32.vlgmr.msra.gmra.mxu0 %vm9632_vm1, %v9786_v57 }
 0x6f7   :  { %12480 = vmatpush3.msra.mxu0 %v13738_v4  ;;  %12481 = vmatprep.mubr.msk.f32.mxu0 %vm12866_vm0, %v12865_v25 }
 0x6f8   :  { %12489 = vmatprep.subr.mxu0 %v12865_v25 }
 0x6f9   :  { %v12651_v17 = vpop.eup %12650 }
 0x6fa   :  { %v9778_v6 = vmul.f32 %v12651_v17, %v13766_v12 }
 0x6fc   :  { %12457 = vmatmul.mubr.msk.f32.vlgmr.msra.gmra.mxu1 %vm9632_vm1, %v9778_v6 }
 0x6fd   :  { %v12653_v61 = vpop.eup %12652  ;;  %12465 = vmatpush3.msra.mxu1 %v13734_v27  ;;  %12466 = vmatprep.mubr.msk.f32.mxu1 %vm12866_vm0, %v12865_v25 }
 0x6fe   :  { %12474 = vmatprep.subr.mxu1 %v12865_v25  ;;  %v9784_v4 = vmul.f32 %v12653_v61, %v13770_v21 }
 0x700   :  { %12467 = vmatmul.mubr.msk.f32.vlgmr.msra.gmra.mxu1 %vm9632_vm1, %v9784_v4 }
 0x701   :  { %v12655_v52 = vpop.eup %12654  ;;  %12475 = vmatpush3.msra.mxu1 %v13756_v37  ;;  %12476 = vmatprep.mubr.msk.f32.mxu1 %vm12866_vm0, %v12865_v25 }
 0x702   :  { %12484 = vmatprep.subr.mxu1 %v12865_v25  ;;  %v9788_v12 = vmul.f32 %v12655_v52, %v13774_v51 }
 0x704   :  { %12477 = vmatmul.mubr.msk.f32.vlgmr.msra.gmra.mxu1 %vm9632_vm1, %v9788_v12 }
 0x705   :  { %12485 = vmatpush3.msra.mxu1 %v10345_v32  ;;  %12486 = vmatprep.mubr.msk.f32.mxu1 %vm12866_vm0, %v12865_v25 }
 0x706   :  { %12494 = vmatprep.subr.mxu1 %v12865_v25 }
 0x70c   :  { %v9749_v27 = vpop.xlane.xlu0 %9748 }
 0x70d   :  { %12656 = vrcp.f32 %v9749_v27 }
 0x70e   :  { %v9752_v21 = vpop.xlane.xlu1 %9751 }
 0x70f   :  { %12658 = vrcp.f32 %v9752_v21 }
 0x712   :  { %v9758_v37 = vpop.xlane.xlu0 %9757 }
 0x713   :  { %v9755_v30 = vpop.xlane.xlu1 %9754  ;;  %12660 = vrcp.f32 %v9758_v37 }
 0x714   :  { %12662 = vrcp.f32 %v9755_v30 }
 0x717   :  { %v9764_v11 = vpop.xlane.xlu1 %9763  ;;  %v9761_v53 = vpop.xlane.xlu0 %9760 }
 0x718   :  { %12664 = vrcp.f32 %v9764_v11 }
 0x719   :  { %12666 = vrcp.f32 %v9761_v53 }
 0x71a   :  { %v12657_v51 = vpop.eup %12656 }
 0x71b   :  { %v9770_v45 = vpop.xlane.xlu1 %9769  ;;  %v9767_v15 = vpop.xlane.xlu0 %9766  ;;  %v9790_v1 = vmul.f32 %v12657_v51, %v13786_v3 }
 0x71c   :  { %v12659_v28 = vpop.eup %12658  ;;  %12668 = vrcp.f32 %v9770_v45 }
 0x71d   :  { %12670 = vrcp.f32 %v9767_v15  ;;  %12482 = vmatmul.mubr.msk.f32.vlgmr.msra.gmra.mxu0 %vm9632_vm1, %v9790_v1  ;;  %v9792_v50 = vmul.f32 %v12659_v28, %v13791_v47  ;;  %v10430_v1 = vld [vmem:[#allocation13] sm:$0x1] }
 0x71e   :  { %12490 = vmatpush3.msra.mxu0 %v13825_v39  ;;  %12491 = vmatprep.mubr.msk.f32.mxu0 %vm12866_vm0, %v12865_v25 }
 0x71f   :  { %v9773_v62 = vpop.xlane.xlu1 %9772  ;;  %12487 = vmatmul.mubr.msk.f32.vlgmr.msra.gmra.mxu1 %vm9632_vm1, %v9792_v50  ;;  %12499 = vmatprep.subr.mxu0 %v12865_v25  ;;  %v10904_v26 = vpop.permute.xlu0 %10903 }
 0x720   :  { %v12661_v16 = vpop.eup %12660  ;;  %12672 = vrcp.f32 %v9773_v62  ;;  %12495 = vmatpush3.msra.mxu1 %v13650_v0  ;;  %12496 = vmatprep.mubr.msk.f32.mxu1 %vm12866_vm0, %v12865_v25 }
 0x721   :  { %v12663_v3 = vpop.eup %12662  ;;  %12504 = vmatprep.subr.mxu1 %v12865_v25  ;;  %v9796_v40 = vmul.f32 %v12661_v16, %v13795_v63 }
 0x722   :  { %v9794_v47 = vmul.f32 %v12663_v3, %v13797_v35 }
 0x723   :  { %12492 = vmatmul.mubr.msk.f32.vlgmr.msra.gmra.mxu0 %vm9632_vm1, %v9796_v40 }
 0x724   :  { %12497 = vmatmul.mubr.msk.f32.vlgmr.msra.gmra.mxu1 %vm9632_vm1, %v9794_v47  ;;  %12500 = vmatpush3.msra.mxu0 %v13829_v24 }
 0x725   :  { %v12665_v14 = vpop.eup %12664  ;;  %12505 = vmatpush3.msra.mxu1 %v13827_v48  ;;  %12501 = vmatprep.mubr.msk.f32.mxu0 %vm12866_vm0, %v12865_v25 }
 0x726   :  { %v12667_v0 = vpop.eup %12666  ;;  %12506 = vmatprep.mubr.msk.f32.mxu1 %vm12866_vm0, %v12865_v25  ;;  %12509 = vmatprep.subr.mxu0 %v12865_v25  ;;  %v9800_v41 = vmul.f32 %v12665_v14, %v13803_v9 }
 0x727   :  { %12514 = vmatprep.subr.mxu1 %v12865_v25  ;;  %v9798_v63 = vmul.f32 %v12667_v0, %v13805_v58 }
 0x728   :  { %12507 = vmatmul.mubr.msk.f32.vlgmr.msra.gmra.mxu1 %vm9632_vm1, %v9800_v41 }
 0x729   :  { %v12669_v35 = vpop.eup %12668  ;;  %12502 = vmatmul.mubr.msk.f32.vlgmr.msra.gmra.mxu0 %vm9632_vm1, %v9798_v63  ;;  %12515 = vmatpush3.msra.mxu1 %v13852_v8 }
 0x72a   :  { %v12671_v13 = vpop.eup %12670  ;;  %12510 = vmatpush3.msra.mxu0 %v13832_v55  ;;  %12511 = vmatprep.mubr.msk.f32.mxu0 %vm12866_vm0, %v12865_v25  ;;  %v9804_v10 = vmul.f32 %v12669_v35, %v13811_v20 }
 0x72b   :  { %12516 = vmatprep.mubr.msk.f32.mxu1 %vm12866_vm0, %v12865_v25  ;;  %12519 = vmatprep.subr.mxu0 %v12865_v25  ;;  %v9802_v9 = vmul.f32 %v12671_v13, %v13813_v19 }
 0x72c   :  { %12517 = vmatmul.mubr.msk.f32.vlgmr.msra.gmra.mxu1 %vm9632_vm1, %v9804_v10  ;;  %12524 = vmatprep.subr.mxu1 %v12865_v25 }
 0x72d   :  { %v12673_v58 = vpop.eup %12672  ;;  %12512 = vmatmul.mubr.msk.f32.vlgmr.msra.gmra.mxu0 %vm9632_vm1, %v9802_v9  ;;  %12526 = vmatprep.mubr.msk.f32.mxu1 %vm12866_vm0, %v12865_v25 }
 0x72e   :  { %12520 = vmatpush3.msra.mxu0 %v10904_v26  ;;  %12521 = vmatprep.mubr.msk.f32.mxu0 %vm12866_vm0, %v12865_v25  ;;  %v9806_v31 = vmul.f32 %v12673_v58, %v13819_v60 }
 0x731   :  { %12522 = vmatmul.mubr.msk.f32.vlgmr.msra.gmra.mxu0 %vm9632_vm1, %v9806_v31 }
 0x753   :  { %v9776_v20 = vpop.xlane.xlu1 %9775 }
 0x754   :  { %12674 = vrcp.f32 %v9776_v20 }
 0x757   :  { %v10981_v19 = vpop.permute.xlu1 %10980 }
 0x758   :  { %12525 = vmatpush3.msra.mxu1 %v10981_v19 }
 0x761   :  { %v12675_v34 = vpop.eup %12674 }
 0x762   :  { %v9808_v49 = vmul.f32 %v12675_v34, %v13834_v46 }
 0x764   :  { %12527 = vmatmul.mubr.msk.f32.vlgmr.msra.gmra.mxu1 %vm9632_vm1, %v9808_v49 }
 0x78f   :  { %v9882_v7 = vpop.f32.mrf.mxu0 }
 0x791   :  { %v12453_v39 = vpop.f32.mrf.mxu0 }
 0x793   :  { %v10031_v32 = vpop.f32.mrf.mxu0 }
 0x795   :  { %v12463_v48 = vpop.f32.mrf.mxu0 }
 0x7b6   :  { %v10185_v24 = vpop.f32.mrf.mxu0 }
 0x7b8   :  { %v12473_v44 = vpop.f32.mrf.mxu0 }
 0x7bc   :  { %v9955_v25 = vpop.f32.mrf.mxu1 }
 0x7bd   :  { %v9956_v23 = vadd.f32 %v9955_v25, %v9882_v7  ;;  %v11065_v7 = vld [vmem:[#allocation13] sm:$0x1] }
 0x7be   :  { %v12458_v60 = vpop.f32.mrf.mxu1 }
 0x7bf   :  { %v10035_v29 = vadd.f32 %v10031_v32, %v9956_v23 }
 0x7c0   :  { %v10108_v55 = vpop.f32.mrf.mxu1 }
 0x7c1   :  { %v10112_v18 = vadd.f32 %v10108_v55, %v10035_v29 }
 0x7c2   :  { %v12468_v56 = vpop.f32.mrf.mxu1 }
 0x7c3   :  { %v10189_v22 = vadd.f32 %v10185_v24, %v10112_v18 }
 0x7c4   :  { %v10262_v54 = vpop.f32.mrf.mxu1 }
 0x7c5   :  { %v10266_v33 = vadd.f32 %v10262_v54, %v10189_v22 }
 0x7c6   :  { %v12478_v59 = vpop.f32.mrf.mxu1 }
 0x7dd   :  { %v10339_v46 = vpop.f32.mrf.mxu0 }
 0x7de   :  { %v10343_v5 = vadd.f32 %v10339_v46, %v10266_v33 }
 0x7df   :  { %v12483_v2 = vpop.f32.mrf.mxu0  ;;  %v10416_v8 = vpop.f32.mrf.mxu1 }
 0x7e0   :  { %v10420_v38 = vadd.f32 %v10416_v8, %v10343_v5 }
 0x7e1   :  { %v12488_v43 = vpop.f32.mrf.mxu1 }
 0x7e2   :  { %v10422_v36 = vsel %vm10421_vm2, %v10420_v38, 0.0 }
 0x7e3   :  { %v10423_v42 = vrot.slane %v10422_v36, 4  ;;  %v10518_v57 = vpop.f32.mrf.mxu0 }
 0x7e4   :  { %v10591_v17 = vpop.f32.mrf.mxu1 }
 0x7e5   :  { %v10424_v6 = vadd.f32 %v10423_v42, %v10422_v36  ;;  %v12493_v61 = vpop.f32.mrf.mxu0  ;;  %v10592_v47 = vadd.f32 %v10591_v17, %v10518_v57 }
 0x7e6   :  { %v12498_v4 = vpop.f32.mrf.mxu1 }
 0x7e7   :  { %v10425_v52 = vrot.slane %v10424_v6, 2 }
 0x7e8   :  { %v10744_v12 = vpop.f32.mrf.mxu1 }
 0x7e9   :  { %v10426_v27 = vadd.f32 %v10425_v52, %v10424_v6  ;;  %v10667_v21 = vpop.f32.mrf.mxu0 }
 0x7ea   :  { %v12508_v37 = vpop.f32.mrf.mxu1  ;;  %v10671_v14 = vadd.f32 %v10667_v21, %v10592_v47 }
 0x7eb   :  { %v12503_v30 = vpop.f32.mrf.mxu0  ;;  %v10427_v11 = vrot.slane %v10426_v27, 1 }
 0x7ec   :  { %v10898_v53 = vpop.f32.mrf.mxu1  ;;  %v10748_v0 = vadd.f32 %v10744_v12, %v10671_v14 }
 0x7ed   :  { %v10821_v51 = vpop.f32.mrf.mxu0  ;;  %v10428_v45 = vadd.f32 %v10427_v11, %v10426_v27 }
 0x7ee   :  { %v12518_v15 = vpop.f32.mrf.mxu1  ;;  %v10825_v41 = vadd.f32 %v10821_v51, %v10748_v0 }
 0x7ef   :  { %v12513_v28 = vpop.f32.mrf.mxu0  ;;  %v10429_v50 = vmul.f32 0.125, %v10428_v45 }
 0x7f0   :  { %v10902_v63 = vadd.f32 %v10898_v53, %v10825_v41 }
 0x7f1   :  { %v10975_v62 = vpop.f32.mrf.mxu0  ;;  %v10431_v16 = vadd.f32 %v10430_v1, %v10429_v50 }
 0x7f2   :  { %v10979_v35 = vadd.f32 %v10975_v62, %v10902_v63 }
 0x7f3   :  { %v12523_v3 = vpop.f32.mrf.mxu0  ;;  %v10433_v40 = vsel %vm10432_vm3, %v10431_v16, -inf }
 0x7f4   :  { %10434 = vmax.xlane.f32.xlu0 %v10433_v40 }
 0x824   :  { %v11052_v13 = vpop.f32.mrf.mxu1 }
 0x825   :  { %v11056_v10 = vadd.f32 %v11052_v13, %v10979_v35 }
 0x826   :  { %v12528_v9 = vpop.f32.mrf.mxu1 }
 0x827   :  { %v11057_v58 = vsel %vm10421_vm2, %v11056_v10, 0.0 }
 0x828   :  { %v11058_v26 = vrot.slane %v11057_v58, 4 }
 0x82a   :  { %v11059_v31 = vadd.f32 %v11058_v26, %v11057_v58 }
 0x82c   :  { %v11060_v20 = vrot.slane %v11059_v31, 2 }
 0x82e   :  { %v11061_v19 = vadd.f32 %v11060_v20, %v11059_v31 }
 0x830   :  { %v11062_v34 = vrot.slane %v11061_v19, 1 }
 0x832   :  { %v11063_v49 = vadd.f32 %v11062_v34, %v11061_v19 }
 0x834   :  { %v11064_v39 = vmul.f32 0.125, %v11063_v49 }
 0x836   :  { %v11066_v32 = vadd.f32 %v11065_v7, %v11064_v39 }
 0x838   :  { %v11067_v48 = vsel %vm10432_vm3, %v11066_v32, -inf }
 0x839   :  { %11068 = vmax.xlane.f32.xlu1 %v11067_v48 }
 0x87d   :  { %v10435_v24 = vpop.xlane.xlu0 %10434 }
 0x87e   :  { %v10436_v44 = vsub.f32 %v10431_v16, %v10435_v24 }
 0x880   :  { %v10437_v25 = vmul.f32 1.442695, %v10436_v44 }
 0x882   :  { %12676 = vpow2.f32 %v10437_v25 }
 0x88f   :  { %v12677_v23 = vpop.eup %12676 }
 0x890   :  { %v10439_v60 = vsel %vm10432_vm3, %v12677_v23, 0.0 }
 0x891   :  { %10440 = vadd.xlane.f32.xlu0 %v10439_v60 }
 0x8c2   :  { %v11069_v29 = vpop.xlane.xlu1 %11068 }
 0x8c3   :  { %v11070_v55 = vsub.f32 %v11066_v32, %v11069_v29 }
 0x8c5   :  { %v11071_v56 = vmul.f32 1.442695, %v11070_v55 }
 0x8c7   :  { %12678 = vpow2.f32 %v11071_v56 }
 0x8d4   :  { %v12679_v54 = vpop.eup %12678 }
 0x8d5   :  { %v11073_v59 = vsel %vm10432_vm3, %v12679_v54, 0.0 }
 0x8d6   :  { %11074 = vadd.xlane.f32.xlu0 %v11073_v59 }
 0x91a   :  { %v10441_v18 = vpop.xlane.xlu0 %10440 }
 0x91b   :  { %12680 = vrcp.f32 %v10441_v18 }
 0x928   :  { %v12681_v22 = vpop.eup %12680 }
 0x929   :  { %v10443_v33 = vmul.f32 %v12681_v22, %v12677_v23 }
 0x92b   :  { %10444 = vst.msk [vmem:[#allocation14] sm:$0x1] %vm10432_vm3, %v10443_v33 }
 0x95f   :  { %v11075_v46 = vpop.xlane.xlu0 %11074 }
 0x960   :  { %12682 = vrcp.f32 %v11075_v46 }
 0x96d   :  { %v12683_v5 = vpop.eup %12682 }
 0x96e   :  { %v11077_v2 = vmul.f32 %v12683_v5, %v12679_v54 }
 0x970   :  { %11078 = vst.msk [vmem:[#allocation14 + $0x1] sm:$0x1] %vm10432_vm3, %v11077_v2 }
 0x971   :  { %12837 = shalt.err (!%p12834_p11)
}
 0x972   :  { %11088 = dma.vmem_to_hbm [thread:$0]  %s11086_s30, 32, %s13944_s8, [#allocation4]  }
 0x973   :  { %12854 = dma.done.wait [#allocation4], 32  }
 0x974   :  { %12855 = vsyncadd [#allocation4], 4294967264 }
 0x975   :  { %11092 = vsyncpa [#allocation3], 1 }
 0x976   :  { %11093 = vsyncpa [#allocation6], 1 }
 0x977   :  { %11094 = vsyncpa [#allocation9], 1 }
 0x978   :  { %11095 = vsyncpa [#allocation12], 1 }
 0x979   :  { %11096 = vsyncpa [#allocation4], 1 }

</bundles_post_ra>
